<compile_context>
chip_gen: v5e
topology: v5e:2x2
jax: 0.10.0
libtpu: 0.0.40
codegen_flags: <defaults>
</compile_context>

<pallas_src>
import jax
import jax.numpy as jnp
from jax.experimental import pallas as pl
from jax.experimental.pallas import tpu as pltpu

HIDDEN = 256
LAYER1 = 12
MAX_LENGTH = 30
MAX_OUTPUT = 30
SPAD = 32                      # sequence padded to a sublane-aligned size
EPS = 1e-5                     # torch.nn.LayerNorm default


def _layernorm(x, g, b):
    mu = jnp.mean(x, axis=-1, keepdims=True)
    var = jnp.mean(jnp.square(x - mu), axis=-1, keepdims=True)
    return (x - mu) * jax.lax.rsqrt(var + EPS) * g + b


def _branches(h, temp, w1_bf16, ln3g, ln3b):
    """combination ['0','1','2','3'] of test_sublayer; returns stacked (4m,H)."""
    b0 = h + temp                                                      # '0'
    b1 = jnp.dot((h + b0).astype(jnp.bfloat16), w1_bf16,
                 preferred_element_type=jnp.float32)                   # '1'
    b2 = jnp.exp(_layernorm(h + b1, ln3g, ln3b))                       # '2'
    b3 = jnp.maximum(h + b2, 0.0)                                      # '3'
    return jnp.concatenate([b0, b1, b2, b3], axis=0)


def _max4(p, m):
    """Elementwise max over the 4 stacked branch projections."""
    return jnp.maximum(jnp.maximum(p[0:m], p[m:2 * m]),
                       jnp.maximum(p[2 * m:3 * m], p[3 * m:4 * m]))


# ---------------------------------------------------------------------------
# single fused kernel: 11 x [layernorm(suffle(x)) ; test_sublayer ;
#                            result += total ; total += result]
# and, on the last grid step, the tail:
#   suffle[-1] ; sublayer[-1] ; w1 ; w2 ; Decoder (w(U_d(y)) ; LN ; softmax)
# ---------------------------------------------------------------------------
def fused_kernel(x_ref, y_ref, wpk_ref, w8bd_ref, vec_ref, ln_ref,
                 twpk_ref, tw62_ref, tw8bd_ref, w1w_ref, w2w_ref, decw_ref,
                 vh_ref, vv_ref, o_ref, res_sc, tot_sc):
    H = HIDDEN
    l = pl.program_id(0)

    @pl.when(l == 0)
    def _():
        res_sc[...] = x_ref[...]
        tot_sc[...] = jnp.zeros_like(tot_sc)

    res = res_sc[...]
    tot = tot_sc[...]
    m = res.shape[0]                       # folded rows = B * SPAD

    # packed per-layer vectors: [sfl.b, w0@w1, w6_1.b, w6_2.b,
    #                            ln3.g, ln3.b, ln6.g, ln6.b]
    sfl_b, temp = vec_ref[0:1, :], vec_ref[1:2, :]
    w61b, w62b = vec_ref[2:3, :], vec_ref[3:4, :]
    ln3g, ln3b = vec_ref[4:5, :], vec_ref[5:6, :]
    ln6g, ln6b = vec_ref[6:7, :], vec_ref[7:8, :]
    ln_g, ln_b = ln_ref[0:1, :], ln_ref[1:2, :]

    # packed (H, 4H) bf16 weights for this layer: [sflw | w1 | w6_1 | w6_2]
    w_sfl = wpk_ref[:, 0:H]
    w_1 = wpk_ref[:, H:2 * H]
    w_61 = wpk_ref[:, 2 * H:3 * H]
    w_62 = wpk_ref[:, 3 * H:4 * H]

    # result = layernorm(suffle_l(result))
    h = jnp.dot(res.astype(jnp.bfloat16), w_sfl,
                preferred_element_type=jnp.float32) + sfl_b
    h = _layernorm(h, ln_g, ln_b)

    # ---- test_sublayer (hidden == out) ----
    stacked = _branches(h, temp, w_1, ln3g, ln3b)                  # (4m, H)
    p = jnp.dot(stacked.astype(jnp.bfloat16), w_61,
                preferred_element_type=jnp.float32) + w61b
    p = jnp.dot(p.astype(jnp.bfloat16), w_62,
                preferred_element_type=jnp.float32) + w62b
    r = _max4(p, m)                                                # (m, H)

    r = r + h                    # result += total_out (total_out == x == h)
    t_sub = h + r                # total_out += result
    r = jnp.dot(w8bd_ref[...], r, preferred_element_type=jnp.float32) + t_sub
    r = _layernorm(r, ln6g, ln6b)

    # ---- outer residual chain ----
    res_new = r + tot
    res_sc[...] = res_new
    tot_sc[...] = tot + res_new

    # ---- fused tail on the last layer step ----
    @pl.when(l == pl.num_programs(0) - 1)
    def _():
        t_sfl = twpk_ref[:, 0:H]
        t_w1 = twpk_ref[:, H:2 * H]
        t_w61 = twpk_ref[:, 2 * H:3 * H]

        # vh rows: [suffle.b, w0@w1, w6_1.b, ln3.g, ln3.b, w1.b]
        tsfl_b, ttemp, tw61b = vh_ref[0:1, :], vh_ref[1:2, :], vh_ref[2:3, :]
        tln3g, tln3b, w1b = vh_ref[3:4, :], vh_ref[4:5, :], vh_ref[5:6, :]
        # vv rows: [w6_2.b, ln6.g, ln6.b, w2.b, dec.w.b, dec.ln.g, dec.ln.b]
        tw62b, tln6g, tln6b = vv_ref[0:1, :], vv_ref[1:2, :], vv_ref[2:3, :]
        w2b, decb = vv_ref[3:4, :], vv_ref[4:5, :]
        dlng, dlnb = vv_ref[5:6, :], vv_ref[6:7, :]

        # suffle[-1] (no shared layernorm on the last layer)
        hh = jnp.dot(res_new.astype(jnp.bfloat16), t_sfl,
                     preferred_element_type=jnp.float32) + tsfl_b

        # last test_sublayer (hidden != out)
        st = _branches(hh, ttemp, t_w1, tln3g, tln3b)              # (4m, H)
        q = jnp.dot(st.astype(jnp.bfloat16), t_w61,
                    preferred_element_type=jnp.float32) + tw61b
        q = jnp.dot(q, tw62_ref[...], preferred_element_type=jnp.float32) + tw62b
        rr = _max4(q, m)                                           # (m, V2)

        rr = jnp.dot(tw8bd_ref[...], rr,
                     preferred_element_type=jnp.float32) + rr
        rr = _layernorm(rr, tln6g, tln6b)

        # model.w1 : Linear(V2 -> H), model.w2 : Linear(H -> V2)
        rr = jnp.dot(rr, w1w_ref[...], preferred_element_type=jnp.float32) + w1b
        e_out = jnp.dot(rr, w2w_ref[...], preferred_element_type=jnp.float32) + w2b

        # Decoder: w(U_d(y)) ; layernorm(e_out + .) ; softmax
        z = jnp.dot(y_ref[...], decw_ref[...],
                    preferred_element_type=jnp.float32) + decb
        d = _layernorm(e_out + z, dlng, dlnb)
        mx = jnp.max(d, axis=-1, keepdims=True)
        e = jnp.exp(d - mx)
        o_ref[...] = e / jnp.sum(e, axis=-1, keepdims=True)


# ---------------------------------------------------------------------------
# pallas_call wrapper
# ---------------------------------------------------------------------------
def pallas_forward(emb_x, emb_y, params):
    enc, tail = params["enc"], params["tail"]
    B, S, H = emb_x.shape
    assert S == MAX_OUTPUT and H == HIDDEN   # required by the module's w8 path
    L = enc["wpack"].shape[0]
    V2 = tail["w62"].shape[1]
    BS = B * SPAD

    # zero-pad sequence 30 -> 32 and fold batch into the row (M) dimension
    pad = ((0, 0), (0, SPAD - S), (0, 0))
    x_flat = jnp.pad(emb_x, pad).reshape(BS, H)
    y_flat = jnp.pad(emb_y, pad).reshape(BS, H)

    # block-diagonal w8 (zero pad cols/rows 30:32, repeated per batch element)
    # NOTE: (BS, BS) blocks are fine for small B; tiny here (B=2 -> 64x64).
    eye_b = jnp.eye(B, dtype=jnp.float32)
    w8bd = jnp.einsum("ab,lij->laibj", eye_b,
                      enc["w8p"]).reshape(L, BS, BS)
    tw8bd = jnp.kron(eye_b, tail["w8p"])                       # (BS, BS)

    lmap3 = lambda l: (l, 0, 0)
    cmap2 = lambda l: (0, 0)

    out = pl.pallas_call(
        fused_kernel,
        out_shape=jax.ShapeDtypeStruct((BS, V2), jnp.float32),
        grid=(L,),
        in_specs=[
            pl.BlockSpec((BS, H), cmap2),              # folded U_e(x)
            pl.BlockSpec((BS, H), cmap2),              # folded U_d(y)
            pl.BlockSpec((None, H, 4 * H), lmap3),     # packed enc weights (bf16)
            pl.BlockSpec((None, BS, BS), lmap3),       # per-layer block-diag w8
            pl.BlockSpec((None, 8, H), lmap3),         # packed per-layer vecs
            pl.BlockSpec((2, H), cmap2),               # shared layernorm g,b
            pl.BlockSpec((H, 3 * H), cmap2),           # packed tail HxH (bf16)
            pl.BlockSpec((H, V2), cmap2),              # tail w6_2
            pl.BlockSpec((BS, BS), cmap2),             # tail block-diag w8
            pl.BlockSpec((V2, H), cmap2),              # model.w1
            pl.BlockSpec((H, V2), cmap2),              # model.w2
            pl.BlockSpec((H, V2), cmap2),              # decoder.w
            pl.BlockSpec((6, H), cmap2),               # packed tail H vectors
            pl.BlockSpec((7, V2), cmap2),              # packed tail V2 vectors
        ],
        out_specs=pl.BlockSpec((BS, V2), cmap2),
        scratch_shapes=[pltpu.VMEM((BS, H), jnp.float32),   # result
                        pltpu.VMEM((BS, H), jnp.float32)],  # total
        compiler_params=pltpu.CompilerParams(
            dimension_semantics=("arbitrary",)),
    )(x_flat, y_flat, enc["wpack"], w8bd, enc["vec"], params["ln"],
      tail["wpack"], tail["w62"], tw8bd, tail["w1w"], tail["w2w"],
      tail["decw"], tail["vh"], tail["vv"])

    return out.reshape(B, SPAD, V2)[:, :S, :]


# ---------------------------------------------------------------------------
# parameter init (deterministic, synthetic) and model forward
# ---------------------------------------------------------------------------
def _xavier(key, shape, fan_in, fan_out):
    std = (2.0 / (fan_in + fan_out)) ** 0.5
    return std * jax.random.normal(key, shape, dtype=jnp.float32)


def init_params(key, word_dim1, word_dim2):
    H = HIDDEN
    V2 = word_dim2
    L = LAYER1 - 1                      # 11 hidden-out encoder layers
    ks = jax.random.split(key, 6 * L + 40)
    it = iter(range(len(ks)))
    nk = lambda: ks[next(it)]
    xav = lambda shape: _xavier(nk(), shape, shape[0], shape[-1])
    small = lambda shape: 0.01 * jax.random.normal(nk(), shape, jnp.float32)

    # --- encoder stack (sublayers with out == hidden) ---
    sflw = jnp.stack([xav((H, H)) for _ in range(L)])
    w0 = jnp.stack([xav((1, H)) for _ in range(L)])
    w1 = jnp.stack([xav((H, H)) for _ in range(L)])
    w61 = jnp.stack([xav((H, H)) for _ in range(L)])
    w62 = jnp.stack([xav((H, H)) for _ in range(L)])
    w8 = jnp.stack([xav((MAX_OUTPUT, H)) for _ in range(L)])
    sflb, w61b, w62b = small((L, 1, H)), small((L, 1, H)), small((L, 1, H))
    temp = jnp.einsum("lij,ljk->lik", w0, w1)   # hoisted w0 @ w1, (L,1,H)

    ones = jnp.ones((L, 1, H), jnp.float32)
    zeros = jnp.zeros((L, 1, H), jnp.float32)
    # rows: [suffle.b, w0@w1, w6_1.b, w6_2.b, ln3.g, ln3.b, ln6.g, ln6.b]
    vec = jnp.concatenate([sflb, temp, w61b, w62b, ones, zeros, ones, zeros],
                          axis=1)
    wpack = jnp.concatenate([sflw, w1, w61, w62], axis=-1).astype(jnp.bfloat16)
    # w8[:, :30] zero-padded to (32, 32) so padded seq rows never leak
    w8p = jnp.zeros((L, SPAD, SPAD), jnp.float32)
    w8p = w8p.at[:, :MAX_OUTPUT, :MAX_OUTPUT].set(w8[:, :, :MAX_OUTPUT])
    enc = dict(wpack=wpack, vec=vec, w8p=w8p)

    # shared encoder LayerNorm (gamma, beta)
    ln_pack = jnp.concatenate([jnp.ones((1, H), jnp.float32),
                               jnp.zeros((1, H), jnp.float32)], axis=0)

    # --- tail: suffle[-1], sublayer[-1] (out = word_dim2), w1, w2, Decoder ---
    t_sflw = xav((H, H))
    t_sflb = small((1, H))
    t_w0 = xav((1, H))
    t_w1 = xav((H, H))
    t_temp = t_w0 @ t_w1
    t_w61 = xav((H, H))
    t_w61b = small((1, H))
    t_w62 = xav((H, V2))
    t_w62b = small((1, V2))
    t_w8 = xav((MAX_OUTPUT, V2))
    t_w8p = jnp.zeros((SPAD, SPAD), jnp.float32)
    t_w8p = t_w8p.at[:MAX_OUTPUT, :MAX_OUTPUT].set(t_w8[:, :MAX_OUTPUT])
    w1w = xav((V2, H))
    w1b = small((1, H))
    w2w = xav((H, V2))
    w2b = small((1, V2))
    decw = xav((H, V2))
    decb = small((1, V2))

    onesH, zerosH = jnp.ones((1, H), jnp.float32), jnp.zeros((1, H), jnp.float32)
    onesV, zerosV = jnp.ones((1, V2), jnp.float32), jnp.zeros((1, V2), jnp.float32)
    vh = jnp.concatenate([t_sflb, t_temp, t_w61b, onesH, zerosH, w1b], axis=0)
    vv = jnp.concatenate([t_w62b, onesV, zerosV, w2b, decb, onesV, zerosV],
                         axis=0)
    t_wpack = jnp.concatenate([t_sflw, t_w1, t_w61], axis=-1).astype(jnp.bfloat16)

    tail = dict(wpack=t_wpack, w62=t_w62, w8p=t_w8p, w1w=w1w, w2w=w2w,
                decw=decw, vh=vh, vv=vv)

    U_e = jax.random.uniform(nk(), (word_dim1, H), jnp.float32, -0.01, 0.01)
    U_d = 0.02 * jax.random.normal(nk(), (word_dim2, H), jnp.float32)
    return dict(U_e=U_e, U_d=U_d, enc=enc, ln=ln_pack, tail=tail)


def model_forward(params, x_tokens, y_tokens):
    emb_x = jnp.take(params["U_e"], x_tokens, axis=0)        # (B, S, H)
    emb_y = jnp.take(params["U_d"], y_tokens, axis=0)        # (B, S, H)
    return pallas_forward(emb_x, emb_y, params)               # (B, S, V2)


if __name__ == "__main__":
    B = 2
    S = MAX_LENGTH          # 30 (must equal MAX_OUTPUT per the module's w8 path)
    word_dim1 = 40          # input vocab
    word_dim2 = 32          # output vocab (>= MAX_LENGTH, as the module requires)

    key = jax.random.PRNGKey(0)
    kp, kx, ky = jax.random.split(key, 3)
    params = init_params(kp, word_dim1, word_dim2)
    x = jax.random.randint(kx, (B, S), 0, word_dim1, dtype=jnp.int32)
    y = jax.random.randint(ky, (B, S), 0, word_dim2, dtype=jnp.int32)

    fwd = jax.jit(model_forward)
    out = jax.block_until_ready(fwd(params, x, y))

    assert out.shape == (B, S, word_dim2), out.shape
    assert bool(jnp.all(jnp.isfinite(out)))
    # softmax rows sum to 1
    assert bool(jnp.allclose(jnp.sum(out, axis=-1), 1.0, atol=1e-4))
    print("KERNEL_OK")
</pallas_src>

<mosaic_0001>
module attributes {stable_mosaic.version = 11 : i64} {
  func.func @fused_kernel(%arg0: i32, %arg1: memref<64x256xf32, #tpu.memory_space<vmem>>, %arg2: memref<64x256xf32, #tpu.memory_space<vmem>>, %arg3: memref<1x256x1024xbf16, #tpu.memory_space<vmem>>, %arg4: memref<1x64x64xf32, #tpu.memory_space<vmem>>, %arg5: memref<1x8x256xf32, #tpu.memory_space<vmem>>, %arg6: memref<2x256xf32, #tpu.memory_space<vmem>>, %arg7: memref<256x768xbf16, #tpu.memory_space<vmem>>, %arg8: memref<256x32xf32, #tpu.memory_space<vmem>>, %arg9: memref<64x64xf32, #tpu.memory_space<vmem>>, %arg10: memref<32x256xf32, #tpu.memory_space<vmem>>, %arg11: memref<256x32xf32, #tpu.memory_space<vmem>>, %arg12: memref<256x32xf32, #tpu.memory_space<vmem>>, %arg13: memref<6x256xf32, #tpu.memory_space<vmem>>, %arg14: memref<7x32xf32, #tpu.memory_space<vmem>>, %arg15: memref<64x32xf32, #tpu.memory_space<vmem>>, %arg16: memref<64x256xf32, #tpu.memory_space<vmem>>, %arg17: memref<64x256xf32, #tpu.memory_space<vmem>>) attributes {dimension_semantics = [#tpu.dimension_semantics<arbitrary>], iteration_bounds = array<i64: 11>, scalar_prefetch = 0 : i64, scratch_operands = 2 : i64, tpu.core_type = #tpu.core_type<tc>, window_params = [{pipeline_mode = #tpu.pipeline_mode<synchronous>, transform_indices = @transform_0, window_bounds = array<i64: 64, 256>}, {pipeline_mode = #tpu.pipeline_mode<synchronous>, transform_indices = @transform_1, window_bounds = array<i64: 64, 256>}, {transform_indices = @transform_2, window_bounds = array<i64: 1, 256, 1024>}, {transform_indices = @transform_3, window_bounds = array<i64: 1, 64, 64>}, {transform_indices = @transform_4, window_bounds = array<i64: 1, 8, 256>}, {pipeline_mode = #tpu.pipeline_mode<synchronous>, transform_indices = @transform_5, window_bounds = array<i64: 2, 256>}, {pipeline_mode = #tpu.pipeline_mode<synchronous>, transform_indices = @transform_6, window_bounds = array<i64: 256, 768>}, {pipeline_mode = #tpu.pipeline_mode<synchronous>, transform_indices = @transform_7, window_bounds = array<i64: 256, 32>}, {pipeline_mode = #tpu.pipeline_mode<synchronous>, transform_indices = @transform_8, window_bounds = array<i64: 64, 64>}, {pipeline_mode = #tpu.pipeline_mode<synchronous>, transform_indices = @transform_9, window_bounds = array<i64: 32, 256>}, {pipeline_mode = #tpu.pipeline_mode<synchronous>, transform_indices = @transform_10, window_bounds = array<i64: 256, 32>}, {pipeline_mode = #tpu.pipeline_mode<synchronous>, transform_indices = @transform_11, window_bounds = array<i64: 256, 32>}, {pipeline_mode = #tpu.pipeline_mode<synchronous>, transform_indices = @transform_12, window_bounds = array<i64: 6, 256>}, {pipeline_mode = #tpu.pipeline_mode<synchronous>, transform_indices = @transform_13, window_bounds = array<i64: 7, 32>}, {pipeline_mode = #tpu.pipeline_mode<synchronous>, transform_indices = @transform_14, window_bounds = array<i64: 64, 32>}]} {
    %c0_i32 = arith.constant 0 : i32
    %0 = arith.cmpi eq, %arg0, %c0_i32 : i32
    %1 = arith.extui %0 : i1 to i32
    %c0_i32_0 = arith.constant 0 : i32
    %2 = arith.cmpi ne, %1, %c0_i32_0 : i32
    scf.if %2 {
      %c0_62 = arith.constant 0 : index
      %c0_63 = arith.constant 0 : index
      %140 = vector.load %arg1[%c0_62, %c0_63] : memref<64x256xf32, #tpu.memory_space<vmem>>, vector<64x256xf32>
      %c0_64 = arith.constant 0 : index
      %c0_65 = arith.constant 0 : index
      %141 = vector.load %arg16[%c0_64, %c0_65] : memref<64x256xf32, #tpu.memory_space<vmem>>, vector<64x256xf32>
      tpu.vector_store %arg16[%c0_64, %c0_65], %140 {strides = array<i32>} : memref<64x256xf32, #tpu.memory_space<vmem>>, vector<64x256xf32>,
      %cst_66 = arith.constant 0.000000e+00 : f32
      %142 = vector.broadcast %cst_66 : f32 to vector<64x256xf32>
      %c0_67 = arith.constant 0 : index
      %c0_68 = arith.constant 0 : index
      %143 = vector.load %arg17[%c0_67, %c0_68] : memref<64x256xf32, #tpu.memory_space<vmem>>, vector<64x256xf32>
      tpu.vector_store %arg17[%c0_67, %c0_68], %142 {strides = array<i32>} : memref<64x256xf32, #tpu.memory_space<vmem>>, vector<64x256xf32>,
    } else {
    }
    %c0 = arith.constant 0 : index
    %c0_1 = arith.constant 0 : index
    %3 = vector.load %arg16[%c0, %c0_1] : memref<64x256xf32, #tpu.memory_space<vmem>>, vector<64x256xf32>
    %c0_2 = arith.constant 0 : index
    %c0_3 = arith.constant 0 : index
    %4 = vector.load %arg17[%c0_2, %c0_3] : memref<64x256xf32, #tpu.memory_space<vmem>>, vector<64x256xf32>
    %c0_4 = arith.constant 0 : index
    %c0_5 = arith.constant 0 : index
    %c0_6 = arith.constant 0 : index
    %5 = vector.load %arg5[%c0_4, %c0_5, %c0_6] : memref<1x8x256xf32, #tpu.memory_space<vmem>>, vector<1x1x256xf32>
    %6 = vector.shape_cast %5 : vector<1x1x256xf32> to vector<1x256xf32>
    %c0_7 = arith.constant 0 : index
    %c1 = arith.constant 1 : index
    %c0_8 = arith.constant 0 : index
    %7 = vector.load %arg5[%c0_7, %c1, %c0_8] : memref<1x8x256xf32, #tpu.memory_space<vmem>>, vector<1x1x256xf32>
    %8 = vector.shape_cast %7 : vector<1x1x256xf32> to vector<1x256xf32>
    %c0_9 = arith.constant 0 : index
    %c2 = arith.constant 2 : index
    %c0_10 = arith.constant 0 : index
    %9 = vector.load %arg5[%c0_9, %c2, %c0_10] : memref<1x8x256xf32, #tpu.memory_space<vmem>>, vector<1x1x256xf32>
    %10 = vector.shape_cast %9 : vector<1x1x256xf32> to vector<1x256xf32>
    %c0_11 = arith.constant 0 : index
    %c3 = arith.constant 3 : index
    %c0_12 = arith.constant 0 : index
    %11 = vector.load %arg5[%c0_11, %c3, %c0_12] : memref<1x8x256xf32, #tpu.memory_space<vmem>>, vector<1x1x256xf32>
    %12 = vector.shape_cast %11 : vector<1x1x256xf32> to vector<1x256xf32>
    %c0_13 = arith.constant 0 : index
    %c4 = arith.constant 4 : index
    %c0_14 = arith.constant 0 : index
    %13 = vector.load %arg5[%c0_13, %c4, %c0_14] : memref<1x8x256xf32, #tpu.memory_space<vmem>>, vector<1x1x256xf32>
    %14 = vector.shape_cast %13 : vector<1x1x256xf32> to vector<1x256xf32>
    %c0_15 = arith.constant 0 : index
    %c5 = arith.constant 5 : index
    %c0_16 = arith.constant 0 : index
    %15 = vector.load %arg5[%c0_15, %c5, %c0_16] : memref<1x8x256xf32, #tpu.memory_space<vmem>>, vector<1x1x256xf32>
    %16 = vector.shape_cast %15 : vector<1x1x256xf32> to vector<1x256xf32>
    %c0_17 = arith.constant 0 : index
    %c6 = arith.constant 6 : index
    %c0_18 = arith.constant 0 : index
    %17 = vector.load %arg5[%c0_17, %c6, %c0_18] : memref<1x8x256xf32, #tpu.memory_space<vmem>>, vector<1x1x256xf32>
    %18 = vector.shape_cast %17 : vector<1x1x256xf32> to vector<1x256xf32>
    %c0_19 = arith.constant 0 : index
    %c7 = arith.constant 7 : index
    %c0_20 = arith.constant 0 : index
    %19 = vector.load %arg5[%c0_19, %c7, %c0_20] : memref<1x8x256xf32, #tpu.memory_space<vmem>>, vector<1x1x256xf32>
    %20 = vector.shape_cast %19 : vector<1x1x256xf32> to vector<1x256xf32>
    %c0_21 = arith.constant 0 : index
    %c0_22 = arith.constant 0 : index
    %21 = vector.load %arg6[%c0_21, %c0_22] : memref<2x256xf32, #tpu.memory_space<vmem>>, vector<1x256xf32>
    %c1_23 = arith.constant 1 : index
    %c0_24 = arith.constant 0 : index
    %22 = vector.load %arg6[%c1_23, %c0_24] : memref<2x256xf32, #tpu.memory_space<vmem>>, vector<1x256xf32>
    %c0_25 = arith.constant 0 : index
    %c0_26 = arith.constant 0 : index
    %c0_27 = arith.constant 0 : index
    %23 = vector.load %arg3[%c0_25, %c0_26, %c0_27] : memref<1x256x1024xbf16, #tpu.memory_space<vmem>>, vector<1x256x256xbf16>
    %24 = vector.shape_cast %23 : vector<1x256x256xbf16> to vector<256x256xbf16>
    %c0_28 = arith.constant 0 : index
    %c0_29 = arith.constant 0 : index
    %c256 = arith.constant 256 : index
    %25 = vector.load %arg3[%c0_28, %c0_29, %c256] : memref<1x256x1024xbf16, #tpu.memory_space<vmem>>, vector<1x256x256xbf16>
    %26 = vector.shape_cast %25 : vector<1x256x256xbf16> to vector<256x256xbf16>
    %c0_30 = arith.constant 0 : index
    %c0_31 = arith.constant 0 : index
    %c512 = arith.constant 512 : index
    %27 = vector.load %arg3[%c0_30, %c0_31, %c512] : memref<1x256x1024xbf16, #tpu.memory_space<vmem>>, vector<1x256x256xbf16>
    %28 = vector.shape_cast %27 : vector<1x256x256xbf16> to vector<256x256xbf16>
    %c0_32 = arith.constant 0 : index
    %c0_33 = arith.constant 0 : index
    %c768 = arith.constant 768 : index
    %29 = vector.load %arg3[%c0_32, %c0_33, %c768] : memref<1x256x1024xbf16, #tpu.memory_space<vmem>>, vector<1x256x256xbf16>
    %30 = vector.shape_cast %29 : vector<1x256x256xbf16> to vector<256x256xbf16>
    %31 = arith.truncf %3 : vector<64x256xf32> to vector<64x256xbf16>
    %cst = arith.constant dense<0.000000e+00> : vector<64x256xf32>
    %32 = tpu.matmul %31, %24, %cst {dimension_numbers = #tpu.dot_dimension_numbers<[1], [0], [0], [1], [0, 0, 1, 1], [], []>} : vector<64x256xbf16>, vector<256x256xbf16>, vector<64x256xf32> -> vector<64x256xf32>
    %33 = vector.broadcast %6 : vector<1x256xf32> to vector<64x256xf32>
    %34 = arith.addf %32, %33 : vector<64x256xf32>
    %cst_34 = arith.constant dense<0.000000e+00> : vector<64xf32>
    %35 = vector.multi_reduction <add>, %34, %cst_34 [1] : vector<64x256xf32> to vector<64xf32>
    %36 = vector.shape_cast %35 : vector<64xf32> to vector<64x1xf32>
    %cst_35 = arith.constant 2.560000e+02 : f32
    %37 = vector.broadcast %cst_35 : f32 to vector<64x1xf32>
    %38 = arith.divf %36, %37 : vector<64x1xf32>
    %39 = vector.broadcast %38 : vector<64x1xf32> to vector<64x256xf32>
    %40 = arith.subf %34, %39 : vector<64x256xf32>
    %41 = arith.mulf %40, %40 : vector<64x256xf32>
    %cst_36 = arith.constant dense<0.000000e+00> : vector<64xf32>
    %42 = vector.multi_reduction <add>, %41, %cst_36 [1] : vector<64x256xf32> to vector<64xf32>
    %43 = vector.shape_cast %42 : vector<64xf32> to vector<64x1xf32>
    %cst_37 = arith.constant 2.560000e+02 : f32
    %44 = vector.broadcast %cst_37 : f32 to vector<64x1xf32>
    %45 = arith.divf %43, %44 : vector<64x1xf32>
    %46 = vector.broadcast %38 : vector<64x1xf32> to vector<64x256xf32>
    %47 = arith.subf %34, %46 : vector<64x256xf32>
    %cst_38 = arith.constant 9.99999974E-6 : f32
    %48 = vector.broadcast %cst_38 : f32 to vector<64x1xf32>
    %49 = arith.addf %45, %48 : vector<64x1xf32>
    %50 = math.rsqrt %49 : vector<64x1xf32>
    %51 = vector.broadcast %50 : vector<64x1xf32> to vector<64x256xf32>
    %52 = arith.mulf %47, %51 : vector<64x256xf32>
    %53 = vector.broadcast %21 : vector<1x256xf32> to vector<64x256xf32>
    %54 = arith.mulf %52, %53 : vector<64x256xf32>
    %55 = vector.broadcast %22 : vector<1x256xf32> to vector<64x256xf32>
    %56 = arith.addf %54, %55 : vector<64x256xf32>
    %57 = vector.broadcast %8 : vector<1x256xf32> to vector<64x256xf32>
    %58 = arith.addf %56, %57 : vector<64x256xf32>
    %59 = arith.addf %56, %58 : vector<64x256xf32>
    %60 = arith.truncf %59 : vector<64x256xf32> to vector<64x256xbf16>
    %cst_39 = arith.constant dense<0.000000e+00> : vector<64x256xf32>
    %61 = tpu.matmul %60, %26, %cst_39 {dimension_numbers = #tpu.dot_dimension_numbers<[1], [0], [0], [1], [0, 0, 1, 1], [], []>} : vector<64x256xbf16>, vector<256x256xbf16>, vector<64x256xf32> -> vector<64x256xf32>
    %62 = arith.addf %56, %61 : vector<64x256xf32>
    %cst_40 = arith.constant dense<0.000000e+00> : vector<64xf32>
    %63 = vector.multi_reduction <add>, %62, %cst_40 [1] : vector<64x256xf32> to vector<64xf32>
    %64 = vector.shape_cast %63 : vector<64xf32> to vector<64x1xf32>
    %cst_41 = arith.constant 2.560000e+02 : f32
    %65 = vector.broadcast %cst_41 : f32 to vector<64x1xf32>
    %66 = arith.divf %64, %65 : vector<64x1xf32>
    %67 = vector.broadcast %66 : vector<64x1xf32> to vector<64x256xf32>
    %68 = arith.subf %62, %67 : vector<64x256xf32>
    %69 = arith.mulf %68, %68 : vector<64x256xf32>
    %cst_42 = arith.constant dense<0.000000e+00> : vector<64xf32>
    %70 = vector.multi_reduction <add>, %69, %cst_42 [1] : vector<64x256xf32> to vector<64xf32>
    %71 = vector.shape_cast %70 : vector<64xf32> to vector<64x1xf32>
    %cst_43 = arith.constant 2.560000e+02 : f32
    %72 = vector.broadcast %cst_43 : f32 to vector<64x1xf32>
    %73 = arith.divf %71, %72 : vector<64x1xf32>
    %74 = vector.broadcast %66 : vector<64x1xf32> to vector<64x256xf32>
    %75 = arith.subf %62, %74 : vector<64x256xf32>
    %cst_44 = arith.constant 9.99999974E-6 : f32
    %76 = vector.broadcast %cst_44 : f32 to vector<64x1xf32>
    %77 = arith.addf %73, %76 : vector<64x1xf32>
    %78 = math.rsqrt %77 : vector<64x1xf32>
    %79 = vector.broadcast %78 : vector<64x1xf32> to vector<64x256xf32>
    %80 = arith.mulf %75, %79 : vector<64x256xf32>
    %81 = vector.broadcast %14 : vector<1x256xf32> to vector<64x256xf32>
    %82 = arith.mulf %80, %81 : vector<64x256xf32>
    %83 = vector.broadcast %16 : vector<1x256xf32> to vector<64x256xf32>
    %84 = arith.addf %82, %83 : vector<64x256xf32>
    %85 = math.exp %84 : vector<64x256xf32>
    %86 = arith.addf %56, %85 : vector<64x256xf32>
    %cst_45 = arith.constant 0.000000e+00 : f32
    %87 = vector.broadcast %cst_45 : f32 to vector<64x256xf32>
    %88 = arith.maximumf %86, %87 : vector<64x256xf32>
    %89 = tpu.concatenate %58, %61, %85, %88 in 0 : vector<64x256xf32>, vector<64x256xf32>, vector<64x256xf32>, vector<64x256xf32> -> vector<256x256xf32>
    %90 = arith.truncf %89 : vector<256x256xf32> to vector<256x256xbf16>
    %cst_46 = arith.constant dense<0.000000e+00> : vector<256x256xf32>
    %91 = tpu.matmul %90, %28, %cst_46 {dimension_numbers = #tpu.dot_dimension_numbers<[1], [0], [0], [1], [0, 0, 1, 1], [], []>} : vector<256x256xbf16>, vector<256x256xbf16>, vector<256x256xf32> -> vector<256x256xf32>
    %92 = vector.broadcast %10 : vector<1x256xf32> to vector<256x256xf32>
    %93 = arith.addf %91, %92 : vector<256x256xf32>
    %94 = arith.truncf %93 : vector<256x256xf32> to vector<256x256xbf16>
    %cst_47 = arith.constant dense<0.000000e+00> : vector<256x256xf32>
    %95 = tpu.matmul %94, %30, %cst_47 {dimension_numbers = #tpu.dot_dimension_numbers<[1], [0], [0], [1], [0, 0, 1, 1], [], []>} : vector<256x256xbf16>, vector<256x256xbf16>, vector<256x256xf32> -> vector<256x256xf32>
    %96 = vector.broadcast %12 : vector<1x256xf32> to vector<256x256xf32>
    %97 = arith.addf %95, %96 : vector<256x256xf32>
    %98 = vector.extract_strided_slice %97 {offsets = [0, 0], sizes = [64, 256], strides = [1, 1]} : vector<256x256xf32> to vector<64x256xf32>
    %99 = vector.extract_strided_slice %97 {offsets = [64, 0], sizes = [64, 256], strides = [1, 1]} : vector<256x256xf32> to vector<64x256xf32>
    %100 = arith.maximumf %98, %99 : vector<64x256xf32>
    %101 = vector.extract_strided_slice %97 {offsets = [128, 0], sizes = [64, 256], strides = [1, 1]} : vector<256x256xf32> to vector<64x256xf32>
    %102 = vector.extract_strided_slice %97 {offsets = [192, 0], sizes = [64, 256], strides = [1, 1]} : vector<256x256xf32> to vector<64x256xf32>
    %103 = arith.maximumf %101, %102 : vector<64x256xf32>
    %104 = arith.maximumf %100, %103 : vector<64x256xf32>
    %105 = arith.addf %104, %56 : vector<64x256xf32>
    %106 = arith.addf %56, %105 : vector<64x256xf32>
    %c0_48 = arith.constant 0 : index
    %c0_49 = arith.constant 0 : index
    %c0_50 = arith.constant 0 : index
    %107 = vector.load %arg4[%c0_48, %c0_49, %c0_50] : memref<1x64x64xf32, #tpu.memory_space<vmem>>, vector<1x64x64xf32>
    %108 = vector.shape_cast %107 : vector<1x64x64xf32> to vector<64x64xf32>
    %cst_51 = arith.constant dense<0.000000e+00> : vector<64x256xf32>
    %109 = tpu.matmul %108, %105, %cst_51 {dimension_numbers = #tpu.dot_dimension_numbers<[1], [0], [0], [1], [0, 0, 1, 1], [], []>} : vector<64x64xf32>, vector<64x256xf32>, vector<64x256xf32> -> vector<64x256xf32>
    %110 = arith.addf %109, %106 : vector<64x256xf32>
    %cst_52 = arith.constant dense<0.000000e+00> : vector<64xf32>
    %111 = vector.multi_reduction <add>, %110, %cst_52 [1] : vector<64x256xf32> to vector<64xf32>
    %112 = vector.shape_cast %111 : vector<64xf32> to vector<64x1xf32>
    %cst_53 = arith.constant 2.560000e+02 : f32
    %113 = vector.broadcast %cst_53 : f32 to vector<64x1xf32>
    %114 = arith.divf %112, %113 : vector<64x1xf32>
    %115 = vector.broadcast %114 : vector<64x1xf32> to vector<64x256xf32>
    %116 = arith.subf %110, %115 : vector<64x256xf32>
    %117 = arith.mulf %116, %116 : vector<64x256xf32>
    %cst_54 = arith.constant dense<0.000000e+00> : vector<64xf32>
    %118 = vector.multi_reduction <add>, %117, %cst_54 [1] : vector<64x256xf32> to vector<64xf32>
    %119 = vector.shape_cast %118 : vector<64xf32> to vector<64x1xf32>
    %cst_55 = arith.constant 2.560000e+02 : f32
    %120 = vector.broadcast %cst_55 : f32 to vector<64x1xf32>
    %121 = arith.divf %119, %120 : vector<64x1xf32>
    %122 = vector.broadcast %114 : vector<64x1xf32> to vector<64x256xf32>
    %123 = arith.subf %110, %122 : vector<64x256xf32>
    %cst_56 = arith.constant 9.99999974E-6 : f32
    %124 = vector.broadcast %cst_56 : f32 to vector<64x1xf32>
    %125 = arith.addf %121, %124 : vector<64x1xf32>
    %126 = math.rsqrt %125 : vector<64x1xf32>
    %127 = vector.broadcast %126 : vector<64x1xf32> to vector<64x256xf32>
    %128 = arith.mulf %123, %127 : vector<64x256xf32>
    %129 = vector.broadcast %18 : vector<1x256xf32> to vector<64x256xf32>
    %130 = arith.mulf %128, %129 : vector<64x256xf32>
    %131 = vector.broadcast %20 : vector<1x256xf32> to vector<64x256xf32>
    %132 = arith.addf %130, %131 : vector<64x256xf32>
    %133 = arith.addf %132, %4 : vector<64x256xf32>
    %c0_57 = arith.constant 0 : index
    %c0_58 = arith.constant 0 : index
    %134 = vector.load %arg16[%c0_57, %c0_58] : memref<64x256xf32, #tpu.memory_space<vmem>>, vector<64x256xf32>
    tpu.vector_store %arg16[%c0_57, %c0_58], %133 {strides = array<i32>} : memref<64x256xf32, #tpu.memory_space<vmem>>, vector<64x256xf32>,
    %135 = arith.addf %4, %133 : vector<64x256xf32>
    %c0_59 = arith.constant 0 : index
    %c0_60 = arith.constant 0 : index
    %136 = vector.load %arg17[%c0_59, %c0_60] : memref<64x256xf32, #tpu.memory_space<vmem>>, vector<64x256xf32>
    tpu.vector_store %arg17[%c0_59, %c0_60], %135 {strides = array<i32>} : memref<64x256xf32, #tpu.memory_space<vmem>>, vector<64x256xf32>,
    %c10_i32 = arith.constant 10 : i32
    %137 = arith.cmpi eq, %arg0, %c10_i32 : i32
    %138 = arith.extui %137 : i1 to i32
    %c0_i32_61 = arith.constant 0 : i32
    %139 = arith.cmpi ne, %138, %c0_i32_61 : i32
    scf.if %139 {
      %c0_62 = arith.constant 0 : index
      %c0_63 = arith.constant 0 : index
      %140 = vector.load %arg7[%c0_62, %c0_63] : memref<256x768xbf16, #tpu.memory_space<vmem>>, vector<256x256xbf16>
      %c0_64 = arith.constant 0 : index
      %c256_65 = arith.constant 256 : index
      %141 = vector.load %arg7[%c0_64, %c256_65] : memref<256x768xbf16, #tpu.memory_space<vmem>>, vector<256x256xbf16>
      %c0_66 = arith.constant 0 : index
      %c512_67 = arith.constant 512 : index
      %142 = vector.load %arg7[%c0_66, %c512_67] : memref<256x768xbf16, #tpu.memory_space<vmem>>, vector<256x256xbf16>
      %c0_68 = arith.constant 0 : index
      %c0_69 = arith.constant 0 : index
      %143 = vector.load %arg13[%c0_68, %c0_69] : memref<6x256xf32, #tpu.memory_space<vmem>>, vector<1x256xf32>
      %c1_70 = arith.constant 1 : index
      %c0_71 = arith.constant 0 : index
      %144 = vector.load %arg13[%c1_70, %c0_71] : memref<6x256xf32, #tpu.memory_space<vmem>>, vector<1x256xf32>
      %c2_72 = arith.constant 2 : index
      %c0_73 = arith.constant 0 : index
      %145 = vector.load %arg13[%c2_72, %c0_73] : memref<6x256xf32, #tpu.memory_space<vmem>>, vector<1x256xf32>
      %c3_74 = arith.constant 3 : index
      %c0_75 = arith.constant 0 : index
      %146 = vector.load %arg13[%c3_74, %c0_75] : memref<6x256xf32, #tpu.memory_space<vmem>>, vector<1x256xf32>
      %c4_76 = arith.constant 4 : index
      %c0_77 = arith.constant 0 : index
      %147 = vector.load %arg13[%c4_76, %c0_77] : memref<6x256xf32, #tpu.memory_space<vmem>>, vector<1x256xf32>
      %c5_78 = arith.constant 5 : index
      %c0_79 = arith.constant 0 : index
      %148 = vector.load %arg13[%c5_78, %c0_79] : memref<6x256xf32, #tpu.memory_space<vmem>>, vector<1x256xf32>
      %c0_80 = arith.constant 0 : index
      %c0_81 = arith.constant 0 : index
      %149 = vector.load %arg14[%c0_80, %c0_81] : memref<7x32xf32, #tpu.memory_space<vmem>>, vector<1x32xf32>
      %c1_82 = arith.constant 1 : index
      %c0_83 = arith.constant 0 : index
      %150 = vector.load %arg14[%c1_82, %c0_83] : memref<7x32xf32, #tpu.memory_space<vmem>>, vector<1x32xf32>
      %c2_84 = arith.constant 2 : index
      %c0_85 = arith.constant 0 : index
      %151 = vector.load %arg14[%c2_84, %c0_85] : memref<7x32xf32, #tpu.memory_space<vmem>>, vector<1x32xf32>
      %c3_86 = arith.constant 3 : index
      %c0_87 = arith.constant 0 : index
      %152 = vector.load %arg14[%c3_86, %c0_87] : memref<7x32xf32, #tpu.memory_space<vmem>>, vector<1x32xf32>
      %c4_88 = arith.constant 4 : index
      %c0_89 = arith.constant 0 : index
      %153 = vector.load %arg14[%c4_88, %c0_89] : memref<7x32xf32, #tpu.memory_space<vmem>>, vector<1x32xf32>
      %c5_90 = arith.constant 5 : index
      %c0_91 = arith.constant 0 : index
      %154 = vector.load %arg14[%c5_90, %c0_91] : memref<7x32xf32, #tpu.memory_space<vmem>>, vector<1x32xf32>
      %c6_92 = arith.constant 6 : index
      %c0_93 = arith.constant 0 : index
      %155 = vector.load %arg14[%c6_92, %c0_93] : memref<7x32xf32, #tpu.memory_space<vmem>>, vector<1x32xf32>
      %156 = arith.truncf %133 : vector<64x256xf32> to vector<64x256xbf16>
      %cst_94 = arith.constant dense<0.000000e+00> : vector<64x256xf32>
      %157 = tpu.matmul %156, %140, %cst_94 {dimension_numbers = #tpu.dot_dimension_numbers<[1], [0], [0], [1], [0, 0, 1, 1], [], []>} : vector<64x256xbf16>, vector<256x256xbf16>, vector<64x256xf32> -> vector<64x256xf32>
      %158 = vector.broadcast %143 : vector<1x256xf32> to vector<64x256xf32>
      %159 = arith.addf %157, %158 : vector<64x256xf32>
      %160 = vector.broadcast %144 : vector<1x256xf32> to vector<64x256xf32>
      %161 = arith.addf %159, %160 : vector<64x256xf32>
      %162 = arith.addf %159, %161 : vector<64x256xf32>
      %163 = arith.truncf %162 : vector<64x256xf32> to vector<64x256xbf16>
      %cst_95 = arith.constant dense<0.000000e+00> : vector<64x256xf32>
      %164 = tpu.matmul %163, %141, %cst_95 {dimension_numbers = #tpu.dot_dimension_numbers<[1], [0], [0], [1], [0, 0, 1, 1], [], []>} : vector<64x256xbf16>, vector<256x256xbf16>, vector<64x256xf32> -> vector<64x256xf32>
      %165 = arith.addf %159, %164 : vector<64x256xf32>
      %cst_96 = arith.constant dense<0.000000e+00> : vector<64xf32>
      %166 = vector.multi_reduction <add>, %165, %cst_96 [1] : vector<64x256xf32> to vector<64xf32>
      %167 = vector.shape_cast %166 : vector<64xf32> to vector<64x1xf32>
      %cst_97 = arith.constant 2.560000e+02 : f32
      %168 = vector.broadcast %cst_97 : f32 to vector<64x1xf32>
      %169 = arith.divf %167, %168 : vector<64x1xf32>
      %170 = vector.broadcast %169 : vector<64x1xf32> to vector<64x256xf32>
      %171 = arith.subf %165, %170 : vector<64x256xf32>
      %172 = arith.mulf %171, %171 : vector<64x256xf32>
      %cst_98 = arith.constant dense<0.000000e+00> : vector<64xf32>
      %173 = vector.multi_reduction <add>, %172, %cst_98 [1] : vector<64x256xf32> to vector<64xf32>
      %174 = vector.shape_cast %173 : vector<64xf32> to vector<64x1xf32>
      %cst_99 = arith.constant 2.560000e+02 : f32
      %175 = vector.broadcast %cst_99 : f32 to vector<64x1xf32>
      %176 = arith.divf %174, %175 : vector<64x1xf32>
      %177 = vector.broadcast %169 : vector<64x1xf32> to vector<64x256xf32>
      %178 = arith.subf %165, %177 : vector<64x256xf32>
      %cst_100 = arith.constant 9.99999974E-6 : f32
      %179 = vector.broadcast %cst_100 : f32 to vector<64x1xf32>
      %180 = arith.addf %176, %179 : vector<64x1xf32>
      %181 = math.rsqrt %180 : vector<64x1xf32>
      %182 = vector.broadcast %181 : vector<64x1xf32> to vector<64x256xf32>
      %183 = arith.mulf %178, %182 : vector<64x256xf32>
      %184 = vector.broadcast %146 : vector<1x256xf32> to vector<64x256xf32>
      %185 = arith.mulf %183, %184 : vector<64x256xf32>
      %186 = vector.broadcast %147 : vector<1x256xf32> to vector<64x256xf32>
      %187 = arith.addf %185, %186 : vector<64x256xf32>
      %188 = math.exp %187 : vector<64x256xf32>
      %189 = arith.addf %159, %188 : vector<64x256xf32>
      %cst_101 = arith.constant 0.000000e+00 : f32
      %190 = vector.broadcast %cst_101 : f32 to vector<64x256xf32>
      %191 = arith.maximumf %189, %190 : vector<64x256xf32>
      %192 = tpu.concatenate %161, %164, %188, %191 in 0 : vector<64x256xf32>, vector<64x256xf32>, vector<64x256xf32>, vector<64x256xf32> -> vector<256x256xf32>
      %193 = arith.truncf %192 : vector<256x256xf32> to vector<256x256xbf16>
      %cst_102 = arith.constant dense<0.000000e+00> : vector<256x256xf32>
      %194 = tpu.matmul %193, %142, %cst_102 {dimension_numbers = #tpu.dot_dimension_numbers<[1], [0], [0], [1], [0, 0, 1, 1], [], []>} : vector<256x256xbf16>, vector<256x256xbf16>, vector<256x256xf32> -> vector<256x256xf32>
      %195 = vector.broadcast %145 : vector<1x256xf32> to vector<256x256xf32>
      %196 = arith.addf %194, %195 : vector<256x256xf32>
      %c0_103 = arith.constant 0 : index
      %c0_104 = arith.constant 0 : index
      %197 = vector.load %arg8[%c0_103, %c0_104] : memref<256x32xf32, #tpu.memory_space<vmem>>, vector<256x32xf32>
      %cst_105 = arith.constant dense<0.000000e+00> : vector<256x32xf32>
      %198 = tpu.matmul %196, %197, %cst_105 {dimension_numbers = #tpu.dot_dimension_numbers<[1], [0], [0], [1], [0, 0, 1, 1], [], []>} : vector<256x256xf32>, vector<256x32xf32>, vector<256x32xf32> -> vector<256x32xf32>
      %199 = vector.broadcast %149 : vector<1x32xf32> to vector<256x32xf32>
      %200 = arith.addf %198, %199 : vector<256x32xf32>
      %201 = vector.extract_strided_slice %200 {offsets = [0, 0], sizes = [64, 32], strides = [1, 1]} : vector<256x32xf32> to vector<64x32xf32>
      %202 = vector.extract_strided_slice %200 {offsets = [64, 0], sizes = [64, 32], strides = [1, 1]} : vector<256x32xf32> to vector<64x32xf32>
      %203 = arith.maximumf %201, %202 : vector<64x32xf32>
      %204 = vector.extract_strided_slice %200 {offsets = [128, 0], sizes = [64, 32], strides = [1, 1]} : vector<256x32xf32> to vector<64x32xf32>
      %205 = vector.extract_strided_slice %200 {offsets = [192, 0], sizes = [64, 32], strides = [1, 1]} : vector<256x32xf32> to vector<64x32xf32>
      %206 = arith.maximumf %204, %205 : vector<64x32xf32>
      %207 = arith.maximumf %203, %206 : vector<64x32xf32>
      %c0_106 = arith.constant 0 : index
      %c0_107 = arith.constant 0 : index
      %208 = vector.load %arg9[%c0_106, %c0_107] : memref<64x64xf32, #tpu.memory_space<vmem>>, vector<64x64xf32>
      %cst_108 = arith.constant dense<0.000000e+00> : vector<64x32xf32>
      %209 = tpu.matmul %208, %207, %cst_108 {dimension_numbers = #tpu.dot_dimension_numbers<[1], [0], [0], [1], [0, 0, 1, 1], [], []>} : vector<64x64xf32>, vector<64x32xf32>, vector<64x32xf32> -> vector<64x32xf32>
      %210 = arith.addf %209, %207 : vector<64x32xf32>
      %cst_109 = arith.constant dense<0.000000e+00> : vector<64xf32>
      %211 = vector.multi_reduction <add>, %210, %cst_109 [1] : vector<64x32xf32> to vector<64xf32>
      %212 = vector.shape_cast %211 : vector<64xf32> to vector<64x1xf32>
      %cst_110 = arith.constant 3.200000e+01 : f32
      %213 = vector.broadcast %cst_110 : f32 to vector<64x1xf32>
      %214 = arith.divf %212, %213 : vector<64x1xf32>
      %215 = vector.broadcast %214 : vector<64x1xf32> to vector<64x32xf32>
      %216 = arith.subf %210, %215 : vector<64x32xf32>
      %217 = arith.mulf %216, %216 : vector<64x32xf32>
      %cst_111 = arith.constant dense<0.000000e+00> : vector<64xf32>
      %218 = vector.multi_reduction <add>, %217, %cst_111 [1] : vector<64x32xf32> to vector<64xf32>
      %219 = vector.shape_cast %218 : vector<64xf32> to vector<64x1xf32>
      %cst_112 = arith.constant 3.200000e+01 : f32
      %220 = vector.broadcast %cst_112 : f32 to vector<64x1xf32>
      %221 = arith.divf %219, %220 : vector<64x1xf32>
      %222 = vector.broadcast %214 : vector<64x1xf32> to vector<64x32xf32>
      %223 = arith.subf %210, %222 : vector<64x32xf32>
      %cst_113 = arith.constant 9.99999974E-6 : f32
      %224 = vector.broadcast %cst_113 : f32 to vector<64x1xf32>
      %225 = arith.addf %221, %224 : vector<64x1xf32>
      %226 = math.rsqrt %225 : vector<64x1xf32>
      %227 = vector.broadcast %226 : vector<64x1xf32> to vector<64x32xf32>
      %228 = arith.mulf %223, %227 : vector<64x32xf32>
      %229 = vector.broadcast %150 : vector<1x32xf32> to vector<64x32xf32>
      %230 = arith.mulf %228, %229 : vector<64x32xf32>
      %231 = vector.broadcast %151 : vector<1x32xf32> to vector<64x32xf32>
      %232 = arith.addf %230, %231 : vector<64x32xf32>
      %c0_114 = arith.constant 0 : index
      %c0_115 = arith.constant 0 : index
      %233 = vector.load %arg10[%c0_114, %c0_115] : memref<32x256xf32, #tpu.memory_space<vmem>>, vector<32x256xf32>
      %cst_116 = arith.constant dense<0.000000e+00> : vector<64x256xf32>
      %234 = tpu.matmul %232, %233, %cst_116 {dimension_numbers = #tpu.dot_dimension_numbers<[1], [0], [0], [1], [0, 0, 1, 1], [], []>} : vector<64x32xf32>, vector<32x256xf32>, vector<64x256xf32> -> vector<64x256xf32>
      %235 = vector.broadcast %148 : vector<1x256xf32> to vector<64x256xf32>
      %236 = arith.addf %234, %235 : vector<64x256xf32>
      %c0_117 = arith.constant 0 : index
      %c0_118 = arith.constant 0 : index
      %237 = vector.load %arg11[%c0_117, %c0_118] : memref<256x32xf32, #tpu.memory_space<vmem>>, vector<256x32xf32>
      %cst_119 = arith.constant dense<0.000000e+00> : vector<64x32xf32>
      %238 = tpu.matmul %236, %237, %cst_119 {dimension_numbers = #tpu.dot_dimension_numbers<[1], [0], [0], [1], [0, 0, 1, 1], [], []>} : vector<64x256xf32>, vector<256x32xf32>, vector<64x32xf32> -> vector<64x32xf32>
      %239 = vector.broadcast %152 : vector<1x32xf32> to vector<64x32xf32>
      %240 = arith.addf %238, %239 : vector<64x32xf32>
      %c0_120 = arith.constant 0 : index
      %c0_121 = arith.constant 0 : index
      %241 = vector.load %arg2[%c0_120, %c0_121] : memref<64x256xf32, #tpu.memory_space<vmem>>, vector<64x256xf32>
      %c0_122 = arith.constant 0 : index
      %c0_123 = arith.constant 0 : index
      %242 = vector.load %arg12[%c0_122, %c0_123] : memref<256x32xf32, #tpu.memory_space<vmem>>, vector<256x32xf32>
      %cst_124 = arith.constant dense<0.000000e+00> : vector<64x32xf32>
      %243 = tpu.matmul %241, %242, %cst_124 {dimension_numbers = #tpu.dot_dimension_numbers<[1], [0], [0], [1], [0, 0, 1, 1], [], []>} : vector<64x256xf32>, vector<256x32xf32>, vector<64x32xf32> -> vector<64x32xf32>
      %244 = vector.broadcast %153 : vector<1x32xf32> to vector<64x32xf32>
      %245 = arith.addf %243, %244 : vector<64x32xf32>
      %246 = arith.addf %240, %245 : vector<64x32xf32>
      %cst_125 = arith.constant dense<0.000000e+00> : vector<64xf32>
      %247 = vector.multi_reduction <add>, %246, %cst_125 [1] : vector<64x32xf32> to vector<64xf32>
      %248 = vector.shape_cast %247 : vector<64xf32> to vector<64x1xf32>
      %cst_126 = arith.constant 3.200000e+01 : f32
      %249 = vector.broadcast %cst_126 : f32 to vector<64x1xf32>
      %250 = arith.divf %248, %249 : vector<64x1xf32>
      %251 = vector.broadcast %250 : vector<64x1xf32> to vector<64x32xf32>
      %252 = arith.subf %246, %251 : vector<64x32xf32>
      %253 = arith.mulf %252, %252 : vector<64x32xf32>
      %cst_127 = arith.constant dense<0.000000e+00> : vector<64xf32>
      %254 = vector.multi_reduction <add>, %253, %cst_127 [1] : vector<64x32xf32> to vector<64xf32>
      %255 = vector.shape_cast %254 : vector<64xf32> to vector<64x1xf32>
      %cst_128 = arith.constant 3.200000e+01 : f32
      %256 = vector.broadcast %cst_128 : f32 to vector<64x1xf32>
      %257 = arith.divf %255, %256 : vector<64x1xf32>
      %258 = vector.broadcast %250 : vector<64x1xf32> to vector<64x32xf32>
      %259 = arith.subf %246, %258 : vector<64x32xf32>
      %cst_129 = arith.constant 9.99999974E-6 : f32
      %260 = vector.broadcast %cst_129 : f32 to vector<64x1xf32>
      %261 = arith.addf %257, %260 : vector<64x1xf32>
      %262 = math.rsqrt %261 : vector<64x1xf32>
      %263 = vector.broadcast %262 : vector<64x1xf32> to vector<64x32xf32>
      %264 = arith.mulf %259, %263 : vector<64x32xf32>
      %265 = vector.broadcast %154 : vector<1x32xf32> to vector<64x32xf32>
      %266 = arith.mulf %264, %265 : vector<64x32xf32>
      %267 = vector.broadcast %155 : vector<1x32xf32> to vector<64x32xf32>
      %268 = arith.addf %266, %267 : vector<64x32xf32>
      %cst_130 = arith.constant dense<0xFF800000> : vector<64xf32>
      %269 = vector.multi_reduction <maximumf>, %268, %cst_130 [1] : vector<64x32xf32> to vector<64xf32>
      %270 = vector.shape_cast %269 : vector<64xf32> to vector<64x1xf32>
      %271 = vector.broadcast %270 : vector<64x1xf32> to vector<64x32xf32>
      %272 = arith.subf %268, %271 : vector<64x32xf32>
      %273 = math.exp %272 : vector<64x32xf32>
      %cst_131 = arith.constant dense<0.000000e+00> : vector<64xf32>
      %274 = vector.multi_reduction <add>, %273, %cst_131 [1] : vector<64x32xf32> to vector<64xf32>
      %275 = vector.shape_cast %274 : vector<64xf32> to vector<64x1xf32>
      %276 = vector.broadcast %275 : vector<64x1xf32> to vector<64x32xf32>
      %277 = arith.divf %273, %276 : vector<64x32xf32>
      %c0_132 = arith.constant 0 : index
      %c0_133 = arith.constant 0 : index
      %278 = vector.load %arg15[%c0_132, %c0_133] : memref<64x32xf32, #tpu.memory_space<vmem>>, vector<64x32xf32>
      tpu.vector_store %arg15[%c0_132, %c0_133], %277 {strides = array<i32>} : memref<64x32xf32, #tpu.memory_space<vmem>>, vector<64x32xf32>,
    } else {
    }
    return
  }
  func.func @transform_0(%arg0: i32) -> (i32, i32) {
    %c0_i32 = arith.constant 0 : i32
    %c0_i32_0 = arith.constant 0 : i32
    %c0_i32_1 = arith.constant 0 : i32
    return %c0_i32, %c0_i32_0 : i32, i32
  }
  func.func @transform_1(%arg0: i32) -> (i32, i32) {
    %c0_i32 = arith.constant 0 : i32
    %c0_i32_0 = arith.constant 0 : i32
    %c0_i32_1 = arith.constant 0 : i32
    return %c0_i32, %c0_i32_0 : i32, i32
  }
  func.func @transform_2(%arg0: i32) -> (i32, i32, i32) {
    %c0_i32 = arith.constant 0 : i32
    %c0_i32_0 = arith.constant 0 : i32
    %c0_i32_1 = arith.constant 0 : i32
    return %arg0, %c0_i32, %c0_i32_0 : i32, i32, i32
  }
  func.func @transform_3(%arg0: i32) -> (i32, i32, i32) {
    %c0_i32 = arith.constant 0 : i32
    %c0_i32_0 = arith.constant 0 : i32
    %c0_i32_1 = arith.constant 0 : i32
    return %arg0, %c0_i32, %c0_i32_0 : i32, i32, i32
  }
  func.func @transform_4(%arg0: i32) -> (i32, i32, i32) {
    %c0_i32 = arith.constant 0 : i32
    %c0_i32_0 = arith.constant 0 : i32
    %c0_i32_1 = arith.constant 0 : i32
    return %arg0, %c0_i32, %c0_i32_0 : i32, i32, i32
  }
  func.func @transform_5(%arg0: i32) -> (i32, i32) {
    %c0_i32 = arith.constant 0 : i32
    %c0_i32_0 = arith.constant 0 : i32
    %c0_i32_1 = arith.constant 0 : i32
    return %c0_i32, %c0_i32_0 : i32, i32
  }
  func.func @transform_6(%arg0: i32) -> (i32, i32) {
    %c0_i32 = arith.constant 0 : i32
    %c0_i32_0 = arith.constant 0 : i32
    %c0_i32_1 = arith.constant 0 : i32
    return %c0_i32, %c0_i32_0 : i32, i32
  }
  func.func @transform_7(%arg0: i32) -> (i32, i32) {
    %c0_i32 = arith.constant 0 : i32
    %c0_i32_0 = arith.constant 0 : i32
    %c0_i32_1 = arith.constant 0 : i32
    return %c0_i32, %c0_i32_0 : i32, i32
  }
  func.func @transform_8(%arg0: i32) -> (i32, i32) {
    %c0_i32 = arith.constant 0 : i32
    %c0_i32_0 = arith.constant 0 : i32
    %c0_i32_1 = arith.constant 0 : i32
    return %c0_i32, %c0_i32_0 : i32, i32
  }
  func.func @transform_9(%arg0: i32) -> (i32, i32) {
    %c0_i32 = arith.constant 0 : i32
    %c0_i32_0 = arith.constant 0 : i32
    %c0_i32_1 = arith.constant 0 : i32
    return %c0_i32, %c0_i32_0 : i32, i32
  }
  func.func @transform_10(%arg0: i32) -> (i32, i32) {
    %c0_i32 = arith.constant 0 : i32
    %c0_i32_0 = arith.constant 0 : i32
    %c0_i32_1 = arith.constant 0 : i32
    return %c0_i32, %c0_i32_0 : i32, i32
  }
  func.func @transform_11(%arg0: i32) -> (i32, i32) {
    %c0_i32 = arith.constant 0 : i32
    %c0_i32_0 = arith.constant 0 : i32
    %c0_i32_1 = arith.constant 0 : i32
    return %c0_i32, %c0_i32_0 : i32, i32
  }
  func.func @transform_12(%arg0: i32) -> (i32, i32) {
    %c0_i32 = arith.constant 0 : i32
    %c0_i32_0 = arith.constant 0 : i32
    %c0_i32_1 = arith.constant 0 : i32
    return %c0_i32, %c0_i32_0 : i32, i32
  }
  func.func @transform_13(%arg0: i32) -> (i32, i32) {
    %c0_i32 = arith.constant 0 : i32
    %c0_i32_0 = arith.constant 0 : i32
    %c0_i32_1 = arith.constant 0 : i32
    return %c0_i32, %c0_i32_0 : i32, i32
  }
  func.func @transform_14(%arg0: i32) -> (i32, i32) {
    %c0_i32 = arith.constant 0 : i32
    %c0_i32_0 = arith.constant 0 : i32
    %c0_i32_1 = arith.constant 0 : i32
    return %c0_i32, %c0_i32_0 : i32, i32
  }
}

</mosaic_0001>

<bundles_post_ra>
// kernel: model_forward.1
= control target key start
LH: loop header
LB: loop body
LE: loop exit
PB: predicated region body
PF: predicated region fallthrough
CT: control target
= control target key end

     0   :  { %s12309_s0 = inlined_call_operand.vmem [shape: f32[64,256], index: 0, kind: input, shape index: {}]   ;;  %s12310_s1 = inlined_call_operand.vmem [shape: f32[64,256], index: 1, kind: input, shape index: {}]   ;;  %s12311_s2 = inlined_call_operand.hbm [shape: bf16[11,256,1024], index: 2, kind: input, shape index: {}]   ;;  %s12312_s3 = inlined_call_operand.vmem [shape: f32[11,64,64], index: 3, kind: input, shape index: {}]   ;;  %s12313_s4 = inlined_call_operand.hbm [shape: f32[11,8,256], index: 4, kind: input, shape index: {}]   ;;  %s12314_s5 = inlined_call_operand.hbm [shape: f32[2,256], index: 5, kind: input, shape index: {}]   ;;  %s12315_s6 = inlined_call_operand.hbm [shape: bf16[256,768], index: 6, kind: input, shape index: {}]   ;;  %s12316_s7 = inlined_call_operand.vmem [shape: f32[256,32], index: 7, kind: input, shape index: {}]   ;;  %s12317_s8 = inlined_call_operand.vmem [shape: f32[64,64], index: 8, kind: input, shape index: {}]   ;;  %s12318_s9 = inlined_call_operand.hbm [shape: f32[32,256], index: 9, kind: input, shape index: {}]   ;;  %s12319_s10 = inlined_call_operand.vmem [shape: f32[256,32], index: 10, kind: input, shape index: {}]   ;;  %s12320_s11 = inlined_call_operand.vmem [shape: f32[256,32], index: 11, kind: input, shape index: {}]   ;;  %s12321_s12 = inlined_call_operand.hbm [shape: f32[6,256], index: 12, kind: input, shape index: {}]   ;;  %s12322_s13 = inlined_call_operand.hbm [shape: f32[7,32], index: 13, kind: input, shape index: {}]   ;;  %s12323_s14 = inlined_call_operand.vmem [shape: f32[64,32], index: 14, kind: output, shape index: {}]  }
   0x1   :  { %12367 = sst [smem:[#allocation82_spill]] %s12310_s1 }
   0x2   :  { %12368 = sst [smem:[#allocation83_spill]] %s12311_s2 }
   0x3   :  { %12369 = sst [smem:[#allocation84_spill]] %s12314_s5 }
   0x4   :  { %12370 = sst [smem:[#allocation85_spill]] %s12315_s6 }
   0x5   :  { %12371 = sst [smem:[#allocation86_spill]] %s12318_s9 }
   0x6   :  { %12372 = sst [smem:[#allocation87_spill]] %s12320_s11 }
   0x7   :  { %12373 = sst [smem:[#allocation88_spill]] %s12321_s12 }
   0x8   :  { %12374 = sst [smem:[#allocation89_spill]] %s12322_s13 }
   0x9   :  { %12375 = sst [smem:[#allocation90_spill]] %s12323_s14 }
   0xa   :  { %19 = vsyncpa [#allocation5], 0 }
   0xb   :  { %21 = vsyncpa [#allocation5 + $0x1], 0 }
   0xc   :  { %22 = vsyncpa [#allocation7], 0 }
   0xd   :  { %24 = vsyncpa [#allocation7 + $0x1], 0 }
   0xe   :  { %25 = vsyncpa [#allocation10], 0 }
   0xf   :  { %26 = vsyncpa [#allocation13], 0  ;;  %s8582_s29 = smov 0   ;;  %s8584_s30 = smov 0  }
  0x10   :  { %s8586_s15 = smov 0   ;;  %s8588_s16 = smov 0  }
  0x11 LB: > { %12376 = sst [smem:[#allocation20_spill]] %s8487_s15  ;;  %s8606_s20 = sadd.s32 4294967295, %s8491_s16   ;;  %s8491_s16 = sphi %s8588_s16, %s12540_s16   ;;  %s8487_s15 = sphi %s8586_s15, %s12537_s15   ;;  %s8483_s30 = sphi %s8584_s30, %s12539_s30   ;;  %s8479_s29 = sphi %s8582_s29, %s12538_s29  }
  0x12   : > { %s12377_s5 = sld [smem:[#allocation84_spill]]  ;;  %p6679_p0 = scmp.ge.s32.totalorder %s8491_s16, 1 }
  0x13   : > { %p95_p1 = scmp.eq.s32.totalorder %s8606_s20, 0  ;;  %p367_p2 = scmp.lt.s32.totalorder %s8491_s16, 12 }
  0x14   : > { %p6680_p3 = scmp.ne.s32.totalorder %s8606_s20, 0  ;;  %s8493_s22 = smov [#allocation8]  }
  0x15   : > { %p8612_p4 = pnand %p6679_p0, %p367_p2  ;;  %s387_s23 = sshll.u32 %s8493_s22, 4  ;;  %s388_s23 = int_to_ptr.vmem [resolvable:$true] %s387_s23 }
  0x16   : > { %s12379_s6 = sld [smem:[#allocation85_spill]]  ;;  %s8494_s28 = smov [#allocation9]  }
  0x17   : > { %p7948_p5 = pneg %p8612_p4  ;;  %s398_s17 = sshll.u32 %s8494_s28, 4  ;;  %s399_s17 = int_to_ptr.vmem [resolvable:$true] %s398_s17 }
  0x18   : > { %s385_s19 = sshll.u32 %s12377_s5, 4  ;;  %s8495_s18 = smov 384   ;;  %s386_s19 = int_to_ptr.hbm [resolvable:$true] %s385_s19 }
  0x19   : > { %p8623_p6 = pnand %p7948_p5, %p95_p1  ;;  %s8496_s22 = smov 24  }
  0x1a   : > { %s12381_s12 = sld [smem:[#allocation88_spill]]  ;;  %s81_s24 = sadd.s32 1, %s8487_s15 }
  0x1b   : > { %7951 = dma.hbm_to_vmem [thread:$0]  (!%p8623_p6), %s386_s19, 64, %s388_s23, [#allocation7]  }
  0x1c   : > { %s396_s26 = sshll.u32 %s12379_s6, 4  ;;  %s8497_s6 = smov [#allocation12]   ;;  %s397_s26 = int_to_ptr.hbm [resolvable:$true] %s396_s26 }
  0x1d   : > { %7954 = dma.hbm_to_vmem [thread:$0]  (!%p8623_p6), %s397_s26, 12288, %s399_s17, [#allocation10], %s8495_s18, %s8495_s18, %s8496_s22  }
  0x1e   : > { %s439_s14 = sshll.u32 %s8497_s6, 4  ;;  %s12382_s9 = sld [smem:[#allocation86_spill]]  ;;  %s440_s14 = int_to_ptr.vmem [resolvable:$true] %s439_s14 }
  0x1f   : > { %s8498_s19 = smov [#allocation11]   ;;  %s8499_s6 = smov 256  }
  0x20   : > { %s437_s5 = sshll.u32 %s12381_s12, 4  ;;  %s418_s23 = sshll.u32 %s8498_s19, 4  ;;  %s438_s5 = int_to_ptr.hbm [resolvable:$true] %s437_s5  ;;  %s419_s23 = int_to_ptr.vmem [resolvable:$true] %s418_s23 }
  0x21   : > { %7960 = dma.hbm_to_vmem [thread:$0]  (!%p8623_p6), %s438_s5, 256, %s440_s14, [#allocation13]  }
  0x22   : > { %s8500_s26 = smov 16   ;;  %s12383_s13 = sld [smem:[#allocation89_spill]] }
  0x23   : > { %s8501_s14 = smov [#allocation14]   ;;  %s8647_s18 = sadd.s32 1, %s8491_s16  }
  0x24   : > { %s416_s28 = sshll.u32 %s12382_s9, 4  ;;  %s451_s17 = sshll.u32 %s8501_s14, 4  ;;  %s417_s28 = int_to_ptr.hbm [resolvable:$true] %s416_s28  ;;  %s452_s17 = int_to_ptr.vmem [resolvable:$true] %s451_s17 }
  0x25   : > { %7957 = dma.hbm_to_vmem [thread:$0]  (!%p8623_p6), %s417_s28, 1024, %s419_s23, [#allocation10], %s8499_s6, %s8499_s6, %s8500_s26  }
  0x26   : > { %s78_s22 = ssub.s32 %s8491_s16, %s8647_s18  ;;  %p88_p8 = scmp.ne.s32.totalorder %s8487_s15, %s8483_s30 }
  0x27   : > { %p79_p7 = scmp.eq.s32.totalorder %s78_s22, 0  ;;  %p89_p9 = scmp.eq.s32.totalorder %s8491_s16, 0 }
  0x28   : > { %s449_s5 = sshll.u32 %s12383_s13, 4  ;;  %p94_p10 = scmp.ne.s32.totalorder %s8483_s30, %s8479_s29  ;;  %s450_s5 = int_to_ptr.hbm [resolvable:$true] %s449_s5 }
  0x29   : > { %7963 = dma.hbm_to_vmem [thread:$0]  (!%p8623_p6), %s450_s5, 128, %s452_s17, [#allocation13]  }
  0x2a   : > { %s8658_s25 = scalar_select %p79_p7, %s8487_s15, %s81_s24  }
  0x2b   : > { %p90_p11 = por %p89_p9, %p88_p8  ;;  %p8662_p12 = por %p95_p1, %p94_p10 }
  0x2c   : > { %12384 = sst [smem:[#allocation21_spill]] %s8658_s25  ;;  %p7976_p13 = scmp.lt.s32.totalorder %s8491_s16, 11 }
  0x2d   : > { %s8668_s27 = sand.u32 1, %s8487_s15   ;;  %s7649_s23 = sshll.u32 %s8491_s16, 10 }
  0x2e   : > { %s6686_s19 = sshll.u32 %s8668_s27, 10  ;;  %s12386_s2 = sld [smem:[#allocation83_spill]] }
  0x2f   : > { %s466_s29 = scalar_lea.vmem [#allocation4], %s6686_s19  ;;  %p8675_p0 = pnand %p7976_p13, %p90_p11 }
  0x30   : > { %s474_s11 = sshll.u32 %s466_s29, 4  ;;  %s492_s17 = sand.u32 1, %s8491_s16   ;;  %s475_s11 = int_to_ptr.vmem [resolvable:$true] %s474_s11 }
  0x31   : > { %s463_s22 = scalar_lea.sflag [#allocation5], %s8668_s27  ;;  %p8385_p5 = pneg %p8675_p0 }
  0x34   : > { %s471_s1 = scalar_lea.hbm %s12386_s2, %s7649_s23  ;;  %s8388_s6 = scalar_lea.hbm %s12386_s2, 11264 }
  0x35   : > { %s472_s5 = sshll.u32 %s471_s1, 4  ;;  %s473_s5 = int_to_ptr.hbm [resolvable:$true] %s472_s5 }
  0x36   : > { %s8381_s24 = sshra.s32 %s473_s5, 4  ;;  %s8382_s24 = int_to_ptr.hbm [resolvable:$true] %s8381_s24 }
  0x37   : > { %s8383_s9 = scalar_lea.hbm %s8382_s24, 1024  ;;  %p8389_p8 = scmp.lt.s32.totalorder %s8382_s24, %s12386_s2 }
  0x38   : > { %p8384_p2 = scmp.ne.s32.totalorder %s8382_s24, %s8383_s9  ;;  %p8390_p9 = scmp.lt.s32.totalorder %s8388_s6, %s8383_s9 }
  0x3a   : > { %p8386_p6 = pnand %p8385_p5, %p8384_p2  ;;  %p8391_p10 = por %p8390_p9, %p8389_p8 }
  0x3c   : > { %p8387_p7 = pneg %p8386_p6 }
  0x3e   : > { %p8392_p11 = pnand %p8391_p10, %p8387_p7 }
  0x40   : > { %8395 = shalt.err (!%p8392_p11)
}
  0x41   : > { %s8502_s29 = smov 512   ;;  %s8503_s12 = smov 32  }
  0x42   : > { %7967 = dma.hbm_to_vmem [thread:$0]  (!%p8675_p0), %s473_s5, 16384, %s475_s11, %s463_s22, %s8502_s29, %s8502_s29, %s8503_s12  }
  0x43   : > { %s6689_s13 = sshll.u32 %s8668_s27, 4  ;;  %s7650_s25 = sshll.u32 %s8491_s16, 4 }
  0x44   : > { %s501_s15 = scalar_lea.hbm %s12313_s4, %s7650_s25  ;;  %s496_s26 = scalar_lea.vmem [#allocation6], %s6689_s13 }
  0x45   : > { %s505_s24 = sshll.u32 %s496_s26, 4  ;;  %s503_s9 = sshll.u32 %s501_s15, 4  ;;  %s506_s24 = int_to_ptr.vmem [resolvable:$true] %s505_s24  ;;  %s504_s9 = int_to_ptr.hbm [resolvable:$true] %s503_s9 }
  0x46   : > { %s493_s6 = scalar_lea.sflag [#allocation7], %s492_s17  ;;  %s8411_s1 = sshra.s32 %s504_s9, 4  ;;  %s8412_s1 = int_to_ptr.hbm [resolvable:$true] %s8411_s1 }
  0x47   : > { %s8413_s2 = scalar_lea.hbm %s8412_s1, 16  ;;  %s8418_s27 = scalar_lea.hbm %s12313_s4, 176 }
  0x48   : > { %p8414_p13 = scmp.ne.s32.totalorder %s8412_s1, %s8413_s2  ;;  %p8419_p7 = scmp.lt.s32.totalorder %s8412_s1, %s12313_s4 }
  0x49   : > { %p8420_p8 = scmp.lt.s32.totalorder %s8418_s27, %s8413_s2 }
  0x4a   : > { %p8416_p2 = pnand %p8414_p13, %p8385_p5 }
  0x4b   : > { %p8421_p9 = por %p8420_p8, %p8419_p7 }
  0x4c   : > { %p8417_p6 = pneg %p8416_p2 }
  0x4e   : > { %p8422_p10 = pnand %p8421_p9, %p8417_p6 }
  0x50   : > { %8425 = shalt.err (!%p8422_p10)
}
  0x51   : > { %7970 = dma.hbm_to_vmem [thread:$0]  (!%p8675_p0), %s504_s9, 256, %s506_s24, %s493_s6  }
  0x52   : > { %514 = sbr.rel (%p8612_p4) target bundleno = 4614 (0x1206), region = 76 }
  0x57   : > { %s516_s13 = sand.u32 1, %s8483_s30  }
  0x58   : > { %s6693_s15 = sshll.u32 %s516_s13, 10  ;;  %s517_s5 = scalar_lea.sflag [#allocation5], %s516_s13 }
  0x59   : > { %s8713_s17 = scalar_lea.vmem [#allocation4], %s6693_s15 }
  0x5a   : > { %8458 = dma.done.wait (%p8662_p12), %s517_s5, 16384  }
  0x5b   : > { %8460 = vsyncadd (%p8662_p12), %s517_s5, 4294950912  ;;  %s526_s2 = sand.u32 1, %s8606_s20   ;;  %s6694_s14 = sshll.u32 %s516_s13, 4 }
  0x5c   : > { %s527_s22 = scalar_lea.sflag [#allocation7], %s526_s2  ;;  %s8720_s29 = scalar_lea.vmem [#allocation6], %s6694_s14 }
  0x5d   : > { %8462 = dma.done.wait (%p8662_p12), %s527_s22, 256  }
  0x5e   : > { %8464 = vsyncadd (%p8662_p12), %s527_s22, 4294967040 }
  0x5f   : > { %8466 = dma.done.wait (%p95_p1), [#allocation7], 64  }
  0x60   : > { %8468 = vsyncadd (%p95_p1), [#allocation7], 4294967232 }
  0x61   : > { %8470 = dma.done.wait (%p95_p1), [#allocation10], 13312  }
  0x62   : > { %8472 = vsyncadd (%p95_p1), [#allocation10], 4294953984 }
  0x63   : > { %8474 = dma.done.wait (%p95_p1), [#allocation13], 384  }
  0x64   : > { %8476 = vsyncadd (%p95_p1), [#allocation13], 4294966912  ;;  %p606_p4 = scmp.lt.s32.totalorder %s8606_s20, 10 }
  0x65   : > { %614 = sbr.rel (%p6680_p3) target bundleno = 139 (0x8b), region = 108 }
  0x66   : > { %s607_s21 = scalar_select %p606_p4, %s8606_s20, 10 }
  0x68   : > { %s7651_s28 = sshll.u32 %s607_s21, 6 }
  0x69   : > { %s8743_s26 = scalar_lea.vmem %s12312_s3, %s7651_s28 }
  0x6a   : > { %v615_v0 = vld [vmem:[%s12309_s0] sm:$0xff]  ;;  %v616_v1 = vld [vmem:[%s12309_s0 + $0x8] sm:$0xff]  ;;  %v617_v2 = vld [vmem:[%s12309_s0 + $0x10] sm:$0xff]  ;;  %v8504_v16 = vmov 0.0  }
  0x6b   : > { %631 = vst [vmem:[#allocation2 + $0x30] sm:$0xff] %v615_v0  ;;  %v618_v3 = vld [vmem:[%s12309_s0 + $0x18] sm:$0xff]  ;;  %v619_v4 = vld [vmem:[%s12309_s0 + $0x20] sm:$0xff]  ;;  %v620_v5 = vld [vmem:[%s12309_s0 + $0x28] sm:$0xff] }
  0x6c   : > { %632 = vst [vmem:[#allocation2] sm:$0xff] %v616_v1  ;;  %v621_v6 = vld [vmem:[%s12309_s0 + $0x30] sm:$0xff]  ;;  %v622_v7 = vld [vmem:[%s12309_s0 + $0x38] sm:$0xff]  ;;  %v623_v8 = vld [vmem:[%s12309_s0 + $0x40] sm:$0xff] }
  0x6d   : > { %633 = vst [vmem:[#allocation2 + $0x58] sm:$0xff] %v617_v2  ;;  %v624_v9 = vld [vmem:[%s12309_s0 + $0x48] sm:$0xff]  ;;  %v625_v10 = vld [vmem:[%s12309_s0 + $0x50] sm:$0xff]  ;;  %v626_v11 = vld [vmem:[%s12309_s0 + $0x58] sm:$0xff] }
  0x6e   : > { %634 = vst [vmem:[#allocation2 + $0x18] sm:$0xff] %v618_v3  ;;  %v627_v12 = vld [vmem:[%s12309_s0 + $0x60] sm:$0xff]  ;;  %v628_v13 = vld [vmem:[%s12309_s0 + $0x68] sm:$0xff]  ;;  %v629_v14 = vld [vmem:[%s12309_s0 + $0x70] sm:$0xff] }
  0x6f   : > { %635 = vst [vmem:[#allocation2 + $0x50] sm:$0xff] %v619_v4  ;;  %v630_v15 = vld [vmem:[%s12309_s0 + $0x78] sm:$0xff] }
  0x70   : > { %636 = vst [vmem:[#allocation2 + $0x68] sm:$0xff] %v620_v5 }
  0x71   : > { %637 = vst [vmem:[#allocation2 + $0x8] sm:$0xff] %v621_v6 }
  0x72   : > { %638 = vst [vmem:[#allocation2 + $0x48] sm:$0xff] %v622_v7 }
  0x73   : > { %639 = vst [vmem:[#allocation2 + $0x40] sm:$0xff] %v623_v8 }
  0x74   : > { %640 = vst [vmem:[#allocation2 + $0x20] sm:$0xff] %v624_v9 }
  0x75   : > { %641 = vst [vmem:[#allocation2 + $0x10] sm:$0xff] %v625_v10 }
  0x76   : > { %642 = vst [vmem:[#allocation2 + $0x38] sm:$0xff] %v626_v11 }
  0x77   : > { %643 = vst [vmem:[#allocation2 + $0x60] sm:$0xff] %v627_v12 }
  0x78   : > { %644 = vst [vmem:[#allocation2 + $0x70] sm:$0xff] %v628_v13 }
  0x79   : > { %645 = vst [vmem:[#allocation2 + $0x78] sm:$0xff] %v629_v14 }
  0x7a   : > { %646 = vst [vmem:[#allocation2 + $0x28] sm:$0xff] %v630_v15 }
  0x7b   : > { %647 = vst [vmem:[#allocation3 + $0x28] sm:$0xff] %v8504_v16 }
  0x7c   : > { %648 = vst [vmem:[#allocation3 + $0x68] sm:$0xff] %v8504_v16 }
  0x7d   : > { %649 = vst [vmem:[#allocation3 + $0x10] sm:$0xff] %v8504_v16 }
  0x7e   : > { %650 = vst [vmem:[#allocation3 + $0x40] sm:$0xff] %v8504_v16 }
  0x7f   : > { %651 = vst [vmem:[#allocation3 + $0x48] sm:$0xff] %v8504_v16 }
  0x80   : > { %652 = vst [vmem:[#allocation3 + $0x30] sm:$0xff] %v8504_v16 }
  0x81   : > { %653 = vst [vmem:[#allocation3 + $0x70] sm:$0xff] %v8504_v16 }
  0x82   : > { %654 = vst [vmem:[#allocation3 + $0x38] sm:$0xff] %v8504_v16 }
  0x83   : > { %655 = vst [vmem:[#allocation3 + $0x20] sm:$0xff] %v8504_v16 }
  0x84   : > { %656 = vst [vmem:[#allocation3 + $0x78] sm:$0xff] %v8504_v16 }
  0x85   : > { %657 = vst [vmem:[#allocation3 + $0x18] sm:$0xff] %v8504_v16 }
  0x86   : > { %658 = vst [vmem:[#allocation3 + $0x58] sm:$0xff] %v8504_v16 }
  0x87   : > { %659 = vst [vmem:[#allocation3] sm:$0xff] %v8504_v16 }
  0x88   : > { %660 = vst [vmem:[#allocation3 + $0x8] sm:$0xff] %v8504_v16 }
  0x89   : > { %661 = vst [vmem:[#allocation3 + $0x60] sm:$0xff] %v8504_v16 }
  0x8a   : > { %662 = vst [vmem:[#allocation3 + $0x50] sm:$0xff] %v8504_v16 }
  0x8b PF: > { %v6768_v17 = vld [vmem:[%s8713_s17 + $0x1c0] sm:$0xf]  ;;  %v7666_v63 = vld [vmem:[%s8713_s17 + $0x1c4] sm:$0xf]  ;;  %v673_v5 = vld [vmem:[#allocation2 + $0x10] sm:$0xff]  ;;  %p7238_p1 = scmp.ne.s32.totalorder %s8606_s20, 10 }
  0x8c   : > { %v7667_v18 = vld [vmem:[%s8713_s17 + $0x1dc] sm:$0xf0]  ;;  %v6770_v0 = vld [vmem:[%s8713_s17 + $0x1e0] sm:$0xf0]  ;;  %v674_v8 = vld [vmem:[#allocation2 + $0x38] sm:$0xff] }
  0x8d   : > { %v6832_v19 = vld [vmem:[%s8713_s17 + $0x3c0] sm:$0xf]  ;;  %v6769_v20 = vor.u32 %v7667_v18, %v6768_v17  ;;  %v7682_v1 = vld [vmem:[%s8713_s17 + $0x3c4] sm:$0xf]  ;;  %v6773_v9 = vor.u32 %v7666_v63, %v6770_v0  ;;  %v663_v13 = vld [vmem:[#allocation2 + $0x30] sm:$0xff] }
  0x8e   : > { %v7683_v21 = vld [vmem:[%s8713_s17 + $0x3dc] sm:$0xf0]  ;;  %v6834_v2 = vld [vmem:[%s8713_s17 + $0x3e0] sm:$0xf0]  ;;  %v665_v14 = vld [vmem:[#allocation2 + $0x58] sm:$0xff] }
  0x8f   : > { %v6760_v22 = vld [vmem:[%s8713_s17 + $0x180] sm:$0xf]  ;;  %v6833_v24 = vor.u32 %v7683_v21, %v6832_v19  ;;  %7876 = vmatpush.bf16.msra.mxu2 %v6769_v20  ;;  %1014 = vmatpush.bf16.msra.mxu0 %v6769_v20  ;;  %v7664_v10 = vld [vmem:[%s8713_s17 + $0x184] sm:$0xf]  ;;  %v6837_v12 = vor.u32 %v7682_v1, %v6834_v2  ;;  %v8837_v19 = vpack.c.bf16 %v665_v14, %v663_v13  ;;  %v666_v20 = vld [vmem:[#allocation2 + $0x18] sm:$0xff] }
  0x90   : > { %v7665_v23 = vld [vmem:[%s8713_s17 + $0x19c] sm:$0xf0]  ;;  %v6762_v11 = vld [vmem:[%s8713_s17 + $0x1a0] sm:$0xf0] }
  0x91   : > { %v6824_v25 = vld [vmem:[%s8713_s17 + $0x380] sm:$0xf]  ;;  %v6761_v27 = vor.u32 %v7665_v23, %v6760_v22  ;;  %7884 = vmatpush.bf16.msra.mxu3 %v6833_v24  ;;  %1043 = vmatpush.bf16.msra.mxu1 %v6833_v24  ;;  %v7680_v17 = vld [vmem:[%s8713_s17 + $0x384] sm:$0xf]  ;;  %v6765_v22 = vor.u32 %v7664_v10, %v6762_v11 }
  0x92   : > { %v7681_v26 = vld [vmem:[%s8713_s17 + $0x39c] sm:$0xf0]  ;;  %v6826_v18 = vld [vmem:[%s8713_s17 + $0x3a0] sm:$0xf0] }
  0x93   : > { %v6825_v28 = vor.u32 %v7681_v26, %v6824_v25  ;;  %v6752_v29 = vld [vmem:[%s8713_s17 + $0x140] sm:$0xf]  ;;  %7877 = vmatpush.bf16.msra.mxu2 %v6761_v27  ;;  %1015 = vmatpush.bf16.msra.mxu0 %v6761_v27  ;;  %v6829_v24 = vor.u32 %v7680_v17, %v6826_v18  ;;  %v7662_v25 = vld [vmem:[%s8713_s17 + $0x144] sm:$0xf] }
  0x94   : > { %v7663_v30 = vld [vmem:[%s8713_s17 + $0x15c] sm:$0xf0]  ;;  %v6754_v26 = vld [vmem:[%s8713_s17 + $0x160] sm:$0xf0] }
  0x95   : > { %v6816_v31 = vld [vmem:[%s8713_s17 + $0x340] sm:$0xf]  ;;  %v6753_v33 = vor.u32 %v7663_v30, %v6752_v29  ;;  %7885 = vmatpush.bf16.msra.mxu3 %v6825_v28  ;;  %1044 = vmatpush.bf16.msra.mxu1 %v6825_v28  ;;  %v7678_v27 = vld [vmem:[%s8713_s17 + $0x344] sm:$0xf]  ;;  %v6757_v29 = vor.u32 %v7662_v25, %v6754_v26 }
  0x96   : > { %v7679_v32 = vld [vmem:[%s8713_s17 + $0x35c] sm:$0xf0]  ;;  %v6818_v28 = vld [vmem:[%s8713_s17 + $0x360] sm:$0xf0] }
  0x97   : > { %v6817_v34 = vor.u32 %v7679_v32, %v6816_v31  ;;  %v6744_v35 = vld [vmem:[%s8713_s17 + $0x100] sm:$0xf]  ;;  %7878 = vmatpush.bf16.msra.mxu2 %v6753_v33  ;;  %1016 = vmatpush.bf16.msra.mxu0 %v6753_v33  ;;  %v6821_v30 = vor.u32 %v7678_v27, %v6818_v28  ;;  %v7660_v31 = vld [vmem:[%s8713_s17 + $0x104] sm:$0xf] }
  0x98   : > { %v7661_v36 = vld [vmem:[%s8713_s17 + $0x11c] sm:$0xf0]  ;;  %v6746_v32 = vld [vmem:[%s8713_s17 + $0x120] sm:$0xf0] }
  0x99   : > { %v6808_v37 = vld [vmem:[%s8713_s17 + $0x300] sm:$0xf]  ;;  %v6745_v39 = vor.u32 %v7661_v36, %v6744_v35  ;;  %7886 = vmatpush.bf16.msra.mxu3 %v6817_v34  ;;  %1045 = vmatpush.bf16.msra.mxu1 %v6817_v34  ;;  %v7676_v33 = vld [vmem:[%s8713_s17 + $0x304] sm:$0xf]  ;;  %v6749_v35 = vor.u32 %v7660_v31, %v6746_v32 }
  0x9a   : > { %v7677_v38 = vld [vmem:[%s8713_s17 + $0x31c] sm:$0xf0]  ;;  %v6810_v34 = vld [vmem:[%s8713_s17 + $0x320] sm:$0xf0] }
  0x9b   : > { %v6809_v40 = vor.u32 %v7677_v38, %v6808_v37  ;;  %v6736_v41 = vld [vmem:[%s8713_s17 + $0xc0] sm:$0xf]  ;;  %7879 = vmatpush.bf16.msra.mxu2 %v6745_v39  ;;  %1017 = vmatpush.bf16.msra.mxu0 %v6745_v39  ;;  %v6813_v36 = vor.u32 %v7676_v33, %v6810_v34  ;;  %v7658_v37 = vld [vmem:[%s8713_s17 + $0xc4] sm:$0xf] }
  0x9c   : > { %v7659_v42 = vld [vmem:[%s8713_s17 + $0xdc] sm:$0xf0]  ;;  %v6738_v38 = vld [vmem:[%s8713_s17 + $0xe0] sm:$0xf0] }
  0x9d   : > { %v6800_v43 = vld [vmem:[%s8713_s17 + $0x2c0] sm:$0xf]  ;;  %v6737_v45 = vor.u32 %v7659_v42, %v6736_v41  ;;  %7887 = vmatpush.bf16.msra.mxu3 %v6809_v40  ;;  %1046 = vmatpush.bf16.msra.mxu1 %v6809_v40  ;;  %v7674_v40 = vld [vmem:[%s8713_s17 + $0x2c4] sm:$0xf]  ;;  %v677_v42 = vld [vmem:[#allocation2 + $0x78] sm:$0xff] }
  0x9e   : > { %v7675_v44 = vld [vmem:[%s8713_s17 + $0x2dc] sm:$0xf0]  ;;  %v6802_v41 = vld [vmem:[%s8713_s17 + $0x2e0] sm:$0xf0] }
  0x9f   : > { %v6801_v46 = vor.u32 %v7675_v44, %v6800_v43  ;;  %v6728_v47 = vld [vmem:[%s8713_s17 + $0x80] sm:$0xf]  ;;  %7880 = vmatpush.bf16.msra.mxu2 %v6737_v45  ;;  %1018 = vmatpush.bf16.msra.mxu0 %v6737_v45  ;;  %v667_v43 = vld [vmem:[#allocation2 + $0x50] sm:$0xff]  ;;  %v669_v44 = vld [vmem:[#allocation2 + $0x8] sm:$0xff] }
  0xa0   : > { %v7657_v48 = vld [vmem:[%s8713_s17 + $0x9c] sm:$0xf0]  ;;  %v676_v45 = vld [vmem:[#allocation2 + $0x70] sm:$0xff]  ;;  %v7670_v63 = vld [vmem:[%s8713_s17 + $0x244] sm:$0xf] }
  0xa1   : > { %v6792_v49 = vld [vmem:[%s8713_s17 + $0x280] sm:$0xf]  ;;  %v6729_v51 = vor.u32 %v7657_v48, %v6728_v47  ;;  %7888 = vmatpush.bf16.msra.mxu3 %v6801_v46  ;;  %1047 = vmatpush.bf16.msra.mxu1 %v6801_v46  ;;  %v678_v46 = vld [vmem:[#allocation2 + $0x28] sm:$0xff]  ;;  %v6741_v47 = vor.u32 %v7658_v37, %v6738_v38  ;;  %v7656_v48 = vld [vmem:[%s8713_s17 + $0x84] sm:$0xf] }
  0xa2   : > { %v7673_v50 = vld [vmem:[%s8713_s17 + $0x29c] sm:$0xf0]  ;;  %v6786_v0 = vld [vmem:[%s8713_s17 + $0x260] sm:$0xf0] }
  0xa3   : > { %v6793_v52 = vor.u32 %v7673_v50, %v6792_v49  ;;  %v6720_v53 = vld [vmem:[%s8713_s17 + $0x40] sm:$0xf]  ;;  %7881 = vmatpush.bf16.msra.mxu2 %v6729_v51  ;;  %1019 = vmatpush.bf16.msra.mxu0 %v6729_v51  ;;  %v6805_v49 = vor.u32 %v7674_v40, %v6802_v41  ;;  %v6730_v50 = vld [vmem:[%s8713_s17 + $0xa0] sm:$0xf0]  ;;  %v668_v51 = vld [vmem:[#allocation2 + $0x68] sm:$0xff]  ;;  %v6789_v2 = vor.u32 %v7670_v63, %v6786_v0 }
  0xa4   : > { %v7655_v54 = vld [vmem:[%s8713_s17 + $0x5c] sm:$0xf0] }
  0xa5   : > { %v6784_v55 = vld [vmem:[%s8713_s17 + $0x240] sm:$0xf]  ;;  %v6721_v57 = vor.u32 %v7655_v54, %v6720_v53  ;;  %7889 = vmatpush.bf16.msra.mxu3 %v6793_v52  ;;  %1048 = vmatpush.bf16.msra.mxu1 %v6793_v52  ;;  %v670_v52 = vld [vmem:[#allocation2 + $0x48] sm:$0xff]  ;;  %v7672_v54 = vld [vmem:[%s8713_s17 + $0x284] sm:$0xf] }
  0xa6   : > { %v7671_v56 = vld [vmem:[%s8713_s17 + $0x25c] sm:$0xf0] }
  0xa7   : > { %v6785_v58 = vor.u32 %v7671_v56, %v6784_v55  ;;  %v6712_v59 = vld [vmem:[%s8713_s17] sm:$0xf]  ;;  %7882 = vmatpush.bf16.msra.mxu2 %v6721_v57  ;;  %1020 = vmatpush.bf16.msra.mxu0 %v6721_v57  ;;  %v6794_v55 = vld [vmem:[%s8713_s17 + $0x2a0] sm:$0xf0]  ;;  %v843_v56 = vpack.c.bf16 %v669_v44, %v667_v43  ;;  %v848_v57 = vpack.c.bf16 %v678_v46, %v676_v45 }
  0xa8   : > { %v7653_v60 = vld [vmem:[%s8713_s17 + $0x1c] sm:$0xf0] }
  0xa9   : > { %v6776_v61 = vld [vmem:[%s8713_s17 + $0x200] sm:$0xf]  ;;  %v6713_v3 = vor.u32 %v7653_v60, %v6712_v59  ;;  %7890 = vmatpush.bf16.msra.mxu3 %v6785_v58  ;;  %1049 = vmatpush.bf16.msra.mxu1 %v6785_v58  ;;  %v6733_v58 = vor.u32 %v7656_v48, %v6730_v50  ;;  %v844_v59 = vpack.c.bf16 %v670_v52, %v668_v51 }
  0xaa   : > { %v7669_v62 = vld [vmem:[%s8713_s17 + $0x21c] sm:$0xf0]  ;;  %v6797_v60 = vor.u32 %v7672_v54, %v6794_v55 }
  0xab   : > { %v671_v4 = vld [vmem:[#allocation2 + $0x40] sm:$0xff]  ;;  %v6777_v7 = vor.u32 %v7669_v62, %v6776_v61  ;;  %7883 = vmatpush.bf16.msra.mxu2 %v6713_v3  ;;  %1021 = vmatpush.bf16.msra.mxu0 %v6713_v3 }
  0xac   : > { %v672_v6 = vld [vmem:[#allocation2 + $0x20] sm:$0xff]  ;;  %v8833_v16 = vpack.c.bf16 %v673_v5, %v671_v4 }
  0xad   : > { %v664_v15 = vld [vmem:[#allocation2] sm:$0xff]  ;;  %v8839_v21 = vpack.c.bf16 %v674_v8, %v672_v6  ;;  %7891 = vmatpush.bf16.msra.mxu3 %v6777_v7  ;;  %1050 = vmatpush.bf16.msra.mxu1 %v6777_v7 }
  0xae   : > { %v8841_v23 = vpack.c.bf16 %v666_v20, %v664_v15  ;;  %1032 = vmatmul.bf16.vlgmr.msra.gmra.mxu2 %v8833_v16  ;;  %1022 = vmatmul.bf16.vlgmr.msra.gmra.mxu0 %v8837_v19  ;;  %v675_v39 = vld [vmem:[#allocation2 + $0x60] sm:$0xff] }
  0xaf   : > { %1072 = vmatpush.bf16.msrb.mxu2 %v6773_v9  ;;  %v847_v53 = vpack.c.bf16 %v677_v42, %v675_v39  ;;  %v7654_v61 = vld [vmem:[%s8713_s17 + $0x44] sm:$0xf]  ;;  %v695_v9 = vld [vmem:[%s8720_s29] ss:$8 sm:$0x3] }
  0xb0   : > { %1061 = vmatmul.bf16.vlgmr.msra.gmra.mxu3 %v8839_v21  ;;  %1051 = vmatmul.bf16.vlgmr.msra.gmra.mxu1 %v8841_v23  ;;  %v6722_v62 = vld [vmem:[%s8713_s17 + $0x60] sm:$0xf0]  ;;  %v8876_v10 = vperm.slane %v695_v9, 0  ;;  %v851_v26 = vperm.slane %v695_v9, 1 }
  0xb1   : > { %1101 = vmatpush.bf16.msrb.mxu3 %v6837_v12  ;;  %v6725_v1 = vor.u32 %v7654_v61, %v6722_v62  ;;  %v7652_v3 = vld [vmem:[%s8713_s17 + $0x4] sm:$0xf] }
  0xb2   : > { %v6714_v4 = vld [vmem:[%s8713_s17 + $0x20] sm:$0xf0] }
  0xb3   : > { %1073 = vmatpush.bf16.msrb.mxu2 %v6765_v22  ;;  %v7668_v5 = vld [vmem:[%s8713_s17 + $0x204] sm:$0xf]  ;;  %v6717_v7 = vor.u32 %v7652_v3, %v6714_v4 }
  0xb4   : > { %v6778_v6 = vld [vmem:[%s8713_s17 + $0x220] sm:$0xf0] }
  0xb5   : > { %1102 = vmatpush.bf16.msrb.mxu3 %v6829_v24  ;;  %v6781_v8 = vor.u32 %v7668_v5, %v6778_v6 }
  0xb7   : > { %1074 = vmatpush.bf16.msrb.mxu2 %v6757_v29 }
  0xb9   : > { %1103 = vmatpush.bf16.msrb.mxu3 %v6821_v30 }
  0xbb   : > { %1075 = vmatpush.bf16.msrb.mxu2 %v6749_v35 }
  0xbd   : > { %1104 = vmatpush.bf16.msrb.mxu3 %v6813_v36 }
  0xbe   : > { %1037 = vmatmul.bf16.gmra.mxu2 %v847_v53  ;;  %1027 = vmatmul.bf16.gmra.mxu0 %v843_v56 }
  0xbf   : > { %1076 = vmatpush.bf16.msrb.mxu2 %v6741_v47 }
  0xc0   : > { %1066 = vmatmul.bf16.gmra.mxu3 %v848_v57  ;;  %1056 = vmatmul.bf16.gmra.mxu1 %v844_v59 }
  0xc1   : > { %1105 = vmatpush.bf16.msrb.mxu3 %v6805_v49 }
  0xc3   : > { %1077 = vmatpush.bf16.msrb.mxu2 %v6733_v58 }
  0xc5   : > { %1106 = vmatpush.bf16.msrb.mxu3 %v6797_v60 }
  0xc7   : > { %1078 = vmatpush.bf16.msrb.mxu2 %v6725_v1 }
  0xc9   : > { %1107 = vmatpush.bf16.msrb.mxu3 %v6789_v2 }
  0xcb   : > { %1079 = vmatpush.bf16.msrb.mxu2 %v6717_v7 }
  0xcd   : > { %1108 = vmatpush.bf16.msrb.mxu3 %v6781_v8 }
  0xce   : > { %1080 = vmatmul.bf16.vlgmr.msrb.gmra.mxu2 %v8837_v19 }
  0xd0   : > { %1109 = vmatmul.bf16.vlgmr.msrb.gmra.mxu3 %v8841_v23 }
  0xde   : > { %1085 = vmatmul.bf16.gmra.mxu2 %v843_v56 }
  0xe0   : > { %1114 = vmatmul.bf16.gmra.mxu3 %v844_v59 }
  0xee   : > { %1090 = vmatmul.bf16.gmra.mxu2 %v8833_v16 }
  0xf0   : > { %1119 = vmatmul.bf16.gmra.mxu3 %v8839_v21 }
  0xfe   : > { %1095 = vmatmul.bf16.gmra.mxu2 %v847_v53 }
 0x100   : > { %1124 = vmatmul.bf16.gmra.mxu3 %v848_v57 }
 0x12b   : > { %v1023_v21 = vpop.f32.mrf.mxu0 }
 0x12c   : > { %v1024_v25 = vadd.f32 %v1023_v21, %v8876_v10 }
 0x12d   : > { %v1052_v24 = vpop.f32.mrf.mxu1 }
 0x12e   : > { %v8887_v29 = vadd.f32 %v1052_v24, %v1024_v25  ;;  %v8505_v25 = vmov 256.0  }
 0x12f   : > { %8028 = vrcp.f32 %v8505_v25 }
 0x131   : > { %v1033_v11 = vpop.f32.mrf.mxu2 }
 0x132   : > { %v1034_v12 = vadd.f32 %v1033_v11, %v8876_v10 }
 0x133   : > { %v1062_v13 = vpop.f32.mrf.mxu3  ;;  %v1025_v27 = vpop.f32.mrf.mxu0 }
 0x134   : > { %v8879_v14 = vadd.f32 %v1062_v13, %v1034_v12  ;;  %v1026_v35 = vadd.f32 %v1025_v27, %v8876_v10 }
 0x135   : > { %v1054_v33 = vpop.f32.mrf.mxu1  ;;  %v8029_v27 = vpop.eup %8028 }
 0x136   : > { %v8894_v40 = vadd.f32 %v1054_v33, %v1026_v35  ;;  %vm1159_vm0 = vweird.f32 %v8029_v27 }
 0x139   : > { %v1035_v15 = vpop.f32.mrf.mxu2 }
 0x13a   : > { %v1036_v1 = vadd.f32 %v1035_v15, %v8876_v10 }
 0x13b   : > { %v1064_v17 = vpop.f32.mrf.mxu3  ;;  %v1028_v39 = vpop.f32.mrf.mxu0 }
 0x13c   : > { %v1029_v42 = vadd.f32 %v1028_v39, %v8876_v10  ;;  %v8919_v5 = vadd.f32 %v1064_v17, %v1036_v1 }
 0x13d   : > { %v1057_v44 = vpop.f32.mrf.mxu1 }
 0x13e   : > { %v8901_v46 = vadd.f32 %v1057_v44, %v1029_v42 }
 0x141   : > { %v1038_v18 = vpop.f32.mrf.mxu2 }
 0x142   : > { %v1039_v19 = vadd.f32 %v1038_v18, %v8876_v10 }
 0x143   : > { %v1067_v20 = vpop.f32.mrf.mxu3  ;;  %v1030_v50 = vpop.f32.mrf.mxu0 }
 0x144   : > { %v8882_v16 = vadd.f32 %v1067_v20, %v1039_v19  ;;  %v1031_v52 = vadd.f32 %v1030_v50, %v8876_v10 }
 0x145   : > { %v1059_v53 = vpop.f32.mrf.mxu1 }
 0x146   : > { %v8908_v57 = vadd.f32 %v1059_v53, %v1031_v52 }
 0x149   : > { %v1040_v22 = vpop.f32.mrf.mxu2 }
 0x14a   : > { %v1041_v15 = vadd.f32 %v1040_v22, %v8876_v10 }
 0x14b   : > { %v8884_v23 = vpop.f32.mrf.mxu3 }
 0x14c   : > { %v8931_v20 = vadd.f32 %v8884_v23, %v1041_v15 }
 0x151   : > { %v1081_v28 = vpop.f32.mrf.mxu2 }
 0x152   : > { %v1082_v30 = vadd.f32 %v1081_v28, %v851_v26  ;;  %v1155_v28 = vmul.f32 256.0, %v8029_v27 }
 0x153   : > { %v1110_v31 = vpop.f32.mrf.mxu3 }
 0x154   : > { %v8889_v32 = vadd.f32 %v1110_v31, %v1082_v30  ;;  %v1156_v30 = vsub.f32 1.0, %v1155_v28  ;;  %v7699_v28 = vld [vmem:[%s8713_s17 + $0x1e4] sm:$0xf0] }
 0x156   : > { %v1130_v34 = vadd.f32 %v8889_v32, %v8887_v29  ;;  %v1157_v31 = vmul.f32 %v8029_v27, %v1156_v30  ;;  %v6960_v30 = vld [vmem:[%s8713_s17 + $0x3c8] sm:$0xf] }
 0x158   : > { %1131 = vadd.xlane.f32.xlu0 %v1130_v34  ;;  %v1158_v10 = vadd.f32 %v8029_v27, %v1157_v31  ;;  %v7715_v31 = vld [vmem:[%s8713_s17 + $0x3e4] sm:$0xf0] }
 0x159   : > { %v1083_v36 = vpop.f32.mrf.mxu2 }
 0x15a   : > { %v1084_v37 = vadd.f32 %v1083_v36, %v851_v26  ;;  %v8937_v22 = vsel %vm1159_vm0, %v8029_v27, %v1158_v10  ;;  %v6896_v27 = vld [vmem:[%s8713_s17 + $0x1c8] sm:$0xf]  ;;  %v7698_v10 = vld [vmem:[%s8713_s17 + $0x1cc] sm:$0xf] }
 0x15b   : > { %v1112_v38 = vpop.f32.mrf.mxu3  ;;  %12388 = vst [vmem:[#allocation22_spill] sm:$0xff] %v8937_v22 }
 0x15c   : > { %v8896_v41 = vadd.f32 %v1112_v38, %v1084_v37 }
 0x15e   : > { %v1133_v43 = vadd.f32 %v8896_v41, %v8894_v40 }
 0x160   : > { %1134 = vadd.xlane.f32.xlu0 %v1133_v43 }
 0x161   : > { %v1086_v45 = vpop.f32.mrf.mxu2 }
 0x162   : > { %v1087_v47 = vadd.f32 %v1086_v45, %v851_v26 }
 0x163   : > { %v1115_v48 = vpop.f32.mrf.mxu3 }
 0x164   : > { %v8903_v49 = vadd.f32 %v1115_v48, %v1087_v47 }
 0x166   : > { %v1136_v51 = vadd.f32 %v8903_v49, %v8901_v46 }
 0x168   : > { %1137 = vadd.xlane.f32.xlu1 %v1136_v51 }
 0x169   : > { %v1088_v54 = vpop.f32.mrf.mxu2 }
 0x16a   : > { %v1089_v55 = vadd.f32 %v1088_v54, %v851_v26 }
 0x16b   : > { %v1117_v56 = vpop.f32.mrf.mxu3 }
 0x16c   : > { %v8910_v58 = vadd.f32 %v1117_v56, %v1089_v55 }
 0x16e   : > { %v1139_v59 = vadd.f32 %v8910_v58, %v8908_v57 }
 0x170   : > { %1140 = vadd.xlane.f32.xlu1 %v1139_v59 }
 0x171   : > { %v1091_v60 = vpop.f32.mrf.mxu2 }
 0x172   : > { %v1092_v61 = vadd.f32 %v1091_v60, %v851_v26 }
 0x173   : > { %v1120_v62 = vpop.f32.mrf.mxu3 }
 0x174   : > { %v8914_v63 = vadd.f32 %v1120_v62, %v1092_v61 }
 0x176   : > { %v1142_v0 = vadd.f32 %v8914_v63, %v8879_v14 }
 0x178   : > { %1143 = vadd.xlane.f32.xlu2 %v1142_v0 }
 0x179   : > { %v1093_v2 = vpop.f32.mrf.mxu2 }
 0x17a   : > { %v1094_v3 = vadd.f32 %v1093_v2, %v851_v26 }
 0x17b   : > { %v1122_v4 = vpop.f32.mrf.mxu3 }
 0x17c   : > { %v8921_v6 = vadd.f32 %v1122_v4, %v1094_v3 }
 0x17e   : > { %v1145_v7 = vadd.f32 %v8921_v6, %v8919_v5 }
 0x180   : > { %1146 = vadd.xlane.f32.xlu2 %v1145_v7 }
 0x181   : > { %v1096_v8 = vpop.f32.mrf.mxu2 }
 0x182   : > { %v1097_v9 = vadd.f32 %v1096_v8, %v851_v26 }
 0x183   : > { %v1125_v11 = vpop.f32.mrf.mxu3 }
 0x184   : > { %v8925_v12 = vadd.f32 %v1125_v11, %v1097_v9 }
 0x186   : > { %v1148_v13 = vadd.f32 %v8925_v12, %v8882_v16 }
 0x188   : > { %1149 = vadd.xlane.f32.xlu0 %v1148_v13 }
 0x189   : > { %v1098_v18 = vpop.f32.mrf.mxu2 }
 0x18a   : > { %v1099_v17 = vadd.f32 %v1098_v18, %v851_v26 }
 0x18b   : > { %v1127_v19 = vpop.f32.mrf.mxu3 }
 0x18c   : > { %v8933_v21 = vadd.f32 %v1127_v19, %v1099_v17 }
 0x18e   : > { %v1151_v24 = vadd.f32 %v8933_v21, %v8931_v20 }
 0x190   : > { %1152 = vadd.xlane.f32.xlu1 %v1151_v24 }
 0x1cb   : > { %v1132_v26 = vpop.xlane.xlu0 %1131 }
 0x1cc   : > { %v1161_v23 = vmul.f32 %v8937_v22, %v1132_v26  ;;  %v6961_v26 = vor.u32 %v7715_v31, %v6960_v30  ;;  %v7691_v30 = vld [vmem:[%s8713_s17 + $0xe4] sm:$0xf0] }
 0x1ce   : > { %v8941_v33 = vsub.f32 %v8887_v29, %v1161_v23  ;;  %v8944_v34 = vsub.f32 %v8889_v32, %v1161_v23  ;;  %1613 = vmatpush.bf16.msrb.mxu1 %v6961_v26  ;;  %v6866_v26 = vld [vmem:[%s8713_s17 + $0xe8] sm:$0xf0] }
 0x1d0   : > { %v1185_v35 = vmul.f32 %v8941_v33, %v8941_v33  ;;  %v1186_v36 = vmul.f32 %v8944_v34, %v8944_v34 }
 0x1d2   : > { %v1201_v37 = vadd.f32 %v1186_v36, %v1185_v35  ;;  %v7714_v35 = vld [vmem:[%s8713_s17 + $0x3cc] sm:$0xf] }
 0x1d3   : > { %v1135_v38 = vpop.xlane.xlu0 %1134  ;;  %v6962_v36 = vld [vmem:[%s8713_s17 + $0x3e8] sm:$0xf0] }
 0x1d4   : > { %v1162_v39 = vmul.f32 %v8937_v22, %v1135_v38  ;;  %1202 = vadd.xlane.f32.xlu2 %v1201_v37  ;;  %v6965_v37 = vor.u32 %v7714_v35, %v6962_v36  ;;  %v6888_v38 = vld [vmem:[%s8713_s17 + $0x188] sm:$0xf]  ;;  %v7706_v36 = vld [vmem:[%s8713_s17 + $0x2cc] sm:$0xf] }
 0x1d6   : > { %v8952_v42 = vsub.f32 %v8894_v40, %v1162_v39  ;;  %v8955_v29 = vsub.f32 %v8896_v41, %v1162_v39  ;;  %v7697_v39 = vld [vmem:[%s8713_s17 + $0x1a4] sm:$0xf0]  ;;  %1671 = vmatpush.bf16.msra.mxu3 %v6965_v37  ;;  %v6930_v37 = vld [vmem:[%s8713_s17 + $0x2e8] sm:$0xf0] }
 0x1d8   : > { %v1187_v32 = vmul.f32 %v8952_v42, %v8952_v42  ;;  %v1188_v43 = vmul.f32 %v8955_v29, %v8955_v29 }
 0x1da   : > { %v1204_v44 = vadd.f32 %v1188_v43, %v1187_v32  ;;  %v6952_v32 = vld [vmem:[%s8713_s17 + $0x388] sm:$0xf]  ;;  %v6889_v43 = vor.u32 %v7697_v39, %v6888_v38  ;;  %v6933_v38 = vor.u32 %v7706_v36, %v6930_v37 }
 0x1db   : > { %v1138_v45 = vpop.xlane.xlu1 %1137  ;;  %v6856_v39 = vld [vmem:[%s8713_s17 + $0x88] sm:$0xf] }
 0x1dc   : > { %v1163_v47 = vmul.f32 %v8937_v22, %v1138_v45  ;;  %1205 = vadd.xlane.f32.xlu0 %v1204_v44  ;;  %v7713_v44 = vld [vmem:[%s8713_s17 + $0x3a4] sm:$0xf0]  ;;  %v7696_v45 = vld [vmem:[%s8713_s17 + $0x18c] sm:$0xf] }
 0x1de   : > { %v8963_v48 = vsub.f32 %v8901_v46, %v1163_v47  ;;  %v8966_v40 = vsub.f32 %v8903_v49, %v1163_v47  ;;  %v6890_v47 = vld [vmem:[%s8713_s17 + $0x1a8] sm:$0xf0] }
 0x1e0   : > { %v1189_v41 = vmul.f32 %v8963_v48, %v8963_v48  ;;  %v1190_v50 = vmul.f32 %v8966_v40, %v8966_v40 }
 0x1e2   : > { %v1207_v51 = vadd.f32 %v1190_v50, %v1189_v41  ;;  %v6953_v41 = vor.u32 %v7713_v44, %v6952_v32  ;;  %v6893_v50 = vor.u32 %v7696_v45, %v6890_v47  ;;  %v7689_v32 = vld [vmem:[%s8713_s17 + $0xa4] sm:$0xf0]  ;;  %v7688_v47 = vld [vmem:[%s8713_s17 + $0x8c] sm:$0xf] }
 0x1e3   : > { %v1141_v52 = vpop.xlane.xlu1 %1140  ;;  %v6857_v44 = vor.u32 %v7689_v32, %v6856_v39  ;;  %v7705_v45 = vld [vmem:[%s8713_s17 + $0x2a4] sm:$0xf0] }
 0x1e4   : > { %v1164_v53 = vmul.f32 %v8937_v22, %v1141_v52  ;;  %1208 = vadd.xlane.f32.xlu1 %v1207_v51  ;;  %v7712_v51 = vld [vmem:[%s8713_s17 + $0x38c] sm:$0xf]  ;;  %1614 = vmatpush.bf16.msrb.mxu1 %v6953_v41 }
 0x1e5   : > { %v6954_v52 = vld [vmem:[%s8713_s17 + $0x3a8] sm:$0xf0] }
 0x1e6   : > { %v8974_v54 = vsub.f32 %v8908_v57, %v1164_v53  ;;  %v8977_v46 = vsub.f32 %v8910_v58, %v1164_v53  ;;  %v6957_v53 = vor.u32 %v7712_v51, %v6954_v52  ;;  %v6858_v41 = vld [vmem:[%s8713_s17 + $0xa8] sm:$0xf0] }
 0x1e7   : > { %v6861_v52 = vor.u32 %v7688_v47, %v6858_v41 }
 0x1e8   : > { %v1191_v49 = vmul.f32 %v8974_v54, %v8974_v54  ;;  %v1192_v55 = vmul.f32 %v8977_v46, %v8977_v46  ;;  %1672 = vmatpush.bf16.msra.mxu3 %v6957_v53  ;;  %v7704_v53 = vld [vmem:[%s8713_s17 + $0x28c] sm:$0xf] }
 0x1ea   : > { %v1210_v56 = vadd.f32 %v1192_v55, %v1191_v49  ;;  %v6880_v49 = vld [vmem:[%s8713_s17 + $0x148] sm:$0xf] }
 0x1eb   : > { %v1144_v59 = vpop.xlane.xlu2 %1143  ;;  %v7695_v55 = vld [vmem:[%s8713_s17 + $0x164] sm:$0xf0] }
 0x1ec   : > { %v1165_v60 = vmul.f32 %v8937_v22, %v1144_v59  ;;  %1211 = vadd.xlane.f32.xlu2 %v1210_v56  ;;  %v6944_v56 = vld [vmem:[%s8713_s17 + $0x348] sm:$0xf]  ;;  %v6881_v59 = vor.u32 %v7695_v55, %v6880_v49  ;;  %v6922_v49 = vld [vmem:[%s8713_s17 + $0x2a8] sm:$0xf0] }
 0x1ee   : > { %v8985_v61 = vsub.f32 %v8879_v14, %v1165_v60  ;;  %v8988_v57 = vsub.f32 %v8914_v63, %v1165_v60  ;;  %v7711_v60 = vld [vmem:[%s8713_s17 + $0x364] sm:$0xf0] }
 0x1f0   : > { %v1193_v58 = vmul.f32 %v8985_v61, %v8985_v61  ;;  %v1194_v62 = vmul.f32 %v8988_v57, %v8988_v57 }
 0x1f2   : > { %v1213_v0 = vadd.f32 %v1194_v62, %v1193_v58  ;;  %v7694_v58 = vld [vmem:[%s8713_s17 + $0x14c] sm:$0xf] }
 0x1f3   : > { %v1147_v1 = vpop.xlane.xlu2 %1146  ;;  %v6882_v62 = vld [vmem:[%s8713_s17 + $0x168] sm:$0xf0] }
 0x1f4   : > { %v1166_v2 = vmul.f32 %v8937_v22, %v1147_v1  ;;  %1214 = vadd.xlane.f32.xlu0 %v1213_v0  ;;  %v6945_v0 = vor.u32 %v7711_v60, %v6944_v56  ;;  %v6885_v1 = vor.u32 %v7694_v58, %v6882_v62  ;;  %v6925_v56 = vor.u32 %v7704_v53, %v6922_v49  ;;  %v7687_v60 = vld [vmem:[%s8713_s17 + $0x64] sm:$0xf0]  ;;  %v712_v53 = vld [vmem:[#allocation8 + $0x1] ss:$2 sm:$0x3] }
 0x1f5   : > { %v6912_v58 = vld [vmem:[%s8713_s17 + $0x248] sm:$0xf] }
 0x1f6   : > { %v8996_v3 = vsub.f32 %v8919_v5, %v1166_v2  ;;  %v8999_v14 = vsub.f32 %v8921_v6, %v1166_v2  ;;  %v7710_v2 = vld [vmem:[%s8713_s17 + $0x34c] sm:$0xf]  ;;  %1615 = vmatpush.bf16.msrb.mxu1 %v6945_v0 }
 0x1f8   : > { %v1195_v63 = vmul.f32 %v8996_v3, %v8996_v3  ;;  %v1196_v4 = vmul.f32 %v8999_v14, %v8999_v14 }
 0x1fa   : > { %v1216_v7 = vadd.f32 %v1196_v4, %v1195_v63  ;;  %v6946_v63 = vld [vmem:[%s8713_s17 + $0x368] sm:$0xf0] }
 0x1fb   : > { %v1150_v8 = vpop.xlane.xlu0 %1149  ;;  %v6949_v4 = vor.u32 %v7710_v2, %v6946_v63  ;;  %v7686_v2 = vld [vmem:[%s8713_s17 + $0x4c] sm:$0xf] }
 0x1fc   : > { %v1167_v9 = vmul.f32 %v8937_v22, %v1150_v8  ;;  %1217 = vadd.xlane.f32.xlu1 %v1216_v7  ;;  %v6872_v7 = vld [vmem:[%s8713_s17 + $0x108] sm:$0xf] }
 0x1fd   : > { %v7693_v8 = vld [vmem:[%s8713_s17 + $0x124] sm:$0xf0]  ;;  %1673 = vmatpush.bf16.msra.mxu3 %v6949_v4  ;;  %v6850_v4 = vld [vmem:[%s8713_s17 + $0x68] sm:$0xf0] }
 0x1fe   : > { %v9007_v11 = vsub.f32 %v8882_v16, %v1167_v9  ;;  %v9010_v5 = vsub.f32 %v8925_v12, %v1167_v9  ;;  %v6936_v9 = vld [vmem:[%s8713_s17 + $0x308] sm:$0xf] }
 0x200   : > { %v1197_v6 = vmul.f32 %v9007_v11, %v9007_v11  ;;  %v1198_v13 = vmul.f32 %v9010_v5, %v9010_v5 }
 0x202   : > { %v1219_v15 = vadd.f32 %v1198_v13, %v1197_v6  ;;  %v6873_v6 = vor.u32 %v7693_v8, %v6872_v7  ;;  %v7709_v13 = vld [vmem:[%s8713_s17 + $0x324] sm:$0xf0]  ;;  %v7702_v7 = vld [vmem:[%s8713_s17 + $0x24c] sm:$0xf] }
 0x203   : > { %v1153_v18 = vpop.xlane.xlu1 %1152  ;;  %v6914_v8 = vld [vmem:[%s8713_s17 + $0x268] sm:$0xf0] }
 0x204   : > { %v1168_v17 = vmul.f32 %v8937_v22, %v1153_v18  ;;  %1220 = vadd.xlane.f32.xlu2 %v1219_v15  ;;  %v7692_v15 = vld [vmem:[%s8713_s17 + $0x10c] sm:$0xf] }
 0x205   : > { %v6874_v18 = vld [vmem:[%s8713_s17 + $0x128] sm:$0xf0] }
 0x206   : > { %v9018_v16 = vsub.f32 %v8931_v20, %v1168_v17  ;;  %v9021_v12 = vsub.f32 %v8933_v21, %v1168_v17  ;;  %v6897_v20 = vor.u32 %v7699_v28, %v6896_v27  ;;  %v6898_v21 = vld [vmem:[%s8713_s17 + $0x1e8] sm:$0xf0]  ;;  %v6937_v17 = vor.u32 %v7709_v13, %v6936_v9  ;;  %v6864_v28 = vld [vmem:[%s8713_s17 + $0xc8] sm:$0xf] }
 0x207   : > { %v6901_v23 = vor.u32 %v7698_v10, %v6898_v21  ;;  %v6865_v31 = vor.u32 %v7691_v30, %v6864_v28  ;;  %v7707_v10 = vld [vmem:[%s8713_s17 + $0x2e4] sm:$0xf0]  ;;  %v7690_v21 = vld [vmem:[%s8713_s17 + $0xcc] sm:$0xf]  ;;  %v6853_v9 = vor.u32 %v7686_v2, %v6850_v4 }
 0x208   : > { %v1199_v19 = vmul.f32 %v9018_v16, %v9018_v16  ;;  %v1200_v24 = vmul.f32 %v9021_v12, %v9021_v12  ;;  %1584 = vmatpush.bf16.msrb.mxu0 %v6897_v20  ;;  %1616 = vmatpush.bf16.msrb.mxu1 %v6937_v17  ;;  %v6928_v20 = vld [vmem:[%s8713_s17 + $0x2c8] sm:$0xf]  ;;  %v6869_v35 = vor.u32 %v7690_v21, %v6866_v26 }
 0x209   : > { %1642 = vmatpush.bf16.msra.mxu2 %v6901_v23  ;;  %v6929_v23 = vor.u32 %v7707_v10, %v6928_v20  ;;  %v6840_v13 = vld [vmem:[%s8713_s17 + $0x8] sm:$0xf]  ;;  %v7700_v20 = vld [vmem:[%s8713_s17 + $0x20c] sm:$0xf] }
 0x20a   : > { %v1222_v25 = vadd.f32 %v1200_v24, %v1199_v19  ;;  %v6877_v19 = vor.u32 %v7692_v15, %v6874_v18  ;;  %v7708_v24 = vld [vmem:[%s8713_s17 + $0x30c] sm:$0xf]  ;;  %v7685_v15 = vld [vmem:[%s8713_s17 + $0x24] sm:$0xf0] }
 0x20b   : > { %v6904_v18 = vld [vmem:[%s8713_s17 + $0x208] sm:$0xf]  ;;  %v6841_v17 = vor.u32 %v7685_v15, %v6840_v13 }
 0x20c   : > { %1223 = vadd.xlane.f32.xlu0 %v1222_v25  ;;  %1585 = vmatpush.bf16.msrb.mxu0 %v6889_v43  ;;  %v6938_v25 = vld [vmem:[%s8713_s17 + $0x328] sm:$0xf0]  ;;  %v6920_v43 = vld [vmem:[%s8713_s17 + $0x288] sm:$0xf] }
 0x20d   : > { %1643 = vmatpush.bf16.msra.mxu2 %v6893_v50  ;;  %v6941_v27 = vor.u32 %v7708_v24, %v6938_v25  ;;  %1617 = vmatpush.bf16.msrb.mxu1 %v6929_v23  ;;  %v6921_v51 = vor.u32 %v7705_v45, %v6920_v43  ;;  %v7684_v24 = vld [vmem:[%s8713_s17 + $0xc] sm:$0xf] }
 0x20e   : > { %v6842_v25 = vld [vmem:[%s8713_s17 + $0x28] sm:$0xf0] }
 0x20f   : > { %1674 = vmatpush.bf16.msra.mxu3 %v6941_v27  ;;  %v6845_v30 = vor.u32 %v7684_v24, %v6842_v25 }
 0x210   : > { %1586 = vmatpush.bf16.msrb.mxu0 %v6881_v59  ;;  %v6848_v59 = vld [vmem:[%s8713_s17 + $0x48] sm:$0xf] }
 0x211   : > { %1644 = vmatpush.bf16.msra.mxu2 %v6885_v1  ;;  %1618 = vmatpush.bf16.msrb.mxu1 %v6921_v51  ;;  %v6849_v0 = vor.u32 %v7687_v60, %v6848_v59  ;;  %v7703_v1 = vld [vmem:[%s8713_s17 + $0x264] sm:$0xf0] }
 0x212   : > { %v6913_v63 = vor.u32 %v7703_v1, %v6912_v58 }
 0x213   : > { %1675 = vmatpush.bf16.msra.mxu3 %v6933_v38 }
 0x214   : > { %1587 = vmatpush.bf16.msrb.mxu0 %v6873_v6  ;;  %v6917_v6 = vor.u32 %v7702_v7, %v6914_v8 }
 0x215   : > { %1645 = vmatpush.bf16.msra.mxu2 %v6877_v19  ;;  %1619 = vmatpush.bf16.msrb.mxu1 %v6913_v63  ;;  %v7701_v19 = vld [vmem:[%s8713_s17 + $0x224] sm:$0xf0]  ;;  %v9104_v63 = vperm.slane %v712_v53, 1 }
 0x216   : > { %v6905_v28 = vor.u32 %v7701_v19, %v6904_v18 }
 0x217   : > { %1676 = vmatpush.bf16.msra.mxu3 %v6925_v56 }
 0x218   : > { %1588 = vmatpush.bf16.msrb.mxu0 %v6865_v31  ;;  %v6906_v31 = vld [vmem:[%s8713_s17 + $0x228] sm:$0xf0] }
 0x219   : > { %1646 = vmatpush.bf16.msra.mxu2 %v6869_v35  ;;  %v6909_v21 = vor.u32 %v7700_v20, %v6906_v31  ;;  %1620 = vmatpush.bf16.msrb.mxu1 %v6905_v28 }
 0x21b   : > { %1677 = vmatpush.bf16.msra.mxu3 %v6917_v6 }
 0x21c   : > { %1589 = vmatpush.bf16.msrb.mxu0 %v6857_v44  ;;  %v710_v44 = vld [vmem:[#allocation8] ss:$2 sm:$0x3] }
 0x21d   : > { %1647 = vmatpush.bf16.msra.mxu2 %v6861_v52 }
 0x21f   : > { %1678 = vmatpush.bf16.msra.mxu3 %v6909_v21 }
 0x220   : > { %1590 = vmatpush.bf16.msrb.mxu0 %v6849_v0 }
 0x221   : > { %1648 = vmatpush.bf16.msra.mxu2 %v6853_v9 }
 0x224   : > { %1591 = vmatpush.bf16.msrb.mxu0 %v6841_v17 }
 0x225   : > { %1649 = vmatpush.bf16.msra.mxu2 %v6845_v30 }
 0x247   : > { %v1203_v50 = vpop.xlane.xlu2 %1202 }
 0x248   : > { %v1225_v55 = vmul.f32 %v1203_v50, %v8937_v22  ;;  %v9094_v50 = vperm.slane %v710_v44, 0 }
 0x24a   : > { %v1233_v62 = vadd.f32 1e-05, %v1225_v55  ;;  %v9097_v55 = vperm.slane %v710_v44, 1 }
 0x24c   : > { %8030 = vrsqrt.f32 %v1233_v62  ;;  %vm1247_vm2 = vweird.f32 %v1233_v62 }
 0x24f   : > { %v1206_v27 = vpop.xlane.xlu0 %1205 }
 0x250   : > { %v1226_v10 = vmul.f32 %v1206_v27, %v8937_v22 }
 0x252   : > { %v8031_v26 = vpop.eup %8030  ;;  %v1234_v23 = vadd.f32 1e-05, %v1226_v10 }
 0x253   : > { %v1242_v35 = vmul.f32 %v8031_v26, %v1233_v62  ;;  %vm1248_vm1 = vweird.f32 %v8031_v26  ;;  %v9101_v62 = vperm.slane %v712_v53, 0 }
 0x254   : > { %8032 = vrsqrt.f32 %v1234_v23  ;;  %vm1249_vm3 = vmor %vm1247_vm2, %vm1248_vm1  ;;  %vm1257_vm5 = vweird.f32 %v1234_v23 }
 0x255   : > { %v1243_v36 = vmul.f32 %v8031_v26, %v1242_v35 }
 0x257   : > { %v1244_v37 = vmul.f32 0.5, %v1243_v36  ;;  %v1209_v38 = vpop.xlane.xlu1 %1208 }
 0x258   : > { %v1227_v39 = vmul.f32 %v1209_v38, %v8937_v22 }
 0x259   : > { %v1245_v32 = vsub.f32 1.5, %v1244_v37 }
 0x25a   : > { %v8033_v43 = vpop.eup %8032  ;;  %v1235_v45 = vadd.f32 1e-05, %v1227_v39 }
 0x25b   : > { %v1246_v47 = vmul.f32 %v8031_v26, %v1245_v32  ;;  %v1252_v41 = vmul.f32 %v8033_v43, %v1234_v23  ;;  %vm1258_vm4 = vweird.f32 %v8033_v43 }
 0x25c   : > { %8034 = vrsqrt.f32 %v1235_v45  ;;  %vm1259_vm6 = vmor %vm1257_vm5, %vm1258_vm4  ;;  %vm1267_vm8 = vweird.f32 %v1235_v45 }
 0x25d   : > { %v1250_v51 = vsel %vm1249_vm3, %v8031_v26, %v1246_v47  ;;  %v1253_v52 = vmul.f32 %v8033_v43, %v1252_v41 }
 0x25e   : > { %v1321_v49 = vmul.f32 %v1250_v51, %v8941_v33  ;;  %v1322_v56 = vmul.f32 %v1250_v51, %v8944_v34  ;;  %v6703_v33 = vld [vmem:[%s8720_s29 + $0x1] ss:$8 sm:$0x3] }
 0x25f   : > { %v1254_v59 = vmul.f32 0.5, %v1253_v52  ;;  %v1212_v60 = vpop.xlane.xlu2 %1211  ;;  %v9114_v15 = vperm.slane %v6703_v33, 0  ;;  %v9121_v27 = vperm.slane %v6703_v33, 1 }
 0x260   : > { %v1228_v58 = vmul.f32 %v1212_v60, %v8937_v22  ;;  %v1342_v0 = vmul.f32 %v9094_v50, %v1321_v49  ;;  %v1343_v7 = vmul.f32 %v9097_v55, %v1322_v56 }
 0x261   : > { %v1255_v1 = vsub.f32 1.5, %v1254_v59 }
 0x262   : > { %v8035_v2 = vpop.eup %8034  ;;  %v9106_v4 = vadd.f32 1e-05, %v1228_v58  ;;  %v9112_v9 = vadd.f32 %v9101_v62, %v1342_v0  ;;  %v9119_v19 = vadd.f32 %v9104_v63, %v1343_v7 }
 0x263   : > { %v1256_v8 = vmul.f32 %v8033_v43, %v1255_v1  ;;  %v1262_v34 = vmul.f32 %v8035_v2, %v1235_v45  ;;  %vm1268_vm7 = vweird.f32 %v8035_v2  ;;  %v7024_v1 = vld [vmem:[%s8713_s17 + $0x1d0] sm:$0xf] }
 0x264   : > { %8036 = vrsqrt.f32 %v9106_v4  ;;  %12389 = vst [vmem:[#allocation23_spill] sm:$0xff] %v9112_v9  ;;  %v1385_v36 = vadd.f32 %v9121_v27, %v9119_v19  ;;  %vm1269_vm9 = vmor %vm1267_vm8, %vm1268_vm7  ;;  %vm1277_vm11 = vweird.f32 %v9106_v4 }
 0x265   : > { %v1260_v6 = vsel %vm1259_vm6, %v8033_v43, %v1256_v8  ;;  %v1263_v13 = vmul.f32 %v8035_v2, %v1262_v34  ;;  %12390 = vst [vmem:[#allocation24_spill] sm:$0xff] %v9119_v19 }
 0x266   : > { %v1323_v18 = vmul.f32 %v1260_v6, %v8952_v42  ;;  %v1324_v17 = vmul.f32 %v1260_v6, %v8955_v29  ;;  %v1384_v42 = vadd.f32 %v9114_v15, %v9112_v9  ;;  %v1401_v53 = vadd.f32 %v1385_v36, %v9119_v19 }
 0x267   : > { %v1264_v24 = vmul.f32 0.5, %v1263_v13  ;;  %v1215_v25 = vpop.xlane.xlu0 %1214  ;;  %v7088_v13 = vld [vmem:[%s8713_s17 + $0x3d0] sm:$0xf] }
 0x268   : > { %v1344_v28 = vmul.f32 %v9094_v50, %v1323_v18  ;;  %v1345_v30 = vmul.f32 %v9097_v55, %v1324_v17  ;;  %v1229_v20 = vmul.f32 %v1215_v25, %v8937_v22  ;;  %v1400_v43 = vadd.f32 %v1384_v42, %v9112_v9  ;;  %v7747_v18 = vld [vmem:[%s8713_s17 + $0x3ec] sm:$0xf0] }
 0x269   : > { %v1265_v31 = vsub.f32 1.5, %v1264_v24  ;;  %v7089_v25 = vor.u32 %v7747_v18, %v7088_v13 }
 0x26a   : > { %v8037_v10 = vpop.eup %8036  ;;  %v9129_v29 = vadd.f32 %v9101_v62, %v1344_v28  ;;  %v9132_v21 = vadd.f32 %v9104_v63, %v1345_v30  ;;  %v9134_v26 = vadd.f32 1e-05, %v1229_v20  ;;  %v7730_v28 = vld [vmem:[%s8713_s17 + $0x1d4] sm:$0xf] }
 0x26b   : > { %v1266_v23 = vmul.f32 %v8035_v2, %v1265_v31  ;;  %v1272_v35 = vmul.f32 %v8037_v10, %v9106_v4  ;;  %vm1278_vm10 = vweird.f32 %v8037_v10  ;;  %v7026_v30 = vld [vmem:[%s8713_s17 + $0x1f0] sm:$0xf0]  ;;  %2308 = vmatpush.bf16.msra.mxu1 %v7089_v25  ;;  %v7072_v25 = vld [vmem:[%s8713_s17 + $0x350] sm:$0xf] }
 0x26c   : > { %12391 = vst [vmem:[#allocation25_spill] sm:$0xff] %v9129_v29  ;;  %8038 = vrsqrt.f32 %v9134_v26  ;;  %v1386_v37 = vadd.f32 %v9114_v15, %v9129_v29  ;;  %v1387_v38 = vadd.f32 %v9121_v27, %v9132_v21  ;;  %v7746_v20 = vld [vmem:[%s8713_s17 + $0x3d4] sm:$0xf]  ;;  %vm1279_vm12 = vmor %vm1277_vm11, %vm1278_vm10  ;;  %vm1287_vm14 = vweird.f32 %v9134_v26 }
 0x26d   : > { %12392 = vst [vmem:[#allocation26_spill] sm:$0xff] %v9132_v21  ;;  %v1270_v39 = vsel %vm1269_vm9, %v8035_v2, %v1266_v23  ;;  %v1273_v32 = vmul.f32 %v8037_v10, %v1272_v35  ;;  %v7731_v2 = vld [vmem:[%s8713_s17 + $0x1ec] sm:$0xf0]  ;;  %v7090_v31 = vld [vmem:[%s8713_s17 + $0x3f0] sm:$0xf0]  ;;  %v7029_v35 = vor.u32 %v7730_v28, %v7026_v30 }
 0x26e   : > { %v1325_v44 = vmul.f32 %v1270_v39, %v8963_v48  ;;  %v1326_v45 = vmul.f32 %v1270_v39, %v8966_v40  ;;  %v1402_v47 = vadd.f32 %v1386_v37, %v9129_v29  ;;  %v1403_v41 = vadd.f32 %v1387_v38, %v9132_v21  ;;  %v7080_v39 = vld [vmem:[%s8713_s17 + $0x390] sm:$0xf] }
 0x26f   : > { %v1274_v51 = vmul.f32 0.5, %v1273_v32  ;;  %v1218_v52 = vpop.xlane.xlu1 %1217  ;;  %v9150_v49 = vpack.c.bf16 %v1386_v37, %v1384_v42  ;;  %v9152_v56 = vpack.c.bf16 %v1387_v38, %v1385_v36  ;;  %v7025_v6 = vor.u32 %v7731_v2, %v7024_v1  ;;  %v7016_v37 = vld [vmem:[%s8713_s17 + $0x190] sm:$0xf]  ;;  %2397 = vmatpush.bf16.msrb.mxu2 %v7029_v35 }
 0x270   : > { %v1346_v59 = vmul.f32 %v9094_v50, %v1325_v44  ;;  %v1347_v48 = vmul.f32 %v9097_v55, %v1326_v45  ;;  %v1230_v40 = vmul.f32 %v1218_v52, %v8937_v22  ;;  %v1416_v60 = vpack.c.bf16 %v1402_v47, %v1400_v43  ;;  %v7729_v38 = vld [vmem:[%s8713_s17 + $0x1ac] sm:$0xf0]  ;;  %v7728_v45 = vld [vmem:[%s8713_s17 + $0x194] sm:$0xf] }
 0x271   : > { %v1275_v58 = vsub.f32 1.5, %v1274_v51  ;;  %v1417_v0 = vpack.c.bf16 %v1403_v41, %v1401_v53  ;;  %2219 = vmatpush.bf16.msra.mxu0 %v7025_v6  ;;  %v7093_v36 = vor.u32 %v7746_v20, %v7090_v31  ;;  %v7018_v47 = vld [vmem:[%s8713_s17 + $0x1b0] sm:$0xf0]  ;;  %v7017_v52 = vor.u32 %v7729_v38, %v7016_v37  ;;  %v7008_v2 = vld [vmem:[%s8713_s17 + $0x150] sm:$0xf] }
 0x272   : > { %v9159_v33 = vpop.eup %8038  ;;  %v9162_v7 = vadd.f32 %v9101_v62, %v1346_v59  ;;  %v9165_v8 = vadd.f32 %v9104_v63, %v1347_v48  ;;  %v9167_v34 = vadd.f32 1e-05, %v1230_v40  ;;  %1592 = vmatmul.bf16.vlgmr.msrb.gmra.mxu0 %v1416_v60  ;;  %1650 = vmatmul.bf16.vlgmr.msra.gmra.mxu2 %v1416_v60  ;;  %v7744_v59 = vld [vmem:[%s8713_s17 + $0x394] sm:$0xf]  ;;  %v7727_v6 = vld [vmem:[%s8713_s17 + $0x16c] sm:$0xf0] }
 0x273   : > { %v1276_v17 = vmul.f32 %v8037_v10, %v1275_v58  ;;  %v1282_v24 = vmul.f32 %v9159_v33, %v9134_v26  ;;  %1621 = vmatmul.bf16.vlgmr.msrb.gmra.mxu1 %v1417_v0  ;;  %1679 = vmatmul.bf16.vlgmr.msra.gmra.mxu3 %v1417_v0  ;;  %vm1288_vm13 = vweird.f32 %v9159_v33  ;;  %v7009_v26 = vor.u32 %v7727_v6, %v7008_v2  ;;  %v7743_v28 = vld [vmem:[%s8713_s17 + $0x36c] sm:$0xf0]  ;;  %v7742_v38 = vld [vmem:[%s8713_s17 + $0x354] sm:$0xf] }
 0x274   : > { %12393 = vst [vmem:[#allocation27_spill] sm:$0xff] %v9162_v7  ;;  %8040 = vrsqrt.f32 %v9167_v34  ;;  %v9181_v4 = vadd.f32 %v9114_v15, %v9162_v7  ;;  %v9193_v44 = vadd.f32 %v9121_v27, %v9165_v8  ;;  %2486 = vmatpush.bf16.msrb.mxu3 %v7093_v36  ;;  %vm1289_vm15 = vmor %vm1287_vm14, %vm1288_vm13  ;;  %vm1297_vm0 = vweird.f32 %v9167_v34 }
 0x275   : > { %12394 = vst [vmem:[#allocation28_spill] sm:$0xff] %v9165_v8  ;;  %v1280_v42 = vsel %vm1279_vm12, %v8037_v10, %v1276_v17  ;;  %v1283_v23 = vmul.f32 %v9159_v33, %v1282_v24  ;;  %v7745_v10 = vld [vmem:[%s8713_s17 + $0x3ac] sm:$0xf0]  ;;  %2220 = vmatpush.bf16.msra.mxu0 %v7017_v52  ;;  %v7073_v31 = vor.u32 %v7743_v28, %v7072_v25 }
 0x276   : > { %v1327_v32 = vmul.f32 %v1280_v42, %v8974_v54  ;;  %v1328_v43 = vmul.f32 %v1280_v42, %v8977_v46  ;;  %v7081_v53 = vor.u32 %v7745_v10, %v7080_v39  ;;  %v7021_v54 = vor.u32 %v7728_v45, %v7018_v47  ;;  %v7082_v46 = vld [vmem:[%s8713_s17 + $0x3b0] sm:$0xf0]  ;;  %v7725_v47 = vld [vmem:[%s8713_s17 + $0x12c] sm:$0xf0] }
 0x277   : > { %v1284_v41 = vmul.f32 0.5, %v1283_v23  ;;  %v1221_v51 = vpop.xlane.xlu2 %1220  ;;  %v7085_v58 = vor.u32 %v7744_v59, %v7082_v46  ;;  %v1404_v1 = vadd.f32 %v9181_v4, %v9162_v7  ;;  %v7726_v42 = vld [vmem:[%s8713_s17 + $0x154] sm:$0xf]  ;;  %v1405_v37 = vadd.f32 %v9193_v44, %v9165_v8 }
 0x278   : > { %v1348_v48 = vmul.f32 %v9094_v50, %v1327_v32  ;;  %v1349_v40 = vmul.f32 %v9097_v55, %v1328_v43  ;;  %v1231_v60 = vmul.f32 %v1221_v51, %v8937_v22  ;;  %2309 = vmatpush.bf16.msra.mxu1 %v7081_v53  ;;  %2398 = vmatpush.bf16.msrb.mxu2 %v7021_v54  ;;  %v7010_v23 = vld [vmem:[%s8713_s17 + $0x170] sm:$0xf0]  ;;  %v7000_v32 = vld [vmem:[%s8713_s17 + $0x110] sm:$0xf] }
 0x279   : > { %v1285_v0 = vsub.f32 1.5, %v1284_v41  ;;  %2487 = vmatpush.bf16.msrb.mxu3 %v7085_v58  ;;  %v7074_v39 = vld [vmem:[%s8713_s17 + $0x370] sm:$0xf0]  ;;  %2221 = vmatpush.bf16.msra.mxu0 %v7009_v26  ;;  %v7013_v45 = vor.u32 %v7726_v42, %v7010_v23  ;;  %v7064_v41 = vld [vmem:[%s8713_s17 + $0x310] sm:$0xf] }
 0x27a   : > { %v9208_v13 = vpop.eup %8040  ;;  %v9211_v18 = vadd.f32 %v9101_v62, %v1348_v48  ;;  %v9214_v17 = vadd.f32 %v9104_v63, %v1349_v40  ;;  %v9216_v24 = vadd.f32 1e-05, %v1231_v60  ;;  %v7741_v51 = vld [vmem:[%s8713_s17 + $0x32c] sm:$0xf0]  ;;  %v7724_v59 = vld [vmem:[%s8713_s17 + $0x114] sm:$0xf]  ;;  %v7077_v58 = vor.u32 %v7742_v38, %v7074_v39 }
 0x27b   : > { %v1286_v30 = vmul.f32 %v9159_v33, %v1285_v0  ;;  %v1292_v20 = vmul.f32 %v9208_v13, %v9167_v34  ;;  %vm1298_vm1 = vweird.f32 %v9208_v13  ;;  %v7002_v46 = vld [vmem:[%s8713_s17 + $0x130] sm:$0xf0]  ;;  %v7001_v0 = vor.u32 %v7725_v47, %v7000_v32  ;;  %v6992_v42 = vld [vmem:[%s8713_s17 + $0xd0] sm:$0xf] }
 0x27c   : > { %12395 = vst [vmem:[#allocation29_spill] sm:$0xff] %v9211_v18  ;;  %8042 = vrsqrt.f32 %v9216_v24  ;;  %v9231_v35 = vadd.f32 %v9114_v15, %v9211_v18  ;;  %v9235_v36 = vadd.f32 %v9121_v27, %v9214_v17  ;;  %2310 = vmatpush.bf16.msra.mxu1 %v7073_v31  ;;  %v7740_v48 = vld [vmem:[%s8713_s17 + $0x314] sm:$0xf]  ;;  %2399 = vmatpush.bf16.msrb.mxu2 %v7013_v45  ;;  %v7723_v23 = vld [vmem:[%s8713_s17 + $0xec] sm:$0xf0]  ;;  %vm1299_vm2 = vmor %vm1297_vm0, %vm1298_vm1  ;;  %vm1307_vm3 = vweird.f32 %v9216_v24 }
 0x27d   : > { %12396 = vst [vmem:[#allocation30_spill] sm:$0xff] %v9214_v17  ;;  %v1290_v43 = vsel %vm1289_vm15, %v9159_v33, %v1286_v30  ;;  %v1293_v10 = vmul.f32 %v9208_v13, %v1292_v20  ;;  %v7065_v2 = vor.u32 %v7741_v51, %v7064_v41  ;;  %2488 = vmatpush.bf16.msrb.mxu3 %v7077_v58  ;;  %v7722_v41 = vld [vmem:[%s8713_s17 + $0xd4] sm:$0xf]  ;;  %v7737_v58 = vld [vmem:[%s8713_s17 + $0x2ac] sm:$0xf0] }
 0x27e   : > { %v1329_v52 = vmul.f32 %v1290_v43, %v8985_v61  ;;  %v1330_v53 = vmul.f32 %v1290_v43, %v8988_v57  ;;  %v1406_v54 = vadd.f32 %v9231_v35, %v9211_v18  ;;  %v1407_v33 = vadd.f32 %v9235_v36, %v9214_v17  ;;  %v7066_v61 = vld [vmem:[%s8713_s17 + $0x330] sm:$0xf0]  ;;  %2222 = vmatpush.bf16.msra.mxu0 %v7001_v0  ;;  %v7056_v43 = vld [vmem:[%s8713_s17 + $0x2d0] sm:$0xf] }
 0x27f   : > { %v1294_v40 = vmul.f32 0.5, %v1293_v10  ;;  %v1224_v60 = vpop.xlane.xlu0 %1223  ;;  %v7005_v20 = vor.u32 %v7724_v59, %v7002_v46  ;;  %v7069_v31 = vor.u32 %v7740_v48, %v7066_v61  ;;  %v7739_v10 = vld [vmem:[%s8713_s17 + $0x2ec] sm:$0xf0]  ;;  %v6994_v51 = vld [vmem:[%s8713_s17 + $0xf0] sm:$0xf0] }
 0x280   : > { %v1350_v57 = vmul.f32 %v9094_v50, %v1329_v52  ;;  %v1351_v6 = vmul.f32 %v9097_v55, %v1330_v53  ;;  %v1232_v26 = vmul.f32 %v1224_v60, %v8937_v22  ;;  %v1418_v25 = vpack.c.bf16 %v1406_v54, %v1404_v1  ;;  %2311 = vmatpush.bf16.msra.mxu1 %v7065_v2  ;;  %v7738_v53 = vld [vmem:[%s8713_s17 + $0x2d4] sm:$0xf]  ;;  %v7048_v60 = vld [vmem:[%s8713_s17 + $0x290] sm:$0xf] }
 0x281   : > { %v1295_v28 = vsub.f32 1.5, %v1294_v40  ;;  %v1419_v30 = vpack.c.bf16 %v1407_v33, %v1405_v37  ;;  %v6993_v37 = vor.u32 %v7723_v23, %v6992_v42  ;;  %2400 = vmatpush.bf16.msrb.mxu2 %v7005_v20  ;;  %v7057_v34 = vor.u32 %v7739_v10, %v7056_v43  ;;  %v7058_v54 = vld [vmem:[%s8713_s17 + $0x2f0] sm:$0xf0]  ;;  %v6984_v33 = vld [vmem:[%s8713_s17 + $0x90] sm:$0xf]  ;;  %2489 = vmatpush.bf16.msrb.mxu3 %v7069_v31 }
 0x282   : > { %v9263_v38 = vpop.eup %8042  ;;  %v9266_v39 = vadd.f32 %v9101_v62, %v1350_v57  ;;  %v9269_v32 = vadd.f32 %v9104_v63, %v1351_v6  ;;  %v9271_v1 = vadd.f32 1e-05, %v1232_v26  ;;  %1597 = vmatmul.bf16.gmra.mxu0 %v1418_v25  ;;  %1655 = vmatmul.bf16.gmra.mxu2 %v1418_v25  ;;  %v6997_v48 = vor.u32 %v7722_v41, %v6994_v51  ;;  %v7721_v40 = vld [vmem:[%s8713_s17 + $0xac] sm:$0xf0]  ;;  %v6986_v57 = vld [vmem:[%s8713_s17 + $0xb0] sm:$0xf0] }
 0x283   : > { %v1296_v45 = vmul.f32 %v9208_v13, %v1295_v28  ;;  %v1302_v47 = vmul.f32 %v9263_v38, %v9216_v24  ;;  %1626 = vmatmul.bf16.gmra.mxu1 %v1419_v30  ;;  %1684 = vmatmul.bf16.gmra.mxu3 %v1419_v30  ;;  %v7736_v6 = vld [vmem:[%s8713_s17 + $0x294] sm:$0xf]  ;;  %v7061_v25 = vor.u32 %v7738_v53, %v7058_v54  ;;  %vm1308_vm4 = vweird.f32 %v9263_v38  ;;  %v7719_v23 = vld [vmem:[%s8713_s17 + $0x6c] sm:$0xf0] }
 0x284   : > { %12397 = vst [vmem:[#allocation31_spill] sm:$0xff] %v9266_v39  ;;  %8044 = vrsqrt.f32 %v9271_v1  ;;  %v9287_v52 = vadd.f32 %v9114_v15, %v9266_v39  ;;  %2223 = vmatpush.bf16.msra.mxu0 %v6993_v37  ;;  %v9302_v61 = vadd.f32 %v9121_v27, %v9269_v32  ;;  %v6985_v28 = vor.u32 %v7721_v40, %v6984_v33  ;;  %v7050_v20 = vld [vmem:[%s8713_s17 + $0x2b0] sm:$0xf0]  ;;  %v7040_v37 = vld [vmem:[%s8713_s17 + $0x250] sm:$0xf]  ;;  %vm1309_vm5 = vmor %vm1307_vm3, %vm1308_vm4 }
 0x285   : > { %12398 = vst [vmem:[#allocation32_spill] sm:$0xff] %v9269_v32  ;;  %v1300_v59 = vsel %vm1299_vm2, %v9208_v13, %v1296_v45  ;;  %v1303_v46 = vmul.f32 %v9263_v38, %v1302_v47  ;;  %v7720_v13 = vld [vmem:[%s8713_s17 + $0x94] sm:$0xf]  ;;  %v7049_v30 = vor.u32 %v7737_v58, %v7048_v60  ;;  %2312 = vmatpush.bf16.msra.mxu1 %v7057_v34  ;;  %v7735_v43 = vld [vmem:[%s8713_s17 + $0x26c] sm:$0xf0]  ;;  %vm1317_vm7 = vweird.f32 %v9271_v1 }
 0x286   : > { %v1331_v0 = vmul.f32 %v1300_v59, %v8996_v3  ;;  %v1332_v2 = vmul.f32 %v1300_v59, %v8999_v14  ;;  %v6976_v3 = vld [vmem:[%s8713_s17 + $0x50] sm:$0xf]  ;;  %2401 = vmatpush.bf16.msrb.mxu2 %v6997_v48  ;;  %v6989_v42 = vor.u32 %v7720_v13, %v6986_v57  ;;  %v1408_v45 = vadd.f32 %v9287_v52, %v9266_v39  ;;  %v7718_v51 = vld [vmem:[%s8713_s17 + $0x54] sm:$0xf] }
 0x287   : > { %v1304_v26 = vmul.f32 0.5, %v1303_v46  ;;  %2490 = vmatpush.bf16.msrb.mxu3 %v7061_v25  ;;  %v7053_v47 = vor.u32 %v7736_v6, %v7050_v20  ;;  %v6977_v41 = vor.u32 %v7719_v23, %v6976_v3  ;;  %v6978_v34 = vld [vmem:[%s8713_s17 + $0x70] sm:$0xf0]  ;;  %v1409_v59 = vadd.f32 %v9302_v61, %v9269_v32  ;;  %v6968_v40 = vld [vmem:[%s8713_s17 + $0x10] sm:$0xf] }
 0x288   : > { %v1352_v14 = vmul.f32 %v9094_v50, %v1331_v0  ;;  %v1353_v31 = vmul.f32 %v9097_v55, %v1332_v2  ;;  %2224 = vmatpush.bf16.msra.mxu0 %v6985_v28  ;;  %v7734_v46 = vld [vmem:[%s8713_s17 + $0x254] sm:$0xf]  ;;  %v9332_v60 = vpack.c.bf16 %v9231_v35, %v9181_v4  ;;  %v7041_v2 = vor.u32 %v7735_v43, %v7040_v37  ;;  %v7717_v57 = vld [vmem:[%s8713_s17 + $0x2c] sm:$0xf0] }
 0x289   : > { %v1305_v10 = vsub.f32 1.5, %v1304_v26  ;;  %v7042_v48 = vld [vmem:[%s8713_s17 + $0x270] sm:$0xf0]  ;;  %v6981_v13 = vor.u32 %v7718_v51, %v6978_v34  ;;  %v7032_v6 = vld [vmem:[%s8713_s17 + $0x210] sm:$0xf]  ;;  %2313 = vmatpush.bf16.msra.mxu1 %v7049_v30 }
 0x28a   : > { %v8045_v53 = vpop.eup %8044  ;;  %v9320_v54 = vadd.f32 %v9101_v62, %v1352_v14  ;;  %v9323_v33 = vadd.f32 %v9104_v63, %v1353_v31  ;;  %2402 = vmatpush.bf16.msrb.mxu2 %v6989_v42  ;;  %v7045_v35 = vor.u32 %v7734_v46, %v7042_v48  ;;  %v7733_v25 = vld [vmem:[%s8713_s17 + $0x22c] sm:$0xf0]  ;;  %v7716_v24 = vld [vmem:[%s8713_s17 + $0x14] sm:$0xf]  ;;  %v6969_v14 = vor.u32 %v7717_v57, %v6968_v40 }
 0x28b   : > { %v1306_v58 = vmul.f32 %v9263_v38, %v1305_v10  ;;  %v1312_v0 = vmul.f32 %v8045_v53, %v9271_v1  ;;  %v6970_v28 = vld [vmem:[%s8713_s17 + $0x30] sm:$0xf0]  ;;  %vm1318_vm6 = vweird.f32 %v8045_v53  ;;  %2491 = vmatpush.bf16.msrb.mxu3 %v7053_v47  ;;  %v7033_v51 = vor.u32 %v7733_v25, %v7032_v6 }
 0x28c   : > { %12399 = vst [vmem:[#allocation33_spill] sm:$0xff] %v9320_v54  ;;  %v1394_v26 = vadd.f32 %v9114_v15, %v9320_v54  ;;  %v1395_v4 = vadd.f32 %v9121_v27, %v9323_v33  ;;  %2225 = vmatpush.bf16.msra.mxu0 %v6977_v41  ;;  %v7732_v31 = vld [vmem:[%s8713_s17 + $0x214] sm:$0xf]  ;;  %v6973_v34 = vor.u32 %v7716_v24, %v6970_v28  ;;  %vm1319_vm8 = vmor %vm1317_vm7, %vm1318_vm6 }
 0x28d   : > { %12400 = vst [vmem:[#allocation34_spill] sm:$0xff] %v9323_v33  ;;  %v1310_v20 = vsel %vm1309_vm5, %v9263_v38, %v1306_v58  ;;  %v1313_v3 = vmul.f32 %v8045_v53, %v1312_v0  ;;  %v7034_v23 = vld [vmem:[%s8713_s17 + $0x230] sm:$0xf0]  ;;  %v2025_v38 = vpack.c.bf16 %v9235_v36, %v9193_v44  ;;  %2314 = vmatpush.bf16.msra.mxu1 %v7041_v2 }
 0x28e   : > { %v1333_v37 = vmul.f32 %v1310_v20, %v9007_v11  ;;  %v1334_v43 = vmul.f32 %v1310_v20, %v9010_v5  ;;  %v1410_v30 = vadd.f32 %v1394_v26, %v9320_v54  ;;  %v1411_v42 = vadd.f32 %v1395_v4, %v9323_v33  ;;  %2403 = vmatpush.bf16.msrb.mxu2 %v6981_v13 }
 0x28f   : > { %v1314_v10 = vmul.f32 0.5, %v1313_v3  ;;  %v7037_v48 = vor.u32 %v7732_v31, %v7034_v23  ;;  %2492 = vmatpush.bf16.msrb.mxu3 %v7045_v35  ;;  %v2026_v5 = vpack.c.bf16 %v1394_v26, %v9287_v52  ;;  %v2027_v58 = vpack.c.bf16 %v1395_v4, %v9302_v61 }
 0x290   : > { %v1354_v47 = vmul.f32 %v9094_v50, %v1333_v37  ;;  %v1420_v41 = vpack.c.bf16 %v1410_v30, %v1408_v45  ;;  %v1421_v46 = vpack.c.bf16 %v1411_v42, %v1409_v59  ;;  %v1355_v11 = vmul.f32 %v9097_v55, %v1334_v43  ;;  %2226 = vmatpush.bf16.msra.mxu0 %v6969_v14 }
 0x291   : > { %v1315_v40 = vsub.f32 1.5, %v1314_v10  ;;  %2315 = vmatpush.bf16.msra.mxu1 %v7033_v51 }
 0x292   : > { %1602 = vmatmul.bf16.gmra.mxu0 %v1420_v41  ;;  %1660 = vmatmul.bf16.gmra.mxu2 %v1420_v41  ;;  %v9365_v44 = vadd.f32 %v9101_v62, %v1354_v47  ;;  %v9368_v36 = vadd.f32 %v9104_v63, %v1355_v11 }
 0x293   : > { %v1316_v0 = vmul.f32 %v8045_v53, %v1315_v40  ;;  %1631 = vmatmul.bf16.gmra.mxu1 %v1421_v46  ;;  %1689 = vmatmul.bf16.gmra.mxu3 %v1421_v46 }
 0x294   : > { %12401 = vst [vmem:[#allocation35_spill] sm:$0xff] %v9365_v44  ;;  %2404 = vmatpush.bf16.msrb.mxu2 %v6973_v34  ;;  %2493 = vmatpush.bf16.msrb.mxu3 %v7037_v48  ;;  %v1396_v2 = vadd.f32 %v9114_v15, %v9365_v44  ;;  %v1397_v13 = vadd.f32 %v9121_v27, %v9368_v36 }
 0x295   : > { %12402 = vst [vmem:[#allocation36_spill] sm:$0xff] %v9368_v36  ;;  %v1320_v52 = vsel %vm1319_vm8, %v8045_v53, %v1316_v0 }
 0x296   : > { %v1335_v61 = vmul.f32 %v1320_v52, %v9018_v16  ;;  %v1336_v45 = vmul.f32 %v1320_v52, %v9021_v12 }
 0x298   : > { %v1356_v1 = vmul.f32 %v9094_v50, %v1335_v61  ;;  %v1357_v59 = vmul.f32 %v9097_v55, %v1336_v45  ;;  %v1412_v50 = vadd.f32 %v1396_v2, %v9365_v44  ;;  %v1413_v55 = vadd.f32 %v1397_v13, %v9368_v36 }
 0x29a   : > { %v9379_v57 = vadd.f32 %v9101_v62, %v1356_v1  ;;  %v9382_v53 = vadd.f32 %v9104_v63, %v1357_v59 }
 0x29c   : > { %12403 = vst [vmem:[#allocation37_spill] sm:$0xff] %v9379_v57  ;;  %v1398_v16 = vadd.f32 %v9114_v15, %v9379_v57  ;;  %v1399_v12 = vadd.f32 %v9121_v27, %v9382_v53 }
 0x29d   : > { %12404 = vst [vmem:[#allocation38_spill] sm:$0xff] %v9382_v53 }
 0x29e   : > { %v1414_v6 = vadd.f32 %v1398_v16, %v9379_v57  ;;  %v1415_v26 = vadd.f32 %v1399_v12, %v9382_v53  ;;  %v2028_v4 = vpack.c.bf16 %v1398_v16, %v1396_v2  ;;  %v2029_v62 = vpack.c.bf16 %v1399_v12, %v1397_v13 }
 0x2a0   : > { %v1422_v35 = vpack.c.bf16 %v1414_v6, %v1412_v50  ;;  %v1423_v25 = vpack.c.bf16 %v1415_v26, %v1413_v55 }
 0x2a2   : > { %1607 = vmatmul.bf16.gmra.mxu0 %v1422_v35  ;;  %1665 = vmatmul.bf16.gmra.mxu2 %v1422_v35 }
 0x2a3   : > { %1636 = vmatmul.bf16.gmra.mxu1 %v1423_v25  ;;  %1694 = vmatmul.bf16.gmra.mxu3 %v1423_v25 }
 0x2b2   : > { %2227 = vmatmul.bf16.vlgmr.msra.gmra.mxu0 %v9150_v49  ;;  %2405 = vmatmul.bf16.vlgmr.msrb.gmra.mxu2 %v9150_v49 }
 0x2b3   : > { %2316 = vmatmul.bf16.vlgmr.msra.gmra.mxu1 %v9152_v56  ;;  %2494 = vmatmul.bf16.vlgmr.msrb.gmra.mxu3 %v9152_v56 }
 0x2c2   : > { %2232 = vmatmul.bf16.gmra.mxu0 %v9332_v60  ;;  %2410 = vmatmul.bf16.gmra.mxu2 %v9332_v60 }
 0x2c3   : > { %2321 = vmatmul.bf16.gmra.mxu1 %v2025_v38  ;;  %2499 = vmatmul.bf16.gmra.mxu3 %v2025_v38 }
 0x2d2   : > { %2237 = vmatmul.bf16.gmra.mxu0 %v2026_v5  ;;  %2415 = vmatmul.bf16.gmra.mxu2 %v2026_v5 }
 0x2d3   : > { %2326 = vmatmul.bf16.gmra.mxu1 %v2027_v58  ;;  %2504 = vmatmul.bf16.gmra.mxu3 %v2027_v58 }
 0x2e2   : > { %2242 = vmatmul.bf16.gmra.mxu0 %v2028_v4  ;;  %2420 = vmatmul.bf16.gmra.mxu2 %v2028_v4 }
 0x2e3   : > { %2331 = vmatmul.bf16.gmra.mxu1 %v2029_v62  ;;  %2509 = vmatmul.bf16.gmra.mxu3 %v2029_v62 }
 0x2ef   : > { %v1593_v63 = vpop.f32.mrf.mxu0 }
 0x2f0   : > { %v1622_v15 = vpop.f32.mrf.mxu1 }
 0x2f1   : > { %v1623_v27 = vadd.f32 %v1622_v15, %v1593_v63 }
 0x2f3   : > { %v9399_v60 = vadd.f32 %v1623_v27, %v9112_v9 }
 0x2f5   : > { %v1651_v49 = vpop.f32.mrf.mxu2 }
 0x2f6   : > { %v1680_v24 = vpop.f32.mrf.mxu3 }
 0x2f7   : > { %v1681_v56 = vadd.f32 %v1680_v24, %v1651_v49  ;;  %v1595_v28 = vpop.f32.mrf.mxu0 }
 0x2f8   : > { %v1624_v20 = vpop.f32.mrf.mxu1 }
 0x2f9   : > { %v9402_v3 = vadd.f32 %v1681_v56, %v9119_v19  ;;  %v1625_v14 = vadd.f32 %v1624_v20, %v1595_v28 }
 0x2fb   : > { %v1716_v31 = vadd.f32 %v9402_v3, %v9399_v60  ;;  %v2030_v23 = vpack.c.bf16 %v1625_v14, %v1623_v27  ;;  %v9407_v34 = vadd.f32 %v1625_v14, %v9129_v29 }
 0x2fd   : > { %1717 = vadd.xlane.f32.xlu1 %v1716_v31  ;;  %2247 = vmatmul.bf16.gmra.mxu0 %v2030_v23  ;;  %v1653_v37 = vpop.f32.mrf.mxu2 }
 0x2fe   : > { %2425 = vmatmul.bf16.gmra.mxu2 %v2030_v23  ;;  %v1682_v43 = vpop.f32.mrf.mxu3 }
 0x2ff   : > { %v1683_v30 = vadd.f32 %v1682_v43, %v1653_v37  ;;  %v1598_v42 = vpop.f32.mrf.mxu0 }
 0x300   : > { %v1627_v10 = vpop.f32.mrf.mxu1 }
 0x301   : > { %v2031_v51 = vpack.c.bf16 %v1683_v30, %v1681_v56  ;;  %v9410_v38 = vadd.f32 %v1683_v30, %v9132_v21  ;;  %v1628_v41 = vadd.f32 %v1627_v10, %v1598_v42 }
 0x303   : > { %2336 = vmatmul.bf16.gmra.mxu1 %v2031_v51  ;;  %2514 = vmatmul.bf16.gmra.mxu3 %v2031_v51  ;;  %v1719_v47 = vadd.f32 %v9410_v38, %v9407_v34  ;;  %v9415_v58 = vadd.f32 %v1628_v41, %v9162_v7 }
 0x305   : > { %1720 = vadd.xlane.f32.xlu2 %v1719_v47  ;;  %v1656_v46 = vpop.f32.mrf.mxu2 }
 0x306   : > { %v1685_v48 = vpop.f32.mrf.mxu3 }
 0x307   : > { %v1686_v11 = vadd.f32 %v1685_v48, %v1656_v46  ;;  %v1600_v40 = vpop.f32.mrf.mxu0 }
 0x308   : > { %v1629_v5 = vpop.f32.mrf.mxu1 }
 0x309   : > { %v9418_v0 = vadd.f32 %v1686_v11, %v9165_v8  ;;  %v1630_v52 = vadd.f32 %v1629_v5, %v1600_v40 }
 0x30b   : > { %v1722_v61 = vadd.f32 %v9418_v0, %v9415_v58  ;;  %v2032_v45 = vpack.c.bf16 %v1630_v52, %v1628_v41  ;;  %v9423_v50 = vadd.f32 %v1630_v52, %v9211_v18  ;;  %v6704_v52 = vld [vmem:[%s8720_s29 + $0x2] ss:$8 sm:$0x3] }
 0x30d   : > { %1723 = vadd.xlane.f32.xlu0 %v1722_v61  ;;  %2252 = vmatmul.bf16.gmra.mxu0 %v2032_v45  ;;  %v1658_v1 = vpop.f32.mrf.mxu2 }
 0x30e   : > { %2430 = vmatmul.bf16.gmra.mxu2 %v2032_v45  ;;  %v1687_v59 = vpop.f32.mrf.mxu3 }
 0x30f   : > { %v1688_v2 = vadd.f32 %v1687_v59, %v1658_v1  ;;  %v1603_v13 = vpop.f32.mrf.mxu0  ;;  %v9455_v1 = vperm.slane %v6704_v52, 0 }
 0x310   : > { %v1632_v16 = vpop.f32.mrf.mxu1 }
 0x311   : > { %v2033_v12 = vpack.c.bf16 %v1688_v2, %v1686_v11  ;;  %v9426_v55 = vadd.f32 %v1688_v2, %v9214_v17  ;;  %v1633_v26 = vadd.f32 %v1632_v16, %v1603_v13 }
 0x313   : > { %2341 = vmatmul.bf16.gmra.mxu1 %v2033_v12  ;;  %2519 = vmatmul.bf16.gmra.mxu3 %v2033_v12  ;;  %v1725_v6 = vadd.f32 %v9426_v55, %v9423_v50  ;;  %v9431_v15 = vadd.f32 %v1633_v26, %v9266_v39 }
 0x315   : > { %1726 = vadd.xlane.f32.xlu1 %v1725_v6  ;;  %v1661_v4 = vpop.f32.mrf.mxu2 }
 0x316   : > { %v1690_v62 = vpop.f32.mrf.mxu3 }
 0x317   : > { %v1691_v35 = vadd.f32 %v1690_v62, %v1661_v4  ;;  %v1605_v25 = vpop.f32.mrf.mxu0 }
 0x318   : > { %v1634_v63 = vpop.f32.mrf.mxu1 }
 0x319   : > { %v9434_v27 = vadd.f32 %v1691_v35, %v9269_v32  ;;  %v1635_v49 = vadd.f32 %v1634_v63, %v1605_v25  ;;  %v9466_v25 = vperm.slane %v6704_v52, 1 }
 0x31b   : > { %v2034_v24 = vpack.c.bf16 %v1635_v49, %v1633_v26  ;;  %v1728_v56 = vadd.f32 %v9434_v27, %v9431_v15  ;;  %v9439_v43 = vadd.f32 %v1635_v49, %v9320_v54 }
 0x31d   : > { %1729 = vadd.xlane.f32.xlu2 %v1728_v56  ;;  %2257 = vmatmul.bf16.gmra.mxu0 %v2034_v24  ;;  %v1663_v28 = vpop.f32.mrf.mxu2 }
 0x31e   : > { %2435 = vmatmul.bf16.gmra.mxu2 %v2034_v24  ;;  %v1692_v20 = vpop.f32.mrf.mxu3 }
 0x31f   : > { %v1693_v14 = vadd.f32 %v1692_v20, %v1663_v28  ;;  %v1608_v31 = vpop.f32.mrf.mxu0 }
 0x320   : > { %v1637_v23 = vpop.f32.mrf.mxu1 }
 0x321   : > { %v2035_v37 = vpack.c.bf16 %v1693_v14, %v1691_v35  ;;  %v9442_v30 = vadd.f32 %v1693_v14, %v9323_v33  ;;  %v1638_v10 = vadd.f32 %v1637_v23, %v1608_v31 }
 0x323   : > { %2346 = vmatmul.bf16.gmra.mxu1 %v2035_v37  ;;  %2524 = vmatmul.bf16.gmra.mxu3 %v2035_v37  ;;  %v1731_v42 = vadd.f32 %v9442_v30, %v9439_v43  ;;  %v9447_v11 = vadd.f32 %v1638_v10, %v9365_v44 }
 0x325   : > { %1732 = vadd.xlane.f32.xlu0 %v1731_v42  ;;  %v1666_v51 = vpop.f32.mrf.mxu2 }
 0x326   : > { %v1695_v47 = vpop.f32.mrf.mxu3 }
 0x327   : > { %v1696_v41 = vadd.f32 %v1695_v47, %v1666_v51  ;;  %v1610_v46 = vpop.f32.mrf.mxu0 }
 0x328   : > { %v1639_v48 = vpop.f32.mrf.mxu1 }
 0x329   : > { %v9450_v40 = vadd.f32 %v1696_v41, %v9368_v36  ;;  %v1640_v5 = vadd.f32 %v1639_v48, %v1610_v46 }
 0x32b   : > { %v2036_v61 = vpack.c.bf16 %v1640_v5, %v1638_v10  ;;  %v1734_v45 = vadd.f32 %v9450_v40, %v9447_v11  ;;  %v9459_v4 = vadd.f32 %v1640_v5, %v9379_v57 }
 0x32d   : > { %1735 = vadd.xlane.f32.xlu1 %v1734_v45  ;;  %2262 = vmatmul.bf16.gmra.mxu0 %v2036_v61  ;;  %v1668_v59 = vpop.f32.mrf.mxu2 }
 0x32e   : > { %2440 = vmatmul.bf16.gmra.mxu2 %v2036_v61  ;;  %v1697_v2 = vpop.f32.mrf.mxu3 }
 0x32f   : > { %v1698_v13 = vadd.f32 %v1697_v2, %v1668_v59  ;;  %v2228_v16 = vpop.f32.mrf.mxu0 }
 0x330   : > { %v2229_v12 = vadd.f32 %v2228_v16, %v9455_v1  ;;  %v2317_v6 = vpop.f32.mrf.mxu1 }
 0x331   : > { %v2037_v26 = vpack.c.bf16 %v1698_v13, %v1696_v41  ;;  %v9462_v62 = vadd.f32 %v1698_v13, %v9382_v53 }
 0x332   : > { %v9464_v35 = vadd.f32 %v2317_v6, %v2229_v12 }
 0x333   : > { %2351 = vmatmul.bf16.gmra.mxu1 %v2037_v26  ;;  %2529 = vmatmul.bf16.gmra.mxu3 %v2037_v26  ;;  %v1737_v63 = vadd.f32 %v9462_v62, %v9459_v4 }
 0x335   : > { %1738 = vadd.xlane.f32.xlu2 %v1737_v63  ;;  %v2406_v49 = vpop.f32.mrf.mxu2 }
 0x336   : > { %v2407_v24 = vadd.f32 %v2406_v49, %v9466_v25  ;;  %v2495_v56 = vpop.f32.mrf.mxu3 }
 0x337   : > { %v9471_v28 = vpop.f32.mrf.mxu0 }
 0x338   : > { %v9473_v20 = vadd.f32 %v2495_v56, %v2407_v24  ;;  %v9475_v14 = vpop.f32.mrf.mxu1 }
 0x33d   : > { %v9477_v31 = vpop.f32.mrf.mxu2 }
 0x33e   : > { %v9479_v23 = vpop.f32.mrf.mxu3 }
 0x33f   : > { %v2233_v37 = vpop.f32.mrf.mxu0 }
 0x340   : > { %v2234_v42 = vadd.f32 %v2233_v37, %v9455_v1  ;;  %v2322_v10 = vpop.f32.mrf.mxu1 }
 0x342   : > { %v9482_v51 = vadd.f32 %v2322_v10, %v2234_v42 }
 0x344   : > { %12405 = vst [vmem:[#allocation39_spill] sm:$0xff] %v9482_v51 }
 0x345   : > { %v2411_v47 = vpop.f32.mrf.mxu2 }
 0x346   : > { %v2412_v41 = vadd.f32 %v2411_v47, %v9466_v25  ;;  %v2500_v46 = vpop.f32.mrf.mxu3 }
 0x347   : > { %v9485_v48 = vpop.f32.mrf.mxu0 }
 0x348   : > { %12406 = vst [vmem:[#allocation40_spill] sm:$0xff] %v9485_v48  ;;  %v9487_v5 = vadd.f32 %v2500_v46, %v2412_v41  ;;  %v9489_v52 = vpop.f32.mrf.mxu1 }
 0x349   : > { %12408 = vst [vmem:[#allocation42_spill] sm:$0xff] %v9489_v52 }
 0x34a   : > { %12407 = vst [vmem:[#allocation41_spill] sm:$0xff] %v9487_v5 }
 0x34d   : > { %v9491_v61 = vpop.f32.mrf.mxu2 }
 0x34e   : > { %12409 = vst [vmem:[#allocation43_spill] sm:$0xff] %v9491_v61  ;;  %v9493_v45 = vpop.f32.mrf.mxu3 }
 0x34f   : > { %12410 = vst [vmem:[#allocation44_spill] sm:$0xff] %v9493_v45  ;;  %v2238_v59 = vpop.f32.mrf.mxu0 }
 0x350   : > { %v2239_v2 = vadd.f32 %v2238_v59, %v9455_v1  ;;  %v2327_v13 = vpop.f32.mrf.mxu1 }
 0x352   : > { %v9496_v16 = vadd.f32 %v2327_v13, %v2239_v2 }
 0x354   : > { %12411 = vst [vmem:[#allocation45_spill] sm:$0xff] %v9496_v16 }
 0x355   : > { %v2416_v12 = vpop.f32.mrf.mxu2 }
 0x356   : > { %v2417_v6 = vadd.f32 %v2416_v12, %v9466_v25  ;;  %v2505_v26 = vpop.f32.mrf.mxu3 }
 0x357   : > { %v9499_v63 = vpop.f32.mrf.mxu0 }
 0x358   : > { %12412 = vst [vmem:[#allocation46_spill] sm:$0xff] %v9499_v63  ;;  %v9501_v49 = vadd.f32 %v2505_v26, %v2417_v6  ;;  %v9503_v24 = vpop.f32.mrf.mxu1  ;;  %v6707_v63 = vld [vmem:[%s8720_s29 + $0x5] ss:$8 sm:$0x3] }
 0x359   : > { %12414 = vst [vmem:[#allocation48_spill] sm:$0xff] %v9503_v24 }
 0x35a   : > { %12413 = vst [vmem:[#allocation47_spill] sm:$0xff] %v9501_v49 }
 0x35d   : > { %v9505_v56 = vpop.f32.mrf.mxu2 }
 0x35e   : > { %12415 = vst [vmem:[#allocation49_spill] sm:$0xff] %v9505_v56  ;;  %v9507_v37 = vpop.f32.mrf.mxu3 }
 0x35f   : > { %12416 = vst [vmem:[#allocation50_spill] sm:$0xff] %v9507_v37  ;;  %v2243_v42 = vpop.f32.mrf.mxu0 }
 0x360   : > { %v2244_v10 = vadd.f32 %v2243_v42, %v9455_v1  ;;  %v2332_v47 = vpop.f32.mrf.mxu1 }
 0x362   : > { %v9510_v41 = vadd.f32 %v2332_v47, %v2244_v10 }
 0x364   : > { %12417 = vst [vmem:[#allocation51_spill] sm:$0xff] %v9510_v41 }
 0x365   : > { %v2421_v46 = vpop.f32.mrf.mxu2 }
 0x366   : > { %v2422_v59 = vadd.f32 %v2421_v46, %v9466_v25  ;;  %v2510_v2 = vpop.f32.mrf.mxu3 }
 0x367   : > { %v9516_v26 = vpop.f32.mrf.mxu0 }
 0x368   : > { %v9513_v13 = vadd.f32 %v2510_v2, %v2422_v59  ;;  %12419 = vst [vmem:[#allocation53_spill] sm:$0xff] %v9516_v26  ;;  %v9528_v46 = vpop.f32.mrf.mxu1 }
 0x369   : > { %12420 = vst [vmem:[#allocation54_spill] sm:$0xff] %v9528_v46 }
 0x36a   : > { %12418 = vst [vmem:[#allocation52_spill] sm:$0xff] %v9513_v13 }
 0x36d   : > { %v9530_v2 = vpop.f32.mrf.mxu2 }
 0x36e   : > { %12421 = vst [vmem:[#allocation55_spill] sm:$0xff] %v9530_v2 }
 0x370   : > { %v1718_v12 = vpop.xlane.xlu1 %1717 }
 0x371   : > { %v1740_v6 = vmul.f32 %v1718_v12, %v8937_v22 }
 0x373   : > { %v9519_v49 = vsub.f32 %v9399_v60, %v1740_v6  ;;  %v9522_v16 = vsub.f32 %v9402_v3, %v1740_v6 }
 0x375   : > { %v1764_v42 = vmul.f32 %v9519_v49, %v9519_v49  ;;  %v1765_v10 = vmul.f32 %v9522_v16, %v9522_v16 }
 0x377   : > { %v1780_v47 = vadd.f32 %v1765_v10, %v1764_v42  ;;  %v9543_v10 = vpop.f32.mrf.mxu3 }
 0x378   : > { %v1721_v59 = vpop.xlane.xlu2 %1720  ;;  %12422 = vst [vmem:[#allocation56_spill] sm:$0xff] %v9543_v10 }
 0x379   : > { %v1741_v12 = vmul.f32 %v1721_v59, %v8937_v22  ;;  %1781 = vadd.xlane.f32.xlu0 %v1780_v47 }
 0x37a   : > { %v2248_v60 = vpop.f32.mrf.mxu0 }
 0x37b   : > { %v9534_v13 = vsub.f32 %v9407_v34, %v1741_v12  ;;  %v9537_v3 = vsub.f32 %v9410_v38, %v1741_v12  ;;  %v2249_v41 = vadd.f32 %v2248_v60, %v9455_v1 }
 0x37d   : > { %v1766_v6 = vmul.f32 %v9534_v13, %v9534_v13  ;;  %v1767_v42 = vmul.f32 %v9537_v3, %v9537_v3 }
 0x37f   : > { %v1783_v46 = vadd.f32 %v1767_v42, %v1766_v6 }
 0x380   : > { %v2337_v59 = vpop.f32.mrf.mxu1  ;;  %v1724_v47 = vpop.xlane.xlu0 %1723 }
 0x381   : > { %v9546_v2 = vadd.f32 %v2337_v59, %v2249_v41  ;;  %v2426_v34 = vpop.f32.mrf.mxu2  ;;  %v1742_v26 = vmul.f32 %v1724_v47, %v8937_v22  ;;  %1784 = vadd.xlane.f32.xlu1 %v1783_v46 }
 0x382   : > { %v9549_v38 = vpop.f32.mrf.mxu0  ;;  %v2427_v10 = vadd.f32 %v2426_v34, %v9466_v25 }
 0x383   : > { %12423 = vst [vmem:[#allocation57_spill] sm:$0xff] %v9546_v2  ;;  %v9552_v12 = vsub.f32 %v9415_v58, %v1742_v26  ;;  %v9555_v37 = vsub.f32 %v9418_v0, %v1742_v26 }
 0x384   : > { %12424 = vst [vmem:[#allocation58_spill] sm:$0xff] %v9549_v38 }
 0x385   : > { %v1768_v60 = vmul.f32 %v9552_v12, %v9552_v12  ;;  %v1769_v41 = vmul.f32 %v9555_v37, %v9555_v37 }
 0x386   : > { %v2515_v6 = vpop.f32.mrf.mxu3 }
 0x387   : > { %v9562_v42 = vadd.f32 %v2515_v6, %v2427_v10  ;;  %v1786_v46 = vadd.f32 %v1769_v41, %v1768_v60 }
 0x388   : > { %v1727_v59 = vpop.xlane.xlu1 %1726  ;;  %v9564_v47 = vpop.f32.mrf.mxu1 }
 0x389   : > { %12425 = vst [vmem:[#allocation59_spill] sm:$0xff] %v9562_v42  ;;  %v1743_v58 = vmul.f32 %v1727_v59, %v8937_v22  ;;  %v9567_v2 = vpop.f32.mrf.mxu2  ;;  %1787 = vadd.xlane.f32.xlu2 %v1786_v46 }
 0x38a   : > { %12426 = vst [vmem:[#allocation60_spill] sm:$0xff] %v9564_v47  ;;  %v2253_v0 = vpop.f32.mrf.mxu0 }
 0x38b   : > { %12427 = vst [vmem:[#allocation61_spill] sm:$0xff] %v9567_v2  ;;  %v9570_v26 = vsub.f32 %v9423_v50, %v1743_v58  ;;  %v9573_v34 = vsub.f32 %v9426_v55, %v1743_v58  ;;  %v2254_v6 = vadd.f32 %v2253_v0, %v9455_v1 }
 0x38d   : > { %v1770_v10 = vmul.f32 %v9570_v26, %v9570_v26  ;;  %v1771_v60 = vmul.f32 %v9573_v34, %v9573_v34 }
 0x38e   : > { %v9579_v41 = vpop.f32.mrf.mxu3 }
 0x38f   : > { %12428 = vst [vmem:[#allocation62_spill] sm:$0xff] %v9579_v41  ;;  %v1789_v59 = vadd.f32 %v1771_v60, %v1770_v10 }
 0x390   : > { %v1730_v42 = vpop.xlane.xlu2 %1729  ;;  %v2342_v46 = vpop.f32.mrf.mxu1 }
 0x391   : > { %v1744_v47 = vmul.f32 %v1730_v42, %v8937_v22  ;;  %v9583_v50 = vadd.f32 %v2342_v46, %v2254_v6  ;;  %v2431_v2 = vpop.f32.mrf.mxu2  ;;  %1790 = vadd.xlane.f32.xlu0 %v1789_v59 }
 0x392   : > { %v9585_v55 = vpop.f32.mrf.mxu0  ;;  %v2432_v41 = vadd.f32 %v2431_v2, %v9466_v25 }
 0x393   : > { %12429 = vst [vmem:[#allocation63_spill] sm:$0xff] %v9583_v50  ;;  %v9588_v58 = vsub.f32 %v9431_v15, %v1744_v47  ;;  %v9591_v38 = vsub.f32 %v9434_v27, %v1744_v47 }
 0x394   : > { %12430 = vst [vmem:[#allocation64_spill] sm:$0xff] %v9585_v55 }
 0x395   : > { %v1772_v0 = vmul.f32 %v9588_v58, %v9588_v58  ;;  %v1773_v42 = vmul.f32 %v9591_v38, %v9591_v38 }
 0x396   : > { %v2520_v10 = vpop.f32.mrf.mxu3 }
 0x397   : > { %v9598_v60 = vadd.f32 %v2520_v10, %v2432_v41  ;;  %v1792_v6 = vadd.f32 %v1773_v42, %v1772_v0 }
 0x398   : > { %v9600_v59 = vpop.f32.mrf.mxu1  ;;  %v1733_v46 = vpop.xlane.xlu0 %1732 }
 0x399   : > { %12431 = vst [vmem:[#allocation65_spill] sm:$0xff] %v9598_v60  ;;  %v9602_v15 = vpop.f32.mrf.mxu2  ;;  %v1745_v27 = vmul.f32 %v1733_v46, %v8937_v22  ;;  %1793 = vadd.xlane.f32.xlu1 %v1792_v6 }
 0x39a   : > { %12432 = vst [vmem:[#allocation66_spill] sm:$0xff] %v9600_v59  ;;  %v2258_v47 = vpop.f32.mrf.mxu0 }
 0x39b   : > { %12433 = vst [vmem:[#allocation67_spill] sm:$0xff] %v9602_v15  ;;  %v9606_v2 = vsub.f32 %v9439_v43, %v1745_v27  ;;  %v9609_v50 = vsub.f32 %v9442_v30, %v1745_v27  ;;  %v2259_v10 = vadd.f32 %v2258_v47, %v9455_v1 }
 0x39d   : > { %v1774_v41 = vmul.f32 %v9606_v2, %v9606_v2  ;;  %v1775_v0 = vmul.f32 %v9609_v50, %v9609_v50 }
 0x39e   : > { %v9615_v42 = vpop.f32.mrf.mxu3 }
 0x39f   : > { %12434 = vst [vmem:[#allocation68_spill] sm:$0xff] %v9615_v42  ;;  %v1795_v60 = vadd.f32 %v1775_v0, %v1774_v41 }
 0x3a0   : > { %v2347_v46 = vpop.f32.mrf.mxu1  ;;  %v1736_v6 = vpop.xlane.xlu1 %1735 }
 0x3a1   : > { %v9618_v59 = vadd.f32 %v2347_v46, %v2259_v10  ;;  %v2436_v43 = vpop.f32.mrf.mxu2  ;;  %v1746_v15 = vmul.f32 %v1736_v6, %v8937_v22  ;;  %1796 = vadd.xlane.f32.xlu2 %v1795_v60 }
 0x3a2   : > { %v9621_v30 = vpop.f32.mrf.mxu0  ;;  %v2437_v42 = vadd.f32 %v2436_v43, %v9466_v25 }
 0x3a3   : > { %12435 = vst [vmem:[#allocation69_spill] sm:$0xff] %v9618_v59  ;;  %v9624_v27 = vsub.f32 %v9447_v11, %v1746_v15  ;;  %v9627_v55 = vsub.f32 %v9450_v40, %v1746_v15 }
 0x3a4   : > { %12436 = vst [vmem:[#allocation70_spill] sm:$0xff] %v9621_v30 }
 0x3a5   : > { %v1776_v47 = vmul.f32 %v9624_v27, %v9624_v27  ;;  %v1777_v41 = vmul.f32 %v9627_v55, %v9627_v55 }
 0x3a6   : > { %v2525_v0 = vpop.f32.mrf.mxu3 }
 0x3a7   : > { %v9634_v10 = vadd.f32 %v2525_v0, %v2437_v42  ;;  %v1798_v60 = vadd.f32 %v1777_v41, %v1776_v47 }
 0x3a8   : > { %v9636_v46 = vpop.f32.mrf.mxu1  ;;  %v1739_v6 = vpop.xlane.xlu2 %1738 }
 0x3a9   : > { %12437 = vst [vmem:[#allocation71_spill] sm:$0xff] %v9634_v10  ;;  %v9638_v11 = vpop.f32.mrf.mxu2  ;;  %v1747_v40 = vmul.f32 %v1739_v6, %v8937_v22  ;;  %1799 = vadd.xlane.f32.xlu0 %v1798_v60 }
 0x3aa   : > { %12438 = vst [vmem:[#allocation72_spill] sm:$0xff] %v9636_v46  ;;  %v2263_v59 = vpop.f32.mrf.mxu0 }
 0x3ab   : > { %12439 = vst [vmem:[#allocation73_spill] sm:$0xff] %v9638_v11  ;;  %v9642_v15 = vsub.f32 %v9459_v4, %v1747_v40  ;;  %v9645_v43 = vsub.f32 %v9462_v62, %v1747_v40  ;;  %v2264_v0 = vadd.f32 %v2263_v59, %v9455_v1 }
 0x3ad   : > { %v1778_v42 = vmul.f32 %v9642_v15, %v9642_v15  ;;  %v1779_v47 = vmul.f32 %v9645_v43, %v9645_v43 }
 0x3ae   : > { %v9651_v41 = vpop.f32.mrf.mxu3 }
 0x3af   : > { %12440 = vst [vmem:[#allocation74_spill] sm:$0xff] %v9651_v41  ;;  %v1801_v10 = vadd.f32 %v1779_v47, %v1778_v42 }
 0x3b0   : > { %v2352_v6 = vpop.f32.mrf.mxu1 }
 0x3b1   : > { %v9654_v60 = vadd.f32 %v2352_v6, %v2264_v0  ;;  %1802 = vadd.xlane.f32.xlu1 %v1801_v10  ;;  %v2441_v4 = vpop.f32.mrf.mxu2 }
 0x3b2   : > { %v2442_v62 = vadd.f32 %v2441_v4, %v9466_v25 }
 0x3b3   : > { %12441 = vst [vmem:[#allocation75_spill] sm:$0xff] %v9654_v60 }
 0x3b6   : > { %v2530_v40 = vpop.f32.mrf.mxu3 }
 0x3b7   : > { %v9657_v46 = vadd.f32 %v2530_v40, %v2442_v62  ;;  %v6706_v62 = vld [vmem:[%s8720_s29 + $0x4] ss:$8 sm:$0x3] }
 0x3b8   : > { %v9666_v5 = vperm.slane %v6706_v62, 1 }
 0x3b9   : > { %12442 = vst [vmem:[#allocation76_spill] sm:$0xff] %v9657_v46 }
 0x3ec   : > { %v1782_v11 = vpop.xlane.xlu0 %1781 }
 0x3ed   : > { %v1804_v30 = vmul.f32 %v1782_v11, %v8937_v22 }
 0x3ef   : > { %v1812_v24 = vadd.f32 1e-05, %v1804_v30 }
 0x3f1   : > { %8046 = vrsqrt.f32 %v1812_v24  ;;  %vm1826_vm10 = vweird.f32 %v1812_v24 }
 0x3f4   : > { %v1785_v41 = vpop.xlane.xlu1 %1784 }
 0x3f5   : > { %v1805_v59 = vmul.f32 %v1785_v41, %v8937_v22  ;;  %v9664_v41 = vperm.slane %v6706_v62, 0 }
 0x3f7   : > { %v8047_v42 = vpop.eup %8046  ;;  %v1813_v47 = vadd.f32 1e-05, %v1805_v59 }
 0x3f8   : > { %v1821_v0 = vmul.f32 %v8047_v42, %v1812_v24  ;;  %vm1827_vm9 = vweird.f32 %v8047_v42 }
 0x3f9   : > { %8048 = vrsqrt.f32 %v1813_v47  ;;  %vm1828_vm11 = vmor %vm1826_vm10, %vm1827_vm9  ;;  %vm1836_vm13 = vweird.f32 %v1813_v47 }
 0x3fa   : > { %v1822_v10 = vmul.f32 %v8047_v42, %v1821_v0 }
 0x3fc   : > { %v1823_v6 = vmul.f32 0.5, %v1822_v10  ;;  %v1788_v4 = vpop.xlane.xlu2 %1787 }
 0x3fd   : > { %v1806_v60 = vmul.f32 %v1788_v4, %v8937_v22 }
 0x3fe   : > { %v1824_v40 = vsub.f32 1.5, %v1823_v6  ;;  %v9670_v6 = vperm.slane %v6707_v63, 0 }
 0x3ff   : > { %v8049_v46 = vpop.eup %8048  ;;  %v1814_v11 = vadd.f32 1e-05, %v1806_v60 }
 0x400   : > { %v1825_v30 = vmul.f32 %v8047_v42, %v1824_v40  ;;  %v1831_v56 = vmul.f32 %v8049_v46, %v1813_v47  ;;  %v9672_v40 = vperm.slane %v6707_v63, 1  ;;  %vm1837_vm12 = vweird.f32 %v8049_v46 }
 0x401   : > { %8050 = vrsqrt.f32 %v1814_v11  ;;  %vm1838_vm14 = vmor %vm1836_vm13, %vm1837_vm12  ;;  %vm1846_vm0 = vweird.f32 %v1814_v11 }
 0x402   : > { %v1829_v59 = vsel %vm1828_vm11, %v8047_v42, %v1825_v30  ;;  %v1832_v0 = vmul.f32 %v8049_v46, %v1831_v56 }
 0x403   : > { %v1900_v10 = vmul.f32 %v1829_v59, %v9519_v49  ;;  %v1901_v4 = vmul.f32 %v1829_v59, %v9522_v16 }
 0x404   : > { %v1833_v51 = vmul.f32 0.5, %v1832_v0  ;;  %v1791_v60 = vpop.xlane.xlu0 %1790 }
 0x405   : > { %v1921_v24 = vmul.f32 %v9664_v41, %v1900_v10  ;;  %v1922_v45 = vmul.f32 %v9666_v5, %v1901_v4  ;;  %v1807_v62 = vmul.f32 %v1791_v60, %v8937_v22 }
 0x406   : > { %v1834_v52 = vsub.f32 1.5, %v1833_v51 }
 0x407   : > { %v8051_v42 = vpop.eup %8050  ;;  %v1815_v56 = vadd.f32 1e-05, %v1807_v62  ;;  %v1942_v49 = vadd.f32 %v9670_v6, %v1921_v24  ;;  %v1943_v59 = vadd.f32 %v9672_v40, %v1922_v45 }
 0x408   : > { %v1835_v30 = vmul.f32 %v8049_v46, %v1834_v52  ;;  %v1841_v16 = vmul.f32 %v8051_v42, %v1814_v11  ;;  %vm1847_vm15 = vweird.f32 %v8051_v42 }
 0x409   : > { %8052 = vrsqrt.f32 %v1815_v56  ;;  %v1958_v63 = vmul.f32 1.442695, %v1942_v49  ;;  %v1960_v62 = vmul.f32 1.442695, %v1943_v59  ;;  %vm1848_vm1 = vmor %vm1846_vm0, %vm1847_vm15  ;;  %vm1856_vm3 = vweird.f32 %v1815_v56 }
 0x40a   : > { %v1839_v0 = vsel %vm1838_vm14, %v8049_v46, %v1835_v30  ;;  %v1842_v10 = vmul.f32 %v8051_v42, %v1841_v16 }
 0x40b   : > { %v1902_v4 = vmul.f32 %v1839_v0, %v9534_v13  ;;  %v1903_v60 = vmul.f32 %v1839_v0, %v9537_v3  ;;  %8054 = vpow2.f32 %v1958_v63 }
 0x40c   : > { %v1843_v51 = vmul.f32 0.5, %v1842_v10  ;;  %v1794_v61 = vpop.xlane.xlu1 %1793  ;;  %8056 = vpow2.f32 %v1960_v62 }
 0x40d   : > { %v1923_v24 = vmul.f32 %v9664_v41, %v1902_v4  ;;  %v1924_v52 = vmul.f32 %v9666_v5, %v1903_v60  ;;  %v1808_v47 = vmul.f32 %v1794_v61, %v8937_v22 }
 0x40e   : > { %v1844_v45 = vsub.f32 1.5, %v1843_v51 }
 0x40f   : > { %v8053_v48 = vpop.eup %8052  ;;  %v9684_v49 = vadd.f32 1e-05, %v1808_v47  ;;  %v1944_v46 = vadd.f32 %v9670_v6, %v1923_v24  ;;  %v1945_v13 = vadd.f32 %v9672_v40, %v1924_v52 }
 0x410   : > { %v1845_v3 = vmul.f32 %v8051_v42, %v1844_v45  ;;  %v1851_v30 = vmul.f32 %v8053_v48, %v1815_v56  ;;  %vm1857_vm2 = vweird.f32 %v8053_v48 }
 0x411   : > { %8058 = vrsqrt.f32 %v9684_v49  ;;  %v1962_v16 = vmul.f32 1.442695, %v1944_v46  ;;  %v1964_v59 = vmul.f32 1.442695, %v1945_v13  ;;  %v8055_v63 = vpop.eup %8054  ;;  %vm1858_vm4 = vmor %vm1856_vm3, %vm1857_vm2  ;;  %vm1866_vm5 = vweird.f32 %v9684_v49 }
 0x412   : > { %v1849_v61 = vsel %vm1848_vm1, %v8051_v42, %v1845_v3  ;;  %v1852_v0 = vmul.f32 %v8053_v48, %v1851_v30  ;;  %v1990_v52 = vadd.f32 %v8055_v63, %v9112_v9  ;;  %v8057_v47 = vpop.eup %8056  ;;  %vm3216_vm1 = vcmask 523264  }
 0x413   : > { %v1904_v10 = vmul.f32 %v1849_v61, %v9552_v12  ;;  %v1905_v4 = vmul.f32 %v1849_v61, %v9555_v37  ;;  %8060 = vpow2.f32 %v1962_v16 }
 0x414   : > { %v1853_v60 = vmul.f32 0.5, %v1852_v0  ;;  %v1797_v51 = vpop.xlane.xlu2 %1796  ;;  %8062 = vpow2.f32 %v1964_v59  ;;  %v2006_v16 = vmax.f32 %v1990_v52, 0.0  ;;  %v1991_v59 = vadd.f32 %v8057_v47, %v9119_v19 }
 0x415   : > { %v1925_v11 = vmul.f32 %v9664_v41, %v1904_v10  ;;  %v1926_v62 = vmul.f32 %v9666_v5, %v1905_v4  ;;  %v1809_v24 = vmul.f32 %v1797_v51, %v8937_v22 }
 0x416   : > { %v1854_v45 = vsub.f32 1.5, %v1853_v60 }
 0x417   : > { %v8059_v42 = vpop.eup %8058  ;;  %v9695_v46 = vadd.f32 1e-05, %v1809_v24  ;;  %v1946_v37 = vadd.f32 %v9670_v6, %v1925_v11  ;;  %v1947_v3 = vadd.f32 %v9672_v40, %v1926_v62 }
 0x418   : > { %v1855_v12 = vmul.f32 %v8053_v48, %v1854_v45  ;;  %v1861_v13 = vmul.f32 %v8059_v42, %v9684_v49  ;;  %vm1867_vm6 = vweird.f32 %v8059_v42 }
 0x419   : > { %v8061_v30 = vpop.eup %8060  ;;  %8064 = vrsqrt.f32 %v9695_v46  ;;  %v1966_v62 = vmul.f32 1.442695, %v1946_v37  ;;  %v1968_v9 = vmul.f32 1.442695, %v1947_v3  ;;  %vm1868_vm7 = vmor %vm1866_vm5, %vm1867_vm6  ;;  %vm1876_vm9 = vweird.f32 %v9695_v46 }
 0x41a   : > { %v8063_v61 = vpop.eup %8062  ;;  %v1859_v0 = vsel %vm1858_vm4, %v8053_v48, %v1855_v12  ;;  %v1862_v10 = vmul.f32 %v8059_v42, %v1861_v13  ;;  %v2038_v4 = vpack.c.bf16 %v8061_v30, %v8055_v63  ;;  %v1992_v60 = vadd.f32 %v8061_v30, %v9129_v29 }
 0x41b   : > { %v1906_v56 = vmul.f32 %v1859_v0, %v9570_v26  ;;  %v1907_v51 = vmul.f32 %v1859_v0, %v9573_v34  ;;  %v2039_v11 = vpack.c.bf16 %v8063_v61, %v8057_v47  ;;  %v1993_v19 = vadd.f32 %v8063_v61, %v9132_v21 }
 0x41c   : > { %v1863_v24 = vmul.f32 0.5, %v1862_v10  ;;  %2267 = vmatmul.bf16.gmra.mxu0 %v2038_v4  ;;  %2445 = vmatmul.bf16.gmra.mxu2 %v2038_v4  ;;  %v1800_v45 = vpop.xlane.xlu0 %1799  ;;  %v2008_v52 = vmax.f32 %v1992_v60, 0.0  ;;  %v2007_v12 = vmax.f32 %v1991_v59, 0.0  ;;  %8066 = vpow2.f32 %v1966_v62 }
 0x41d   : > { %v1927_v48 = vmul.f32 %v9664_v41, %v1906_v56  ;;  %v1928_v63 = vmul.f32 %v9666_v5, %v1907_v51  ;;  %2356 = vmatmul.bf16.gmra.mxu1 %v2039_v11  ;;  %2534 = vmatmul.bf16.gmra.mxu3 %v2039_v11  ;;  %v1810_v26 = vmul.f32 %v1800_v45, %v8937_v22  ;;  %v2009_v37 = vmax.f32 %v1993_v19, 0.0 }
 0x41e   : > { %v1864_v34 = vsub.f32 1.5, %v1863_v24  ;;  %v9710_v47 = vpack.c.bf16 %v2008_v52, %v2006_v16  ;;  %8068 = vpow2.f32 %v1968_v9 }
 0x41f   : > { %v8065_v13 = vpop.eup %8064  ;;  %v9712_v30 = vadd.f32 1e-05, %v1810_v26  ;;  %v1948_v3 = vadd.f32 %v9670_v6, %v1927_v48  ;;  %v1949_v61 = vadd.f32 %v9672_v40, %v1928_v63  ;;  %v9717_v4 = vpack.c.bf16 %v2009_v37, %v2007_v12 }
 0x420   : > { %v1865_v0 = vmul.f32 %v8059_v42, %v1864_v34  ;;  %v1871_v10 = vmul.f32 %v8065_v13, %v9695_v46  ;;  %vm1877_vm8 = vweird.f32 %v8065_v13 }
 0x421   : > { %8070 = vrsqrt.f32 %v9712_v30  ;;  %v1970_v19 = vmul.f32 1.442695, %v1948_v3  ;;  %v1972_v16 = vmul.f32 1.442695, %v1949_v61  ;;  %vm1878_vm10 = vmor %vm1876_vm9, %vm1877_vm8  ;;  %vm1886_vm12 = vweird.f32 %v9712_v30 }
 0x422   : > { %v1869_v59 = vsel %vm1868_vm7, %v8059_v42, %v1865_v0  ;;  %v1872_v60 = vmul.f32 %v8065_v13, %v1871_v10  ;;  %v8067_v9 = vpop.eup %8066 }
 0x423   : > { %v1908_v56 = vmul.f32 %v1869_v59, %v9588_v58  ;;  %v1909_v51 = vmul.f32 %v1869_v59, %v9591_v38  ;;  %8072 = vpow2.f32 %v1970_v19  ;;  %v1994_v12 = vadd.f32 %v8067_v9, %v9162_v7 }
 0x424   : > { %v1873_v11 = vmul.f32 0.5, %v1872_v60  ;;  %v1803_v62 = vpop.xlane.xlu1 %1802  ;;  %8074 = vpow2.f32 %v1972_v16  ;;  %v8069_v52 = vpop.eup %8068 }
 0x425   : > { %v1929_v24 = vmul.f32 %v9664_v41, %v1908_v56  ;;  %v1930_v49 = vmul.f32 %v9666_v5, %v1909_v51  ;;  %v1811_v45 = vmul.f32 %v1803_v62, %v8937_v22  ;;  %v1995_v3 = vadd.f32 %v8069_v52, %v9165_v8 }
 0x426   : > { %v1874_v48 = vsub.f32 1.5, %v1873_v11  ;;  %v2010_v11 = vmax.f32 %v1994_v12, 0.0 }
 0x427   : > { %v8071_v42 = vpop.eup %8070  ;;  %v9727_v63 = vadd.f32 1e-05, %v1811_v45  ;;  %v1950_v58 = vadd.f32 %v9670_v6, %v1929_v24  ;;  %v1951_v37 = vadd.f32 %v9672_v40, %v1930_v49  ;;  %v2011_v45 = vmax.f32 %v1995_v3, 0.0 }
 0x428   : > { %v1875_v38 = vmul.f32 %v8065_v13, %v1874_v48  ;;  %v1881_v26 = vmul.f32 %v8071_v42, %v9712_v30  ;;  %vm1887_vm11 = vweird.f32 %v8071_v42 }
 0x429   : > { %v8073_v34 = vpop.eup %8072  ;;  %8076 = vrsqrt.f32 %v9727_v63  ;;  %v1974_v56 = vmul.f32 1.442695, %v1950_v58  ;;  %vm1888_vm13 = vmor %vm1886_vm12, %vm1887_vm11  ;;  %vm1896_vm15 = vweird.f32 %v9727_v63 }
 0x42a   : > { %v8075_v61 = vpop.eup %8074  ;;  %v1879_v0 = vsel %vm1878_vm10, %v8065_v13, %v1875_v38  ;;  %v1882_v10 = vmul.f32 %v8071_v42, %v1881_v26  ;;  %v2040_v19 = vpack.c.bf16 %v8073_v34, %v8067_v9  ;;  %v1996_v16 = vadd.f32 %v8073_v34, %v9211_v18 }
 0x42b   : > { %v1910_v46 = vmul.f32 %v1879_v0, %v9606_v2  ;;  %v1911_v59 = vmul.f32 %v1879_v0, %v9609_v50  ;;  %v2041_v60 = vpack.c.bf16 %v8075_v61, %v8069_v52  ;;  %v1997_v24 = vadd.f32 %v8075_v61, %v9214_v17 }
 0x42c   : > { %v1883_v51 = vmul.f32 0.5, %v1882_v10  ;;  %2272 = vmatmul.bf16.gmra.mxu0 %v2040_v19  ;;  %2450 = vmatmul.bf16.gmra.mxu2 %v2040_v19  ;;  %v2012_v62 = vmax.f32 %v1996_v16, 0.0  ;;  %v1976_v9 = vmul.f32 1.442695, %v1951_v37  ;;  %8078 = vpow2.f32 %v1974_v56 }
 0x42d   : > { %v1931_v49 = vmul.f32 %v9664_v41, %v1910_v46  ;;  %v1932_v13 = vmul.f32 %v9666_v5, %v1911_v59  ;;  %2361 = vmatmul.bf16.gmra.mxu1 %v2041_v60  ;;  %2539 = vmatmul.bf16.gmra.mxu3 %v2041_v60  ;;  %v2013_v52 = vmax.f32 %v1997_v24, 0.0 }
 0x42e   : > { %v1884_v2 = vsub.f32 1.5, %v1883_v51  ;;  %v9742_v50 = vpack.c.bf16 %v2012_v62, %v2010_v11  ;;  %8080 = vpow2.f32 %v1976_v9 }
 0x42f   : > { %v8077_v48 = vpop.eup %8076  ;;  %v1952_v58 = vadd.f32 %v9670_v6, %v1931_v49  ;;  %v1953_v38 = vadd.f32 %v9672_v40, %v1932_v13  ;;  %v9748_v34 = vpack.c.bf16 %v2013_v52, %v2011_v45 }
 0x430   : > { %v1885_v26 = vmul.f32 %v8071_v42, %v1884_v2  ;;  %v1891_v12 = vmul.f32 %v8077_v48, %v9727_v63  ;;  %vm1897_vm14 = vweird.f32 %v8077_v48 }
 0x431   : > { %v1978_v37 = vmul.f32 1.442695, %v1952_v58  ;;  %v1980_v3 = vmul.f32 1.442695, %v1953_v38  ;;  %vm1898_vm0 = vmor %vm1896_vm15, %vm1897_vm14 }
 0x432   : > { %v1889_v61 = vsel %vm1888_vm13, %v8071_v42, %v1885_v26  ;;  %v1892_v0 = vmul.f32 %v8077_v48, %v1891_v12  ;;  %v8079_v46 = vpop.eup %8078 }
 0x433   : > { %v1912_v10 = vmul.f32 %v1889_v61, %v9624_v27  ;;  %v1913_v19 = vmul.f32 %v1889_v61, %v9627_v55  ;;  %8082 = vpow2.f32 %v1978_v37  ;;  %v1998_v55 = vadd.f32 %v8079_v46, %v9266_v39 }
 0x434   : > { %v1893_v16 = vmul.f32 0.5, %v1892_v0  ;;  %8084 = vpow2.f32 %v1980_v3  ;;  %v8081_v56 = vpop.eup %8080 }
 0x435   : > { %v1933_v30 = vmul.f32 %v9664_v41, %v1912_v10  ;;  %v1934_v59 = vmul.f32 %v9666_v5, %v1913_v19  ;;  %v1999_v9 = vadd.f32 %v8081_v56, %v9269_v32  ;;  %v2014_v38 = vmax.f32 %v1998_v55, 0.0 }
 0x436   : > { %v1894_v60 = vsub.f32 1.5, %v1893_v16 }
 0x437   : > { %v1954_v51 = vadd.f32 %v9670_v6, %v1933_v30  ;;  %v1955_v27 = vadd.f32 %v9672_v40, %v1934_v59 }
 0x438   : > { %v1895_v11 = vmul.f32 %v8077_v48, %v1894_v60 }
 0x439   : > { %v8083_v42 = vpop.eup %8082  ;;  %v1982_v58 = vmul.f32 1.442695, %v1954_v51  ;;  %v1984_v63 = vmul.f32 1.442695, %v1955_v27 }
 0x43a   : > { %v8085_v62 = vpop.eup %8084  ;;  %v1899_v24 = vsel %vm1898_vm0, %v8077_v48, %v1895_v11  ;;  %v2042_v49 = vpack.c.bf16 %v8083_v42, %v8079_v46  ;;  %v2000_v13 = vadd.f32 %v8083_v42, %v9320_v54 }
 0x43b   : > { %v1914_v45 = vmul.f32 %v1899_v24, %v9642_v15  ;;  %v1915_v2 = vmul.f32 %v1899_v24, %v9645_v43  ;;  %v2043_v52 = vpack.c.bf16 %v8085_v62, %v8081_v56  ;;  %v2001_v12 = vadd.f32 %v8085_v62, %v9323_v33 }
 0x43c   : > { %2277 = vmatmul.bf16.gmra.mxu0 %v2042_v49  ;;  %2455 = vmatmul.bf16.gmra.mxu2 %v2042_v49  ;;  %v2016_v26 = vmax.f32 %v2000_v13, 0.0  ;;  %v2015_v15 = vmax.f32 %v1999_v9, 0.0  ;;  %8086 = vpow2.f32 %v1982_v58  ;;  %v7152_v49 = vld [vmem:[%s8713_s17 + $0x1d8] sm:$0xf]  ;;  %v7154_v58 = vld [vmem:[%s8713_s17 + $0x1f8] sm:$0xf0] }
 0x43d   : > { %v1935_v48 = vmul.f32 %v9664_v41, %v1914_v45  ;;  %v1936_v37 = vmul.f32 %v9666_v5, %v1915_v2  ;;  %2366 = vmatmul.bf16.gmra.mxu1 %v2043_v52  ;;  %2544 = vmatmul.bf16.gmra.mxu3 %v2043_v52  ;;  %v2017_v61 = vmax.f32 %v2001_v12, 0.0  ;;  %8088 = vpow2.f32 %v1984_v63  ;;  %v7763_v13 = vld [vmem:[%s8713_s17 + $0x1f4] sm:$0xf0]  ;;  %v7762_v52 = vld [vmem:[%s8713_s17 + $0x1dc] sm:$0xf] }
 0x43e   : > { %v9765_v3 = vpack.c.bf16 %v2016_v26, %v2014_v38  ;;  %v7216_v9 = vld [vmem:[%s8713_s17 + $0x3d8] sm:$0xf]  ;;  %v7153_v45 = vor.u32 %v7763_v13, %v7152_v49  ;;  %v7157_v38 = vor.u32 %v7762_v52, %v7154_v58  ;;  %v7218_v26 = vld [vmem:[%s8713_s17 + $0x3f8] sm:$0xf0] }
 0x43f   : > { %v1956_v43 = vadd.f32 %v9670_v6, %v1935_v48  ;;  %v1957_v0 = vadd.f32 %v9672_v40, %v1936_v37  ;;  %v9769_v10 = vpack.c.bf16 %v2017_v61, %v2015_v15  ;;  %v7779_v2 = vld [vmem:[%s8713_s17 + $0x3f4] sm:$0xf0]  ;;  %v7756_v52 = vld [vmem:[%s8713_s17 + $0x11c] sm:$0xf] }
 0x440   : > { %v7217_v63 = vor.u32 %v7779_v2, %v7216_v9  ;;  %v7144_v12 = vld [vmem:[%s8713_s17 + $0x198] sm:$0xf]  ;;  %2772 = vmatpush.bf16.msrb.mxu0 %v7153_v45  ;;  %2950 = vmatpush.bf16.msra.mxu2 %v7157_v38  ;;  %v7130_v58 = vld [vmem:[%s8713_s17 + $0x138] sm:$0xf0] }
 0x441   : > { %v1986_v19 = vmul.f32 1.442695, %v1956_v43  ;;  %v1988_v16 = vmul.f32 1.442695, %v1957_v0  ;;  %v7761_v48 = vld [vmem:[%s8713_s17 + $0x1b4] sm:$0xf0] }
 0x442   : > { %v8087_v41 = vpop.eup %8086  ;;  %v7208_v37 = vld [vmem:[%s8713_s17 + $0x398] sm:$0xf]  ;;  %2861 = vmatpush.bf16.msrb.mxu1 %v7217_v63  ;;  %v7145_v61 = vor.u32 %v7761_v48, %v7144_v12  ;;  %v7760_v0 = vld [vmem:[%s8713_s17 + $0x19c] sm:$0xf]  ;;  %v7133_v12 = vor.u32 %v7756_v52, %v7130_v58 }
 0x443   : > { %8090 = vpow2.f32 %v1986_v19  ;;  %v8089_v5 = vpop.eup %8088  ;;  %v2002_v46 = vadd.f32 %v8087_v41, %v9365_v44  ;;  %v7777_v15 = vld [vmem:[%s8713_s17 + $0x3b4] sm:$0xf0]  ;;  %v7146_v19 = vld [vmem:[%s8713_s17 + $0x1b8] sm:$0xf0] }
 0x444   : > { %8092 = vpow2.f32 %v1988_v16  ;;  %v2003_v59 = vadd.f32 %v8089_v5, %v9368_v36  ;;  %v7209_v43 = vor.u32 %v7777_v15, %v7208_v37  ;;  %v7776_v16 = vld [vmem:[%s8713_s17 + $0x39c] sm:$0xf]  ;;  %2773 = vmatpush.bf16.msrb.mxu0 %v7145_v61  ;;  %v7128_v13 = vld [vmem:[%s8713_s17 + $0x118] sm:$0xf] }
 0x445   : > { %v2018_v11 = vmax.f32 %v2002_v46, 0.0  ;;  %v7136_v46 = vld [vmem:[%s8713_s17 + $0x158] sm:$0xf]  ;;  %v7772_v63 = vld [vmem:[%s8713_s17 + $0x31c] sm:$0xf] }
 0x446   : > { %v2019_v55 = vmax.f32 %v2003_v59, 0.0  ;;  %2862 = vmatpush.bf16.msrb.mxu1 %v7209_v43  ;;  %v7757_v9 = vld [vmem:[%s8713_s17 + $0x134] sm:$0xf0]  ;;  %v7194_v38 = vld [vmem:[%s8713_s17 + $0x338] sm:$0xf0] }
 0x447   : > { %v7192_v45 = vld [vmem:[%s8713_s17 + $0x318] sm:$0xf]  ;;  %v7106_v52 = vld [vmem:[%s8713_s17 + $0x78] sm:$0xf0] }
 0x448   : > { %v7773_v2 = vld [vmem:[%s8713_s17 + $0x334] sm:$0xf0]  ;;  %v7766_v58 = vld [vmem:[%s8713_s17 + $0x25c] sm:$0xf] }
 0x449   : > { %v8091_v30 = vpop.eup %8090  ;;  %v7120_v48 = vld [vmem:[%s8713_s17 + $0xd8] sm:$0xf] }
 0x44a   : > { %v8093_v60 = vpop.eup %8092  ;;  %v2044_v56 = vpack.c.bf16 %v8091_v30, %v8087_v41  ;;  %v2004_v6 = vadd.f32 %v8091_v30, %v9379_v57  ;;  %v7149_v41 = vor.u32 %v7760_v0, %v7146_v19  ;;  %v7759_v30 = vld [vmem:[%s8713_s17 + $0x174] sm:$0xf0]  ;;  %v7122_v0 = vld [vmem:[%s8713_s17 + $0xf8] sm:$0xf0] }
 0x44b   : > { %v2045_v51 = vpack.c.bf16 %v8093_v60, %v8089_v5  ;;  %v2005_v40 = vadd.f32 %v8093_v60, %v9382_v53  ;;  %v7210_v5 = vld [vmem:[%s8713_s17 + $0x3b8] sm:$0xf0]  ;;  %v7200_v60 = vld [vmem:[%s8713_s17 + $0x358] sm:$0xf] }
 0x44c   : > { %2282 = vmatmul.bf16.gmra.mxu0 %v2044_v56  ;;  %2460 = vmatmul.bf16.gmra.mxu2 %v2044_v56  ;;  %v2020_v27 = vmax.f32 %v2004_v6, 0.0  ;;  %v7213_v59 = vor.u32 %v7776_v16, %v7210_v5  ;;  %v7775_v56 = vld [vmem:[%s8713_s17 + $0x374] sm:$0xf0]  ;;  %v7758_v6 = vld [vmem:[%s8713_s17 + $0x15c] sm:$0xf] }
 0x44d   : > { %2371 = vmatmul.bf16.gmra.mxu1 %v2045_v51  ;;  %2549 = vmatmul.bf16.gmra.mxu3 %v2045_v51  ;;  %v2021_v42 = vmax.f32 %v2005_v40, 0.0  ;;  %v7137_v51 = vor.u32 %v7759_v30, %v7136_v46  ;;  %v7138_v40 = vld [vmem:[%s8713_s17 + $0x178] sm:$0xf0]  ;;  %v7755_v37 = vld [vmem:[%s8713_s17 + $0xf4] sm:$0xf0] }
 0x44e   : > { %v9775_v62 = vpack.c.bf16 %v2020_v27, %v2018_v11  ;;  %v7774_v11 = vld [vmem:[%s8713_s17 + $0x35c] sm:$0xf]  ;;  %2951 = vmatpush.bf16.msra.mxu2 %v7149_v41  ;;  %v7184_v15 = vld [vmem:[%s8713_s17 + $0x2d8] sm:$0xf]  ;;  %v7121_v61 = vor.u32 %v7755_v37, %v7120_v48 }
 0x44f   : > { %v9777_v24 = vpack.c.bf16 %v2021_v42, %v2019_v55  ;;  %v7202_v27 = vld [vmem:[%s8713_s17 + $0x378] sm:$0xf0]  ;;  %v7201_v55 = vor.u32 %v7775_v56, %v7200_v60  ;;  %v7141_v42 = vor.u32 %v7758_v6, %v7138_v40  ;;  %2774 = vmatpush.bf16.msrb.mxu0 %v7137_v51  ;;  %v7771_v43 = vld [vmem:[%s8713_s17 + $0x2f4] sm:$0xf0] }
 0x450   : > { %v7205_v49 = vor.u32 %v7774_v11, %v7202_v27  ;;  %v7185_v19 = vor.u32 %v7771_v43, %v7184_v15  ;;  %v7770_v16 = vld [vmem:[%s8713_s17 + $0x2dc] sm:$0xf]  ;;  %v7112_v5 = vld [vmem:[%s8713_s17 + $0x98] sm:$0xf] }
 0x451   : > { %2863 = vmatpush.bf16.msrb.mxu1 %v7201_v55  ;;  %v7186_v41 = vld [vmem:[%s8713_s17 + $0x2f8] sm:$0xf0]  ;;  %v7753_v30 = vld [vmem:[%s8713_s17 + $0xb4] sm:$0xf0] }
 0x452   : > { %2952 = vmatpush.bf16.msra.mxu2 %v7141_v42  ;;  %v7189_v46 = vor.u32 %v7770_v16, %v7186_v41  ;;  %v7769_v60 = vld [vmem:[%s8713_s17 + $0x2b4] sm:$0xf0]  ;;  %v7752_v56 = vld [vmem:[%s8713_s17 + $0x9c] sm:$0xf]  ;;  %v7113_v40 = vor.u32 %v7753_v30, %v7112_v5  ;;  %v9863_v5 = vpop.f32.mrf.mxu1 }
 0x453   : > { %v7114_v6 = vld [vmem:[%s8713_s17 + $0xb8] sm:$0xf0]  ;;  %v7104_v55 = vld [vmem:[%s8713_s17 + $0x58] sm:$0xf] }
 0x454   : > { %v7768_v51 = vld [vmem:[%s8713_s17 + $0x29c] sm:$0xf]  ;;  %v7751_v42 = vld [vmem:[%s8713_s17 + $0x74] sm:$0xf0] }
 0x455   : > { %v7178_v27 = vld [vmem:[%s8713_s17 + $0x2b8] sm:$0xf0]  ;;  %v7749_v48 = vld [vmem:[%s8713_s17 + $0x34] sm:$0xf0] }
 0x456   : > { %2953 = vmatpush.bf16.msra.mxu2 %v7133_v12  ;;  %v7160_v37 = vld [vmem:[%s8713_s17 + $0x218] sm:$0xf]  ;;  %v7748_v43 = vld [vmem:[%s8713_s17 + $0x1c] sm:$0xf] }
 0x457   : > { %v7162_v16 = vld [vmem:[%s8713_s17 + $0x238] sm:$0xf0] }
 0x45c   : > { %2287 = vmatmul.bf16.gmra.mxu0 %v9710_v47  ;;  %2465 = vmatmul.bf16.gmra.mxu2 %v9710_v47  ;;  %v7778_v47 = vld [vmem:[%s8713_s17 + $0x3dc] sm:$0xf] }
 0x45d   : > { %2376 = vmatmul.bf16.gmra.mxu1 %v9717_v4  ;;  %2554 = vmatmul.bf16.gmra.mxu3 %v9717_v4  ;;  %v7221_v4 = vor.u32 %v7778_v47, %v7218_v26  ;;  %v7129_v47 = vor.u32 %v7757_v9, %v7128_v13  ;;  %v7193_v26 = vor.u32 %v7773_v2, %v7192_v45  ;;  %v7168_v9 = vld [vmem:[%s8713_s17 + $0x258] sm:$0xf]  ;;  %v7750_v2 = vld [vmem:[%s8713_s17 + $0x5c] sm:$0xf] }
 0x45e   : > { %v7181_v13 = vor.u32 %v7768_v51, %v7178_v27  ;;  %v7767_v45 = vld [vmem:[%s8713_s17 + $0x274] sm:$0xf0]  ;;  %v12443_v27 = vld [vmem:[#allocation40_spill] sm:$0xff] }
 0x45f   : > { %3039 = vmatpush.bf16.msra.mxu3 %v7221_v4  ;;  %v7197_v4 = vor.u32 %v7772_v63, %v7194_v38  ;;  %2775 = vmatpush.bf16.msrb.mxu0 %v7129_v47  ;;  %v7170_v63 = vld [vmem:[%s8713_s17 + $0x278] sm:$0xf0]  ;;  %v7105_v38 = vor.u32 %v7751_v42, %v7104_v55  ;;  %v7169_v47 = vor.u32 %v7767_v45, %v7168_v9 }
 0x460   : > { %2864 = vmatpush.bf16.msrb.mxu1 %v7193_v26  ;;  %v7109_v26 = vor.u32 %v7750_v2, %v7106_v52  ;;  %v7173_v12 = vor.u32 %v7766_v58, %v7170_v63  ;;  %v2236_v55 = vadd.f32 %v12443_v27, %v9455_v1  ;;  %v12445_v45 = vld [vmem:[#allocation42_spill] sm:$0xff]  ;;  %v12446_v58 = vld [vmem:[#allocation44_spill] sm:$0xff] }
 0x462   : > { %v2325_v2 = vadd.f32 %v12445_v45, %v2236_v55 }
 0x463   : > { %3040 = vmatpush.bf16.msra.mxu3 %v7213_v59  ;;  %v7176_v59 = vld [vmem:[%s8713_s17 + $0x298] sm:$0xf]  ;;  %2776 = vmatpush.bf16.msrb.mxu0 %v7121_v61 }
 0x464   : > { %2865 = vmatpush.bf16.msrb.mxu1 %v7185_v19  ;;  %v7177_v11 = vor.u32 %v7769_v60, %v7176_v59  ;;  %v7765_v61 = vld [vmem:[%s8713_s17 + $0x234] sm:$0xf0]  ;;  %v9869_v60 = vpop.f32.mrf.mxu2 }
 0x467   : > { %3041 = vmatpush.bf16.msra.mxu3 %v7205_v49  ;;  %v7117_v49 = vor.u32 %v7752_v56, %v7114_v6  ;;  %2777 = vmatpush.bf16.msrb.mxu0 %v7113_v40 }
 0x468   : > { %2866 = vmatpush.bf16.msrb.mxu1 %v7177_v11 }
 0x46b   : > { %3042 = vmatpush.bf16.msra.mxu3 %v7197_v4  ;;  %2778 = vmatpush.bf16.msrb.mxu0 %v7105_v38  ;;  %v7096_v4 = vld [vmem:[%s8713_s17 + $0x18] sm:$0xf] }
 0x46c   : > { %2292 = vmatmul.bf16.gmra.mxu0 %v9742_v50  ;;  %2470 = vmatmul.bf16.gmra.mxu2 %v9742_v50  ;;  %v7754_v50 = vld [vmem:[%s8713_s17 + $0xdc] sm:$0xf]  ;;  %v7097_v15 = vor.u32 %v7749_v48, %v7096_v4  ;;  %v12447_v4 = vld [vmem:[#allocation39_spill] sm:$0xff] }
 0x46d   : > { %2381 = vmatmul.bf16.gmra.mxu1 %v9748_v34  ;;  %2559 = vmatmul.bf16.gmra.mxu3 %v9748_v34  ;;  %v7125_v34 = vor.u32 %v7754_v50, %v7122_v0  ;;  %v7098_v50 = vld [vmem:[%s8713_s17 + $0x38] sm:$0xf0]  ;;  %v7161_v0 = vor.u32 %v7765_v61, %v7160_v37  ;;  %v2577_v48 = vpack.c.bf16 %v2325_v2, %v12447_v4  ;;  %v12454_v2 = vld [vmem:[#allocation47_spill] sm:$0xff] }
 0x46e   : > { %2867 = vmatpush.bf16.msrb.mxu1 %v7169_v47  ;;  %v7101_v19 = vor.u32 %v7748_v43, %v7098_v50  ;;  %v12448_v43 = vld [vmem:[#allocation41_spill] sm:$0xff] }
 0x46f   : > { %2954 = vmatpush.bf16.msra.mxu2 %v7125_v34  ;;  %3043 = vmatpush.bf16.msra.mxu3 %v7189_v46  ;;  %v7764_v34 = vld [vmem:[%s8713_s17 + $0x21c] sm:$0xf]  ;;  %v2409_v46 = vadd.f32 %v9477_v31, %v9466_v25 }
 0x470   : > { %2779 = vmatpush.bf16.msrb.mxu0 %v7097_v15  ;;  %v7165_v41 = vor.u32 %v7764_v34, %v7162_v16 }
 0x471   : > { %v2498_v59 = vadd.f32 %v9479_v23, %v2409_v46  ;;  %v12449_v46 = vld [vmem:[#allocation46_spill] sm:$0xff] }
 0x472   : > { %2868 = vmatpush.bf16.msrb.mxu1 %v7161_v0 }
 0x473   : > { %2955 = vmatpush.bf16.msra.mxu2 %v7117_v49  ;;  %3044 = vmatpush.bf16.msra.mxu3 %v7181_v13  ;;  %v12444_v13 = vld [vmem:[#allocation43_spill] sm:$0xff] }
 0x477   : > { %2956 = vmatpush.bf16.msra.mxu2 %v7109_v26  ;;  %3045 = vmatpush.bf16.msra.mxu3 %v7173_v12 }
 0x47b   : > { %2957 = vmatpush.bf16.msra.mxu2 %v7101_v19  ;;  %3046 = vmatpush.bf16.msra.mxu3 %v7165_v41 }
 0x47c   : > { %2297 = vmatmul.bf16.gmra.mxu0 %v9765_v3  ;;  %2475 = vmatmul.bf16.gmra.mxu2 %v9765_v3  ;;  %v9859_v3 = vpop.f32.mrf.mxu0 }
 0x47d   : > { %2386 = vmatmul.bf16.gmra.mxu1 %v9769_v10  ;;  %2564 = vmatmul.bf16.gmra.mxu3 %v9769_v10  ;;  %v2231_v10 = vadd.f32 %v9471_v28, %v9455_v1  ;;  %v2576_v28 = vpack.c.bf16 %v2498_v59, %v9473_v20  ;;  %v2414_v20 = vadd.f32 %v12444_v13, %v9466_v25 }
 0x47f   : > { %v2320_v30 = vadd.f32 %v9475_v14, %v2231_v10  ;;  %v2503_v63 = vadd.f32 %v12446_v58, %v2414_v20 }
 0x481   : > { %v2578_v50 = vpack.c.bf16 %v2503_v63, %v12448_v43 }
 0x48c   : > { %2302 = vmatmul.bf16.gmra.mxu0 %v9775_v62  ;;  %2480 = vmatmul.bf16.gmra.mxu2 %v9775_v62  ;;  %v9871_v62 = vpop.f32.mrf.mxu3 }
 0x48d   : > { %2391 = vmatmul.bf16.gmra.mxu1 %v9777_v24  ;;  %2569 = vmatmul.bf16.gmra.mxu3 %v9777_v24  ;;  %v2575_v24 = vpack.c.bf16 %v2320_v30, %v9464_v35  ;;  %v2241_v30 = vadd.f32 %v12449_v46, %v9455_v1  ;;  %v12458_v46 = vld [vmem:[#allocation56_spill] sm:$0xff] }
 0x499   : > { %v2268_v56 = vpop.f32.mrf.mxu0 }
 0x49a   : > { %v2269_v6 = vadd.f32 %v2268_v56, %v9455_v1  ;;  %v2357_v51 = vpop.f32.mrf.mxu1 }
 0x49c   : > { %v2358_v40 = vadd.f32 %v2357_v51, %v2269_v6  ;;  %2780 = vmatmul.bf16.vlgmr.msrb.gmra.mxu0 %v2575_v24  ;;  %2958 = vmatmul.bf16.vlgmr.msra.gmra.mxu2 %v2575_v24  ;;  %v12450_v6 = vld [vmem:[#allocation49_spill] sm:$0xff] }
 0x49d   : > { %2869 = vmatmul.bf16.vlgmr.msrb.gmra.mxu1 %v2576_v28  ;;  %3047 = vmatmul.bf16.vlgmr.msra.gmra.mxu3 %v2576_v28  ;;  %v2419_v51 = vadd.f32 %v12450_v6, %v9466_v25 }
 0x49f   : > { %v2446_v14 = vpop.f32.mrf.mxu2 }
 0x4a0   : > { %v2447_v31 = vadd.f32 %v2446_v14, %v9466_v25  ;;  %v2535_v23 = vpop.f32.mrf.mxu3 }
 0x4a1   : > { %v2270_v11 = vpop.f32.mrf.mxu0 }
 0x4a2   : > { %v2536_v42 = vadd.f32 %v2535_v23, %v2447_v31  ;;  %v2271_v35 = vadd.f32 %v2270_v11, %v9455_v1  ;;  %v2359_v49 = vpop.f32.mrf.mxu1  ;;  %v12452_v23 = vld [vmem:[#allocation50_spill] sm:$0xff] }
 0x4a3   : > { %v2508_v11 = vadd.f32 %v12452_v23, %v2419_v51  ;;  %v12459_v51 = vld [vmem:[#allocation51_spill] sm:$0xff] }
 0x4a4   : > { %v2360_v9 = vadd.f32 %v2359_v49, %v2271_v35  ;;  %v12453_v49 = vld [vmem:[#allocation45_spill] sm:$0xff] }
 0x4a5   : > { %v2580_v58 = vpack.c.bf16 %v2508_v11, %v12454_v2  ;;  %v12460_v11 = vld [vmem:[#allocation52_spill] sm:$0xff] }
 0x4a6   : > { %v9883_v52 = vpack.c.bf16 %v2360_v9, %v2358_v40  ;;  %v12451_v40 = vld [vmem:[#allocation48_spill] sm:$0xff] }
 0x4a7   : > { %v2448_v38 = vpop.f32.mrf.mxu2  ;;  %v2330_v14 = vadd.f32 %v12451_v40, %v2241_v30 }
 0x4a8   : > { %v2449_v47 = vadd.f32 %v2448_v38, %v9466_v25  ;;  %v2537_v26 = vpop.f32.mrf.mxu3 }
 0x4a9   : > { %v2273_v12 = vpop.f32.mrf.mxu0  ;;  %v2579_v13 = vpack.c.bf16 %v2330_v14, %v12453_v49 }
 0x4aa   : > { %v2538_v37 = vadd.f32 %v2537_v26, %v2449_v47  ;;  %v2274_v15 = vadd.f32 %v2273_v12, %v9455_v1  ;;  %v2362_v61 = vpop.f32.mrf.mxu1 }
 0x4ac   : > { %v9890_v0 = vpack.c.bf16 %v2538_v37, %v2536_v42  ;;  %v2363_v19 = vadd.f32 %v2362_v61, %v2274_v15  ;;  %2785 = vmatmul.bf16.gmra.mxu0 %v2577_v48  ;;  %2963 = vmatmul.bf16.gmra.mxu2 %v2577_v48  ;;  %v12455_v48 = vld [vmem:[#allocation53_spill] sm:$0xff] }
 0x4ad   : > { %2874 = vmatmul.bf16.gmra.mxu1 %v2578_v50  ;;  %3052 = vmatmul.bf16.gmra.mxu3 %v2578_v50  ;;  %v2246_v37 = vadd.f32 %v12455_v48, %v9455_v1  ;;  %v12456_v50 = vld [vmem:[#allocation55_spill] sm:$0xff] }
 0x4af   : > { %v2451_v34 = vpop.f32.mrf.mxu2 }
 0x4b0   : > { %v2452_v16 = vadd.f32 %v2451_v34, %v9466_v25  ;;  %v2540_v41 = vpop.f32.mrf.mxu3 }
 0x4b1   : > { %v2275_v10 = vpop.f32.mrf.mxu0 }
 0x4b2   : > { %v2541_v59 = vadd.f32 %v2540_v41, %v2452_v16  ;;  %v2276_v56 = vadd.f32 %v2275_v10, %v9455_v1  ;;  %v2364_v24 = vpop.f32.mrf.mxu1  ;;  %v12457_v16 = vld [vmem:[#allocation54_spill] sm:$0xff] }
 0x4b3   : > { %v2335_v41 = vadd.f32 %v12457_v16, %v2246_v37  ;;  %v12465_v16 = vld [vmem:[#allocation57_spill] sm:$0xff] }
 0x4b4   : > { %v2365_v28 = vadd.f32 %v2364_v24, %v2276_v56 }
 0x4b6   : > { %v9899_v31 = vpack.c.bf16 %v2365_v28, %v2363_v19  ;;  %v2424_v19 = vadd.f32 %v12456_v50, %v9466_v25  ;;  %v2581_v28 = vpack.c.bf16 %v2335_v41, %v12459_v51 }
 0x4b7   : > { %v2453_v27 = vpop.f32.mrf.mxu2 }
 0x4b8   : > { %v2454_v55 = vadd.f32 %v2453_v27, %v9466_v25  ;;  %v2542_v42 = vpop.f32.mrf.mxu3  ;;  %v2513_v30 = vadd.f32 %v12458_v46, %v2424_v19 }
 0x4b9   : > { %v2278_v35 = vpop.f32.mrf.mxu0 }
 0x4ba   : > { %v2543_v20 = vadd.f32 %v2542_v42, %v2454_v55  ;;  %v2279_v9 = vadd.f32 %v2278_v35, %v9455_v1  ;;  %v2367_v45 = vpop.f32.mrf.mxu1  ;;  %v2582_v27 = vpack.c.bf16 %v2513_v30, %v12460_v11 }
 0x4bc   : > { %v9906_v63 = vpack.c.bf16 %v2543_v20, %v2541_v59  ;;  %v2368_v38 = vadd.f32 %v2367_v45, %v2279_v9  ;;  %2790 = vmatmul.bf16.gmra.mxu0 %v2579_v13  ;;  %2968 = vmatmul.bf16.gmra.mxu2 %v2579_v13 }
 0x4bd   : > { %2879 = vmatmul.bf16.gmra.mxu1 %v2580_v58  ;;  %3057 = vmatmul.bf16.gmra.mxu3 %v2580_v58  ;;  %v12461_v58 = vld [vmem:[#allocation58_spill] sm:$0xff] }
 0x4bf   : > { %v2456_v47 = vpop.f32.mrf.mxu2 }
 0x4c0   : > { %v2457_v26 = vadd.f32 %v2456_v47, %v9466_v25  ;;  %v2545_v12 = vpop.f32.mrf.mxu3 }
 0x4c1   : > { %v2280_v4 = vpop.f32.mrf.mxu0 }
 0x4c2   : > { %v2546_v15 = vadd.f32 %v2545_v12, %v2457_v26  ;;  %v2281_v61 = vadd.f32 %v2280_v4, %v9455_v1  ;;  %v2369_v43 = vpop.f32.mrf.mxu1  ;;  %v12462_v26 = vld [vmem:[#allocation61_spill] sm:$0xff]  ;;  %v12463_v4 = vld [vmem:[#allocation60_spill] sm:$0xff] }
 0x4c3   : > { %v2429_v12 = vadd.f32 %v12462_v26, %v9466_v25 }
 0x4c4   : > { %v2370_v34 = vadd.f32 %v2369_v43, %v2281_v61 }
 0x4c6   : > { %v9915_v10 = vpack.c.bf16 %v2370_v34, %v2368_v38  ;;  %v2251_v38 = vadd.f32 %v12461_v58, %v9455_v1 }
 0x4c7   : > { %v2458_v59 = vpop.f32.mrf.mxu2 }
 0x4c8   : > { %v2459_v56 = vadd.f32 %v2458_v59, %v9466_v25  ;;  %v2547_v24 = vpop.f32.mrf.mxu3  ;;  %v2340_v48 = vadd.f32 %v12463_v4, %v2251_v38  ;;  %v12470_v38 = vld [vmem:[#allocation68_spill] sm:$0xff] }
 0x4c9   : > { %v2283_v6 = vpop.f32.mrf.mxu0 }
 0x4ca   : > { %v2548_v40 = vadd.f32 %v2547_v24, %v2459_v56  ;;  %v2284_v14 = vadd.f32 %v2283_v6, %v9455_v1  ;;  %v2372_v23 = vpop.f32.mrf.mxu1  ;;  %v2583_v41 = vpack.c.bf16 %v2340_v48, %v12465_v16  ;;  %v12466_v56 = vld [vmem:[#allocation59_spill] sm:$0xff] }
 0x4cc   : > { %v9922_v55 = vpack.c.bf16 %v2548_v40, %v2546_v15  ;;  %v2373_v42 = vadd.f32 %v2372_v23, %v2284_v14  ;;  %2795 = vmatmul.bf16.gmra.mxu0 %v2581_v28  ;;  %2973 = vmatmul.bf16.gmra.mxu2 %v2581_v28  ;;  %v12464_v15 = vld [vmem:[#allocation62_spill] sm:$0xff] }
 0x4cd   : > { %2884 = vmatmul.bf16.gmra.mxu1 %v2582_v27  ;;  %3062 = vmatmul.bf16.gmra.mxu3 %v2582_v27  ;;  %v2518_v61 = vadd.f32 %v12464_v15, %v2429_v12  ;;  %v12471_v15 = vld [vmem:[#allocation63_spill] sm:$0xff] }
 0x4cf   : > { %v2461_v35 = vpop.f32.mrf.mxu2  ;;  %v2584_v24 = vpack.c.bf16 %v2518_v61, %v12466_v56 }
 0x4d0   : > { %v2462_v49 = vadd.f32 %v2461_v35, %v9466_v25  ;;  %v2550_v13 = vpop.f32.mrf.mxu3  ;;  %v12467_v35 = vld [vmem:[#allocation64_spill] sm:$0xff] }
 0x4d1   : > { %v2285_v20 = vpop.f32.mrf.mxu0 }
 0x4d2   : > { %v2551_v9 = vadd.f32 %v2550_v13, %v2462_v49  ;;  %v2286_v45 = vadd.f32 %v2285_v20, %v9455_v1  ;;  %v2374_v2 = vpop.f32.mrf.mxu1  ;;  %v2256_v49 = vadd.f32 %v12467_v35, %v9455_v1  ;;  %v12468_v20 = vld [vmem:[#allocation67_spill] sm:$0xff]  ;;  %v12475_v35 = vld [vmem:[#allocation72_spill] sm:$0xff] }
 0x4d4   : > { %v2375_v47 = vadd.f32 %v2374_v2, %v2286_v45  ;;  %v12469_v45 = vld [vmem:[#allocation66_spill] sm:$0xff] }
 0x4d5   : > { %v2345_v2 = vadd.f32 %v12469_v45, %v2256_v49 }
 0x4d6   : > { %v9931_v37 = vpack.c.bf16 %v2375_v47, %v2373_v42 }
 0x4d7   : > { %v2463_v43 = vpop.f32.mrf.mxu2  ;;  %v2585_v61 = vpack.c.bf16 %v2345_v2, %v12471_v15 }
 0x4d8   : > { %v2464_v50 = vadd.f32 %v2463_v43, %v9466_v25  ;;  %v2552_v19 = vpop.f32.mrf.mxu3 }
 0x4d9   : > { %v2288_v34 = vpop.f32.mrf.mxu0 }
 0x4da   : > { %v2553_v46 = vadd.f32 %v2552_v19, %v2464_v50  ;;  %v2289_v30 = vadd.f32 %v2288_v34, %v9455_v1  ;;  %v2377_v59 = vpop.f32.mrf.mxu1  ;;  %v12472_v34 = vld [vmem:[#allocation65_spill] sm:$0xff] }
 0x4dc   : > { %v9938_v6 = vpack.c.bf16 %v2553_v46, %v2551_v9  ;;  %v2378_v51 = vadd.f32 %v2377_v59, %v2289_v30  ;;  %2800 = vmatmul.bf16.gmra.mxu0 %v2583_v41  ;;  %2978 = vmatmul.bf16.gmra.mxu2 %v2583_v41  ;;  %v2434_v9 = vadd.f32 %v12468_v20, %v9466_v25  ;;  %v12476_v20 = vld [vmem:[#allocation74_spill] sm:$0xff] }
 0x4dd   : > { %2889 = vmatmul.bf16.gmra.mxu1 %v2584_v24  ;;  %3067 = vmatmul.bf16.gmra.mxu3 %v2584_v24 }
 0x4de   : > { %v2523_v47 = vadd.f32 %v12470_v38, %v2434_v9 }
 0x4df   : > { %v2466_v28 = vpop.f32.mrf.mxu2 }
 0x4e0   : > { %v2467_v40 = vadd.f32 %v2466_v28, %v9466_v25  ;;  %v2555_v14 = vpop.f32.mrf.mxu3  ;;  %v2586_v16 = vpack.c.bf16 %v2523_v47, %v12472_v34 }
 0x4e1   : > { %v2290_v23 = vpop.f32.mrf.mxu0 }
 0x4e2   : > { %v2556_v11 = vadd.f32 %v2555_v14, %v2467_v40  ;;  %v2291_v27 = vadd.f32 %v2290_v23, %v9455_v1  ;;  %v2379_v42 = vpop.f32.mrf.mxu1  ;;  %v12473_v14 = vld [vmem:[#allocation70_spill] sm:$0xff] }
 0x4e3   : > { %v2261_v23 = vadd.f32 %v12473_v14, %v9455_v1 }
 0x4e4   : > { %v2380_v13 = vadd.f32 %v2379_v42, %v2291_v27 }
 0x4e5   : > { %v2350_v49 = vadd.f32 %v12475_v35, %v2261_v23 }
 0x4e6   : > { %v9947_v58 = vpack.c.bf16 %v2380_v13, %v2378_v51 }
 0x4e7   : > { %v2468_v26 = vpop.f32.mrf.mxu2 }
 0x4e8   : > { %v2469_v12 = vadd.f32 %v2468_v26, %v9466_v25  ;;  %v2557_v4 = vpop.f32.mrf.mxu3  ;;  %v12477_v26 = vld [vmem:[#allocation69_spill] sm:$0xff] }
 0x4e9   : > { %v2293_v48 = vpop.f32.mrf.mxu0 }
 0x4ea   : > { %v2558_v43 = vadd.f32 %v2557_v4, %v2469_v12  ;;  %v2294_v50 = vadd.f32 %v2293_v48, %v9455_v1  ;;  %v2382_v19 = vpop.f32.mrf.mxu1  ;;  %v2587_v12 = vpack.c.bf16 %v2350_v49, %v12477_v26 }
 0x4ec   : > { %v9954_v41 = vpack.c.bf16 %v2558_v43, %v2556_v11  ;;  %v2383_v46 = vadd.f32 %v2382_v19, %v2294_v50  ;;  %2805 = vmatmul.bf16.gmra.mxu0 %v2585_v61  ;;  %2983 = vmatmul.bf16.gmra.mxu2 %v2585_v61  ;;  %v12474_v11 = vld [vmem:[#allocation73_spill] sm:$0xff]  ;;  %v12478_v61 = vld [vmem:[#allocation71_spill] sm:$0xff] }
 0x4ed   : > { %2894 = vmatmul.bf16.gmra.mxu1 %v2586_v16  ;;  %3072 = vmatmul.bf16.gmra.mxu3 %v2586_v16  ;;  %v2439_v42 = vadd.f32 %v12474_v11, %v9466_v25 }
 0x4ef   : > { %v2471_v30 = vpop.f32.mrf.mxu2  ;;  %v2528_v9 = vadd.f32 %v12476_v20, %v2439_v42  ;;  %v12479_v20 = vld [vmem:[#allocation75_spill] sm:$0xff] }
 0x4f0   : > { %v2472_v59 = vadd.f32 %v2471_v30, %v9466_v25  ;;  %v2560_v56 = vpop.f32.mrf.mxu3 }
 0x4f1   : > { %v2295_v24 = vpop.f32.mrf.mxu0  ;;  %v2588_v43 = vpack.c.bf16 %v2528_v9, %v12478_v61 }
 0x4f2   : > { %v2561_v51 = vadd.f32 %v2560_v56, %v2472_v59  ;;  %v2296_v28 = vadd.f32 %v2295_v24, %v9455_v1  ;;  %v2384_v40 = vpop.f32.mrf.mxu1 }
 0x4f4   : > { %v2385_v27 = vadd.f32 %v2384_v40, %v2296_v28  ;;  %v2266_v28 = vadd.f32 %v9859_v3, %v9455_v1 }
 0x4f6   : > { %v9963_v13 = vpack.c.bf16 %v2385_v27, %v2383_v46  ;;  %v2355_v14 = vadd.f32 %v9863_v5, %v2266_v28 }
 0x4f7   : > { %v2473_v45 = vpop.f32.mrf.mxu2 }
 0x4f8   : > { %v2474_v2 = vadd.f32 %v2473_v45, %v9466_v25  ;;  %v2562_v38 = vpop.f32.mrf.mxu3  ;;  %v2589_v9 = vpack.c.bf16 %v2355_v14, %v12479_v20 }
 0x4f9   : > { %v2298_v47 = vpop.f32.mrf.mxu0 }
 0x4fa   : > { %v2563_v4 = vadd.f32 %v2562_v38, %v2474_v2  ;;  %v2299_v48 = vadd.f32 %v2298_v47, %v9455_v1  ;;  %v2387_v15 = vpop.f32.mrf.mxu1  ;;  %v12480_v38 = vld [vmem:[#allocation76_spill] sm:$0xff] }
 0x4fc   : > { %v9970_v50 = vpack.c.bf16 %v2563_v4, %v2561_v51  ;;  %v2388_v19 = vadd.f32 %v2387_v15, %v2299_v48  ;;  %2810 = vmatmul.bf16.gmra.mxu0 %v2587_v12  ;;  %2988 = vmatmul.bf16.gmra.mxu2 %v2587_v12  ;;  %v2444_v51 = vadd.f32 %v9869_v60, %v9466_v25 }
 0x4fd   : > { %2899 = vmatmul.bf16.gmra.mxu1 %v2588_v43  ;;  %3077 = vmatmul.bf16.gmra.mxu3 %v2588_v43  ;;  %v6705_v43 = vld [vmem:[%s8720_s29 + $0x3] ss:$8 sm:$0x3] }
 0x4fe   : > { %v2533_v27 = vadd.f32 %v9871_v62, %v2444_v51 }
 0x4ff   : > { %v2476_v34 = vpop.f32.mrf.mxu2 }
 0x500   : > { %v2477_v16 = vadd.f32 %v2476_v34, %v9466_v25  ;;  %v2565_v46 = vpop.f32.mrf.mxu3  ;;  %v2590_v60 = vpack.c.bf16 %v2533_v27, %v12480_v38 }
 0x501   : > { %v2300_v30 = vpop.f32.mrf.mxu0 }
 0x502   : > { %v2566_v59 = vadd.f32 %v2565_v46, %v2477_v16  ;;  %v2301_v56 = vadd.f32 %v2300_v30, %v9455_v1  ;;  %v2389_v24 = vpop.f32.mrf.mxu1  ;;  %v9993_v16 = vperm.slane %v6705_v43, 0 }
 0x504   : > { %v2390_v40 = vadd.f32 %v2389_v24, %v2301_v56 }
 0x506   : > { %v9979_v23 = vpack.c.bf16 %v2390_v40, %v2388_v19 }
 0x507   : > { %v2478_v11 = vpop.f32.mrf.mxu2 }
 0x508   : > { %v2479_v42 = vadd.f32 %v2478_v11, %v9466_v25  ;;  %v2567_v35 = vpop.f32.mrf.mxu3 }
 0x509   : > { %v2303_v49 = vpop.f32.mrf.mxu0 }
 0x50a   : > { %v2568_v45 = vadd.f32 %v2567_v35, %v2479_v42  ;;  %v2304_v3 = vadd.f32 %v2303_v49, %v9455_v1  ;;  %v2392_v2 = vpop.f32.mrf.mxu1 }
 0x50c   : > { %v9986_v47 = vpack.c.bf16 %v2568_v45, %v2566_v59  ;;  %v2393_v5 = vadd.f32 %v2392_v2, %v2304_v3  ;;  %2815 = vmatmul.bf16.gmra.mxu0 %v2589_v9  ;;  %2993 = vmatmul.bf16.gmra.mxu2 %v2589_v9 }
 0x50d   : > { %2904 = vmatmul.bf16.gmra.mxu1 %v2590_v60  ;;  %3082 = vmatmul.bf16.gmra.mxu3 %v2590_v60 }
 0x50f   : > { %v2481_v62 = vpop.f32.mrf.mxu2 }
 0x510   : > { %v2482_v26 = vadd.f32 %v2481_v62, %v9466_v25  ;;  %v2570_v12 = vpop.f32.mrf.mxu3 }
 0x511   : > { %v2305_v4 = vpop.f32.mrf.mxu0 }
 0x512   : > { %v2571_v48 = vadd.f32 %v2570_v12, %v2482_v26  ;;  %v2306_v15 = vadd.f32 %v2305_v4, %v9455_v1  ;;  %v2394_v61 = vpop.f32.mrf.mxu1  ;;  %v10003_v1 = vperm.slane %v6705_v43, 1 }
 0x514   : > { %v2395_v19 = vadd.f32 %v2394_v61, %v2306_v15 }
 0x516   : > { %v9991_v34 = vpack.c.bf16 %v2395_v19, %v2393_v5 }
 0x517   : > { %v2483_v46 = vpop.f32.mrf.mxu2 }
 0x518   : > { %v2484_v30 = vadd.f32 %v2483_v46, %v9466_v25  ;;  %v2572_v59 = vpop.f32.mrf.mxu3 }
 0x519   : > { %v2781_v56 = vpop.f32.mrf.mxu0 }
 0x51a   : > { %v2573_v24 = vadd.f32 %v2572_v59, %v2484_v30  ;;  %v2782_v28 = vadd.f32 %v2781_v56, %v9993_v16  ;;  %v2870_v40 = vpop.f32.mrf.mxu1 }
 0x51c   : > { %v9997_v51 = vpack.c.bf16 %v2573_v24, %v2571_v48  ;;  %v9999_v14 = vadd.f32 %v2870_v40, %v2782_v28  ;;  %2820 = vmatmul.bf16.gmra.mxu0 %v9883_v52  ;;  %2998 = vmatmul.bf16.gmra.mxu2 %v9883_v52 }
 0x51d   : > { %2909 = vmatmul.bf16.gmra.mxu1 %v9890_v0  ;;  %3087 = vmatmul.bf16.gmra.mxu3 %v9890_v0 }
 0x51f   : > { %v2959_v25 = vpop.f32.mrf.mxu2 }
 0x520   : > { %v2960_v27 = vadd.f32 %v2959_v25, %v10003_v1  ;;  %v3048_v11 = vpop.f32.mrf.mxu3 }
 0x521   : > { %v2783_v42 = vpop.f32.mrf.mxu0 }
 0x522   : > { %v10008_v35 = vadd.f32 %v3048_v11, %v2960_v27  ;;  %v2784_v49 = vadd.f32 %v2783_v42, %v9993_v16  ;;  %v2872_v20 = vpop.f32.mrf.mxu1 }
 0x524   : > { %v10011_v9 = vadd.f32 %v2872_v20, %v2784_v49 }
 0x527   : > { %v2961_v45 = vpop.f32.mrf.mxu2 }
 0x528   : > { %v2962_v52 = vadd.f32 %v2961_v45, %v10003_v1  ;;  %v3050_v3 = vpop.f32.mrf.mxu3 }
 0x529   : > { %v2786_v2 = vpop.f32.mrf.mxu0 }
 0x52a   : > { %v10014_v38 = vadd.f32 %v3050_v3, %v2962_v52  ;;  %v2787_v0 = vadd.f32 %v2786_v2, %v9993_v16  ;;  %v2875_v60 = vpop.f32.mrf.mxu1 }
 0x52c   : > { %v10017_v5 = vadd.f32 %v2875_v60, %v2787_v0  ;;  %2825 = vmatmul.bf16.gmra.mxu0 %v9899_v31  ;;  %3003 = vmatmul.bf16.gmra.mxu2 %v9899_v31 }
 0x52d   : > { %2914 = vmatmul.bf16.gmra.mxu1 %v9906_v63  ;;  %3092 = vmatmul.bf16.gmra.mxu3 %v9906_v63 }
 0x52f   : > { %v2964_v62 = vpop.f32.mrf.mxu2 }
 0x530   : > { %v2965_v26 = vadd.f32 %v2964_v62, %v10003_v1  ;;  %v3053_v12 = vpop.f32.mrf.mxu3 }
 0x531   : > { %v2788_v4 = vpop.f32.mrf.mxu0 }
 0x532   : > { %v10024_v48 = vadd.f32 %v3053_v12, %v2965_v26  ;;  %v2789_v15 = vadd.f32 %v2788_v4, %v9993_v16  ;;  %v2877_v61 = vpop.f32.mrf.mxu1 }
 0x534   : > { %v10027_v43 = vadd.f32 %v2877_v61, %v2789_v15 }
 0x537   : > { %v2966_v19 = vpop.f32.mrf.mxu2 }
 0x538   : > { %v2967_v46 = vadd.f32 %v2966_v19, %v10003_v1  ;;  %v3055_v31 = vpop.f32.mrf.mxu3 }
 0x539   : > { %v2791_v30 = vpop.f32.mrf.mxu0 }
 0x53a   : > { %v10030_v59 = vadd.f32 %v3055_v31, %v2967_v46  ;;  %v2792_v63 = vadd.f32 %v2791_v30, %v9993_v16  ;;  %v2880_v56 = vpop.f32.mrf.mxu1 }
 0x53c   : > { %v10033_v24 = vadd.f32 %v2880_v56, %v2792_v63  ;;  %2830 = vmatmul.bf16.gmra.mxu0 %v9915_v10  ;;  %3008 = vmatmul.bf16.gmra.mxu2 %v9915_v10 }
 0x53d   : > { %2919 = vmatmul.bf16.gmra.mxu1 %v9922_v55  ;;  %3097 = vmatmul.bf16.gmra.mxu3 %v9922_v55 }
 0x53f   : > { %v2969_v28 = vpop.f32.mrf.mxu2 }
 0x540   : > { %v2970_v40 = vadd.f32 %v2969_v28, %v10003_v1  ;;  %v3058_v25 = vpop.f32.mrf.mxu3 }
 0x541   : > { %v2793_v27 = vpop.f32.mrf.mxu0 }
 0x542   : > { %v10040_v11 = vadd.f32 %v3058_v25, %v2970_v40  ;;  %v2794_v42 = vadd.f32 %v2793_v27, %v9993_v16  ;;  %v2882_v49 = vpop.f32.mrf.mxu1 }
 0x544   : > { %v10043_v20 = vadd.f32 %v2882_v49, %v2794_v42 }
 0x547   : > { %v2971_v45 = vpop.f32.mrf.mxu2 }
 0x548   : > { %v2972_v52 = vadd.f32 %v2971_v45, %v10003_v1  ;;  %v3060_v10 = vpop.f32.mrf.mxu3 }
 0x549   : > { %v2796_v3 = vpop.f32.mrf.mxu0 }
 0x54a   : > { %v10046_v2 = vadd.f32 %v3060_v10, %v2972_v52  ;;  %v2797_v55 = vadd.f32 %v2796_v3, %v9993_v16  ;;  %v2885_v0 = vpop.f32.mrf.mxu1 }
 0x54c   : > { %v10049_v60 = vadd.f32 %v2885_v0, %v2797_v55  ;;  %2835 = vmatmul.bf16.gmra.mxu0 %v9931_v37  ;;  %3013 = vmatmul.bf16.gmra.mxu2 %v9931_v37 }
 0x54d   : > { %2924 = vmatmul.bf16.gmra.mxu1 %v9938_v6  ;;  %3102 = vmatmul.bf16.gmra.mxu3 %v9938_v6 }
 0x54f   : > { %v2974_v62 = vpop.f32.mrf.mxu2 }
 0x550   : > { %v2975_v26 = vadd.f32 %v2974_v62, %v10003_v1  ;;  %v3063_v12 = vpop.f32.mrf.mxu3 }
 0x551   : > { %v2798_v4 = vpop.f32.mrf.mxu0 }
 0x552   : > { %v10056_v15 = vadd.f32 %v3063_v12, %v2975_v26  ;;  %v2799_v61 = vadd.f32 %v2798_v4, %v9993_v16  ;;  %v2887_v19 = vpop.f32.mrf.mxu1 }
 0x554   : > { %12481 = vst [vmem:[#allocation40_spill] sm:$0xff] %v10056_v15  ;;  %v10059_v46 = vadd.f32 %v2887_v19, %v2799_v61 }
 0x556   : > { %12482 = vst [vmem:[#allocation43_spill] sm:$0xff] %v10059_v46 }
 0x557   : > { %v2976_v31 = vpop.f32.mrf.mxu2 }
 0x558   : > { %v2977_v30 = vadd.f32 %v2976_v31, %v10003_v1  ;;  %v3065_v37 = vpop.f32.mrf.mxu3 }
 0x559   : > { %v10062_v63 = vpop.f32.mrf.mxu0 }
 0x55a   : > { %v10064_v56 = vadd.f32 %v3065_v37, %v2977_v30  ;;  %v10066_v6 = vpop.f32.mrf.mxu1 }
 0x55c   : > { %12483 = vst [vmem:[#allocation42_spill] sm:$0xff] %v10064_v56  ;;  %2840 = vmatmul.bf16.gmra.mxu0 %v9947_v58  ;;  %3018 = vmatmul.bf16.gmra.mxu2 %v9947_v58 }
 0x55d   : > { %2929 = vmatmul.bf16.gmra.mxu1 %v9954_v41  ;;  %3107 = vmatmul.bf16.gmra.mxu3 %v9954_v41 }
 0x55f   : > { %v2979_v28 = vpop.f32.mrf.mxu2 }
 0x560   : > { %v2980_v40 = vadd.f32 %v2979_v28, %v10003_v1  ;;  %v3068_v25 = vpop.f32.mrf.mxu3 }
 0x561   : > { %v10073_v27 = vpop.f32.mrf.mxu0 }
 0x562   : > { %v10075_v42 = vadd.f32 %v3068_v25, %v2980_v40  ;;  %v10077_v49 = vpop.f32.mrf.mxu1 }
 0x567   : > { %v2981_v52 = vpop.f32.mrf.mxu2 }
 0x568   : > { %v2982_v58 = vadd.f32 %v2981_v52, %v10003_v1  ;;  %v3070_v10 = vpop.f32.mrf.mxu3 }
 0x569   : > { %v10082_v3 = vpop.f32.mrf.mxu0 }
 0x56a   : > { %v10084_v41 = vadd.f32 %v3070_v10, %v2982_v58  ;;  %v10086_v55 = vpop.f32.mrf.mxu1 }
 0x56c   : > { %2845 = vmatmul.bf16.gmra.mxu0 %v9963_v13  ;;  %3023 = vmatmul.bf16.gmra.mxu2 %v9963_v13 }
 0x56d   : > { %2934 = vmatmul.bf16.gmra.mxu1 %v9970_v50  ;;  %3112 = vmatmul.bf16.gmra.mxu3 %v9970_v50 }
 0x56f   : > { %v2984_v62 = vpop.f32.mrf.mxu2 }
 0x570   : > { %v2985_v26 = vadd.f32 %v2984_v62, %v10003_v1  ;;  %v3073_v12 = vpop.f32.mrf.mxu3 }
 0x571   : > { %v10095_v4 = vpop.f32.mrf.mxu0 }
 0x572   : > { %v10097_v61 = vadd.f32 %v3073_v12, %v2985_v26  ;;  %v10099_v19 = vpop.f32.mrf.mxu1 }
 0x577   : > { %v2986_v30 = vpop.f32.mrf.mxu2 }
 0x578   : > { %v2987_v13 = vadd.f32 %v2986_v30, %v10003_v1  ;;  %v3075_v37 = vpop.f32.mrf.mxu3 }
 0x579   : > { %v10104_v28 = vpop.f32.mrf.mxu0 }
 0x57a   : > { %v10106_v50 = vadd.f32 %v3075_v37, %v2987_v13  ;;  %v10108_v40 = vpop.f32.mrf.mxu1 }
 0x57c   : > { %2850 = vmatmul.bf16.gmra.mxu0 %v9979_v23  ;;  %3028 = vmatmul.bf16.gmra.mxu2 %v9979_v23 }
 0x57d   : > { %2939 = vmatmul.bf16.gmra.mxu1 %v9986_v47  ;;  %3117 = vmatmul.bf16.gmra.mxu3 %v9986_v47 }
 0x57f   : > { %v2989_v52 = vpop.f32.mrf.mxu2 }
 0x580   : > { %v2990_v58 = vadd.f32 %v2989_v52, %v10003_v1  ;;  %v3078_v10 = vpop.f32.mrf.mxu3 }
 0x581   : > { %v10117_v62 = vpop.f32.mrf.mxu0 }
 0x582   : > { %v10119_v26 = vadd.f32 %v3078_v10, %v2990_v58  ;;  %v10121_v12 = vpop.f32.mrf.mxu1 }
 0x587   : > { %v2991_v13 = vpop.f32.mrf.mxu2 }
 0x588   : > { %v2992_v23 = vadd.f32 %v2991_v13, %v10003_v1  ;;  %v3080_v37 = vpop.f32.mrf.mxu3 }
 0x589   : > { %v10126_v25 = vpop.f32.mrf.mxu0 }
 0x58a   : > { %v10128_v47 = vadd.f32 %v3080_v37, %v2992_v23  ;;  %v10130_v31 = vpop.f32.mrf.mxu1 }
 0x58c   : > { %2855 = vmatmul.bf16.gmra.mxu0 %v9991_v34  ;;  %3033 = vmatmul.bf16.gmra.mxu2 %v9991_v34 }
 0x58d   : > { %2944 = vmatmul.bf16.gmra.mxu1 %v9997_v51  ;;  %3122 = vmatmul.bf16.gmra.mxu3 %v9997_v51 }
 0x58f   : > { %v2994_v58 = vpop.f32.mrf.mxu2 }
 0x590   : > { %v2995_v10 = vadd.f32 %v2994_v58, %v10003_v1  ;;  %v3083_v13 = vpop.f32.mrf.mxu3 }
 0x591   : > { %v10139_v30 = vpop.f32.mrf.mxu0 }
 0x592   : > { %v10141_v23 = vadd.f32 %v3083_v13, %v2995_v10  ;;  %v10143_v37 = vpop.f32.mrf.mxu1 }
 0x593   : > { %12485 = vst [vmem:[#allocation39_spill] sm:$0xff] %v10143_v37 }
 0x594   : > { %12484 = vst [vmem:[#allocation44_spill] sm:$0xff] %v10141_v23 }
 0x597   : > { %v2996_v0 = vpop.f32.mrf.mxu2 }
 0x598   : > { %v2997_v34 = vadd.f32 %v2996_v0, %v10003_v1  ;;  %v3085_v45 = vpop.f32.mrf.mxu3 }
 0x599   : > { %v2821_v22 = vpop.f32.mrf.mxu0 }
 0x59a   : > { %v10148_v21 = vadd.f32 %v3085_v45, %v2997_v34  ;;  %v2822_v51 = vadd.f32 %v2821_v22, %v9993_v16  ;;  %v2910_v58 = vpop.f32.mrf.mxu1 }
 0x59c   : > { %12486 = vst [vmem:[#allocation41_spill] sm:$0xff] %v10148_v21  ;;  %v10153_v10 = vadd.f32 %v2910_v58, %v2822_v51 }
 0x59f   : > { %v2999_v13 = vpop.f32.mrf.mxu2 }
 0x5a0   : > { %v3000_v17 = vadd.f32 %v2999_v13, %v10003_v1  ;;  %v3088_v32 = vpop.f32.mrf.mxu3 }
 0x5a1   : > { %v2823_v52 = vpop.f32.mrf.mxu0 }
 0x5a2   : > { %v10156_v29 = vadd.f32 %v3088_v32, %v3000_v17  ;;  %v2824_v0 = vadd.f32 %v2823_v52, %v9993_v16  ;;  %v2912_v33 = vpop.f32.mrf.mxu1 }
 0x5a4   : > { %v10159_v45 = vadd.f32 %v2912_v33, %v2824_v0 }
 0x5a7   : > { %v3001_v34 = vpop.f32.mrf.mxu2 }
 0x5a8   : > { %v3002_v22 = vadd.f32 %v3001_v34, %v10003_v1  ;;  %v3090_v7 = vpop.f32.mrf.mxu3 }
 0x5a9   : > { %v2826_v36 = vpop.f32.mrf.mxu0 }
 0x5aa   : > { %v10162_v8 = vadd.f32 %v3090_v7, %v3002_v22  ;;  %v2827_v51 = vadd.f32 %v2826_v36, %v9993_v16  ;;  %v2915_v58 = vpop.f32.mrf.mxu1 }
 0x5ac   : > { %v10165_v13 = vadd.f32 %v2915_v58, %v2827_v51 }
 0x5af   : > { %v3004_v18 = vpop.f32.mrf.mxu2 }
 0x5b0   : > { %v3005_v17 = vadd.f32 %v3004_v18, %v10003_v1  ;;  %v3093_v32 = vpop.f32.mrf.mxu3 }
 0x5b1   : > { %v2828_v52 = vpop.f32.mrf.mxu0 }
 0x5b2   : > { %v10168_v39 = vadd.f32 %v3093_v32, %v3005_v17  ;;  %v2829_v33 = vadd.f32 %v2828_v52, %v9993_v16  ;;  %v2917_v0 = vpop.f32.mrf.mxu1 }
 0x5b4   : > { %v10171_v34 = vadd.f32 %v2917_v0, %v2829_v33 }
 0x5b7   : > { %v3006_v53 = vpop.f32.mrf.mxu2 }
 0x5b8   : > { %v3007_v7 = vadd.f32 %v3006_v53, %v10003_v1  ;;  %v3095_v22 = vpop.f32.mrf.mxu3 }
 0x5b9   : > { %v2831_v36 = vpop.f32.mrf.mxu0 }
 0x5ba   : > { %v10174_v54 = vadd.f32 %v3095_v22, %v3007_v7  ;;  %v2832_v51 = vadd.f32 %v2831_v36, %v9993_v16  ;;  %v2920_v58 = vpop.f32.mrf.mxu1 }
 0x5bc   : > { %v10177_v18 = vadd.f32 %v2920_v58, %v2832_v51 }
 0x5bf   : > { %v3009_v21 = vpop.f32.mrf.mxu2 }
 0x5c0   : > { %v3010_v17 = vadd.f32 %v3009_v21, %v10003_v1  ;;  %v3098_v32 = vpop.f32.mrf.mxu3 }
 0x5c1   : > { %v2833_v52 = vpop.f32.mrf.mxu0 }
 0x5c2   : > { %v10180_v56 = vadd.f32 %v3098_v32, %v3010_v17  ;;  %v2834_v33 = vadd.f32 %v2833_v52, %v9993_v16  ;;  %v2922_v0 = vpop.f32.mrf.mxu1 }
 0x5c4   : > { %v10183_v53 = vadd.f32 %v2922_v0, %v2834_v33 }
 0x5c7   : > { %v3011_v44 = vpop.f32.mrf.mxu2 }
 0x5c8   : > { %v3012_v7 = vadd.f32 %v3011_v44, %v10003_v1  ;;  %v3100_v22 = vpop.f32.mrf.mxu3 }
 0x5c9   : > { %v2836_v36 = vpop.f32.mrf.mxu0 }
 0x5ca   : > { %v10186_v57 = vadd.f32 %v3100_v22, %v3012_v7  ;;  %v2837_v51 = vadd.f32 %v2836_v36, %v9993_v16  ;;  %v2925_v58 = vpop.f32.mrf.mxu1  ;;  %v2802_v7 = vadd.f32 %v10062_v63, %v9993_v16 }
 0x5cc   : > { %v10189_v21 = vadd.f32 %v2925_v58, %v2837_v51  ;;  %v2891_v46 = vadd.f32 %v10066_v6, %v2802_v7 }
 0x5cf   : > { %v3014_v23 = vpop.f32.mrf.mxu2 }
 0x5d0   : > { %v3015_v17 = vadd.f32 %v3014_v23, %v10003_v1  ;;  %v3103_v32 = vpop.f32.mrf.mxu3 }
 0x5d1   : > { %v2838_v52 = vpop.f32.mrf.mxu0 }
 0x5d2   : > { %v10192_v15 = vadd.f32 %v3103_v32, %v3015_v17  ;;  %v2839_v33 = vadd.f32 %v2838_v52, %v9993_v16  ;;  %v2927_v0 = vpop.f32.mrf.mxu1  ;;  %v3128_v52 = vmax.f32 %v9999_v14, %v2891_v46 }
 0x5d4   : > { %12487 = vst [vmem:[#allocation46_spill] sm:$0xff] %v10192_v15  ;;  %v10195_v44 = vadd.f32 %v2927_v0, %v2839_v33  ;;  %v2804_v33 = vadd.f32 %v10073_v27, %v9993_v16 }
 0x5d6   : > { %12488 = vst [vmem:[#allocation49_spill] sm:$0xff] %v10195_v44  ;;  %v2893_v7 = vadd.f32 %v10077_v49, %v2804_v33 }
 0x5d7   : > { %v3016_v22 = vpop.f32.mrf.mxu2 }
 0x5d8   : > { %v3017_v36 = vadd.f32 %v3016_v22, %v10003_v1  ;;  %v3105_v51 = vpop.f32.mrf.mxu3  ;;  %v3130_v27 = vmax.f32 %v10011_v9, %v2893_v7 }
 0x5d9   : > { %v2841_v58 = vpop.f32.mrf.mxu0 }
 0x5da   : > { %v10201_v23 = vadd.f32 %v3105_v51, %v3017_v36  ;;  %v2842_v17 = vadd.f32 %v2841_v58, %v9993_v16  ;;  %v2930_v32 = vpop.f32.mrf.mxu1 }
 0x5dc   : > { %v2931_v15 = vadd.f32 %v2930_v32, %v2842_v17 }
 0x5de   : > { %v3144_v63 = vmax.f32 %v10153_v10, %v2931_v15  ;;  %v2807_v15 = vadd.f32 %v10082_v3, %v9993_v16  ;;  %v12489_v10 = vmax.f32 %v10008_v35, %v10075_v42 }
 0x5df   : > { %v3019_v0 = vpop.f32.mrf.mxu2 }
 0x5e0   : > { %v10208_v44 = vmax.f32 %v3128_v52, %v3144_v63  ;;  %v3020_v22 = vadd.f32 %v3019_v0, %v10003_v1  ;;  %v3108_v37 = vpop.f32.mrf.mxu3  ;;  %v2896_v63 = vadd.f32 %v10086_v55, %v2807_v15 }
 0x5e1   : > { %v2843_v6 = vpop.f32.mrf.mxu0 }
 0x5e2   : > { %v3109_v36 = vadd.f32 %v3108_v37, %v3020_v22  ;;  %v2844_v51 = vadd.f32 %v2843_v6, %v9993_v16  ;;  %v2932_v58 = vpop.f32.mrf.mxu1  ;;  %v3132_v42 = vmax.f32 %v10017_v5, %v2896_v63  ;;  %v12490_v6 = vmax.f32 %v10014_v38, %v10084_v41 }
 0x5e4   : > { %v3145_v14 = vmax.f32 %v10156_v29, %v3109_v36  ;;  %v2933_v46 = vadd.f32 %v2932_v58, %v2844_v51 }
 0x5e6   : > { %v10220_v17 = vmax.f32 %v12489_v10, %v3145_v14  ;;  %v3146_v32 = vmax.f32 %v10159_v45, %v2933_v46  ;;  %v2809_v45 = vadd.f32 %v10095_v4, %v9993_v16  ;;  %v12491_v10 = vmax.f32 %v10024_v48, %v10097_v61 }
 0x5e7   : > { %v3021_v49 = vpop.f32.mrf.mxu2 }
 0x5e8   : > { %v10223_v37 = vmax.f32 %v3130_v27, %v3146_v32  ;;  %v3022_v52 = vadd.f32 %v3021_v49, %v10003_v1  ;;  %v3110_v33 = vpop.f32.mrf.mxu3  ;;  %v2898_v46 = vadd.f32 %v10099_v19, %v2809_v45 }
 0x5e9   : > { %v2846_v29 = vpop.f32.mrf.mxu0 }
 0x5ea   : > { %v3111_v9 = vadd.f32 %v3110_v33, %v3022_v52  ;;  %v2847_v0 = vadd.f32 %v2846_v29, %v9993_v16  ;;  %v2935_v3 = vpop.f32.mrf.mxu1  ;;  %v3134_v41 = vmax.f32 %v10027_v43, %v2898_v46 }
 0x5ec   : > { %v3147_v22 = vmax.f32 %v10162_v8, %v3111_v9  ;;  %v2936_v35 = vadd.f32 %v2935_v3, %v2847_v0  ;;  %v12492_v3 = vmax.f32 %v10030_v59, %v10106_v50  ;;  %v2817_v50 = vadd.f32 %v10126_v25, %v9993_v16 }
 0x5ee   : > { %v10235_v7 = vmax.f32 %v12490_v6, %v3147_v22  ;;  %v3148_v36 = vmax.f32 %v10165_v13, %v2936_v35  ;;  %v2812_v13 = vadd.f32 %v10104_v28, %v9993_v16 }
 0x5ef   : > { %v3024_v55 = vpop.f32.mrf.mxu2 }
 0x5f0   : > { %v10238_v51 = vmax.f32 %v3132_v42, %v3148_v36  ;;  %v3025_v58 = vadd.f32 %v3024_v55, %v10003_v1  ;;  %v3113_v14 = vpop.f32.mrf.mxu3  ;;  %v2901_v63 = vadd.f32 %v10108_v40, %v2812_v13 }
 0x5f1   : > { %v2848_v8 = vpop.f32.mrf.mxu0 }
 0x5f2   : > { %v3114_v5 = vadd.f32 %v3113_v14, %v3025_v58  ;;  %v2849_v27 = vadd.f32 %v2848_v8, %v9993_v16  ;;  %v2937_v4 = vpop.f32.mrf.mxu1  ;;  %v3136_v61 = vmax.f32 %v10033_v24, %v2901_v63  ;;  %v12495_v63 = vld [vmem:[#allocation39_spill] sm:$0xff] }
 0x5f4   : > { %v3149_v15 = vmax.f32 %v10168_v39, %v3114_v5  ;;  %v2938_v38 = vadd.f32 %v2937_v4, %v2849_v27 }
 0x5f6   : > { %v10250_v32 = vmax.f32 %v12491_v10, %v3149_v15  ;;  %v3150_v49 = vmax.f32 %v10171_v34, %v2938_v38  ;;  %v2814_v34 = vadd.f32 %v10117_v62, %v9993_v16 }
 0x5f7   : > { %v3026_v19 = vpop.f32.mrf.mxu2 }
 0x5f8   : > { %v10253_v52 = vmax.f32 %v3134_v41, %v3150_v49  ;;  %v3027_v33 = vadd.f32 %v3026_v19, %v10003_v1  ;;  %v3115_v29 = vpop.f32.mrf.mxu3 }
 0x5f9   : > { %v2851_v39 = vpop.f32.mrf.mxu0 }
 0x5fa   : > { %v3116_v43 = vadd.f32 %v3115_v29, %v3027_v33  ;;  %v2852_v9 = vadd.f32 %v2851_v39, %v9993_v16  ;;  %v2940_v28 = vpop.f32.mrf.mxu1 }
 0x5fc   : > { %v3151_v0 = vmax.f32 %v10174_v54, %v3116_v43  ;;  %v2941_v48 = vadd.f32 %v2940_v28, %v2852_v9  ;;  %v2903_v54 = vadd.f32 %v10121_v12, %v2814_v34  ;;  %v12496_v28 = vld [vmem:[#allocation46_spill] sm:$0xff] }
 0x5fe   : > { %v10265_v22 = vmax.f32 %v12492_v3, %v3151_v0  ;;  %v3152_v35 = vmax.f32 %v10177_v18, %v2941_v48  ;;  %v3138_v59 = vmax.f32 %v10043_v20, %v2903_v54  ;;  %v12493_v18 = vmax.f32 %v10040_v11, %v10119_v26  ;;  %v12497_v48 = vld [vmem:[#allocation43_spill] sm:$0xff]  ;;  %v12501_v3 = vld [vmem:[#allocation49_spill] sm:$0xff] }
 0x5ff   : > { %v3029_v40 = vpop.f32.mrf.mxu2  ;;  %v2819_v26 = vadd.f32 %v10139_v30, %v9993_v16  ;;  %v12502_v54 = vld [vmem:[#allocation37_spill] sm:$0xff] }
 0x600   : > { %v3168_v42 = vmax.f32 %v3136_v61, %v3152_v35  ;;  %v3030_v45 = vadd.f32 %v3029_v40, %v10003_v1  ;;  %v3118_v6 = vpop.f32.mrf.mxu3  ;;  %v12499_v61 = vld [vmem:[#allocation44_spill] sm:$0xff] }
 0x601   : > { %v2853_v36 = vpop.f32.mrf.mxu0 }
 0x602   : > { %v3119_v55 = vadd.f32 %v3118_v6, %v3030_v45  ;;  %v2854_v24 = vadd.f32 %v2853_v36, %v9993_v16  ;;  %v2942_v58 = vpop.f32.mrf.mxu1 }
 0x604   : > { %v3153_v62 = vmax.f32 %v10180_v56, %v3119_v55  ;;  %v2943_v14 = vadd.f32 %v2942_v58, %v2854_v24  ;;  %v2906_v56 = vadd.f32 %v10130_v31, %v2817_v50  ;;  %v12503_v58 = vld [vmem:[#allocation35_spill] sm:$0xff] }
 0x606   : > { %v3169_v8 = vmax.f32 %v12493_v18, %v3153_v62  ;;  %v3154_v46 = vmax.f32 %v10183_v53, %v2943_v14  ;;  %v3140_v11 = vmax.f32 %v10049_v60, %v2906_v56  ;;  %v12494_v53 = vmax.f32 %v10046_v2, %v10128_v47  ;;  %v12498_v47 = vld [vmem:[#allocation40_spill] sm:$0xff]  ;;  %v12504_v14 = vld [vmem:[#allocation42_spill] sm:$0xff] }
 0x607   : > { %v3031_v5 = vpop.f32.mrf.mxu2 }
 0x608   : > { %v3170_v12 = vmax.f32 %v3138_v59, %v3154_v46  ;;  %v3032_v27 = vadd.f32 %v3031_v5, %v10003_v1  ;;  %v3120_v4 = vpop.f32.mrf.mxu3  ;;  %v12505_v59 = vld [vmem:[#allocation41_spill] sm:$0xff]  ;;  %v12508_v5 = vld [vmem:[#allocation38_spill] sm:$0xff] }
 0x609   : > { %v2856_v15 = vpop.f32.mrf.mxu0  ;;  %v12506_v50 = vmax.f32 %v12504_v14, %v12505_v59  ;;  %v12507_v46 = vld [vmem:[#allocation33_spill] sm:$0xff] }
 0x60a   : > { %v3121_v38 = vadd.f32 %v3120_v4, %v3032_v27  ;;  %v2857_v20 = vadd.f32 %v2856_v15, %v9993_v16  ;;  %v2945_v41 = vpop.f32.mrf.mxu1  ;;  %v12510_v15 = vld [vmem:[#allocation29_spill] sm:$0xff] }
 0x60b   : > { %v10326_v56 = vadd.f32 %v10253_v52, %v12510_v15 }
 0x60c   : > { %v3155_v25 = vmax.f32 %v10186_v57, %v3121_v38  ;;  %v2946_v13 = vadd.f32 %v2945_v41, %v2857_v20  ;;  %v2908_v57 = vadd.f32 %v12495_v63, %v2819_v26  ;;  %v12511_v38 = vld [vmem:[#allocation36_spill] sm:$0xff]  ;;  %v12512_v20 = vld [vmem:[#allocation27_spill] sm:$0xff]  ;;  %v12513_v41 = vld [vmem:[#allocation34_spill] sm:$0xff] }
 0x60d   : > { %v3214_v63 = vld [vmem:[%s8743_s26 + $0x30] sm:$0xff] }
 0x60e   : > { %v3171_v10 = vmax.f32 %v12494_v53, %v3155_v25  ;;  %v3156_v49 = vmax.f32 %v10189_v21, %v2946_v13  ;;  %v3142_v2 = vmax.f32 %v12497_v48, %v2908_v57  ;;  %v12500_v21 = vmax.f32 %v12498_v47, %v12499_v61  ;;  %v12514_v13 = vld [vmem:[#allocation25_spill] sm:$0xff]  ;;  %v12516_v53 = vld [vmem:[#allocation23_spill] sm:$0xff] }
 0x60f   : > { %v3034_v19 = vpop.f32.mrf.mxu2  ;;  %v3178_v52 = vadd.f32 %v10223_v37, %v12514_v13  ;;  %v12518_v37 = vld [vmem:[#allocation28_spill] sm:$0xff]  ;;  %v3215_v57 = vld [vmem:[%s8743_s26 + $0x38] sm:$0xff] }
 0x610   : > { %v3172_v31 = vmax.f32 %v3140_v11, %v3156_v49  ;;  %v3035_v33 = vadd.f32 %v3034_v19, %v10003_v1  ;;  %v3123_v29 = vpop.f32.mrf.mxu3  ;;  %v10336_v25 = vadd.f32 %v3171_v10, %v12513_v41  ;;  %v12515_v11 = vld [vmem:[#allocation32_spill] sm:$0xff]  ;;  %v3176_v49 = vadd.f32 %v10208_v44, %v12516_v53  ;;  %v3208_v19 = vld [vmem:[%s8743_s26] sm:$0xff] }
 0x611   : > { %v2858_v39 = vpop.f32.mrf.mxu0  ;;  %v10342_v26 = vadd.f32 %v3169_v8, %v12515_v11  ;;  %v3181_v8 = vadd.f32 %v10250_v32, %v12518_v37  ;;  %v12520_v44 = vld [vmem:[#allocation24_spill] sm:$0xff]  ;;  %v3194_v47 = vadd.f32 %v3178_v52, %v12514_v13 }
 0x612   : > { %v3124_v43 = vadd.f32 %v3123_v29, %v3035_v33  ;;  %v2859_v60 = vadd.f32 %v2858_v39, %v9993_v16  ;;  %v2947_v9 = vpop.f32.mrf.mxu1  ;;  %v10306_v62 = vadd.f32 %v3172_v31, %v12503_v58  ;;  %v12519_v31 = vld [vmem:[#allocation26_spill] sm:$0xff]  ;;  %v3209_v29 = vld [vmem:[%s8743_s26 + $0x8] sm:$0xff]  ;;  %v3210_v32 = vld [vmem:[%s8743_s26 + $0x10] sm:$0xff] }
 0x613   : > { %v3179_v33 = vadd.f32 %v10235_v7, %v12519_v31  ;;  %v3211_v39 = vld [vmem:[%s8743_s26 + $0x18] sm:$0xff]  ;;  %v3212_v7 = vld [vmem:[%s8743_s26 + $0x20] sm:$0xff] }
 0x614   : > { %v3157_v30 = vmax.f32 %v12496_v28, %v3124_v43  ;;  %v2948_v0 = vadd.f32 %v2947_v9, %v2859_v60  ;;  %v3192_v60 = vadd.f32 %v3176_v49, %v12516_v53 }
 0x615   : > { %v3195_v61 = vadd.f32 %v3179_v33, %v12519_v31 }
 0x616   : > { %v3173_v34 = vmax.f32 %v12500_v21, %v3157_v30  ;;  %v3158_v35 = vmax.f32 %v12501_v3, %v2948_v0 }
 0x617   : > { %v3036_v40 = vpop.f32.mrf.mxu2 }
 0x618   : > { %v3174_v45 = vmax.f32 %v3142_v2, %v3158_v35  ;;  %v3037_v6 = vadd.f32 %v3036_v40, %v10003_v1  ;;  %v3125_v36 = vpop.f32.mrf.mxu3  ;;  %v10313_v1 = vadd.f32 %v3170_v12, %v12507_v46  ;;  %v10329_v12 = vadd.f32 %v3173_v34, %v12511_v38 }
 0x61a   : > { %v10301_v55 = vadd.f32 %v3174_v45, %v12502_v54  ;;  %v3126_v16 = vadd.f32 %v3125_v36, %v3037_v6  ;;  %v3197_v6 = vadd.f32 %v3181_v8, %v12518_v37 }
 0x61c   : > { %v3159_v24 = vmax.f32 %v10201_v23, %v3126_v16  ;;  %3249 = vmatpush.msra.mxu0 %v10301_v55  ;;  %v12509_v23 = vld [vmem:[#allocation31_spill] sm:$0xff] }
 0x61d   : > { %v10320_v4 = vadd.f32 %v3168_v42, %v12509_v23  ;;  %v3180_v42 = vadd.f32 %v10238_v51, %v12512_v20  ;;  %v12517_v51 = vld [vmem:[#allocation30_spill] sm:$0xff] }
 0x61e   : > { %v3175_v18 = vmax.f32 %v12506_v50, %v3159_v24  ;;  %3250 = vmatpush.msra.mxu0 %v10306_v62  ;;  %v3183_v10 = vadd.f32 %v10265_v22, %v12517_v51  ;;  %v3177_v22 = vadd.f32 %v10220_v17, %v12520_v44  ;;  %v3213_v17 = vld [vmem:[%s8743_s26 + $0x28] sm:$0xff]  ;;  %v3198_v50 = vadd.f32 %v10326_v56, %v12510_v15 }
 0x61f   : > { %v3196_v45 = vadd.f32 %v3180_v42, %v12512_v20  ;;  %v3200_v20 = vadd.f32 %v10320_v4, %v12509_v23  ;;  %v3202_v15 = vadd.f32 %v10313_v1, %v12507_v46 }
 0x620   : > { %v10316_v27 = vadd.f32 %v3175_v18, %v12508_v5  ;;  %3251 = vmatpush.msra.mxu0 %v10313_v1  ;;  %v3193_v9 = vadd.f32 %v3177_v22, %v12520_v44  ;;  %v3199_v18 = vadd.f32 %v3183_v10, %v12517_v51  ;;  %v3206_v1 = vadd.f32 %v10301_v55, %v12502_v54 }
 0x622   : > { %3252 = vmatpush.msra.mxu0 %v10320_v4  ;;  %3290 = vmatpush.msra.mxu1 %v10316_v27  ;;  %v3204_v4 = vadd.f32 %v10306_v62, %v12503_v58  ;;  %v12521_v62 = vld [vmem:[#allocation22_spill] sm:$0xff] }
 0x624   : > { %3253 = vmatpush.msra.mxu0 %v10326_v56  ;;  %3291 = vmatpush.msra.mxu1 %v10329_v12  ;;  %v3203_v56 = vadd.f32 %v10336_v25, %v12513_v41  ;;  %v3207_v41 = vadd.f32 %v10316_v27, %v12508_v5 }
 0x626   : > { %3254 = vmatpush.msra.mxu0 %v3180_v42  ;;  %3292 = vmatpush.msra.mxu1 %v10336_v25  ;;  %v3201_v42 = vadd.f32 %v10342_v26, %v12515_v11  ;;  %v3205_v11 = vadd.f32 %v10329_v12, %v12511_v38 }
 0x628   : > { %3255 = vmatpush.msra.mxu0 %v3178_v52  ;;  %3293 = vmatpush.msra.mxu1 %v10342_v26 }
 0x62a   : > { %3256 = vmatpush.msra.mxu0 %v3176_v49  ;;  %3294 = vmatpush.msra.mxu1 %v3183_v10 }
 0x62b   : > { %7222 = vmatmul.msk.f32.vlgmr.msra.gmra.mxu0 %vm3216_vm1, %v3208_v19 }
 0x62c   : > { %3295 = vmatpush.msra.mxu1 %v3181_v8 }
 0x62e   : > { %3296 = vmatpush.msra.mxu1 %v3179_v33 }
 0x630   : > { %3297 = vmatpush.msra.mxu1 %v3177_v22 }
 0x631   : > { %7230 = vmatmul.msk.f32.vlgmr.msra.gmra.mxu1 %vm3216_vm1, %v3208_v19 }
 0x633   : > { %7223 = vmatmul.msk.f32.gmra.mxu0 %vm3216_vm1, %v3209_v29 }
 0x639   : > { %7231 = vmatmul.msk.f32.gmra.mxu1 %vm3216_vm1, %v3209_v29 }
 0x63b   : > { %7224 = vmatmul.msk.f32.gmra.mxu0 %vm3216_vm1, %v3210_v32 }
 0x641   : > { %7232 = vmatmul.msk.f32.gmra.mxu1 %vm3216_vm1, %v3210_v32 }
 0x643   : > { %7225 = vmatmul.msk.f32.gmra.mxu0 %vm3216_vm1, %v3211_v39 }
 0x649   : > { %7233 = vmatmul.msk.f32.gmra.mxu1 %vm3216_vm1, %v3211_v39 }
 0x64b   : > { %7226 = vmatmul.msk.f32.gmra.mxu0 %vm3216_vm1, %v3212_v7 }
 0x651   : > { %7234 = vmatmul.msk.f32.gmra.mxu1 %vm3216_vm1, %v3212_v7 }
 0x653   : > { %7227 = vmatmul.msk.f32.gmra.mxu0 %vm3216_vm1, %v3213_v17 }
 0x659   : > { %7235 = vmatmul.msk.f32.gmra.mxu1 %vm3216_vm1, %v3213_v17 }
 0x65b   : > { %7228 = vmatmul.msk.f32.gmra.mxu0 %vm3216_vm1, %v3214_v63 }
 0x661   : > { %7236 = vmatmul.msk.f32.gmra.mxu1 %vm3216_vm1, %v3214_v63 }
 0x663   : > { %7229 = vmatmul.msk.f32.gmra.mxu0 %vm3216_vm1, %v3215_v57 }
 0x669   : > { %7237 = vmatmul.msk.f32.gmra.mxu1 %vm3216_vm1, %v3215_v57 }
 0x6a8   : > { %v3258_v43 = vpop.f32.mrf.mxu0 }
 0x6a9   : > { %v3259_v30 = vadd.f32 %v3258_v43, %v3192_v60 }
 0x6ae   : > { %v3299_v28 = vpop.f32.mrf.mxu1 }
 0x6af   : > { %v3300_v0 = vadd.f32 %v3299_v28, %v3193_v9 }
 0x6b0   : > { %v3261_v48 = vpop.f32.mrf.mxu0 }
 0x6b1   : > { %v3323_v2 = vadd.f32 %v3300_v0, %v3259_v30  ;;  %v3262_v34 = vadd.f32 %v3261_v48, %v3194_v47 }
 0x6b3   : > { %3324 = vadd.xlane.f32.xlu2 %v3323_v2 }
 0x6b6   : > { %v3302_v21 = vpop.f32.mrf.mxu1 }
 0x6b7   : > { %v3303_v3 = vadd.f32 %v3302_v21, %v3195_v61 }
 0x6b8   : > { %v3264_v35 = vpop.f32.mrf.mxu0 }
 0x6b9   : > { %v3326_v40 = vadd.f32 %v3303_v3, %v3262_v34  ;;  %v3265_v16 = vadd.f32 %v3264_v35, %v3196_v45 }
 0x6bb   : > { %3327 = vadd.xlane.f32.xlu0 %v3326_v40 }
 0x6be   : > { %v3305_v36 = vpop.f32.mrf.mxu1 }
 0x6bf   : > { %v3306_v24 = vadd.f32 %v3305_v36, %v3197_v6 }
 0x6c0   : > { %v3267_v14 = vpop.f32.mrf.mxu0 }
 0x6c1   : > { %v3329_v59 = vadd.f32 %v3306_v24, %v3265_v16  ;;  %v3268_v52 = vadd.f32 %v3267_v14, %v3198_v50 }
 0x6c3   : > { %3330 = vadd.xlane.f32.xlu1 %v3329_v59 }
 0x6c6   : > { %v3308_v13 = vpop.f32.mrf.mxu1 }
 0x6c7   : > { %v3309_v53 = vadd.f32 %v3308_v13, %v3199_v18 }
 0x6c8   : > { %v3270_v49 = vpop.f32.mrf.mxu0 }
 0x6c9   : > { %v3332_v19 = vadd.f32 %v3309_v53, %v3268_v52  ;;  %v3271_v8 = vadd.f32 %v3270_v49, %v3200_v20 }
 0x6cb   : > { %3333 = vadd.xlane.f32.xlu2 %v3332_v19 }
 0x6ce   : > { %v3311_v37 = vpop.f32.mrf.mxu1 }
 0x6cf   : > { %v3312_v31 = vadd.f32 %v3311_v37, %v3201_v42 }
 0x6d0   : > { %v3273_v33 = vpop.f32.mrf.mxu0 }
 0x6d1   : > { %v3335_v44 = vadd.f32 %v3312_v31, %v3271_v8  ;;  %v3274_v10 = vadd.f32 %v3273_v33, %v3202_v15 }
 0x6d3   : > { %3336 = vadd.xlane.f32.xlu0 %v3335_v44 }
 0x6d6   : > { %v3314_v51 = vpop.f32.mrf.mxu1 }
 0x6d7   : > { %v3315_v22 = vadd.f32 %v3314_v51, %v3203_v56 }
 0x6d8   : > { %v3276_v23 = vpop.f32.mrf.mxu0 }
 0x6d9   : > { %v3338_v29 = vadd.f32 %v3315_v22, %v3274_v10  ;;  %v3277_v32 = vadd.f32 %v3276_v23, %v3204_v4 }
 0x6db   : > { %3339 = vadd.xlane.f32.xlu1 %v3338_v29 }
 0x6de   : > { %v3317_v26 = vpop.f32.mrf.mxu1 }
 0x6df   : > { %v3318_v39 = vadd.f32 %v3317_v26, %v3205_v11 }
 0x6e0   : > { %v3279_v46 = vpop.f32.mrf.mxu0 }
 0x6e1   : > { %v3341_v7 = vadd.f32 %v3318_v39, %v3277_v32  ;;  %v3280_v17 = vadd.f32 %v3279_v46, %v3206_v1 }
 0x6e3   : > { %3342 = vadd.xlane.f32.xlu2 %v3341_v7 }
 0x6e6   : > { %v3320_v25 = vpop.f32.mrf.mxu1 }
 0x6e7   : > { %v3321_v63 = vadd.f32 %v3320_v25, %v3207_v41 }
 0x6e9   : > { %v3344_v57 = vadd.f32 %v3321_v63, %v3280_v17 }
 0x6eb   : > { %3345 = vadd.xlane.f32.xlu0 %v3344_v57 }
 0x726   : > { %v3325_v58 = vpop.xlane.xlu2 %3324 }
 0x727   : > { %v3347_v38 = vmul.f32 %v3325_v58, %v12521_v62 }
 0x729   : > { %v10405_v12 = vsub.f32 %v3259_v30, %v3347_v38  ;;  %v10407_v43 = vsub.f32 %v3300_v0, %v3347_v38 }
 0x72b   : > { %v3371_v60 = vmul.f32 %v10405_v12, %v10405_v12  ;;  %v3372_v54 = vmul.f32 %v10407_v43, %v10407_v43 }
 0x72d   : > { %v3387_v55 = vadd.f32 %v3372_v54, %v3371_v60 }
 0x72e   : > { %v3328_v5 = vpop.xlane.xlu0 %3327 }
 0x72f   : > { %v3348_v27 = vmul.f32 %v3328_v5, %v12521_v62  ;;  %3388 = vadd.xlane.f32.xlu1 %v3387_v55  ;;  %v6708_v5 = vld [vmem:[%s8720_s29 + $0x6] ss:$8 sm:$0x3] }
 0x731   : > { %v10414_v9 = vsub.f32 %v3262_v34, %v3348_v27  ;;  %v10416_v28 = vsub.f32 %v3303_v3, %v3348_v27 }
 0x733   : > { %v3373_v30 = vmul.f32 %v10414_v9, %v10414_v9  ;;  %v3374_v0 = vmul.f32 %v10416_v28, %v10416_v28 }
 0x735   : > { %v3390_v48 = vadd.f32 %v3374_v0, %v3373_v30 }
 0x736   : > { %v3331_v2 = vpop.xlane.xlu1 %3330 }
 0x737   : > { %v3349_v47 = vmul.f32 %v3331_v2, %v12521_v62  ;;  %3391 = vadd.xlane.f32.xlu2 %v3390_v48  ;;  %v6709_v48 = vld [vmem:[%s8720_s29 + $0x7] ss:$8 sm:$0x3] }
 0x739   : > { %v10423_v61 = vsub.f32 %v3265_v16, %v3349_v47  ;;  %v10425_v21 = vsub.f32 %v3306_v24, %v3349_v47 }
 0x73b   : > { %v3375_v34 = vmul.f32 %v10423_v61, %v10423_v61  ;;  %v3376_v3 = vmul.f32 %v10425_v21, %v10425_v21 }
 0x73d   : > { %v3393_v35 = vadd.f32 %v3376_v3, %v3375_v34  ;;  %v10483_v34 = vperm.slane %v6708_v5, 0  ;;  %v10485_v3 = vperm.slane %v6708_v5, 1 }
 0x73e   : > { %v3334_v40 = vpop.xlane.xlu2 %3333 }
 0x73f   : > { %v3350_v45 = vmul.f32 %v3334_v40, %v12521_v62  ;;  %3394 = vadd.xlane.f32.xlu0 %v3393_v35 }
 0x741   : > { %v10432_v6 = vsub.f32 %v3268_v52, %v3350_v45  ;;  %v10434_v36 = vsub.f32 %v3309_v53, %v3350_v45  ;;  %v10488_v45 = vperm.slane %v6709_v48, 0 }
 0x743   : > { %v3377_v16 = vmul.f32 %v10432_v6, %v10432_v6  ;;  %v3378_v24 = vmul.f32 %v10434_v36, %v10434_v36 }
 0x745   : > { %v3396_v14 = vadd.f32 %v3378_v24, %v3377_v16  ;;  %v10490_v16 = vperm.slane %v6709_v48, 1 }
 0x746   : > { %v3337_v59 = vpop.xlane.xlu0 %3336 }
 0x747   : > { %v3351_v50 = vmul.f32 %v3337_v59, %v12521_v62  ;;  %3397 = vadd.xlane.f32.xlu1 %v3396_v14 }
 0x749   : > { %v10441_v18 = vsub.f32 %v3271_v8, %v3351_v50  ;;  %v10443_v13 = vsub.f32 %v3312_v31, %v3351_v50 }
 0x74b   : > { %v3379_v52 = vmul.f32 %v10441_v18, %v10441_v18  ;;  %v3380_v53 = vmul.f32 %v10443_v13, %v10443_v13 }
 0x74d   : > { %v3399_v49 = vadd.f32 %v3380_v53, %v3379_v52 }
 0x74e   : > { %v3340_v19 = vpop.xlane.xlu1 %3339 }
 0x74f   : > { %v3352_v20 = vmul.f32 %v3340_v19, %v12521_v62  ;;  %3400 = vadd.xlane.f32.xlu2 %v3399_v49  ;;  %v679_v19 = vld [vmem:[#allocation3 + $0x28] sm:$0xff] }
 0x751   : > { %v10450_v42 = vsub.f32 %v3274_v10, %v3352_v20  ;;  %v10452_v37 = vsub.f32 %v3315_v22, %v3352_v20  ;;  %v680_v20 = vld [vmem:[#allocation3 + $0x68] sm:$0xff] }
 0x753   : > { %v3381_v8 = vmul.f32 %v10450_v42, %v10450_v42  ;;  %v3382_v31 = vmul.f32 %v10452_v37, %v10452_v37 }
 0x755   : > { %v3402_v33 = vadd.f32 %v3382_v31, %v3381_v8 }
 0x756   : > { %v3343_v44 = vpop.xlane.xlu2 %3342 }
 0x757   : > { %v3353_v15 = vmul.f32 %v3343_v44, %v12521_v62  ;;  %3403 = vadd.xlane.f32.xlu0 %v3402_v33 }
 0x759   : > { %v10459_v56 = vsub.f32 %v3277_v32, %v3353_v15  ;;  %v10461_v51 = vsub.f32 %v3318_v39, %v3353_v15 }
 0x75b   : > { %v3383_v10 = vmul.f32 %v10459_v56, %v10459_v56  ;;  %v3384_v22 = vmul.f32 %v10461_v51, %v10461_v51 }
 0x75d   : > { %v3405_v29 = vadd.f32 %v3384_v22, %v3383_v10 }
 0x75e   : > { %v3346_v23 = vpop.xlane.xlu0 %3345 }
 0x75f   : > { %v3354_v4 = vmul.f32 %v3346_v23, %v12521_v62  ;;  %3406 = vadd.xlane.f32.xlu1 %v3405_v29 }
 0x761   : > { %v10468_v11 = vsub.f32 %v3280_v17, %v3354_v4  ;;  %v10470_v26 = vsub.f32 %v3321_v63, %v3354_v4 }
 0x763   : > { %v3385_v32 = vmul.f32 %v10468_v11, %v10468_v11  ;;  %v3386_v39 = vmul.f32 %v10470_v26, %v10470_v26 }
 0x765   : > { %v3408_v7 = vadd.f32 %v3386_v39, %v3385_v32 }
 0x767   : > { %3409 = vadd.xlane.f32.xlu2 %v3408_v7 }
 0x7a2   : > { %v3389_v46 = vpop.xlane.xlu1 %3388 }
 0x7a3   : > { %v3411_v1 = vmul.f32 %v3389_v46, %v12521_v62 }
 0x7a5   : > { %v3419_v41 = vadd.f32 1e-05, %v3411_v1 }
 0x7a7   : > { %8094 = vrsqrt.f32 %v3419_v41  ;;  %vm3433_vm3 = vweird.f32 %v3419_v41 }
 0x7aa   : > { %v3392_v25 = vpop.xlane.xlu2 %3391 }
 0x7ab   : > { %v3412_v17 = vmul.f32 %v3392_v25, %v12521_v62 }
 0x7ad   : > { %v8095_v63 = vpop.eup %8094  ;;  %v3420_v57 = vadd.f32 1e-05, %v3412_v17 }
 0x7ae   : > { %v3428_v58 = vmul.f32 %v8095_v63, %v3419_v41  ;;  %vm3434_vm2 = vweird.f32 %v8095_v63 }
 0x7af   : > { %8096 = vrsqrt.f32 %v3420_v57  ;;  %vm3435_vm4 = vmor %vm3433_vm3, %vm3434_vm2  ;;  %vm3443_vm6 = vweird.f32 %v3420_v57 }
 0x7b0   : > { %v3429_v38 = vmul.f32 %v8095_v63, %v3428_v58 }
 0x7b2   : > { %v3430_v60 = vmul.f32 0.5, %v3429_v38  ;;  %v3395_v54 = vpop.xlane.xlu0 %3394 }
 0x7b3   : > { %v3413_v55 = vmul.f32 %v3395_v54, %v12521_v62 }
 0x7b4   : > { %v3431_v27 = vsub.f32 1.5, %v3430_v60 }
 0x7b5   : > { %v8097_v30 = vpop.eup %8096  ;;  %v10480_v0 = vadd.f32 1e-05, %v3413_v55 }
 0x7b6   : > { %v3432_v2 = vmul.f32 %v8095_v63, %v3431_v27  ;;  %v3438_v47 = vmul.f32 %v8097_v30, %v3420_v57  ;;  %vm3444_vm5 = vweird.f32 %v8097_v30  ;;  %v682_v57 = vld [vmem:[#allocation3 + $0x40] sm:$0xff] }
 0x7b7   : > { %8098 = vrsqrt.f32 %v10480_v0  ;;  %vm3445_vm7 = vmor %vm3443_vm6, %vm3444_vm5  ;;  %vm3453_vm9 = vweird.f32 %v10480_v0 }
 0x7b8   : > { %v3436_v35 = vsel %vm3435_vm4, %v8095_v63, %v3432_v2  ;;  %v3439_v40 = vmul.f32 %v8097_v30, %v3438_v47  ;;  %v681_v63 = vld [vmem:[#allocation3 + $0x10] sm:$0xff] }
 0x7b9   : > { %v3507_v24 = vmul.f32 %v3436_v35, %v10405_v12  ;;  %v3508_v14 = vmul.f32 %v3436_v35, %v10407_v43 }
 0x7ba   : > { %v3440_v59 = vmul.f32 0.5, %v3439_v40  ;;  %v3398_v50 = vpop.xlane.xlu1 %3397 }
 0x7bb   : > { %v3528_v52 = vmul.f32 %v10483_v34, %v3507_v24  ;;  %v3529_v53 = vmul.f32 %v10485_v3, %v3508_v14  ;;  %v3414_v49 = vmul.f32 %v3398_v50, %v12521_v62 }
 0x7bc   : > { %v3441_v8 = vsub.f32 1.5, %v3440_v59 }
 0x7bd   : > { %v8099_v31 = vpop.eup %8098  ;;  %v3549_v33 = vadd.f32 %v10488_v45, %v3528_v52  ;;  %v3550_v44 = vadd.f32 %v10490_v16, %v3529_v53  ;;  %v10499_v12 = vadd.f32 1e-05, %v3414_v49  ;;  %v683_v52 = vld [vmem:[#allocation3 + $0x48] sm:$0xff]  ;;  %v684_v53 = vld [vmem:[#allocation3 + $0x30] sm:$0xff] }
 0x7be   : > { %v3442_v43 = vmul.f32 %v8097_v30, %v3441_v8  ;;  %v3448_v15 = vmul.f32 %v8099_v31, %v10480_v0  ;;  %vm3454_vm8 = vweird.f32 %v8099_v31 }
 0x7bf   : > { %v10502_v10 = vadd.f32 %v3549_v33, %v679_v19  ;;  %v10504_v22 = vadd.f32 %v3550_v44, %v680_v20  ;;  %8100 = vrsqrt.f32 %v10499_v12  ;;  %vm3455_vm10 = vmor %vm3453_vm9, %vm3454_vm8  ;;  %vm3463_vm12 = vweird.f32 %v10499_v12 }
 0x7c0   : > { %v3446_v29 = vsel %vm3445_vm7, %v8097_v30, %v3442_v43  ;;  %v3449_v23 = vmul.f32 %v8099_v31, %v3448_v15 }
 0x7c1   : > { %3581 = vst [vmem:[#allocation2 + $0x30] sm:$0xff] %v10502_v10  ;;  %v3597_v4 = vadd.f32 %v10502_v10, %v679_v19  ;;  %v3598_v32 = vadd.f32 %v10504_v22, %v680_v20  ;;  %v3509_v39 = vmul.f32 %v3446_v29, %v10414_v9  ;;  %v3510_v7 = vmul.f32 %v3446_v29, %v10416_v28 }
 0x7c2   : > { %3582 = vst [vmem:[#allocation2] sm:$0xff] %v10504_v22  ;;  %v3450_v46 = vmul.f32 0.5, %v3449_v23  ;;  %v3401_v1 = vpop.xlane.xlu2 %3400 }
 0x7c3   : > { %3613 = vst [vmem:[#allocation3 + $0x28] sm:$0xff] %v3597_v4  ;;  %v3530_v41 = vmul.f32 %v10483_v34, %v3509_v39  ;;  %v3531_v25 = vmul.f32 %v10485_v3, %v3510_v7  ;;  %v3415_v17 = vmul.f32 %v3401_v1, %v12521_v62 }
 0x7c4   : > { %3614 = vst [vmem:[#allocation3 + $0x68] sm:$0xff] %v3598_v32  ;;  %v3451_v58 = vsub.f32 1.5, %v3450_v46 }
 0x7c5   : > { %v8101_v38 = vpop.eup %8100  ;;  %v3551_v9 = vadd.f32 %v10488_v45, %v3530_v41  ;;  %v3552_v28 = vadd.f32 %v10490_v16, %v3531_v25  ;;  %v10518_v60 = vadd.f32 1e-05, %v3415_v17  ;;  %v685_v41 = vld [vmem:[#allocation3 + $0x70] sm:$0xff]  ;;  %v686_v25 = vld [vmem:[#allocation3 + $0x38] sm:$0xff] }
 0x7c6   : > { %v3452_v54 = vmul.f32 %v8099_v31, %v3451_v58  ;;  %v3458_v55 = vmul.f32 %v8101_v38, %v10499_v12  ;;  %vm3464_vm11 = vweird.f32 %v8101_v38 }
 0x7c7   : > { %v10522_v5 = vadd.f32 %v3551_v9, %v681_v63  ;;  %v10524_v27 = vadd.f32 %v3552_v28, %v682_v57  ;;  %8102 = vrsqrt.f32 %v10518_v60  ;;  %vm3465_vm13 = vmor %vm3463_vm12, %vm3464_vm11  ;;  %vm3473_vm15 = vweird.f32 %v10518_v60 }
 0x7c8   : > { %v3456_v30 = vsel %vm3455_vm10, %v8099_v31, %v3452_v54  ;;  %v3459_v48 = vmul.f32 %v8101_v38, %v3458_v55 }
 0x7c9   : > { %3583 = vst [vmem:[#allocation2 + $0x58] sm:$0xff] %v10522_v5  ;;  %v3599_v2 = vadd.f32 %v10522_v5, %v681_v63  ;;  %v3600_v47 = vadd.f32 %v10524_v27, %v682_v57  ;;  %v3511_v35 = vmul.f32 %v3456_v30, %v10423_v61  ;;  %v3512_v0 = vmul.f32 %v3456_v30, %v10425_v21 }
 0x7ca   : > { %3584 = vst [vmem:[#allocation2 + $0x18] sm:$0xff] %v10524_v27  ;;  %v3460_v40 = vmul.f32 0.5, %v3459_v48  ;;  %v3404_v24 = vpop.xlane.xlu0 %3403 }
 0x7cb   : > { %3615 = vst [vmem:[#allocation3 + $0x10] sm:$0xff] %v3599_v2  ;;  %v3532_v14 = vmul.f32 %v10483_v34, %v3511_v35  ;;  %v3533_v59 = vmul.f32 %v10485_v3, %v3512_v0  ;;  %v3416_v50 = vmul.f32 %v3404_v24, %v12521_v62 }
 0x7cc   : > { %3616 = vst [vmem:[#allocation3 + $0x40] sm:$0xff] %v3600_v47  ;;  %v3461_v49 = vsub.f32 1.5, %v3460_v40 }
 0x7cd   : > { %v8103_v19 = vpop.eup %8102  ;;  %v3553_v61 = vadd.f32 %v10488_v45, %v3532_v14  ;;  %v3554_v21 = vadd.f32 %v10490_v16, %v3533_v59  ;;  %v10538_v20 = vadd.f32 1e-05, %v3416_v50  ;;  %v687_v14 = vld [vmem:[#allocation3 + $0x20] sm:$0xff]  ;;  %v688_v59 = vld [vmem:[#allocation3 + $0x78] sm:$0xff] }
 0x7ce   : > { %v3462_v8 = vmul.f32 %v8101_v38, %v3461_v49  ;;  %v3468_v31 = vmul.f32 %v8103_v19, %v10518_v60  ;;  %vm3474_vm14 = vweird.f32 %v8103_v19 }
 0x7cf   : > { %v10542_v33 = vadd.f32 %v3553_v61, %v683_v52  ;;  %v10544_v44 = vadd.f32 %v3554_v21, %v684_v53  ;;  %8104 = vrsqrt.f32 %v10538_v20  ;;  %vm3475_vm0 = vmor %vm3473_vm15, %vm3474_vm14  ;;  %vm3483_vm3 = vweird.f32 %v10538_v20 }
 0x7d0   : > { %v3466_v43 = vsel %vm3465_vm13, %v8101_v38, %v3462_v8  ;;  %v3469_v15 = vmul.f32 %v8103_v19, %v3468_v31 }
 0x7d1   : > { %3585 = vst [vmem:[#allocation2 + $0x50] sm:$0xff] %v10542_v33  ;;  %v3601_v29 = vadd.f32 %v10542_v33, %v683_v52  ;;  %v3602_v23 = vadd.f32 %v10544_v44, %v684_v53  ;;  %v3513_v4 = vmul.f32 %v3466_v43, %v10432_v6  ;;  %v3514_v12 = vmul.f32 %v3466_v43, %v10434_v36 }
 0x7d2   : > { %3586 = vst [vmem:[#allocation2 + $0x68] sm:$0xff] %v10544_v44  ;;  %v3470_v32 = vmul.f32 0.5, %v3469_v15  ;;  %v3407_v39 = vpop.xlane.xlu1 %3406 }
 0x7d3   : > { %3617 = vst [vmem:[#allocation3 + $0x48] sm:$0xff] %v3601_v29  ;;  %v3534_v7 = vmul.f32 %v10483_v34, %v3513_v4  ;;  %v3535_v46 = vmul.f32 %v10485_v3, %v3514_v12  ;;  %v3417_v1 = vmul.f32 %v3407_v39, %v12521_v62  ;;  %v689_v12 = vld [vmem:[#allocation3 + $0x18] sm:$0xff] }
 0x7d4   : > { %3618 = vst [vmem:[#allocation3 + $0x30] sm:$0xff] %v3602_v23  ;;  %v3471_v17 = vsub.f32 1.5, %v3470_v32  ;;  %v690_v32 = vld [vmem:[#allocation3 + $0x58] sm:$0xff] }
 0x7d5   : > { %v8105_v63 = vpop.eup %8104  ;;  %v3555_v6 = vadd.f32 %v10488_v45, %v3534_v7  ;;  %v3556_v36 = vadd.f32 %v10490_v16, %v3535_v46  ;;  %v10558_v57 = vadd.f32 1e-05, %v3417_v1 }
 0x7d6   : > { %v3472_v58 = vmul.f32 %v8103_v19, %v3471_v17  ;;  %v3478_v38 = vmul.f32 %v8105_v63, %v10538_v20  ;;  %vm3484_vm2 = vweird.f32 %v8105_v63 }
 0x7d7   : > { %v10562_v9 = vadd.f32 %v3555_v6, %v685_v41  ;;  %v10564_v28 = vadd.f32 %v3556_v36, %v686_v25  ;;  %8106 = vrsqrt.f32 %v10558_v57  ;;  %vm3485_vm4 = vmor %vm3483_vm3, %vm3484_vm2  ;;  %vm3493_vm6 = vweird.f32 %v10558_v57 }
 0x7d8   : > { %v3476_v54 = vsel %vm3475_vm0, %v8103_v19, %v3472_v58  ;;  %v3479_v55 = vmul.f32 %v8105_v63, %v3478_v38 }
 0x7d9   : > { %3587 = vst [vmem:[#allocation2 + $0x8] sm:$0xff] %v10562_v9  ;;  %v3603_v30 = vadd.f32 %v10562_v9, %v685_v41  ;;  %v3604_v48 = vadd.f32 %v10564_v28, %v686_v25  ;;  %v3515_v2 = vmul.f32 %v3476_v54, %v10441_v18  ;;  %v3516_v60 = vmul.f32 %v3476_v54, %v10443_v13 }
 0x7da   : > { %3588 = vst [vmem:[#allocation2 + $0x48] sm:$0xff] %v10564_v28  ;;  %v3480_v47 = vmul.f32 0.5, %v3479_v55  ;;  %v3410_v35 = vpop.xlane.xlu2 %3409 }
 0x7db   : > { %3619 = vst [vmem:[#allocation3 + $0x70] sm:$0xff] %v3603_v30  ;;  %v3536_v0 = vmul.f32 %v10483_v34, %v3515_v2  ;;  %v3537_v40 = vmul.f32 %v10485_v3, %v3516_v60  ;;  %v3418_v24 = vmul.f32 %v3410_v35, %v12521_v62  ;;  %v691_v30 = vld [vmem:[#allocation3] sm:$0xff] }
 0x7dc   : > { %3620 = vst [vmem:[#allocation3 + $0x38] sm:$0xff] %v3604_v48  ;;  %v3481_v50 = vsub.f32 1.5, %v3480_v47  ;;  %v692_v48 = vld [vmem:[#allocation3 + $0x8] sm:$0xff] }
 0x7dd   : > { %v8107_v52 = vpop.eup %8106  ;;  %v3557_v18 = vadd.f32 %v10488_v45, %v3536_v0  ;;  %v3558_v13 = vadd.f32 %v10490_v16, %v3537_v40  ;;  %v3426_v53 = vadd.f32 1e-05, %v3418_v24 }
 0x7de   : > { %v3482_v49 = vmul.f32 %v8105_v63, %v3481_v50  ;;  %v3488_v19 = vmul.f32 %v8107_v52, %v10558_v57  ;;  %vm3494_vm5 = vweird.f32 %v8107_v52 }
 0x7df   : > { %v10580_v61 = vadd.f32 %v3557_v18, %v687_v14  ;;  %v10582_v21 = vadd.f32 %v3558_v13, %v688_v59  ;;  %8108 = vrsqrt.f32 %v3426_v53  ;;  %vm3495_vm7 = vmor %vm3493_vm6, %vm3494_vm5  ;;  %vm3503_vm9 = vweird.f32 %v3426_v53  ;;  %v693_v18 = vld [vmem:[#allocation3 + $0x60] sm:$0xff]  ;;  %v694_v13 = vld [vmem:[#allocation3 + $0x50] sm:$0xff] }
 0x7e0   : > { %v3486_v62 = vsel %vm3485_vm4, %v8105_v63, %v3482_v49  ;;  %v3489_v8 = vmul.f32 %v8107_v52, %v3488_v19 }
 0x7e1   : > { %3589 = vst [vmem:[#allocation2 + $0x40] sm:$0xff] %v10580_v61  ;;  %v3605_v31 = vadd.f32 %v10580_v61, %v687_v14  ;;  %v3606_v43 = vadd.f32 %v10582_v21, %v688_v59  ;;  %v3517_v15 = vmul.f32 %v3486_v62, %v10450_v42  ;;  %v3518_v20 = vmul.f32 %v3486_v62, %v10452_v37 }
 0x7e2   : > { %3590 = vst [vmem:[#allocation2 + $0x20] sm:$0xff] %v10582_v21  ;;  %v3490_v29 = vmul.f32 0.5, %v3489_v8 }
 0x7e3   : > { %3621 = vst [vmem:[#allocation3 + $0x20] sm:$0xff] %v3605_v31  ;;  %v3538_v23 = vmul.f32 %v10483_v34, %v3517_v15  ;;  %v3539_v4 = vmul.f32 %v10485_v3, %v3518_v20 }
 0x7e4   : > { %3622 = vst [vmem:[#allocation3 + $0x78] sm:$0xff] %v3606_v43  ;;  %v3491_v39 = vsub.f32 1.5, %v3490_v29 }
 0x7e5   : > { %v8109_v7 = vpop.eup %8108  ;;  %v3559_v46 = vadd.f32 %v10488_v45, %v3538_v23  ;;  %v3560_v42 = vadd.f32 %v10490_v16, %v3539_v4 }
 0x7e6   : > { %v3492_v1 = vmul.f32 %v8107_v52, %v3491_v39  ;;  %v3498_v37 = vmul.f32 %v8109_v7, %v3426_v53  ;;  %vm3504_vm8 = vweird.f32 %v8109_v7 }
 0x7e7   : > { %v10595_v41 = vadd.f32 %v3559_v46, %v689_v12  ;;  %v10597_v25 = vadd.f32 %v3560_v42, %v690_v32  ;;  %vm3505_vm10 = vmor %vm3503_vm9, %vm3504_vm8 }
 0x7e8   : > { %v3496_v17 = vsel %vm3495_vm7, %v8107_v52, %v3492_v1  ;;  %v3499_v63 = vmul.f32 %v8109_v7, %v3498_v37 }
 0x7e9   : > { %3591 = vst [vmem:[#allocation2 + $0x10] sm:$0xff] %v10595_v41  ;;  %v3607_v6 = vadd.f32 %v10595_v41, %v689_v12  ;;  %v3608_v36 = vadd.f32 %v10597_v25, %v690_v32  ;;  %v3519_v58 = vmul.f32 %v3496_v17, %v10459_v56  ;;  %v3520_v38 = vmul.f32 %v3496_v17, %v10461_v51 }
 0x7ea   : > { %3592 = vst [vmem:[#allocation2 + $0x38] sm:$0xff] %v10597_v25  ;;  %v3500_v57 = vmul.f32 0.5, %v3499_v63 }
 0x7eb   : > { %3623 = vst [vmem:[#allocation3 + $0x18] sm:$0xff] %v3607_v6  ;;  %v3540_v54 = vmul.f32 %v10483_v34, %v3519_v58  ;;  %v3541_v55 = vmul.f32 %v10485_v3, %v3520_v38 }
 0x7ec   : > { %3624 = vst [vmem:[#allocation3 + $0x58] sm:$0xff] %v3608_v36  ;;  %v3501_v2 = vsub.f32 1.5, %v3500_v57 }
 0x7ed   : > { %v3561_v60 = vadd.f32 %v10488_v45, %v3540_v54  ;;  %v3562_v47 = vadd.f32 %v10490_v16, %v3541_v55 }
 0x7ee   : > { %v3502_v56 = vmul.f32 %v8109_v7, %v3501_v2 }
 0x7ef   : > { %v10609_v51 = vadd.f32 %v3561_v60, %v691_v30  ;;  %v10611_v35 = vadd.f32 %v3562_v47, %v692_v48 }
 0x7f0   : > { %v3506_v0 = vsel %vm3505_vm10, %v8109_v7, %v3502_v56 }
 0x7f1   : > { %3593 = vst [vmem:[#allocation2 + $0x60] sm:$0xff] %v10609_v51  ;;  %v3609_v40 = vadd.f32 %v10609_v51, %v691_v30  ;;  %v3610_v24 = vadd.f32 %v10611_v35, %v692_v48  ;;  %v3521_v14 = vmul.f32 %v3506_v0, %v10468_v11  ;;  %v3522_v59 = vmul.f32 %v3506_v0, %v10470_v26 }
 0x7f2   : > { %3594 = vst [vmem:[#allocation2 + $0x70] sm:$0xff] %v10611_v35 }
 0x7f3   : > { %3625 = vst [vmem:[#allocation3] sm:$0xff] %v3609_v40  ;;  %v3542_v50 = vmul.f32 %v10483_v34, %v3521_v14  ;;  %v3543_v52 = vmul.f32 %v10485_v3, %v3522_v59 }
 0x7f4   : > { %3626 = vst [vmem:[#allocation3 + $0x8] sm:$0xff] %v3610_v24 }
 0x7f5   : > { %v3563_v53 = vadd.f32 %v10488_v45, %v3542_v50  ;;  %v3564_v49 = vadd.f32 %v10490_v16, %v3543_v52 }
 0x7f7   : > { %v10623_v19 = vadd.f32 %v3563_v53, %v693_v18  ;;  %v10625_v62 = vadd.f32 %v3564_v49, %v694_v13 }
 0x7f8   : > { %3632 = sbr.rel (%p7238_p1) target bundleno = 4614 (0x1206), region = 112 }
 0x7f9   : > { %3595 = vst [vmem:[#allocation2 + $0x78] sm:$0xff] %v10623_v19  ;;  %v3611_v11 = vadd.f32 %v10623_v19, %v693_v18  ;;  %v3612_v26 = vadd.f32 %v10625_v62, %v694_v13 }
 0x7fa   : > { %3596 = vst [vmem:[#allocation2 + $0x28] sm:$0xff] %v10625_v62 }
 0x7fb   : > { %3627 = vst [vmem:[#allocation3 + $0x60] sm:$0xff] %v3611_v11 }
 0x7fc   : > { %3628 = vst [vmem:[#allocation3 + $0x50] sm:$0xff] %v3612_v26 }
 0x7fd   : > { %v7297_v34 = vld [vmem:[#allocation9 + $0x150] sm:$0xf]  ;;  %v7795_v3 = vld [vmem:[#allocation9 + $0x164] sm:$0xf0]  ;;  %v7289_v31 = vld [vmem:[#allocation9 + $0x120] sm:$0xf] }
 0x7fe   : > { %v7361_v45 = vld [vmem:[#allocation9 + $0x2d0] sm:$0xf]  ;;  %v7298_v16 = vor.u32 %v7795_v3, %v7297_v34  ;;  %v7811_v8 = vld [vmem:[#allocation9 + $0x2e4] sm:$0xf0]  ;;  %v7793_v43 = vld [vmem:[#allocation9 + $0x134] sm:$0xf0] }
 0x7ff   : > { %v7362_v15 = vor.u32 %v7811_v8, %v7361_v45  ;;  %v7353_v20 = vld [vmem:[#allocation9 + $0x2a0] sm:$0xf]  ;;  %v7809_v29 = vld [vmem:[#allocation9 + $0x2b4] sm:$0xf0]  ;;  %v7290_v23 = vor.u32 %v7793_v43, %v7289_v31  ;;  %v7281_v12 = vld [vmem:[#allocation9 + $0xf0] sm:$0xf] }
 0x800   : > { %3920 = vmatpush.bf16.msra.mxu0 %v7298_v16  ;;  %7892 = vmatpush.bf16.msra.mxu3 %v7298_v16  ;;  %v7354_v4 = vor.u32 %v7809_v29, %v7353_v20  ;;  %v7791_v32 = vld [vmem:[#allocation9 + $0x104] sm:$0xf0]  ;;  %v7345_v39 = vld [vmem:[#allocation9 + $0x270] sm:$0xf]  ;;  %v7273_v42 = vld [vmem:[#allocation9 + $0xc0] sm:$0xf] }
 0x801   : > { %3949 = vmatpush.bf16.msra.mxu1 %v7362_v15  ;;  %v7807_v7 = vld [vmem:[#allocation9 + $0x284] sm:$0xf0]  ;;  %v7282_v46 = vor.u32 %v7791_v32, %v7281_v12  ;;  %v7789_v37 = vld [vmem:[#allocation9 + $0xd4] sm:$0xf0]  ;;  %v7794_v17 = vld [vmem:[#allocation9 + $0x154] sm:$0xf] }
 0x802   : > { %v7346_v1 = vor.u32 %v7807_v7, %v7345_v39  ;;  %v7299_v63 = vld [vmem:[#allocation9 + $0x168] sm:$0xf0]  ;;  %v7337_v6 = vld [vmem:[#allocation9 + $0x240] sm:$0xf]  ;;  %v7805_v36 = vld [vmem:[#allocation9 + $0x254] sm:$0xf0]  ;;  %v7274_v54 = vor.u32 %v7789_v37, %v7273_v42 }
 0x803   : > { %v7302_v58 = vor.u32 %v7794_v17, %v7299_v63  ;;  %v7792_v38 = vld [vmem:[#allocation9 + $0x124] sm:$0xf]  ;;  %v7291_v57 = vld [vmem:[#allocation9 + $0x138] sm:$0xf0]  ;;  %v7338_v55 = vor.u32 %v7805_v36, %v7337_v6  ;;  %v7265_v30 = vld [vmem:[#allocation9 + $0x90] sm:$0xf]  ;;  %v3747_v36 = vpack.c.bf16 %v10522_v5, %v10502_v10 }
 0x804   : > { %3921 = vmatpush.bf16.msra.mxu0 %v7290_v23  ;;  %7893 = vmatpush.bf16.msra.mxu3 %v7290_v23  ;;  %v7787_v48 = vld [vmem:[#allocation9 + $0xa4] sm:$0xf0]  ;;  %v7329_v2 = vld [vmem:[#allocation9 + $0x210] sm:$0xf]  ;;  %v7294_v60 = vor.u32 %v7792_v38, %v7291_v57  ;;  %v7790_v56 = vld [vmem:[#allocation9 + $0xf4] sm:$0xf] }
 0x805   : > { %3950 = vmatpush.bf16.msra.mxu1 %v7354_v4  ;;  %3978 = vmatpush.bf16.msra.mxu2 %v7302_v58  ;;  %v7803_v47 = vld [vmem:[#allocation9 + $0x224] sm:$0xf0]  ;;  %v7283_v0 = vld [vmem:[#allocation9 + $0x108] sm:$0xf0]  ;;  %v7266_v40 = vor.u32 %v7787_v48, %v7265_v30  ;;  %v7257_v14 = vld [vmem:[#allocation9 + $0x60] sm:$0xf]  ;;  %v3751_v58 = vpack.c.bf16 %v10595_v41, %v10580_v61 }
 0x806   : > { %v7330_v24 = vor.u32 %v7803_v47, %v7329_v2  ;;  %v7785_v59 = vld [vmem:[#allocation9 + $0x74] sm:$0xf0]  ;;  %v7321_v50 = vld [vmem:[#allocation9 + $0x1e0] sm:$0xf]  ;;  %v7286_v52 = vor.u32 %v7790_v56, %v7283_v0  ;;  %v7788_v13 = vld [vmem:[#allocation9 + $0xc4] sm:$0xf] }
 0x807   : > { %v7801_v18 = vld [vmem:[#allocation9 + $0x1f4] sm:$0xf0]  ;;  %v7275_v53 = vld [vmem:[#allocation9 + $0xd8] sm:$0xf0]  ;;  %v7258_v49 = vor.u32 %v7785_v59, %v7257_v14  ;;  %v7249_v11 = vld [vmem:[#allocation9 + $0x30] sm:$0xf]  ;;  %v3749_v14 = vpack.c.bf16 %v10562_v9, %v10542_v33  ;;  %v3753_v59 = vpack.c.bf16 %v10623_v19, %v10609_v51  ;;  %v3752_v33 = vpack.c.bf16 %v10597_v25, %v10582_v21 }
 0x808   : > { %3922 = vmatpush.bf16.msra.mxu0 %v7282_v46  ;;  %7894 = vmatpush.bf16.msra.mxu3 %v7282_v46  ;;  %v7783_v26 = vld [vmem:[#allocation9 + $0x44] sm:$0xf0]  ;;  %v7313_v34 = vld [vmem:[#allocation9 + $0x1b0] sm:$0xf]  ;;  %v7322_v3 = vor.u32 %v7801_v18, %v7321_v50  ;;  %v7278_v16 = vor.u32 %v7788_v13, %v7275_v53  ;;  %v7786_v8 = vld [vmem:[#allocation9 + $0x94] sm:$0xf]  ;;  %v3750_v50 = vpack.c.bf16 %v10564_v28, %v10544_v44 }
 0x809   : > { %3951 = vmatpush.bf16.msra.mxu1 %v7346_v1  ;;  %3979 = vmatpush.bf16.msra.mxu2 %v7294_v60  ;;  %v7799_v45 = vld [vmem:[#allocation9 + $0x1c4] sm:$0xf0]  ;;  %v7267_v31 = vld [vmem:[#allocation9 + $0xa8] sm:$0xf0]  ;;  %v7250_v43 = vor.u32 %v7783_v26, %v7249_v11  ;;  %v7241_v20 = vld [vmem:[#allocation9] sm:$0xf]  ;;  %v3754_v44 = vpack.c.bf16 %v10625_v62, %v10611_v35 }
 0x80a   : > { %v7314_v15 = vor.u32 %v7799_v45, %v7313_v34  ;;  %v7781_v29 = vld [vmem:[#allocation9 + $0x14] sm:$0xf0]  ;;  %v7305_v23 = vld [vmem:[#allocation9 + $0x180] sm:$0xf]  ;;  %v7270_v4 = vor.u32 %v7786_v8, %v7267_v31  ;;  %v7810_v32 = vld [vmem:[#allocation9 + $0x2d4] sm:$0xf] }
 0x80b   : > { %v7797_v12 = vld [vmem:[#allocation9 + $0x194] sm:$0xf0]  ;;  %v7363_v39 = vld [vmem:[#allocation9 + $0x2e8] sm:$0xf0]  ;;  %v7784_v7 = vld [vmem:[#allocation9 + $0x64] sm:$0xf]  ;;  %v7242_v42 = vor.u32 %v7781_v29, %v7241_v20 }
 0x80c   : > { %3923 = vmatpush.bf16.msra.mxu0 %v7274_v54  ;;  %7895 = vmatpush.bf16.msra.mxu3 %v7274_v54  ;;  %v7259_v46 = vld [vmem:[#allocation9 + $0x78] sm:$0xf0]  ;;  %v7306_v1 = vor.u32 %v7797_v12, %v7305_v23  ;;  %v7366_v37 = vor.u32 %v7810_v32, %v7363_v39  ;;  %v7808_v17 = vld [vmem:[#allocation9 + $0x2a4] sm:$0xf]  ;;  %v7782_v38 = vld [vmem:[#allocation9 + $0x34] sm:$0xf]  ;;  %v3748_v54 = vpack.c.bf16 %v10524_v27, %v10504_v22 }
 0x80d   : > { %3952 = vmatpush.bf16.msra.mxu1 %v7338_v55  ;;  %3980 = vmatpush.bf16.msra.mxu2 %v7286_v52  ;;  %v7355_v63 = vld [vmem:[#allocation9 + $0x2b8] sm:$0xf0]  ;;  %v7262_v6 = vor.u32 %v7784_v7, %v7259_v46  ;;  %v7251_v57 = vld [vmem:[#allocation9 + $0x48] sm:$0xf0]  ;;  %v7806_v30 = vld [vmem:[#allocation9 + $0x274] sm:$0xf] }
 0x80e   : > { %v7358_v55 = vor.u32 %v7808_v17, %v7355_v63  ;;  %v7347_v48 = vld [vmem:[#allocation9 + $0x288] sm:$0xf0]  ;;  %v7254_v2 = vor.u32 %v7782_v38, %v7251_v57  ;;  %v7780_v10 = vld [vmem:[#allocation9 + $0x4] sm:$0xf]  ;;  %v7243_v5 = vld [vmem:[#allocation9 + $0x18] sm:$0xf0] }
 0x80f   : > { %v7350_v61 = vor.u32 %v7806_v30, %v7347_v48  ;;  %v7804_v41 = vld [vmem:[#allocation9 + $0x244] sm:$0xf]  ;;  %v7339_v60 = vld [vmem:[#allocation9 + $0x258] sm:$0xf0]  ;;  %v7246_v47 = vor.u32 %v7780_v10, %v7243_v5  ;;  %v7802_v27 = vld [vmem:[#allocation9 + $0x214] sm:$0xf] }
 0x810   : > { %3924 = vmatpush.bf16.msra.mxu0 %v7266_v40  ;;  %7896 = vmatpush.bf16.msra.mxu3 %v7266_v40  ;;  %v7342_v22 = vor.u32 %v7804_v41, %v7339_v60  ;;  %v7331_v56 = vld [vmem:[#allocation9 + $0x228] sm:$0xf0]  ;;  %v7800_v40 = vld [vmem:[#allocation9 + $0x1e4] sm:$0xf]  ;;  %v7798_v18 = vld [vmem:[#allocation9 + $0x1b4] sm:$0xf] }
 0x811   : > { %3953 = vmatpush.bf16.msra.mxu1 %v7330_v24  ;;  %3981 = vmatpush.bf16.msra.mxu2 %v7278_v16  ;;  %v7334_v0 = vor.u32 %v7802_v27, %v7331_v56  ;;  %v7323_v24 = vld [vmem:[#allocation9 + $0x1f8] sm:$0xf0]  ;;  %v7315_v13 = vld [vmem:[#allocation9 + $0x1c8] sm:$0xf0]  ;;  %v7425_v9 = vld [vmem:[#allocation9 + $0x158] sm:$0xf] }
 0x812   : > { %v7326_v52 = vor.u32 %v7800_v40, %v7323_v24  ;;  %v7318_v53 = vor.u32 %v7798_v18, %v7315_v13  ;;  %v7307_v11 = vld [vmem:[#allocation9 + $0x198] sm:$0xf0]  ;;  %v7827_v28 = vld [vmem:[#allocation9 + $0x16c] sm:$0xf0]  ;;  %v7427_v34 = vld [vmem:[#allocation9 + $0x170] sm:$0xf0] }
 0x813   : > { %v7826_v51 = vld [vmem:[#allocation9 + $0x15c] sm:$0xf]  ;;  %v7426_v19 = vor.u32 %v7827_v28, %v7425_v9  ;;  %v7825_v45 = vld [vmem:[#allocation9 + $0x13c] sm:$0xf0]  ;;  %v7824_v8 = vld [vmem:[#allocation9 + $0x12c] sm:$0xf] }
 0x814   : > { %3925 = vmatpush.bf16.msra.mxu0 %v7258_v49  ;;  %7897 = vmatpush.bf16.msra.mxu3 %v7258_v49  ;;  %v7796_v49 = vld [vmem:[#allocation9 + $0x184] sm:$0xf]  ;;  %v7430_v16 = vor.u32 %v7826_v51, %v7427_v34  ;;  %v7822_v20 = vld [vmem:[#allocation9 + $0xfc] sm:$0xf]  ;;  %v7411_v35 = vld [vmem:[#allocation9 + $0x110] sm:$0xf0] }
 0x815   : > { %3954 = vmatpush.bf16.msra.mxu1 %v7322_v3  ;;  %3982 = vmatpush.bf16.msra.mxu2 %v7270_v4  ;;  %v7310_v26 = vor.u32 %v7796_v49, %v7307_v11  ;;  %v7417_v3 = vld [vmem:[#allocation9 + $0x128] sm:$0xf]  ;;  %v7419_v31 = vld [vmem:[#allocation9 + $0x140] sm:$0xf0]  ;;  %v7414_v29 = vor.u32 %v7822_v20, %v7411_v35  ;;  %v7821_v4 = vld [vmem:[#allocation9 + $0xdc] sm:$0xf0] }
 0x816   : > { %v7418_v21 = vor.u32 %v7825_v45, %v7417_v3  ;;  %v7422_v25 = vor.u32 %v7824_v8, %v7419_v31  ;;  %v7401_v23 = vld [vmem:[#allocation9 + $0xc8] sm:$0xf]  ;;  %v7820_v12 = vld [vmem:[#allocation9 + $0xcc] sm:$0xf]  ;;  %v7403_v39 = vld [vmem:[#allocation9 + $0xe0] sm:$0xf0] }
 0x817   : > { %v7402_v32 = vor.u32 %v7821_v4, %v7401_v23  ;;  %v7406_v7 = vor.u32 %v7820_v12, %v7403_v39  ;;  %v7393_v46 = vld [vmem:[#allocation9 + $0x98] sm:$0xf]  ;;  %v7395_v17 = vld [vmem:[#allocation9 + $0xb0] sm:$0xf0]  ;;  %v7387_v57 = vld [vmem:[#allocation9 + $0x80] sm:$0xf0] }
 0x818   : > { %3926 = vmatpush.bf16.msra.mxu0 %v7250_v43  ;;  %7898 = vmatpush.bf16.msra.mxu3 %v7250_v43  ;;  %v7409_v43 = vld [vmem:[#allocation9 + $0xf8] sm:$0xf]  ;;  %v7815_v30 = vld [vmem:[#allocation9 + $0x4c] sm:$0xf0]  ;;  %v7814_v48 = vld [vmem:[#allocation9 + $0x3c] sm:$0xf] }
 0x819   : > { %3955 = vmatpush.bf16.msra.mxu1 %v7314_v15  ;;  %3983 = vmatpush.bf16.msra.mxu2 %v7262_v6  ;;  %v7823_v15 = vld [vmem:[#allocation9 + $0x10c] sm:$0xf0]  ;;  %v7385_v6 = vld [vmem:[#allocation9 + $0x68] sm:$0xf]  ;;  %v7379_v10 = vld [vmem:[#allocation9 + $0x50] sm:$0xf0] }
 0x81a   : > { %v7410_v62 = vor.u32 %v7823_v15, %v7409_v43  ;;  %v7382_v5 = vor.u32 %v7814_v48, %v7379_v10  ;;  %v7813_v41 = vld [vmem:[#allocation9 + $0x1c] sm:$0xf0]  ;;  %v7812_v60 = vld [vmem:[#allocation9 + $0xc] sm:$0xf]  ;;  %v7489_v56 = vld [vmem:[#allocation9 + $0x2d8] sm:$0xf] }
 0x81b   : > { %v7842_v40 = vld [vmem:[#allocation9 + $0x2dc] sm:$0xf]  ;;  %v7840_v18 = vld [vmem:[#allocation9 + $0x2ac] sm:$0xf]  ;;  %v7475_v51 = vld [vmem:[#allocation9 + $0x290] sm:$0xf0] }
 0x81c   : > { %3927 = vmatpush.bf16.msra.mxu0 %v7242_v42  ;;  %7899 = vmatpush.bf16.msra.mxu3 %v7242_v42  ;;  %v7819_v42 = vld [vmem:[#allocation9 + $0xac] sm:$0xf0]  ;;  %v10648_v49 = vld [vmem:[#allocation12] ss:$8 sm:$0x3]  ;;  %s12533_s19 = sld [smem:[#allocation87_spill]] }
 0x81d   : > { %3956 = vmatpush.bf16.msra.mxu1 %v7306_v1  ;;  %3984 = vmatpush.bf16.msra.mxu2 %v7254_v2  ;;  %v7818_v1 = vld [vmem:[#allocation9 + $0x9c] sm:$0xf]  ;;  %v10651_v9 = vperm.slane %v10648_v49, 0  ;;  %v7465_v8 = vld [vmem:[#allocation9 + $0x248] sm:$0xf]  ;;  %s12534_s21 = sld [smem:[#allocation82_spill]] }
 0x81e   : > { %v7398_v63 = vor.u32 %v7818_v1, %v7395_v17  ;;  %v7837_v31 = vld [vmem:[#allocation9 + $0x25c] sm:$0xf0]  ;;  %v7467_v43 = vld [vmem:[#allocation9 + $0x260] sm:$0xf0]  ;;  %v7835_v23 = vld [vmem:[#allocation9 + $0x22c] sm:$0xf0] }
 0x81f   : > { %3928 = vmatmul.bf16.vlgmr.msra.gmra.mxu0 %v3747_v36  ;;  %3938 = vmatmul.bf16.vlgmr.msra.gmra.mxu3 %v3751_v58  ;;  %v7834_v4 = vld [vmem:[#allocation9 + $0x21c] sm:$0xf]  ;;  %v7833_v17 = vld [vmem:[#allocation9 + $0x1fc] sm:$0xf0]  ;;  %v7831_v48 = vld [vmem:[#allocation9 + $0x1cc] sm:$0xf0] }
 0x820   : > { %4007 = vmatpush.bf16.msrb.mxu3 %v7366_v37  ;;  %3957 = vmatmul.bf16.vlgmr.msra.gmra.mxu1 %v3748_v54  ;;  %v7394_v37 = vor.u32 %v7819_v42, %v7393_v46  ;;  %s12535_s13 = sld [smem:[#allocation90_spill]] }
 0x821   : > { %3985 = vmatpush.bf16.msra.mxu2 %v7246_v47  ;;  %4241 = vmatpush.bf16.msrb.mxu0 %v7426_v19 }
 0x824   : > { %4008 = vmatpush.bf16.msrb.mxu3 %v7358_v55  ;;  %3986 = vmatmul.bf16.vlgmr.msra.gmra.mxu2 %v3747_v36  ;;  %v7817_v36 = vld [vmem:[#allocation9 + $0x7c] sm:$0xf0]  ;;  %v7377_v55 = vld [vmem:[#allocation9 + $0x38] sm:$0xf] }
 0x825   : > { %4299 = vmatpush.bf16.msrb.mxu2 %v7430_v16  ;;  %4242 = vmatpush.bf16.msrb.mxu0 %v7418_v21  ;;  %v7386_v38 = vor.u32 %v7817_v36, %v7385_v6  ;;  %v7378_v2 = vor.u32 %v7815_v30, %v7377_v55  ;;  %v10654_v16 = vld [vmem:[#allocation12 + $0x1] ss:$8 sm:$0x3]  ;;  %v7836_v21 = vld [vmem:[#allocation9 + $0x24c] sm:$0xf] }
 0x826   : > { %v7470_v15 = vor.u32 %v7836_v21, %v7467_v43  ;;  %v10659_v35 = vperm.slane %v10654_v16, 0  ;;  %v7441_v30 = vld [vmem:[#allocation9 + $0x1b8] sm:$0xf] }
 0x828   : > { %4009 = vmatpush.bf16.msrb.mxu3 %v7350_v61  ;;  %v7369_v61 = vld [vmem:[#allocation9 + $0x8] sm:$0xf] }
 0x829   : > { %4300 = vmatpush.bf16.msrb.mxu2 %v7422_v25  ;;  %4243 = vmatpush.bf16.msrb.mxu0 %v7410_v62  ;;  %v7370_v47 = vor.u32 %v7813_v41, %v7369_v61  ;;  %v7466_v25 = vor.u32 %v7837_v31, %v7465_v8  ;;  %v7443_v61 = vld [vmem:[#allocation9 + $0x1d0] sm:$0xf0] }
 0x82c   : > { %4010 = vmatpush.bf16.msrb.mxu3 %v7342_v22  ;;  %v7371_v22 = vld [vmem:[#allocation9 + $0x20] sm:$0xf0] }
 0x82d   : > { %4301 = vmatpush.bf16.msrb.mxu2 %v7414_v29  ;;  %4244 = vmatpush.bf16.msrb.mxu0 %v7402_v32  ;;  %v7374_v27 = vor.u32 %v7812_v60, %v7371_v22  ;;  %v7457_v29 = vld [vmem:[#allocation9 + $0x218] sm:$0xf]  ;;  %v7459_v32 = vld [vmem:[#allocation9 + $0x230] sm:$0xf0] }
 0x82e   : > { %v7458_v12 = vor.u32 %v7835_v23, %v7457_v29  ;;  %v7855_v29 = vld [vmem:[#allocation9 + $0x114] sm:$0xf0]  ;;  %v7854_v23 = vld [vmem:[#allocation9 + $0x104] sm:$0xf] }
 0x82f   : > { %3933 = vmatmul.bf16.gmra.mxu0 %v3749_v14  ;;  %3943 = vmatmul.bf16.gmra.mxu3 %v3753_v59 }
 0x830   : > { %4011 = vmatpush.bf16.msrb.mxu3 %v7334_v0  ;;  %3962 = vmatmul.bf16.gmra.mxu1 %v3750_v50  ;;  %v7843_v0 = vld [vmem:[#allocation9 + $0x2ec] sm:$0xf0] }
 0x831   : > { %4302 = vmatpush.bf16.msrb.mxu2 %v7406_v7  ;;  %4245 = vmatpush.bf16.msrb.mxu0 %v7394_v37  ;;  %v7490_v24 = vor.u32 %v7843_v0, %v7489_v56  ;;  %v7462_v7 = vor.u32 %v7834_v4, %v7459_v32  ;;  %v7449_v37 = vld [vmem:[#allocation9 + $0x1e8] sm:$0xf]  ;;  %v7539_v32 = vld [vmem:[#allocation9 + $0x118] sm:$0xf0] }
 0x832   : > { %v7450_v36 = vor.u32 %v7833_v17, %v7449_v37  ;;  %v7433_v0 = vld [vmem:[#allocation9 + $0x188] sm:$0xf]  ;;  %v7529_v37 = vld [vmem:[#allocation9 + $0xd0] sm:$0xf] }
 0x833   : > { %4270 = vmatpush.bf16.msrb.mxu1 %v7490_v24  ;;  %v7828_v24 = vld [vmem:[#allocation9 + $0x18c] sm:$0xf]  ;;  %v7853_v17 = vld [vmem:[#allocation9 + $0xe4] sm:$0xf0] }
 0x834   : > { %4012 = vmatpush.bf16.msrb.mxu3 %v7326_v52  ;;  %3991 = vmatmul.bf16.gmra.mxu2 %v3749_v14  ;;  %v7491_v14 = vld [vmem:[#allocation9 + $0x2f0] sm:$0xf0]  ;;  %v7841_v52 = vld [vmem:[#allocation9 + $0x2bc] sm:$0xf0] }
 0x835   : > { %4303 = vmatpush.bf16.msrb.mxu2 %v7398_v63  ;;  %4246 = vmatpush.bf16.msrb.mxu0 %v7386_v38  ;;  %v7832_v63 = vld [vmem:[#allocation9 + $0x1ec] sm:$0xf] }
 0x838   : > { %4013 = vmatpush.bf16.msrb.mxu3 %v7318_v53  ;;  %v7483_v53 = vld [vmem:[#allocation9 + $0x2c0] sm:$0xf0] }
 0x839   : > { %4247 = vmatpush.bf16.msrb.mxu0 %v7378_v2  ;;  %v7486_v11 = vor.u32 %v7840_v18, %v7483_v53  ;;  %v7830_v2 = vld [vmem:[#allocation9 + $0x1bc] sm:$0xf] }
 0x83c   : > { %4014 = vmatpush.bf16.msrb.mxu3 %v7310_v26  ;;  %v7473_v26 = vld [vmem:[#allocation9 + $0x278] sm:$0xf] }
 0x83d   : > { %4248 = vmatpush.bf16.msrb.mxu0 %v7370_v47  ;;  %v7446_v47 = vor.u32 %v7830_v2, %v7443_v61  ;;  %v7521_v2 = vld [vmem:[#allocation9 + $0xa0] sm:$0xf]  ;;  %v10697_v61 = vperm.slane %v10648_v49, 1 }
 0x83f   : > { %4015 = vmatmul.bf16.vlgmr.msrb.gmra.mxu3 %v3748_v54 }
 0x840   : > { %3967 = vmatmul.bf16.gmra.mxu1 %v3752_v33 }
 0x844   : > { %3996 = vmatmul.bf16.gmra.mxu2 %v3751_v58  ;;  %v7816_v58 = vld [vmem:[#allocation9 + $0x6c] sm:$0xf] }
 0x845   : > { %v7390_v54 = vor.u32 %v7816_v58, %v7387_v57  ;;  %v7451_v58 = vld [vmem:[#allocation9 + $0x200] sm:$0xf0] }
 0x846   : > { %v7454_v38 = vor.u32 %v7832_v63, %v7451_v58  ;;  %v7852_v63 = vld [vmem:[#allocation9 + $0xd4] sm:$0xf]  ;;  %v7530_v58 = vor.u32 %v7853_v17, %v7529_v37 }
 0x847   : > { %4304 = vmatpush.bf16.msrb.mxu2 %v7390_v54 }
 0x84b   : > { %4305 = vmatpush.bf16.msrb.mxu2 %v7382_v5  ;;  %v7442_v5 = vor.u32 %v7831_v48, %v7441_v30 }
 0x84f   : > { %4020 = vmatmul.bf16.gmra.mxu3 %v3750_v50  ;;  %4306 = vmatpush.bf16.msrb.mxu2 %v7374_v27  ;;  %v7481_v50 = vld [vmem:[#allocation9 + $0x2a8] sm:$0xf] }
 0x850   : > { %3972 = vmatmul.bf16.gmra.mxu1 %v3754_v44  ;;  %v7482_v13 = vor.u32 %v7841_v52, %v7481_v50  ;;  %v7553_v50 = vld [vmem:[#allocation9 + $0x160] sm:$0xf]  ;;  %v7859_v52 = vld [vmem:[#allocation9 + $0x174] sm:$0xf0] }
 0x851   : > { %v7554_v53 = vor.u32 %v7859_v52, %v7553_v50  ;;  %v7515_v50 = vld [vmem:[#allocation9 + $0x88] sm:$0xf0]  ;;  %v7505_v52 = vld [vmem:[#allocation9 + $0x40] sm:$0xf] }
 0x852   : > { %4271 = vmatpush.bf16.msrb.mxu1 %v7482_v13 }
 0x853   : > { %4876 = vmatpush.bf16.msra.mxu0 %v7554_v53 }
 0x854   : > { %4001 = vmatmul.bf16.gmra.mxu2 %v3753_v59  ;;  %v7494_v59 = vor.u32 %v7842_v40, %v7491_v14  ;;  %v7829_v40 = vld [vmem:[#allocation9 + $0x19c] sm:$0xf0] }
 0x855   : > { %v7434_v14 = vor.u32 %v7829_v40, %v7433_v0  ;;  %v7513_v0 = vld [vmem:[#allocation9 + $0x70] sm:$0xf]  ;;  %v7849_v40 = vld [vmem:[#allocation9 + $0x84] sm:$0xf0] }
 0x856   : > { %4328 = vmatpush.bf16.msra.mxu3 %v7494_v59  ;;  %v7435_v59 = vld [vmem:[#allocation9 + $0x1a0] sm:$0xf0]  ;;  %v7514_v49 = vor.u32 %v7849_v40, %v7513_v0  ;;  %v7873_v0 = vld [vmem:[#allocation9 + $0x2c4] sm:$0xf0] }
 0x857   : > { %v7438_v13 = vor.u32 %v7828_v24, %v7435_v59  ;;  %v7848_v24 = vld [vmem:[#allocation9 + $0x74] sm:$0xf] }
 0x85a   : > { %4329 = vmatpush.bf16.msra.mxu3 %v7486_v11  ;;  %v7858_v11 = vld [vmem:[#allocation9 + $0x164] sm:$0xf] }
 0x85f   : > { %4025 = vmatmul.bf16.gmra.mxu3 %v3752_v33  ;;  %v7839_v33 = vld [vmem:[#allocation9 + $0x28c] sm:$0xf0] }
 0x860   : > { %v7474_v28 = vor.u32 %v7839_v33, %v7473_v26  ;;  %v7555_v26 = vld [vmem:[#allocation9 + $0x178] sm:$0xf0] }
 0x862   : > { %4272 = vmatpush.bf16.msrb.mxu1 %v7474_v28 }
 0x866   : > { %4273 = vmatpush.bf16.msrb.mxu1 %v7466_v25 }
 0x86a   : > { %4274 = vmatpush.bf16.msrb.mxu1 %v7458_v12 }
 0x86e   : > { %4275 = vmatpush.bf16.msrb.mxu1 %v7450_v36 }
 0x86f   : > { %4030 = vmatmul.bf16.gmra.mxu3 %v3754_v44  ;;  %v7838_v44 = vld [vmem:[#allocation9 + $0x27c] sm:$0xf] }
 0x870   : > { %v7478_v34 = vor.u32 %v7838_v44, %v7475_v51  ;;  %v7558_v44 = vor.u32 %v7858_v11, %v7555_v26  ;;  %v7545_v51 = vld [vmem:[#allocation9 + $0x130] sm:$0xf] }
 0x872   : > { %4330 = vmatpush.bf16.msra.mxu3 %v7478_v34  ;;  %4276 = vmatpush.bf16.msrb.mxu1 %v7442_v5  ;;  %v7856_v34 = vld [vmem:[#allocation9 + $0x134] sm:$0xf]  ;;  %v7850_v5 = vld [vmem:[#allocation9 + $0xa4] sm:$0xf] }
 0x873   : > { %5054 = vmatpush.bf16.msra.mxu2 %v7558_v44  ;;  %v7846_v44 = vld [vmem:[#allocation9 + $0x44] sm:$0xf] }
 0x876   : > { %4331 = vmatpush.bf16.msra.mxu3 %v7470_v15  ;;  %4277 = vmatpush.bf16.msrb.mxu1 %v7434_v14  ;;  %v7537_v15 = vld [vmem:[#allocation9 + $0x100] sm:$0xf] }
 0x877   : > { %v7538_v12 = vor.u32 %v7855_v29, %v7537_v15  ;;  %v7845_v15 = vld [vmem:[#allocation9 + $0x24] sm:$0xf0]  ;;  %v7844_v29 = vld [vmem:[#allocation9 + $0x14] sm:$0xf] }
 0x87a   : > { %4332 = vmatpush.bf16.msra.mxu3 %v7462_v7 }
 0x87e   : > { %4333 = vmatpush.bf16.msra.mxu3 %v7454_v38  ;;  %v7531_v38 = vld [vmem:[#allocation9 + $0xe8] sm:$0xf0] }
 0x882   : > { %4334 = vmatpush.bf16.msra.mxu3 %v7446_v47  ;;  %v7523_v47 = vld [vmem:[#allocation9 + $0xb8] sm:$0xf0] }
 0x886   : > { %4335 = vmatpush.bf16.msra.mxu3 %v7438_v13  ;;  %v7847_v13 = vld [vmem:[#allocation9 + $0x54] sm:$0xf0] }
 0x89c   : > { %v3929_v19 = vpop.f32.mrf.mxu0 }
 0x89d   : > { %v3930_v3 = vadd.f32 %v3929_v19, %v10651_v9  ;;  %v3958_v45 = vpop.f32.mrf.mxu1  ;;  %v7857_v19 = vld [vmem:[#allocation9 + $0x144] sm:$0xf0] }
 0x89f   : > { %v10656_v20 = vadd.f32 %v3958_v45, %v3930_v3  ;;  %v7546_v3 = vor.u32 %v7857_v19, %v7545_v51  ;;  %v7547_v45 = vld [vmem:[#allocation9 + $0x148] sm:$0xf0]  ;;  %v7507_v51 = vld [vmem:[#allocation9 + $0x58] sm:$0xf0] }
 0x8a0   : > { %v7550_v31 = vor.u32 %v7856_v34, %v7547_v45  ;;  %v7506_v34 = vor.u32 %v7847_v13, %v7505_v52  ;;  %v10714_v45 = vperm.slane %v10654_v16, 1 }
 0x8a1   : > { %v4041_v1 = vadd.f32 %v10659_v35, %v10656_v20  ;;  %4877 = vmatpush.bf16.msra.mxu0 %v7546_v3 }
 0x8a2   : > { %v10661_v62 = vpop.f32.mrf.mxu3  ;;  %5055 = vmatpush.bf16.msra.mxu2 %v7550_v31 }
 0x8a3   : > { %v4057_v54 = vadd.f32 %v4041_v1, %v10656_v20 }
 0x8a4   : > { %v3931_v39 = vpop.f32.mrf.mxu0 }
 0x8a5   : > { %v3932_v46 = vadd.f32 %v3931_v39, %v10651_v9  ;;  %v3960_v42 = vpop.f32.mrf.mxu1  ;;  %v7542_v39 = vor.u32 %v7854_v23, %v7539_v32  ;;  %4878 = vmatpush.bf16.msra.mxu0 %v7538_v12 }
 0x8a7   : > { %v10666_v6 = vadd.f32 %v3960_v42, %v3932_v46  ;;  %v10677_v18 = vpop.f32.mrf.mxu2  ;;  %5056 = vmatpush.bf16.msra.mxu2 %v7542_v39 }
 0x8a8   : > { %v3988_v14 = vadd.f32 %v10677_v18, %v10697_v61 }
 0x8a9   : > { %v4043_v57 = vadd.f32 %v10659_v35, %v10666_v6  ;;  %4879 = vmatpush.bf16.msra.mxu0 %v7530_v58 }
 0x8aa   : > { %v10671_v55 = vpop.f32.mrf.mxu3 }
 0x8ab   : > { %v4059_v10 = vadd.f32 %v4043_v57, %v10666_v6  ;;  %v10674_v41 = vpack.c.bf16 %v4043_v57, %v4041_v1  ;;  %v3942_v53 = vadd.f32 %v10671_v55, %v10651_v9 }
 0x8ac   : > { %v3934_v60 = vpop.f32.mrf.mxu0 }
 0x8ad   : > { %v3935_v22 = vadd.f32 %v3934_v60, %v10651_v9  ;;  %v3963_v27 = vpop.f32.mrf.mxu1  ;;  %v4073_v56 = vpack.c.bf16 %v4059_v10, %v4057_v54  ;;  %v7534_v54 = vor.u32 %v7852_v63, %v7531_v38  ;;  %v7851_v10 = vld [vmem:[#allocation9 + $0xb4] sm:$0xf0] }
 0x8ae   : > { %v7522_v60 = vor.u32 %v7851_v10, %v7521_v2  ;;  %v7617_v10 = vld [vmem:[#allocation9 + $0x2e0] sm:$0xf] }
 0x8af   : > { %4249 = vmatmul.bf16.vlgmr.msrb.gmra.mxu0 %v4073_v56  ;;  %4307 = vmatmul.bf16.vlgmr.msrb.gmra.mxu2 %v4073_v56  ;;  %v10679_v33 = vadd.f32 %v3963_v27, %v3935_v22  ;;  %v3989_v1 = vpop.f32.mrf.mxu2  ;;  %v7526_v22 = vor.u32 %v7850_v5, %v7523_v47  ;;  %v3940_v27 = vadd.f32 %v10661_v62, %v10651_v9  ;;  %v7875_v5 = vld [vmem:[#allocation9 + $0x2f4] sm:$0xf0] }
 0x8b0   : > { %5057 = vmatpush.bf16.msra.mxu2 %v7534_v54  ;;  %4880 = vmatpush.bf16.msra.mxu0 %v7522_v60  ;;  %v7518_v62 = vor.u32 %v7848_v24, %v7515_v50  ;;  %v3990_v31 = vadd.f32 %v3989_v1, %v10697_v61  ;;  %v7874_v60 = vld [vmem:[#allocation9 + $0x2e4] sm:$0xf] }
 0x8b1   : > { %v4045_v43 = vadd.f32 %v10659_v35, %v10679_v33 }
 0x8b2   : > { %v10681_v28 = vpop.f32.mrf.mxu3 }
 0x8b3   : > { %v4061_v46 = vadd.f32 %v4045_v43, %v10679_v33  ;;  %v3945_v54 = vadd.f32 %v10681_v28, %v10651_v9  ;;  %v7872_v28 = vld [vmem:[#allocation9 + $0x2b4] sm:$0xf] }
 0x8b4   : > { %v3936_v8 = vpop.f32.mrf.mxu0  ;;  %5058 = vmatpush.bf16.msra.mxu2 %v7526_v22  ;;  %4881 = vmatpush.bf16.msra.mxu0 %v7514_v49  ;;  %v7618_v22 = vor.u32 %v7875_v5, %v7617_v10  ;;  %v7866_v10 = vld [vmem:[#allocation9 + $0x224] sm:$0xf] }
 0x8b5   : > { %v3937_v21 = vadd.f32 %v3936_v8, %v10651_v9  ;;  %v3965_v25 = vpop.f32.mrf.mxu1  ;;  %v7510_v8 = vor.u32 %v7846_v44, %v7507_v51 }
 0x8b6   : > { %4965 = vmatpush.bf16.msra.mxu1 %v7618_v22  ;;  %v7577_v22 = vld [vmem:[#allocation9 + $0x1f0] sm:$0xf] }
 0x8b7   : > { %v10686_v4 = vadd.f32 %v3965_v25, %v3937_v21  ;;  %v3992_v11 = vpop.f32.mrf.mxu2 }
 0x8b8   : > { %5059 = vmatpush.bf16.msra.mxu2 %v7518_v62  ;;  %4882 = vmatpush.bf16.msra.mxu0 %v7506_v34  ;;  %v7601_v34 = vld [vmem:[#allocation9 + $0x280] sm:$0xf] }
 0x8b9   : > { %v4047_v7 = vadd.f32 %v10659_v35, %v10686_v4 }
 0x8ba   : > { %v10691_v42 = vpop.f32.mrf.mxu3 }
 0x8bb   : > { %v4063_v36 = vadd.f32 %v4047_v7, %v10686_v4  ;;  %v10694_v57 = vpack.c.bf16 %v4047_v7, %v4045_v43  ;;  %v7497_v43 = vld [vmem:[#allocation9 + $0x10] sm:$0xf]  ;;  %v7499_v7 = vld [vmem:[#allocation9 + $0x28] sm:$0xf0]  ;;  %v3947_v40 = vadd.f32 %v10691_v42, %v10651_v9 }
 0x8bc   : > { %v7498_v39 = vor.u32 %v7845_v15, %v7497_v43  ;;  %5060 = vmatpush.bf16.msra.mxu2 %v7510_v8 }
 0x8bd   : > { %v3968_v30 = vpop.f32.mrf.mxu1  ;;  %v4075_v48 = vpack.c.bf16 %v4063_v36, %v4061_v46  ;;  %v7502_v46 = vor.u32 %v7844_v29, %v7499_v7  ;;  %v7868_v7 = vld [vmem:[#allocation9 + $0x254] sm:$0xf] }
 0x8be   : > { %v10703_v59 = vadd.f32 %v3968_v30, %v3940_v27  ;;  %4883 = vmatpush.bf16.msra.mxu0 %v7498_v39  ;;  %v7619_v27 = vld [vmem:[#allocation9 + $0x2f8] sm:$0xf0]  ;;  %v7869_v39 = vld [vmem:[#allocation9 + $0x264] sm:$0xf0] }
 0x8bf   : > { %4254 = vmatmul.bf16.gmra.mxu0 %v4075_v48  ;;  %4312 = vmatmul.bf16.gmra.mxu2 %v4075_v48  ;;  %v3994_v63 = vpop.f32.mrf.mxu2  ;;  %v3993_v48 = vadd.f32 %v3992_v11, %v10697_v61  ;;  %v7622_v24 = vor.u32 %v7874_v60, %v7619_v27  ;;  %v7587_v60 = vld [vmem:[#allocation9 + $0x238] sm:$0xf0]  ;;  %v7865_v27 = vld [vmem:[#allocation9 + $0x204] sm:$0xf0] }
 0x8c0   : > { %v4049_v3 = vadd.f32 %v10659_v35, %v10703_v59  ;;  %5061 = vmatpush.bf16.msra.mxu2 %v7502_v46  ;;  %v3995_v9 = vadd.f32 %v3994_v63, %v10697_v61 }
 0x8c1   : > { %5143 = vmatpush.bf16.msrb.mxu3 %v7622_v24  ;;  %v7578_v24 = vor.u32 %v7865_v27, %v7577_v22 }
 0x8c2   : > { %v4016_v56 = vpop.f32.mrf.mxu3  ;;  %v4065_v16 = vadd.f32 %v4049_v3, %v10703_v59 }
 0x8c3   : > { %v10709_v18 = vadd.f32 %v4016_v56, %v3988_v14  ;;  %v7609_v56 = vld [vmem:[#allocation9 + $0x2b0] sm:$0xf]  ;;  %v7611_v14 = vld [vmem:[#allocation9 + $0x2c8] sm:$0xf0] }
 0x8c4   : > { %v7610_v50 = vor.u32 %v7873_v0, %v7609_v56  ;;  %v7590_v56 = vor.u32 %v7866_v10, %v7587_v60  ;;  %v7864_v0 = vld [vmem:[#allocation9 + $0x1f4] sm:$0xf] }
 0x8c5   : > { %v3970_v26 = vpop.f32.mrf.mxu1  ;;  %v4042_v32 = vadd.f32 %v10714_v45, %v10709_v18 }
 0x8c6   : > { %v10707_v19 = vadd.f32 %v3970_v26, %v3942_v53  ;;  %v7614_v53 = vor.u32 %v7872_v28, %v7611_v14  ;;  %4966 = vmatpush.bf16.msra.mxu1 %v7610_v50  ;;  %v7863_v50 = vld [vmem:[#allocation9 + $0x1d4] sm:$0xf0] }
 0x8c7   : > { %v4058_v36 = vadd.f32 %v4042_v32, %v10709_v18  ;;  %v3997_v62 = vpop.f32.mrf.mxu2 }
 0x8c8   : > { %v4051_v55 = vadd.f32 %v10659_v35, %v10707_v19  ;;  %5144 = vmatpush.bf16.msrb.mxu3 %v7614_v53  ;;  %v7862_v53 = vld [vmem:[#allocation9 + $0x1c4] sm:$0xf] }
 0x8ca   : > { %v4018_v21 = vpop.f32.mrf.mxu3  ;;  %v4067_v25 = vadd.f32 %v4051_v55, %v10707_v19  ;;  %v10720_v23 = vpack.c.bf16 %v4051_v55, %v4049_v3  ;;  %v7871_v3 = vld [vmem:[#allocation9 + $0x294] sm:$0xf0]  ;;  %v7870_v55 = vld [vmem:[#allocation9 + $0x284] sm:$0xf] }
 0x8cb   : > { %v10722_v12 = vadd.f32 %v4018_v21, %v3990_v31 }
 0x8cc   : > { %v4077_v37 = vpack.c.bf16 %v4067_v25, %v4065_v16  ;;  %v7603_v25 = vld [vmem:[#allocation9 + $0x298] sm:$0xf0] }
 0x8cd   : > { %v3973_v1 = vpop.f32.mrf.mxu1  ;;  %v4044_v17 = vadd.f32 %v10714_v45, %v10722_v12  ;;  %v7606_v43 = vor.u32 %v7870_v55, %v7603_v25  ;;  %v7860_v25 = vld [vmem:[#allocation9 + $0x194] sm:$0xf] }
 0x8ce   : > { %v10736_v47 = vadd.f32 %v3973_v1, %v3945_v54 }
 0x8cf   : > { %4259 = vmatmul.bf16.gmra.mxu0 %v4077_v37  ;;  %4317 = vmatmul.bf16.gmra.mxu2 %v4077_v37  ;;  %v4060_v58 = vadd.f32 %v4044_v17, %v10722_v12  ;;  %v10731_v38 = vpack.c.bf16 %v4044_v17, %v4042_v32  ;;  %v7593_v32 = vld [vmem:[#allocation9 + $0x250] sm:$0xf]  ;;  %v7595_v37 = vld [vmem:[#allocation9 + $0x268] sm:$0xf0]  ;;  %v3999_v54 = vpop.f32.mrf.mxu2 }
 0x8d0   : > { %v4053_v11 = vadd.f32 %v10659_v35, %v10736_v47  ;;  %5145 = vmatpush.bf16.msrb.mxu3 %v7606_v43  ;;  %v7594_v1 = vor.u32 %v7869_v39, %v7593_v32  ;;  %v7598_v63 = vor.u32 %v7868_v7, %v7595_v37 }
 0x8d1   : > { %v4074_v30 = vpack.c.bf16 %v4060_v58, %v4058_v36  ;;  %v3998_v58 = vadd.f32 %v3997_v62, %v10697_v61  ;;  %v4000_v62 = vadd.f32 %v3999_v54, %v10697_v61 }
 0x8d2   : > { %v4021_v2 = vpop.f32.mrf.mxu3  ;;  %v4069_v21 = vadd.f32 %v4053_v11, %v10736_v47 }
 0x8d3   : > { %4278 = vmatmul.bf16.vlgmr.msrb.gmra.mxu1 %v4074_v30  ;;  %4336 = vmatmul.bf16.vlgmr.msra.gmra.mxu3 %v4074_v30  ;;  %v10740_v52 = vadd.f32 %v4021_v2, %v3993_v48  ;;  %v7585_v48 = vld [vmem:[#allocation9 + $0x220] sm:$0xf]  ;;  %v7867_v2 = vld [vmem:[#allocation9 + $0x234] sm:$0xf0] }
 0x8d4   : > { %5146 = vmatpush.bf16.msrb.mxu3 %v7598_v63  ;;  %v7586_v5 = vor.u32 %v7867_v2, %v7585_v48 }
 0x8d5   : > { %v3975_v49 = vpop.f32.mrf.mxu1  ;;  %v4046_v51 = vadd.f32 %v10714_v45, %v10740_v52 }
 0x8d6   : > { %v10742_v13 = vadd.f32 %v3975_v49, %v3947_v40  ;;  %v7579_v40 = vld [vmem:[#allocation9 + $0x208] sm:$0xf0]  ;;  %v7569_v49 = vld [vmem:[#allocation9 + $0x1c0] sm:$0xf] }
 0x8d7   : > { %v4062_v16 = vadd.f32 %v4046_v51, %v10740_v52  ;;  %v7582_v14 = vor.u32 %v7864_v0, %v7579_v40 }
 0x8d8   : > { %v4055_v26 = vadd.f32 %v10659_v35, %v10742_v13  ;;  %v7602_v35 = vor.u32 %v7871_v3, %v7601_v34  ;;  %5147 = vmatpush.bf16.msrb.mxu3 %v7590_v56  ;;  %v4002_v34 = vpop.f32.mrf.mxu2 }
 0x8da   : > { %v4023_v42 = vpop.f32.mrf.mxu3  ;;  %v4071_v44 = vadd.f32 %v4055_v26, %v10742_v13  ;;  %v10752_v8 = vpack.c.bf16 %v4055_v26, %v4053_v11  ;;  %4967 = vmatpush.bf16.msra.mxu1 %v7602_v35  ;;  %v7571_v11 = vld [vmem:[#allocation9 + $0x1d8] sm:$0xf0]  ;;  %v7570_v26 = vor.u32 %v7863_v50, %v7569_v49  ;;  %v7861_v35 = vld [vmem:[#allocation9 + $0x1a4] sm:$0xf0] }
 0x8db   : > { %v10754_v31 = vadd.f32 %v4023_v42, %v3995_v9 }
 0x8dc   : > { %v4079_v15 = vpack.c.bf16 %v4071_v44, %v4069_v21  ;;  %5148 = vmatpush.bf16.msrb.mxu3 %v7582_v14  ;;  %v7574_v44 = vor.u32 %v7862_v53, %v7571_v11  ;;  %v7561_v21 = vld [vmem:[#allocation9 + $0x190] sm:$0xf] }
 0x8dd   : > { %v4048_v29 = vadd.f32 %v10714_v45, %v10754_v31 }
 0x8de   : > { %4968 = vmatpush.bf16.msra.mxu1 %v7594_v1 }
 0x8df   : > { %4264 = vmatmul.bf16.gmra.mxu0 %v4079_v15  ;;  %4322 = vmatmul.bf16.gmra.mxu2 %v4079_v15  ;;  %v4064_v46 = vadd.f32 %v4048_v29, %v10754_v31  ;;  %v10761_v17 = vpack.c.bf16 %v4048_v29, %v4046_v51  ;;  %v7562_v15 = vor.u32 %v7861_v35, %v7561_v21  ;;  %v7563_v29 = vld [vmem:[#allocation9 + $0x1a8] sm:$0xf0] }
 0x8e0   : > { %5149 = vmatpush.bf16.msrb.mxu3 %v7574_v44  ;;  %v7566_v32 = vor.u32 %v7860_v25, %v7563_v29  ;;  %v4004_v1 = vpop.f32.mrf.mxu2 }
 0x8e1   : > { %v4076_v36 = vpack.c.bf16 %v4064_v46, %v4062_v16  ;;  %v4003_v46 = vadd.f32 %v4002_v34, %v10697_v61  ;;  %v4005_v63 = vadd.f32 %v4004_v1, %v10697_v61 }
 0x8e2   : > { %v4026_v30 = vpop.f32.mrf.mxu3  ;;  %4969 = vmatpush.bf16.msra.mxu1 %v7586_v5 }
 0x8e3   : > { %4283 = vmatmul.bf16.gmra.mxu1 %v4076_v36  ;;  %4341 = vmatmul.bf16.gmra.mxu3 %v4076_v36  ;;  %v10764_v28 = vadd.f32 %v4026_v30, %v3998_v58 }
 0x8e4   : > { %5150 = vmatpush.bf16.msrb.mxu3 %v7566_v32 }
 0x8e5   : > { %v4050_v42 = vadd.f32 %v10714_v45, %v10764_v28 }
 0x8e6   : > { %4970 = vmatpush.bf16.msra.mxu1 %v7578_v24 }
 0x8e7   : > { %v4066_v55 = vadd.f32 %v4050_v42, %v10764_v28 }
 0x8ea   : > { %v4028_v9 = vpop.f32.mrf.mxu3  ;;  %4971 = vmatpush.bf16.msra.mxu1 %v7570_v26 }
 0x8eb   : > { %v10769_v51 = vadd.f32 %v4028_v9, %v4000_v62 }
 0x8ed   : > { %v4052_v3 = vadd.f32 %v10714_v45, %v10769_v51 }
 0x8ee   : > { %4972 = vmatpush.bf16.msra.mxu1 %v7562_v15 }
 0x8ef   : > { %4884 = vmatmul.bf16.vlgmr.msra.gmra.mxu0 %v10674_v41  ;;  %5062 = vmatmul.bf16.vlgmr.msra.gmra.mxu2 %v10674_v41  ;;  %v4068_v43 = vadd.f32 %v4052_v3, %v10769_v51  ;;  %v4684_v16 = vpack.c.bf16 %v4052_v3, %v4050_v42 }
 0x8f1   : > { %v4078_v39 = vpack.c.bf16 %v4068_v43, %v4066_v55 }
 0x8f2   : > { %v4031_v7 = vpop.f32.mrf.mxu3 }
 0x8f3   : > { %4288 = vmatmul.bf16.gmra.mxu1 %v4078_v39  ;;  %4346 = vmatmul.bf16.gmra.mxu3 %v4078_v39  ;;  %v10778_v37 = vadd.f32 %v4031_v7, %v4003_v46 }
 0x8f5   : > { %v4054_v58 = vadd.f32 %v10714_v45, %v10778_v37 }
 0x8f7   : > { %v4070_v30 = vadd.f32 %v4054_v58, %v10778_v37 }
 0x8fa   : > { %v4033_v41 = vpop.f32.mrf.mxu3 }
 0x8fb   : > { %v10781_v36 = vadd.f32 %v4033_v41, %v4005_v63 }
 0x8fd   : > { %v4056_v54 = vadd.f32 %v10714_v45, %v10781_v36 }
 0x8ff   : > { %4889 = vmatmul.bf16.gmra.mxu0 %v10694_v57  ;;  %5067 = vmatmul.bf16.gmra.mxu2 %v10694_v57  ;;  %v4072_v48 = vadd.f32 %v4056_v54, %v10781_v36  ;;  %v4686_v2 = vpack.c.bf16 %v4056_v54, %v4054_v58 }
 0x901   : > { %v4080_v10 = vpack.c.bf16 %v4072_v48, %v4070_v30 }
 0x903   : > { %4293 = vmatmul.bf16.gmra.mxu1 %v4080_v10  ;;  %4351 = vmatmul.bf16.gmra.mxu3 %v4080_v10 }
 0x90f   : > { %4894 = vmatmul.bf16.gmra.mxu0 %v10720_v23  ;;  %5072 = vmatmul.bf16.gmra.mxu2 %v10720_v23 }
 0x913   : > { %4973 = vmatmul.bf16.vlgmr.msra.gmra.mxu1 %v10731_v38  ;;  %5151 = vmatmul.bf16.vlgmr.msrb.gmra.mxu3 %v10731_v38 }
 0x91f   : > { %4899 = vmatmul.bf16.gmra.mxu0 %v10752_v8  ;;  %5077 = vmatmul.bf16.gmra.mxu2 %v10752_v8 }
 0x923   : > { %4978 = vmatmul.bf16.gmra.mxu1 %v10761_v17  ;;  %5156 = vmatmul.bf16.gmra.mxu3 %v10761_v17 }
 0x92c   : > { %v4250_v57 = vpop.f32.mrf.mxu0 }
 0x932   : > { %v4308_v45 = vpop.f32.mrf.mxu2 }
 0x933   : > { %4983 = vmatmul.bf16.gmra.mxu1 %v4684_v16  ;;  %5161 = vmatmul.bf16.gmra.mxu3 %v4684_v16 }
 0x934   : > { %v4252_v61 = vpop.f32.mrf.mxu0 }
 0x93a   : > { %v4310_v5 = vpop.f32.mrf.mxu2 }
 0x93c   : > { %v4255_v23 = vpop.f32.mrf.mxu0 }
 0x942   : > { %v4313_v27 = vpop.f32.mrf.mxu2 }
 0x943   : > { %4988 = vmatmul.bf16.gmra.mxu1 %v4686_v2  ;;  %5166 = vmatmul.bf16.gmra.mxu3 %v4686_v2 }
 0x944   : > { %v4257_v60 = vpop.f32.mrf.mxu0 }
 0x94a   : > { %v4315_v62 = vpop.f32.mrf.mxu2 }
 0x94c   : > { %v4260_v8 = vpop.f32.mrf.mxu0 }
 0x950   : > { %v4279_v22 = vpop.f32.mrf.mxu1 }
 0x951   : > { %v4280_v38 = vadd.f32 %v4279_v22, %v4250_v57 }
 0x952   : > { %v4318_v16 = vpop.f32.mrf.mxu2 }
 0x953   : > { %v10800_v17 = vadd.f32 %v4280_v38, %v10656_v20 }
 0x954   : > { %v4262_v34 = vpop.f32.mrf.mxu0 }
 0x956   : > { %v4337_v56 = vpop.f32.mrf.mxu3 }
 0x957   : > { %v4338_v0 = vadd.f32 %v4337_v56, %v4308_v45 }
 0x958   : > { %v4281_v40 = vpop.f32.mrf.mxu1 }
 0x959   : > { %v4282_v24 = vadd.f32 %v4281_v40, %v4252_v61  ;;  %v10803_v14 = vadd.f32 %v4338_v0, %v10709_v18 }
 0x95a   : > { %v4320_v48 = vpop.f32.mrf.mxu2 }
 0x95b   : > { %v4687_v49 = vpack.c.bf16 %v4282_v24, %v4280_v38  ;;  %v4373_v50 = vadd.f32 %v10803_v14, %v10800_v17  ;;  %v10808_v42 = vadd.f32 %v4282_v24, %v10666_v6 }
 0x95c   : > { %v4265_v7 = vpop.f32.mrf.mxu0 }
 0x95d   : > { %4904 = vmatmul.bf16.gmra.mxu0 %v4687_v49  ;;  %5082 = vmatmul.bf16.gmra.mxu2 %v4687_v49 }
 0x95e   : > { %4374 = vadd.xlane.f32.xlu0 %v4373_v50  ;;  %v4339_v53 = vpop.f32.mrf.mxu3 }
 0x95f   : > { %v4340_v11 = vadd.f32 %v4339_v53, %v4310_v5 }
 0x960   : > { %v4284_v26 = vpop.f32.mrf.mxu1 }
 0x961   : > { %v4688_v9 = vpack.c.bf16 %v4340_v11, %v4338_v0  ;;  %v10811_v44 = vadd.f32 %v4340_v11, %v10722_v12  ;;  %v4285_v55 = vadd.f32 %v4284_v26, %v4255_v23 }
 0x963   : > { %4993 = vmatmul.bf16.gmra.mxu1 %v4688_v9  ;;  %5171 = vmatmul.bf16.gmra.mxu3 %v4688_v9  ;;  %v4376_v3 = vadd.f32 %v10811_v44, %v10808_v42  ;;  %v10816_v15 = vadd.f32 %v4285_v55, %v10679_v33 }
 0x964   : > { %v4267_v10 = vpop.f32.mrf.mxu0 }
 0x966   : > { %4377 = vadd.xlane.f32.xlu0 %v4376_v3  ;;  %v4342_v21 = vpop.f32.mrf.mxu3 }
 0x967   : > { %v4343_v35 = vadd.f32 %v4342_v21, %v4313_v27  ;;  %v4323_v27 = vpop.f32.mrf.mxu2 }
 0x968   : > { %v4286_v25 = vpop.f32.mrf.mxu1 }
 0x969   : > { %v4287_v43 = vadd.f32 %v4286_v25, %v4257_v60  ;;  %v10819_v29 = vadd.f32 %v4343_v35, %v10740_v52 }
 0x96b   : > { %v4379_v32 = vadd.f32 %v10819_v29, %v10816_v15  ;;  %v4689_v39 = vpack.c.bf16 %v4287_v43, %v4285_v55  ;;  %v10824_v58 = vadd.f32 %v4287_v43, %v10686_v4 }
 0x96d   : > { %4380 = vadd.xlane.f32.xlu1 %v4379_v32  ;;  %4909 = vmatmul.bf16.gmra.mxu0 %v4689_v39 }
 0x96e   : > { %5087 = vmatmul.bf16.gmra.mxu2 %v4689_v39  ;;  %v4344_v46 = vpop.f32.mrf.mxu3 }
 0x96f   : > { %v4345_v1 = vadd.f32 %v4344_v46, %v4315_v62  ;;  %v4325_v9 = vpop.f32.mrf.mxu2 }
 0x970   : > { %v4289_v63 = vpop.f32.mrf.mxu1 }
 0x971   : > { %v4690_v41 = vpack.c.bf16 %v4345_v1, %v4343_v35  ;;  %v10827_v54 = vadd.f32 %v4345_v1, %v10754_v31  ;;  %v4290_v2 = vadd.f32 %v4289_v63, %v4260_v8  ;;  %v4885_v8 = vpop.f32.mrf.mxu0 }
 0x973   : > { %4998 = vmatmul.bf16.gmra.mxu1 %v4690_v41  ;;  %5176 = vmatmul.bf16.gmra.mxu3 %v4690_v41  ;;  %v4382_v30 = vadd.f32 %v10827_v54, %v10824_v58  ;;  %v10832_v5 = vadd.f32 %v4290_v2, %v10703_v59 }
 0x975   : > { %4383 = vadd.xlane.f32.xlu1 %v4382_v30 }
 0x976   : > { %v4347_v57 = vpop.f32.mrf.mxu3 }
 0x977   : > { %v4348_v61 = vadd.f32 %v4347_v57, %v4318_v16 }
 0x978   : > { %v4291_v45 = vpop.f32.mrf.mxu1 }
 0x979   : > { %v4292_v23 = vadd.f32 %v4291_v45, %v4262_v34  ;;  %v10835_v60 = vadd.f32 %v4348_v61, %v10764_v28  ;;  %v3733_v34 = vld [vmem:[#allocation12 + $0x2] ss:$8 sm:$0x3]  ;;  %v10853_v25 = vpop.f32.mrf.mxu0 }
 0x97a   : > { %v10855_v43 = vperm.slane %v3733_v34, 0  ;;  %v10860_v1 = vperm.slane %v3733_v34, 1 }
 0x97b   : > { %v4691_v22 = vpack.c.bf16 %v4292_v23, %v4290_v2  ;;  %v4385_v38 = vadd.f32 %v10835_v60, %v10832_v5  ;;  %v10840_v49 = vadd.f32 %v4292_v23, %v10707_v19 }
 0x97d   : > { %4386 = vadd.xlane.f32.xlu2 %v4385_v38  ;;  %4914 = vmatmul.bf16.gmra.mxu0 %v4691_v22 }
 0x97e   : > { %5092 = vmatmul.bf16.gmra.mxu2 %v4691_v22  ;;  %v4349_v56 = vpop.f32.mrf.mxu3 }
 0x97f   : > { %v4350_v0 = vadd.f32 %v4349_v56, %v4320_v48 }
 0x980   : > { %v4294_v40 = vpop.f32.mrf.mxu1 }
 0x981   : > { %v4692_v24 = vpack.c.bf16 %v4350_v0, %v4348_v61  ;;  %v10843_v50 = vadd.f32 %v4350_v0, %v10769_v51  ;;  %v4295_v11 = vadd.f32 %v4294_v40, %v4265_v7  ;;  %v4886_v7 = vadd.f32 %v4885_v8, %v10855_v43  ;;  %v4890_v61 = vpop.f32.mrf.mxu0 }
 0x982   : > { %v4891_v56 = vadd.f32 %v4890_v61, %v10855_v43 }
 0x983   : > { %5003 = vmatmul.bf16.gmra.mxu1 %v4692_v24  ;;  %5181 = vmatmul.bf16.gmra.mxu3 %v4692_v24  ;;  %v4388_v53 = vadd.f32 %v10843_v50, %v10840_v49  ;;  %v10848_v55 = vadd.f32 %v4295_v11, %v10736_v47 }
 0x985   : > { %4389 = vadd.xlane.f32.xlu2 %v4388_v53 }
 0x986   : > { %v4352_v62 = vpop.f32.mrf.mxu3 }
 0x987   : > { %v4353_v26 = vadd.f32 %v4352_v62, %v4323_v27 }
 0x988   : > { %v4296_v3 = vpop.f32.mrf.mxu1 }
 0x989   : > { %v10851_v21 = vadd.f32 %v4353_v26, %v10778_v37  ;;  %v4297_v35 = vadd.f32 %v4296_v3, %v4267_v10  ;;  %v5063_v10 = vpop.f32.mrf.mxu2  ;;  %v10877_v27 = vpop.f32.mrf.mxu0 }
 0x98a   : > { %v5064_v45 = vadd.f32 %v5063_v10, %v10860_v1 }
 0x98b   : > { %v4693_v16 = vpack.c.bf16 %v4297_v35, %v4295_v11  ;;  %v4391_v32 = vadd.f32 %v10851_v21, %v10848_v55  ;;  %v10865_v48 = vadd.f32 %v4297_v35, %v10742_v13 }
 0x98d   : > { %4919 = vmatmul.bf16.gmra.mxu0 %v4693_v16  ;;  %4392 = vadd.xlane.f32.xlu0 %v4391_v32 }
 0x98e   : > { %5097 = vmatmul.bf16.gmra.mxu2 %v4693_v16  ;;  %v4354_v39 = vpop.f32.mrf.mxu3 }
 0x98f   : > { %v4355_v46 = vadd.f32 %v4354_v39, %v4325_v9  ;;  %v12527_v39 = vld [vmem:[#allocation22_spill] sm:$0xff] }
 0x990   : > { %v4974_v63 = vpop.f32.mrf.mxu1 }
 0x991   : > { %v4694_v41 = vpack.c.bf16 %v4355_v46, %v4353_v26  ;;  %v10862_v30 = vadd.f32 %v4974_v63, %v4886_v7  ;;  %v10868_v2 = vadd.f32 %v4355_v46, %v10781_v36  ;;  %v4895_v40 = vpop.f32.mrf.mxu0 }
 0x992   : > { %v4896_v53 = vadd.f32 %v4895_v40, %v10855_v43 }
 0x993   : > { %5008 = vmatmul.bf16.gmra.mxu1 %v4694_v41  ;;  %5186 = vmatmul.bf16.gmra.mxu3 %v4694_v41  ;;  %v4394_v57 = vadd.f32 %v10868_v2, %v10865_v48 }
 0x995   : > { %4395 = vadd.xlane.f32.xlu1 %v4394_v57 }
 0x996   : > { %v5152_v23 = vpop.f32.mrf.mxu3 }
 0x997   : > { %v10873_v22 = vadd.f32 %v5152_v23, %v5064_v45 }
 0x998   : > { %v10875_v38 = vpop.f32.mrf.mxu1 }
 0x999   : > { %12522 = vst [vmem:[#allocation77_spill] sm:$0xff] %v10873_v22  ;;  %v10887_v26 = vpop.f32.mrf.mxu0 }
 0x99a   : > { %12524 = vst [vmem:[#allocation79_spill] sm:$0xff] %v10887_v26 }
 0x9a0   : > { %v4979_v0 = vpop.f32.mrf.mxu1 }
 0x9a1   : > { %v10880_v8 = vadd.f32 %v4979_v0, %v4891_v56  ;;  %v4900_v34 = vpop.f32.mrf.mxu0 }
 0x9a2   : > { %v4901_v3 = vadd.f32 %v4900_v34, %v10855_v43 }
 0x9a8   : > { %v10882_v24 = vpop.f32.mrf.mxu1 }
 0x9b0   : > { %v4984_v11 = vpop.f32.mrf.mxu1 }
 0x9b1   : > { %v10885_v62 = vadd.f32 %v4984_v11, %v4896_v53 }
 0x9b3   : > { %12523 = vst [vmem:[#allocation78_spill] sm:$0xff] %v10885_v62 }
 0x9b8   : > { %v10889_v9 = vpop.f32.mrf.mxu1 }
 0x9b9   : > { %12525 = vst [vmem:[#allocation80_spill] sm:$0xff] %v10889_v9 }
 0x9c0   : > { %v4989_v35 = vpop.f32.mrf.mxu1 }
 0x9c1   : > { %v10892_v16 = vadd.f32 %v4989_v35, %v4901_v3 }
 0x9c3   : > { %12526 = vst [vmem:[#allocation81_spill] sm:$0xff] %v10892_v16 }
 0x9d1   : > { %v4375_v32 = vpop.xlane.xlu0 %4374 }
 0x9d2   : > { %v4397_v7 = vmul.f32 %v4375_v32, %v12527_v39 }
 0x9d4   : > { %v10896_v46 = vsub.f32 %v10800_v17, %v4397_v7  ;;  %v10899_v63 = vsub.f32 %v10803_v14, %v4397_v7 }
 0x9d6   : > { %v4421_v41 = vmul.f32 %v10896_v46, %v10896_v46  ;;  %v4422_v10 = vmul.f32 %v10899_v63, %v10899_v63 }
 0x9d8   : > { %v4437_v57 = vadd.f32 %v4422_v10, %v4421_v41 }
 0x9d9   : > { %v4378_v61 = vpop.xlane.xlu0 %4377 }
 0x9da   : > { %v4398_v45 = vmul.f32 %v4378_v61, %v12527_v39  ;;  %4438 = vadd.xlane.f32.xlu2 %v4437_v57 }
 0x9dc   : > { %v10907_v23 = vsub.f32 %v10808_v42, %v4398_v45  ;;  %v10910_v17 = vsub.f32 %v10811_v44, %v4398_v45 }
 0x9de   : > { %v4423_v14 = vmul.f32 %v10907_v23, %v10907_v23  ;;  %v4424_v56 = vmul.f32 %v10910_v17, %v10910_v17 }
 0x9e0   : > { %v4381_v0 = vpop.xlane.xlu1 %4380  ;;  %v4440_v40 = vadd.f32 %v4424_v56, %v4423_v14 }
 0x9e1   : > { %v4399_v53 = vmul.f32 %v4381_v0, %v12527_v39 }
 0x9e2   : > { %4441 = vadd.xlane.f32.xlu0 %v4440_v40 }
 0x9e3   : > { %v10918_v11 = vsub.f32 %v10816_v15, %v4399_v53  ;;  %v10921_v42 = vsub.f32 %v10819_v29, %v4399_v53 }
 0x9e5   : > { %v4425_v44 = vmul.f32 %v10918_v11, %v10918_v11  ;;  %v4426_v34 = vmul.f32 %v10921_v42, %v10921_v42 }
 0x9e7   : > { %v4443_v3 = vadd.f32 %v4426_v34, %v4425_v44 }
 0x9e8   : > { %v4384_v35 = vpop.xlane.xlu1 %4383 }
 0x9e9   : > { %v4400_v32 = vmul.f32 %v4384_v35, %v12527_v39  ;;  %4444 = vadd.xlane.f32.xlu1 %v4443_v3 }
 0x9eb   : > { %v10929_v7 = vsub.f32 %v10824_v58, %v4400_v32  ;;  %v10932_v15 = vsub.f32 %v10827_v54, %v4400_v32 }
 0x9ed   : > { %v4427_v29 = vmul.f32 %v10929_v7, %v10929_v7  ;;  %v4428_v41 = vmul.f32 %v10932_v15, %v10932_v15 }
 0x9ef   : > { %v4446_v10 = vadd.f32 %v4428_v41, %v4427_v29 }
 0x9f0   : > { %v4387_v57 = vpop.xlane.xlu2 %4386 }
 0x9f1   : > { %v4401_v61 = vmul.f32 %v4387_v57, %v12527_v39  ;;  %4447 = vadd.xlane.f32.xlu2 %v4446_v10 }
 0x9f3   : > { %v10940_v45 = vsub.f32 %v10832_v5, %v4401_v61  ;;  %v10943_v58 = vsub.f32 %v10835_v60, %v4401_v61 }
 0x9f5   : > { %v4429_v54 = vmul.f32 %v10940_v45, %v10940_v45  ;;  %v4430_v14 = vmul.f32 %v10943_v58, %v10943_v58 }
 0x9f7   : > { %v4449_v56 = vadd.f32 %v4430_v14, %v4429_v54 }
 0x9f8   : > { %v4390_v0 = vpop.xlane.xlu2 %4389 }
 0x9f9   : > { %v4402_v40 = vmul.f32 %v4390_v0, %v12527_v39  ;;  %4450 = vadd.xlane.f32.xlu0 %v4449_v56 }
 0x9fb   : > { %v10951_v53 = vsub.f32 %v10840_v49, %v4402_v40  ;;  %v10954_v5 = vsub.f32 %v10843_v50, %v4402_v40 }
 0x9fd   : > { %v4431_v60 = vmul.f32 %v10951_v53, %v10951_v53  ;;  %v4432_v44 = vmul.f32 %v10954_v5, %v10954_v5 }
 0x9ff   : > { %v4452_v34 = vadd.f32 %v4432_v44, %v4431_v60 }
 0xa00   : > { %v4393_v3 = vpop.xlane.xlu0 %4392 }
 0xa01   : > { %v4403_v35 = vmul.f32 %v4393_v3, %v12527_v39  ;;  %4453 = vadd.xlane.f32.xlu1 %v4452_v34 }
 0xa03   : > { %v10962_v32 = vsub.f32 %v10848_v55, %v4403_v35  ;;  %v10965_v49 = vsub.f32 %v10851_v21, %v4403_v35 }
 0xa05   : > { %v4433_v50 = vmul.f32 %v10962_v32, %v10962_v32  ;;  %v4434_v29 = vmul.f32 %v10965_v49, %v10965_v49 }
 0xa07   : > { %v4455_v41 = vadd.f32 %v4434_v29, %v4433_v50 }
 0xa08   : > { %v4396_v10 = vpop.xlane.xlu1 %4395 }
 0xa09   : > { %v4404_v57 = vmul.f32 %v4396_v10, %v12527_v39  ;;  %4456 = vadd.xlane.f32.xlu2 %v4455_v41  ;;  %v3735_v41 = vld [vmem:[#allocation12 + $0x3] ss:$8 sm:$0x3] }
 0xa0b   : > { %v10973_v61 = vsub.f32 %v10865_v48, %v4404_v57  ;;  %v10976_v55 = vsub.f32 %v10868_v2, %v4404_v57 }
 0xa0d   : > { %v4435_v21 = vmul.f32 %v10973_v61, %v10973_v61  ;;  %v4436_v54 = vmul.f32 %v10976_v55, %v10976_v55 }
 0xa0f   : > { %v4458_v14 = vadd.f32 %v4436_v54, %v4435_v21 }
 0xa11   : > { %4459 = vadd.xlane.f32.xlu0 %v4458_v14 }
 0xa4d   : > { %v4439_v56 = vpop.xlane.xlu2 %4438 }
 0xa4e   : > { %v4461_v0 = vmul.f32 %v4439_v56, %v12527_v39  ;;  %v3737_v56 = vld [vmem:[#allocation12 + $0x4] ss:$8 sm:$0x3] }
 0xa4f   : > { %v10991_v22 = vperm.slane %v3737_v56, 0 }
 0xa50   : > { %v4469_v40 = vadd.f32 1e-05, %v4461_v0  ;;  %v10985_v0 = vperm.slane %v3735_v41, 0 }
 0xa52   : > { %8117 = vrsqrt.f32 %v4469_v40  ;;  %vm4483_vm12 = vweird.f32 %v4469_v40 }
 0xa55   : > { %v4442_v60 = vpop.xlane.xlu0 %4441 }
 0xa56   : > { %v4462_v48 = vmul.f32 %v4442_v60, %v12527_v39  ;;  %v10987_v60 = vperm.slane %v3735_v41, 1 }
 0xa58   : > { %v8118_v44 = vpop.eup %8117  ;;  %v4470_v34 = vadd.f32 1e-05, %v4462_v48 }
 0xa59   : > { %v4478_v2 = vmul.f32 %v8118_v44, %v4469_v40  ;;  %vm4484_vm11 = vweird.f32 %v8118_v44 }
 0xa5a   : > { %8119 = vrsqrt.f32 %v4470_v34  ;;  %vm4485_vm13 = vmor %vm4483_vm12, %vm4484_vm11  ;;  %vm4493_vm15 = vweird.f32 %v4470_v34 }
 0xa5b   : > { %v4479_v3 = vmul.f32 %v8118_v44, %v4478_v2 }
 0xa5c   : > { %v4445_v35 = vpop.xlane.xlu1 %4444 }
 0xa5d   : > { %v4480_v50 = vmul.f32 0.5, %v4479_v3  ;;  %v4463_v29 = vmul.f32 %v4445_v35, %v12527_v39 }
 0xa5f   : > { %v4481_v10 = vsub.f32 1.5, %v4480_v50  ;;  %v4471_v57 = vadd.f32 1e-05, %v4463_v29  ;;  %v10993_v29 = vperm.slane %v3737_v56, 1 }
 0xa60   : > { %v8120_v21 = vpop.eup %8119 }
 0xa61   : > { %v4482_v54 = vmul.f32 %v8118_v44, %v4481_v10  ;;  %v4488_v14 = vmul.f32 %v8120_v21, %v4470_v34  ;;  %8121 = vrsqrt.f32 %v4471_v57  ;;  %vm4494_vm14 = vweird.f32 %v8120_v21 }
 0xa62   : > { %vm4495_vm0 = vmor %vm4493_vm15, %vm4494_vm14  ;;  %vm4503_vm3 = vweird.f32 %v4471_v57 }
 0xa63   : > { %v4486_v48 = vsel %vm4485_vm13, %v8118_v44, %v4482_v54  ;;  %v4489_v2 = vmul.f32 %v8120_v21, %v4488_v14 }
 0xa64   : > { %v4557_v3 = vmul.f32 %v4486_v48, %v10896_v46  ;;  %v4558_v35 = vmul.f32 %v4486_v48, %v10899_v63  ;;  %v4448_v50 = vpop.xlane.xlu2 %4447 }
 0xa65   : > { %v4490_v40 = vmul.f32 0.5, %v4489_v2  ;;  %v4464_v10 = vmul.f32 %v4448_v50, %v12527_v39 }
 0xa66   : > { %v4578_v16 = vmul.f32 %v10985_v0, %v4557_v3  ;;  %v4579_v41 = vmul.f32 %v10987_v60, %v4558_v35 }
 0xa67   : > { %v8122_v9 = vpop.eup %8121  ;;  %v4491_v26 = vsub.f32 1.5, %v4490_v40  ;;  %v4472_v44 = vadd.f32 1e-05, %v4464_v10 }
 0xa68   : > { %v4498_v54 = vmul.f32 %v8122_v9, %v4471_v57  ;;  %v4599_v46 = vadd.f32 %v10991_v22, %v4578_v16  ;;  %v4600_v63 = vadd.f32 %v10993_v29, %v4579_v41  ;;  %vm4504_vm2 = vweird.f32 %v8122_v9 }
 0xa69   : > { %v4492_v14 = vmul.f32 %v8120_v21, %v4491_v26  ;;  %8123 = vrsqrt.f32 %v4472_v44  ;;  %vm4505_vm4 = vmor %vm4503_vm3, %vm4504_vm2  ;;  %vm4513_vm6 = vweird.f32 %v4472_v44 }
 0xa6a   : > { %v4499_v56 = vmul.f32 %v8122_v9, %v4498_v54  ;;  %v4615_v2 = vmul.f32 1.442695, %v4599_v46  ;;  %v4617_v62 = vmul.f32 1.442695, %v4600_v63 }
 0xa6b   : > { %v4496_v48 = vsel %vm4495_vm0, %v8120_v21, %v4492_v14 }
 0xa6c   : > { %v4559_v3 = vmul.f32 %v4496_v48, %v10907_v23  ;;  %v4560_v35 = vmul.f32 %v4496_v48, %v10910_v17  ;;  %v4500_v50 = vmul.f32 0.5, %v4499_v56  ;;  %v4451_v40 = vpop.xlane.xlu0 %4450  ;;  %8125 = vpow2.f32 %v4615_v2 }
 0xa6d   : > { %v4465_v10 = vmul.f32 %v4451_v40, %v12527_v39  ;;  %8127 = vpow2.f32 %v4617_v62 }
 0xa6e   : > { %v4580_v16 = vmul.f32 %v10985_v0, %v4559_v3  ;;  %v4581_v41 = vmul.f32 %v10987_v60, %v4560_v35  ;;  %v4501_v26 = vsub.f32 1.5, %v4500_v50 }
 0xa6f   : > { %v8124_v34 = vpop.eup %8123  ;;  %v11005_v54 = vadd.f32 1e-05, %v4465_v10 }
 0xa70   : > { %v4502_v21 = vmul.f32 %v8122_v9, %v4501_v26  ;;  %v4508_v23 = vmul.f32 %v8124_v34, %v4472_v44  ;;  %v4601_v17 = vadd.f32 %v10991_v22, %v4580_v16  ;;  %v4602_v46 = vadd.f32 %v10993_v29, %v4581_v41 }
 0xa71   : > { %8129 = vrsqrt.f32 %v11005_v54  ;;  %vm4514_vm5 = vweird.f32 %v8124_v34  ;;  %vm4523_vm8 = vweird.f32 %v11005_v54 }
 0xa72   : > { %v4506_v63 = vsel %vm4505_vm4, %v8122_v9, %v4502_v21  ;;  %v4509_v14 = vmul.f32 %v8124_v34, %v4508_v23  ;;  %v4619_v56 = vmul.f32 1.442695, %v4601_v17  ;;  %v4621_v3 = vmul.f32 1.442695, %v4602_v46  ;;  %v8126_v50 = vpop.eup %8125  ;;  %vm4515_vm7 = vmor %vm4513_vm6, %vm4514_vm5 }
 0xa73   : > { %v4561_v48 = vmul.f32 %v4506_v63, %v10918_v11  ;;  %v4562_v57 = vmul.f32 %v4506_v63, %v10921_v42  ;;  %v8128_v16 = vpop.eup %8127  ;;  %v4647_v17 = vadd.f32 %v8126_v50, %v10656_v20  ;;  %vm5588_vm5 = vcmask 261120  }
 0xa74   : > { %v4510_v35 = vmul.f32 0.5, %v4509_v14  ;;  %v4454_v2 = vpop.xlane.xlu1 %4453  ;;  %8131 = vpow2.f32 %v4619_v56  ;;  %v4648_v56 = vadd.f32 %v8128_v16, %v10709_v18 }
 0xa75   : > { %v4582_v40 = vmul.f32 %v10985_v0, %v4561_v48  ;;  %v4583_v62 = vmul.f32 %v10987_v60, %v4562_v57  ;;  %v4466_v10 = vmul.f32 %v4454_v2, %v12527_v39  ;;  %8133 = vpow2.f32 %v4621_v3 }
 0xa76   : > { %v4511_v9 = vsub.f32 1.5, %v4510_v35  ;;  %v4663_v18 = vmax.f32 %v4647_v17, 0.0 }
 0xa77   : > { %v8130_v41 = vpop.eup %8129  ;;  %v11015_v26 = vadd.f32 1e-05, %v4466_v10  ;;  %v4603_v11 = vadd.f32 %v10991_v22, %v4582_v40  ;;  %v4604_v23 = vadd.f32 %v10993_v29, %v4583_v62 }
 0xa78   : > { %v4512_v42 = vmul.f32 %v8124_v34, %v4511_v9  ;;  %v4518_v21 = vmul.f32 %v8130_v41, %v11005_v54  ;;  %vm4524_vm9 = vweird.f32 %v8130_v41 }
 0xa79   : > { %8135 = vrsqrt.f32 %v11015_v26  ;;  %v4623_v35 = vmul.f32 1.442695, %v4603_v11  ;;  %v4625_v10 = vmul.f32 1.442695, %v4604_v23  ;;  %vm4525_vm10 = vmor %vm4523_vm8, %vm4524_vm9  ;;  %vm4533_vm12 = vweird.f32 %v11015_v26 }
 0xa7a   : > { %v8132_v46 = vpop.eup %8131  ;;  %v4516_v63 = vsel %vm4515_vm7, %v8124_v34, %v4512_v42  ;;  %v4519_v14 = vmul.f32 %v8130_v41, %v4518_v21 }
 0xa7b   : > { %v8134_v48 = vpop.eup %8133  ;;  %v4563_v57 = vmul.f32 %v4516_v63, %v10929_v7  ;;  %v4564_v44 = vmul.f32 %v4516_v63, %v10932_v15  ;;  %v4695_v3 = vpack.c.bf16 %v8132_v46, %v8126_v50  ;;  %v4649_v20 = vadd.f32 %v8132_v46, %v10666_v6 }
 0xa7c   : > { %v4520_v2 = vmul.f32 0.5, %v4519_v14  ;;  %v4457_v40 = vpop.xlane.xlu2 %4456  ;;  %v4696_v62 = vpack.c.bf16 %v8134_v48, %v8128_v16  ;;  %v4650_v50 = vadd.f32 %v8134_v48, %v10722_v12  ;;  %8137 = vpow2.f32 %v4623_v35 }
 0xa7d   : > { %v4584_v34 = vmul.f32 %v10985_v0, %v4563_v57  ;;  %v4585_v9 = vmul.f32 %v10987_v60, %v4564_v44  ;;  %v4467_v42 = vmul.f32 %v4457_v40, %v12527_v39  ;;  %4924 = vmatmul.bf16.gmra.mxu0 %v4695_v3  ;;  %5102 = vmatmul.bf16.gmra.mxu2 %v4695_v3  ;;  %v4665_v15 = vmax.f32 %v4649_v20, 0.0 }
 0xa7e   : > { %v4521_v7 = vsub.f32 1.5, %v4520_v2  ;;  %5013 = vmatmul.bf16.gmra.mxu1 %v4696_v62  ;;  %5191 = vmatmul.bf16.gmra.mxu3 %v4696_v62  ;;  %8139 = vpow2.f32 %v4625_v10  ;;  %v4664_v57 = vmax.f32 %v4648_v56, 0.0  ;;  %v4666_v44 = vmax.f32 %v4650_v50, 0.0 }
 0xa7f   : > { %v8136_v16 = vpop.eup %8135  ;;  %v11031_v11 = vadd.f32 1e-05, %v4467_v42  ;;  %v4605_v6 = vadd.f32 %v10991_v22, %v4584_v34  ;;  %v4606_v21 = vadd.f32 %v10993_v29, %v4585_v9  ;;  %v11036_v17 = vpack.c.bf16 %v4665_v15, %v4663_v18 }
 0xa80   : > { %v4522_v23 = vmul.f32 %v8130_v41, %v4521_v7  ;;  %v4528_v46 = vmul.f32 %v8136_v16, %v11015_v26  ;;  %v11043_v62 = vpack.c.bf16 %v4666_v44, %v4664_v57  ;;  %vm4534_vm11 = vweird.f32 %v8136_v16 }
 0xa81   : > { %8141 = vrsqrt.f32 %v11031_v11  ;;  %v4627_v12 = vmul.f32 1.442695, %v4605_v6  ;;  %v4629_v63 = vmul.f32 1.442695, %v4606_v21  ;;  %vm4535_vm13 = vmor %vm4533_vm12, %vm4534_vm11  ;;  %vm4543_vm15 = vweird.f32 %v11031_v11 }
 0xa82   : > { %v4526_v14 = vsel %vm4525_vm10, %v8130_v41, %v4522_v23  ;;  %v4529_v48 = vmul.f32 %v8136_v16, %v4528_v46  ;;  %v8138_v54 = vpop.eup %8137 }
 0xa83   : > { %v4565_v3 = vmul.f32 %v4526_v14, %v10940_v45  ;;  %v4566_v35 = vmul.f32 %v4526_v14, %v10943_v58  ;;  %8143 = vpow2.f32 %v4627_v12  ;;  %v4651_v7 = vadd.f32 %v8138_v54, %v10679_v33 }
 0xa84   : > { %v4530_v2 = vmul.f32 0.5, %v4529_v48  ;;  %v4460_v40 = vpop.xlane.xlu0 %4459  ;;  %8145 = vpow2.f32 %v4629_v63  ;;  %v8140_v34 = vpop.eup %8139 }
 0xa85   : > { %v4586_v10 = vmul.f32 %v10985_v0, %v4565_v3  ;;  %v4587_v20 = vmul.f32 %v10987_v60, %v4566_v35  ;;  %v4468_v41 = vmul.f32 %v4460_v40, %v12527_v39  ;;  %v4652_v50 = vadd.f32 %v8140_v34, %v10740_v52 }
 0xa86   : > { %v4531_v56 = vsub.f32 1.5, %v4530_v2  ;;  %v4667_v57 = vmax.f32 %v4651_v7, 0.0 }
 0xa87   : > { %v8142_v9 = vpop.eup %8141  ;;  %v11048_v45 = vadd.f32 1e-05, %v4468_v41  ;;  %v4607_v58 = vadd.f32 %v10991_v22, %v4586_v10  ;;  %v4608_v39 = vadd.f32 %v10993_v29, %v4587_v20  ;;  %v4668_v2 = vmax.f32 %v4652_v50, 0.0 }
 0xa88   : > { %v4532_v42 = vmul.f32 %v8136_v16, %v4531_v56  ;;  %v4538_v18 = vmul.f32 %v8142_v9, %v11031_v11  ;;  %vm4544_vm14 = vweird.f32 %v8142_v9 }
 0xa89   : > { %v8144_v15 = vpop.eup %8143  ;;  %8147 = vrsqrt.f32 %v11048_v45  ;;  %v4631_v33 = vmul.f32 1.442695, %v4607_v58  ;;  %vm4545_vm0 = vmor %vm4543_vm15, %vm4544_vm14  ;;  %vm4553_vm3 = vweird.f32 %v11048_v45 }
 0xa8a   : > { %v8146_v6 = vpop.eup %8145  ;;  %v4536_v21 = vsel %vm4535_vm13, %v8136_v16, %v4532_v42  ;;  %v4539_v23 = vmul.f32 %v8142_v9, %v4538_v18  ;;  %v4697_v46 = vpack.c.bf16 %v8144_v15, %v8138_v54  ;;  %v4653_v12 = vadd.f32 %v8144_v15, %v10686_v4 }
 0xa8b   : > { %v4567_v26 = vmul.f32 %v4536_v21, %v10951_v53  ;;  %v4568_v63 = vmul.f32 %v4536_v21, %v10954_v5  ;;  %v4698_v14 = vpack.c.bf16 %v8146_v6, %v8140_v34  ;;  %v4654_v3 = vadd.f32 %v8146_v6, %v10754_v31 }
 0xa8c   : > { %v4540_v48 = vmul.f32 0.5, %v4539_v23  ;;  %v4669_v44 = vmax.f32 %v4653_v12, 0.0  ;;  %v4633_v16 = vmul.f32 1.442695, %v4608_v39  ;;  %8149 = vpow2.f32 %v4631_v33 }
 0xa8d   : > { %v4588_v35 = vmul.f32 %v10985_v0, %v4567_v26  ;;  %v4589_v52 = vmul.f32 %v10987_v60, %v4568_v63  ;;  %4929 = vmatmul.bf16.gmra.mxu0 %v4697_v46  ;;  %5107 = vmatmul.bf16.gmra.mxu2 %v4697_v46  ;;  %v4670_v5 = vmax.f32 %v4654_v3, 0.0 }
 0xa8e   : > { %v4541_v4 = vsub.f32 1.5, %v4540_v48  ;;  %5018 = vmatmul.bf16.gmra.mxu1 %v4698_v14  ;;  %5196 = vmatmul.bf16.gmra.mxu3 %v4698_v14  ;;  %v11063_v53 = vpack.c.bf16 %v4669_v44, %v4667_v57  ;;  %8151 = vpow2.f32 %v4633_v16 }
 0xa8f   : > { %v8148_v40 = vpop.eup %8147  ;;  %v4609_v54 = vadd.f32 %v10991_v22, %v4588_v35  ;;  %v4610_v31 = vadd.f32 %v10993_v29, %v4589_v52  ;;  %v11069_v41 = vpack.c.bf16 %v4670_v5, %v4668_v2 }
 0xa90   : > { %v4542_v10 = vmul.f32 %v8142_v9, %v4541_v4  ;;  %v4548_v20 = vmul.f32 %v8148_v40, %v11048_v45  ;;  %vm4554_vm2 = vweird.f32 %v8148_v40 }
 0xa91   : > { %v4635_v34 = vmul.f32 1.442695, %v4609_v54  ;;  %v4637_v56 = vmul.f32 1.442695, %v4610_v31  ;;  %vm4555_vm4 = vmor %vm4553_vm3, %vm4554_vm2  ;;  %v11094_v54 = vpop.f32.mrf.mxu1 }
 0xa92   : > { %v4546_v58 = vsel %vm4545_vm0, %v8142_v9, %v4542_v10  ;;  %v4549_v42 = vmul.f32 %v8148_v40, %v4548_v20  ;;  %v8150_v39 = vpop.eup %8149 }
 0xa93   : > { %v4569_v18 = vmul.f32 %v4546_v58, %v10962_v32  ;;  %v4570_v7 = vmul.f32 %v4546_v58, %v10965_v49  ;;  %8153 = vpow2.f32 %v4635_v34  ;;  %v4655_v49 = vadd.f32 %v8150_v39, %v10703_v59 }
 0xa94   : > { %v4550_v15 = vmul.f32 0.5, %v4549_v42  ;;  %8155 = vpow2.f32 %v4637_v56  ;;  %v8152_v21 = vpop.eup %8151 }
 0xa95   : > { %v4590_v11 = vmul.f32 %v10985_v0, %v4569_v18  ;;  %v4591_v50 = vmul.f32 %v10987_v60, %v4570_v7  ;;  %v4656_v33 = vadd.f32 %v8152_v21, %v10764_v28  ;;  %v4671_v35 = vmax.f32 %v4655_v49, 0.0  ;;  %v11130_v49 = vld [vmem:[%s12316_s7 + $0xf8] sm:$0xff] }
 0xa96   : > { %v4551_v6 = vsub.f32 1.5, %v4550_v15  ;;  %7900 = vmatpush.msrb.mxu1 %v11130_v49 }
 0xa97   : > { %v4611_v23 = vadd.f32 %v10991_v22, %v4590_v11  ;;  %v4612_v32 = vadd.f32 %v10993_v29, %v4591_v50  ;;  %v4672_v28 = vmax.f32 %v4656_v33, 0.0  ;;  %v11160_v33 = vld [vmem:[%s12316_s7 + $0xe0] sm:$0xff] }
 0xa98   : > { %v4552_v46 = vmul.f32 %v8148_v40, %v4551_v6  ;;  %v11110_v6 = vpop.f32.mrf.mxu3 }
 0xa99   : > { %v8154_v9 = vpop.eup %8153  ;;  %v4639_v3 = vmul.f32 1.442695, %v4611_v23  ;;  %v4641_v45 = vmul.f32 1.442695, %v4612_v32  ;;  %v5247_v32 = vld [vmem:[%s12316_s7 + $0x78] sm:$0xff] }
 0xa9a   : > { %v8156_v12 = vpop.eup %8155  ;;  %v4556_v26 = vsel %vm4555_vm4, %v8148_v40, %v4552_v46  ;;  %v4699_v63 = vpack.c.bf16 %v8154_v9, %v8150_v39  ;;  %v4657_v14 = vadd.f32 %v8154_v9, %v10707_v19  ;;  %v11102_v39 = vpop.f32.mrf.mxu1  ;;  %v5246_v9 = vld [vmem:[%s12316_s7 + $0x70] sm:$0xff]  ;;  %5265 = vmatpush.msrb.mxu0 %v5247_v32 }
 0xa9b   : > { %v4571_v48 = vmul.f32 %v4556_v26, %v10973_v61  ;;  %v4572_v57 = vmul.f32 %v4556_v26, %v10976_v55  ;;  %v4700_v44 = vpack.c.bf16 %v8156_v12, %v8152_v21  ;;  %v4658_v59 = vadd.f32 %v8156_v12, %v10769_v51  ;;  %v5245_v12 = vld [vmem:[%s12316_s7 + $0x68] sm:$0xff] }
 0xa9c   : > { %v4673_v52 = vmax.f32 %v4657_v14, 0.0  ;;  %8157 = vpow2.f32 %v4639_v3  ;;  %v11149_v26 = vld [vmem:[%s12316_s7 + $0xe8] sm:$0xff]  ;;  %5266 = vmatpush.msrb.mxu0 %v5246_v9  ;;  %v5244_v14 = vld [vmem:[%s12316_s7 + $0x60] sm:$0xff] }
 0xa9d   : > { %v4592_v16 = vmul.f32 %v10985_v0, %v4571_v48  ;;  %v4593_v2 = vmul.f32 %v10987_v60, %v4572_v57  ;;  %4934 = vmatmul.bf16.gmra.mxu0 %v4699_v63  ;;  %5112 = vmatmul.bf16.gmra.mxu2 %v4699_v63  ;;  %v4674_v61 = vmax.f32 %v4658_v59, 0.0  ;;  %8159 = vpow2.f32 %v4641_v45  ;;  %v11092_v60 = vpop.f32.mrf.mxu0  ;;  %v5243_v48 = vld [vmem:[%s12316_s7 + $0x58] sm:$0xff]  ;;  %v5242_v45 = vld [vmem:[%s12316_s7 + $0x50] sm:$0xff]  ;;  %v11191_v59 = vld [vmem:[%s12316_s7 + $0xc8] sm:$0xff] }
 0xa9e   : > { %5023 = vmatmul.bf16.gmra.mxu1 %v4700_v44  ;;  %5201 = vmatmul.bf16.gmra.mxu3 %v4700_v44  ;;  %v11086_v19 = vpack.c.bf16 %v4673_v52, %v4671_v35  ;;  %v11169_v57 = vld [vmem:[%s12316_s7 + $0xd8] sm:$0xff]  ;;  %v11182_v35 = vld [vmem:[%s12316_s7 + $0xd0] sm:$0xff]  ;;  %v5241_v52 = vld [vmem:[%s12316_s7 + $0x48] sm:$0xff] }
 0xa9f   : > { %v4613_v55 = vadd.f32 %v10991_v22, %v4592_v16  ;;  %v4614_v4 = vadd.f32 %v10993_v29, %v4593_v2  ;;  %v11090_v5 = vpack.c.bf16 %v4674_v61, %v4672_v28  ;;  %5267 = vmatpush.msrb.mxu0 %v5245_v12  ;;  %v5240_v28 = vld [vmem:[%s12316_s7 + $0x40] sm:$0xff] }
 0xaa0   : > { %v11118_v46 = vpop.f32.mrf.mxu3  ;;  %v11205_v61 = vld [vmem:[%s12316_s7 + $0xc0] sm:$0xff] }
 0xaa1   : > { %v4643_v51 = vmul.f32 1.442695, %v4613_v55  ;;  %v4645_v0 = vmul.f32 1.442695, %v4614_v4  ;;  %5268 = vmatpush.msrb.mxu0 %v5244_v14  ;;  %v5239_v55 = vld [vmem:[%s12316_s7 + $0x38] sm:$0xff]  ;;  %v5232_v9 = vld [vmem:[%s12316_s7] sm:$0xff] }
 0xaa2   : > { %v8158_v40 = vpop.eup %8157  ;;  %v11114_v21 = vpop.f32.mrf.mxu1  ;;  %v11217_v4 = vld [vmem:[%s12316_s7 + $0xb8] sm:$0xff] }
 0xaa3   : > { %8161 = vpow2.f32 %v4643_v51  ;;  %v8160_v31 = vpop.eup %8159  ;;  %v4659_v10 = vadd.f32 %v8158_v40, %v10736_v47  ;;  %5269 = vmatpush.msrb.mxu0 %v5243_v48 }
 0xaa4   : > { %8163 = vpow2.f32 %v4645_v0  ;;  %v4660_v22 = vadd.f32 %v8160_v31, %v10778_v37 }
 0xaa5   : > { %v11100_v18 = vpop.f32.mrf.mxu0  ;;  %v4675_v7 = vmax.f32 %v4659_v10, 0.0  ;;  %5270 = vmatpush.msrb.mxu0 %v5242_v45 }
 0xaa6   : > { %v4676_v11 = vmax.f32 %v4660_v22, 0.0  ;;  %v5252_v22 = vld [vmem:[%s12316_s7 + $0xa0] sm:$0xff] }
 0xaa7   : > { %5271 = vmatpush.msrb.mxu0 %v5241_v52 }
 0xaa8   : > { %v11174_v3 = vpop.f32.mrf.mxu3 }
 0xaa9   : > { %v8162_v20 = vpop.eup %8161  ;;  %5272 = vmatpush.msrb.mxu0 %v5240_v28  ;;  %v4888_v28 = vadd.f32 %v10853_v25, %v10855_v43 }
 0xaaa   : > { %v8164_v34 = vpop.eup %8163  ;;  %v4701_v29 = vpack.c.bf16 %v8162_v20, %v8158_v40  ;;  %v4661_v56 = vadd.f32 %v8162_v20, %v10742_v13  ;;  %v11108_v13 = vpop.f32.mrf.mxu2  ;;  %v5237_v40 = vld [vmem:[%s12316_s7 + $0x28] sm:$0xff]  ;;  %v5236_v20 = vld [vmem:[%s12316_s7 + $0x20] sm:$0xff] }
 0xaab   : > { %v4702_v58 = vpack.c.bf16 %v8164_v34, %v8160_v31  ;;  %v4662_v42 = vadd.f32 %v8164_v34, %v10781_v36  ;;  %v11151_v63 = vpop.f32.mrf.mxu1  ;;  %5273 = vmatpush.msrb.mxu0 %v5239_v55  ;;  %v5253_v31 = vld [vmem:[%s12316_s7 + $0xa8] sm:$0xff]  ;;  %v4977_v55 = vadd.f32 %v10875_v38, %v4888_v28  ;;  %v4893_v38 = vadd.f32 %v10877_v27, %v10855_v43 }
 0xaac   : > { %v4677_v15 = vmax.f32 %v4661_v56, 0.0  ;;  %v5251_v56 = vld [vmem:[%s12316_s7 + $0x98] sm:$0xff] }
 0xaad   : > { %4939 = vmatmul.bf16.gmra.mxu0 %v4701_v29  ;;  %5117 = vmatmul.bf16.gmra.mxu2 %v4701_v29  ;;  %v4678_v47 = vmax.f32 %v4662_v42, 0.0  ;;  %v11112_v36 = vpop.f32.mrf.mxu0  ;;  %v5235_v29 = vld [vmem:[%s12316_s7 + $0x18] sm:$0xff]  ;;  %v5250_v42 = vld [vmem:[%s12316_s7 + $0x90] sm:$0xff] }
 0xaae   : > { %5028 = vmatmul.bf16.gmra.mxu1 %v4702_v58  ;;  %5206 = vmatmul.bf16.gmra.mxu3 %v4702_v58  ;;  %v11104_v37 = vpack.c.bf16 %v4677_v15, %v4675_v7  ;;  %v5234_v58 = vld [vmem:[%s12316_s7 + $0x10] sm:$0xff] }
 0xaaf   : > { %v11106_v50 = vpack.c.bf16 %v4678_v47, %v4676_v11  ;;  %v5233_v11 = vld [vmem:[%s12316_s7 + $0x8] sm:$0xff] }
 0xab0   : > { %v11222_v0 = vpop.f32.mrf.mxu3  ;;  %v5249_v47 = vld [vmem:[%s12316_s7 + $0x88] sm:$0xff] }
 0xab2   : > { %v11116_v23 = vpop.f32.mrf.mxu2 }
 0xab3   : > { %v11196_v2 = vpop.f32.mrf.mxu1 }
 0xab8   : > { %v11261_v15 = vpop.f32.mrf.mxu3 }
 0xaba   : > { %v11171_v44 = vpop.f32.mrf.mxu2 }
 0xabb   : > { %v11245_v34 = vpop.f32.mrf.mxu1 }
 0xabd   : > { %4944 = vmatmul.bf16.gmra.mxu0 %v11036_v17  ;;  %5122 = vmatmul.bf16.gmra.mxu2 %v11036_v17  ;;  %v11139_v17 = vld [vmem:[%s12316_s7 + $0xf0] sm:$0xff] }
 0xabe   : > { %5033 = vmatmul.bf16.gmra.mxu1 %v11043_v62  ;;  %5211 = vmatmul.bf16.gmra.mxu3 %v11043_v62  ;;  %v11141_v62 = vpop.f32.mrf.mxu0 }
 0xabf   : > { %7901 = vmatpush.msrb.mxu1 %v11139_v17 }
 0xac0   : > { %v11284_v48 = vpop.f32.mrf.mxu3 }
 0xac1   : > { %7902 = vmatpush.msrb.mxu1 %v11149_v26 }
 0xac2   : > { %v11219_v51 = vpop.f32.mrf.mxu2 }
 0xac3   : > { %7903 = vmatpush.msrb.mxu1 %v11160_v33  ;;  %v11281_v12 = vpop.f32.mrf.mxu1 }
 0xac5   : > { %7904 = vmatpush.msrb.mxu1 %v11169_v57 }
 0xac6   : > { %v11194_v16 = vpop.f32.mrf.mxu0 }
 0xac7   : > { %7905 = vmatpush.msrb.mxu1 %v11182_v35 }
 0xac9   : > { %7906 = vmatpush.msrb.mxu1 %v11191_v59 }
 0xaca   : > { %v11259_v7 = vpop.f32.mrf.mxu2 }
 0xacb   : > { %7907 = vmatpush.msrb.mxu1 %v11205_v61  ;;  %v11291_v45 = vpop.f32.mrf.mxu1 }
 0xacd   : > { %4949 = vmatmul.bf16.gmra.mxu0 %v11063_v53  ;;  %5127 = vmatmul.bf16.gmra.mxu2 %v11063_v53  ;;  %v5238_v53 = vld [vmem:[%s12316_s7 + $0x30] sm:$0xff] }
 0xace   : > { %5038 = vmatmul.bf16.gmra.mxu1 %v11069_v41  ;;  %5216 = vmatmul.bf16.gmra.mxu3 %v11069_v41  ;;  %v5254_v41 = vld [vmem:[%s12316_s7 + $0xb0] sm:$0xff]  ;;  %v11237_v10 = vpop.f32.mrf.mxu0 }
 0xacf   : > { %7908 = vmatpush.msrb.mxu1 %v11217_v4  ;;  %5274 = vmatpush.msrb.mxu0 %v5238_v53 }
 0xad1   : > { %7909 = vmatpush.msrb.mxu1 %v5254_v41  ;;  %5275 = vmatpush.msrb.mxu0 %v5237_v40 }
 0xad2   : > { %v5078_v14 = vpop.f32.mrf.mxu2 }
 0xad3   : > { %7910 = vmatpush.msrb.mxu1 %v5253_v31  ;;  %5276 = vmatpush.msrb.mxu0 %v5236_v20 }
 0xad5   : > { %7911 = vmatpush.msrb.mxu1 %v5252_v22  ;;  %5277 = vmatpush.msrb.mxu0 %v5235_v29 }
 0xad6   : > { %v11271_v32 = vpop.f32.mrf.mxu0 }
 0xad7   : > { %7912 = vmatpush.msrb.mxu1 %v5251_v56  ;;  %5278 = vmatpush.msrb.mxu0 %v5234_v58 }
 0xad9   : > { %7913 = vmatpush.msrb.mxu1 %v5250_v42  ;;  %5279 = vmatpush.msrb.mxu0 %v5233_v11  ;;  %v12528_v11 = vld [vmem:[#allocation78_spill] sm:$0xff] }
 0xada   : > { %v5080_v52 = vpop.f32.mrf.mxu2 }
 0xadb   : > { %7914 = vmatpush.msrb.mxu1 %v5249_v47  ;;  %5280 = vmatpush.msrb.mxu0 %v5232_v9 }
 0xadd   : > { %4954 = vmatmul.bf16.gmra.mxu0 %v11086_v19  ;;  %5132 = vmatmul.bf16.gmra.mxu2 %v11086_v19  ;;  %v5248_v19 = vld [vmem:[%s12316_s7 + $0x80] sm:$0xff] }
 0xade   : > { %5043 = vmatmul.bf16.gmra.mxu1 %v11090_v5  ;;  %5221 = vmatmul.bf16.gmra.mxu3 %v11090_v5  ;;  %v11288_v5 = vpop.f32.mrf.mxu0 }
 0xadf   : > { %7915 = vmatpush.msrb.mxu1 %v5248_v19  ;;  %5378 = vmatpush.msra.mxu0 %v11130_v49  ;;  %v11297_v49 = vpop.f32.mrf.mxu3 }
 0xae1   : > { %5379 = vmatpush.msra.mxu0 %v11139_v17 }
 0xae3   : > { %5380 = vmatpush.msra.mxu0 %v11149_v26  ;;  %v11305_v26 = vpop.f32.mrf.mxu1 }
 0xae5   : > { %5381 = vmatpush.msra.mxu0 %v11160_v33  ;;  %v5083_v33 = vpop.f32.mrf.mxu2 }
 0xae6   : > { %v11303_v17 = vpop.f32.mrf.mxu0 }
 0xae7   : > { %5382 = vmatpush.msra.mxu0 %v11169_v57 }
 0xae9   : > { %5383 = vmatpush.msra.mxu0 %v11182_v35 }
 0xaeb   : > { %5384 = vmatpush.msra.mxu0 %v11191_v59  ;;  %v5172_v59 = vpop.f32.mrf.mxu3 }
 0xaed   : > { %4959 = vmatmul.bf16.gmra.mxu0 %v11104_v37  ;;  %5137 = vmatmul.bf16.gmra.mxu2 %v11104_v37  ;;  %v5069_v37 = vadd.f32 %v11116_v23, %v10860_v1 }
 0xaee   : > { %5048 = vmatmul.bf16.gmra.mxu1 %v11106_v50  ;;  %5226 = vmatmul.bf16.gmra.mxu3 %v11106_v50 }
 0xaef   : > { %5385 = vmatpush.msra.mxu0 %v11205_v61  ;;  %v5158_v35 = vadd.f32 %v11118_v46, %v5069_v37  ;;  %v5071_v61 = vadd.f32 %v11171_v44, %v10860_v1  ;;  %v12530_v37 = vld [vmem:[#allocation80_spill] sm:$0xff] }
 0xaf1   : > { %5386 = vmatpush.msra.mxu0 %v11217_v4  ;;  %v5085_v4 = vpop.f32.mrf.mxu2 }
 0xaf3   : > { %5387 = vmatpush.msra.mxu0 %v5254_v41  ;;  %v5174_v46 = vpop.f32.mrf.mxu3  ;;  %v5074_v41 = vadd.f32 %v11219_v51, %v10860_v1  ;;  %v4982_v51 = vadd.f32 %v10882_v24, %v4893_v38  ;;  %v12529_v24 = vld [vmem:[#allocation79_spill] sm:$0xff]  ;;  %v4903_v38 = vadd.f32 %v11092_v60, %v10855_v43 }
 0xaf5   : > { %5388 = vmatpush.msra.mxu0 %v5253_v31  ;;  %v5163_v44 = vadd.f32 %v11222_v0, %v5074_v41 }
 0xaf7   : > { %5389 = vmatpush.msra.mxu0 %v5252_v22 }
 0xaf9   : > { %5390 = vmatpush.msra.mxu0 %v5251_v56  ;;  %v5088_v31 = vpop.f32.mrf.mxu2 }
 0xafa   : > { %v11310_v57 = vpop.f32.mrf.mxu0 }
 0xafb   : > { %v11312_v50 = vpop.f32.mrf.mxu1  ;;  %5391 = vmatpush.msra.mxu0 %v5250_v42  ;;  %v5177_v22 = vpop.f32.mrf.mxu3 }
 0xafd   : > { %5281 = vmatmul.f32.vlgmr.msrb.gmra.mxu0 %v10862_v30  ;;  %v5160_v30 = vadd.f32 %v11174_v3, %v5071_v61  ;;  %v5076_v3 = vadd.f32 %v11259_v7, %v10860_v1  ;;  %v5084_v61 = vadd.f32 %v5083_v33, %v10860_v1 }
 0xafe   : > { %5400 = vmatmul.f32.vlgmr.msrb.gmra.mxu1 %v5158_v35  ;;  %5392 = vmatpush.msra.mxu0 %v5249_v47  ;;  %v4898_v47 = vadd.f32 %v12529_v24, %v10855_v43 }
 0xaff   : > { %v5165_v56 = vadd.f32 %v11261_v15, %v5076_v3  ;;  %v5081_v15 = vadd.f32 %v5080_v52, %v10860_v1  ;;  %v12531_v52 = vld [vmem:[#allocation81_spill] sm:$0xff] }
 0xb00   : > { %5393 = vmatpush.msra.mxu0 %v5248_v19 }
 0xb01   : > { %v5090_v0 = vpop.f32.mrf.mxu2  ;;  %v5170_v28 = vadd.f32 %v11297_v49, %v5081_v15  ;;  %v5086_v49 = vadd.f32 %v5085_v4, %v10860_v1 }
 0xb02   : > { %v11320_v23 = vpop.f32.mrf.mxu0 }
 0xb03   : > { %v11323_v53 = vpop.f32.mrf.mxu1  ;;  %v5179_v7 = vpop.f32.mrf.mxu3 }
 0xb05   : > { %5284 = vmatmul.f32.gmra.mxu0 %v4977_v55 }
 0xb06   : > { %5403 = vmatmul.f32.gmra.mxu1 %v5160_v30 }
 0xb09   : > { %v5093_v9 = vpop.f32.mrf.mxu2 }
 0xb0a   : > { %v11328_v25 = vpop.f32.mrf.mxu0 }
 0xb0b   : > { %v11330_v40 = vpop.f32.mrf.mxu1 }
 0xb0d   : > { %5287 = vmatmul.f32.gmra.mxu0 %v10880_v8  ;;  %v5079_v8 = vadd.f32 %v5078_v14, %v10860_v1  ;;  %v4987_v14 = vadd.f32 %v12530_v37, %v4898_v47  ;;  %v5091_v37 = vadd.f32 %v5090_v0, %v10860_v1 }
 0xb0e   : > { %5406 = vmatmul.f32.gmra.mxu1 %v5163_v44  ;;  %v5173_v44 = vadd.f32 %v5172_v59, %v5084_v61  ;;  %v4906_v59 = vadd.f32 %v11100_v18, %v10855_v43 }
 0xb0f   : > { %v5168_v42 = vadd.f32 %v11284_v48, %v5079_v8  ;;  %v5182_v48 = vpop.f32.mrf.mxu3  ;;  %v5175_v8 = vadd.f32 %v5174_v46, %v5086_v49  ;;  %v4908_v46 = vadd.f32 %v11112_v36, %v10855_v43 }
 0xb10   : > { %v4995_v60 = vadd.f32 %v11102_v39, %v4906_v59 }
 0xb11   : > { %v5095_v30 = vpop.f32.mrf.mxu2  ;;  %v4997_v18 = vadd.f32 %v11114_v21, %v4908_v46 }
 0xb12   : > { %v11338_v20 = vpop.f32.mrf.mxu0 }
 0xb13   : > { %v11341_v29 = vpop.f32.mrf.mxu1 }
 0xb15   : > { %5290 = vmatmul.f32.gmra.mxu0 %v4982_v51 }
 0xb16   : > { %5409 = vmatmul.f32.gmra.mxu1 %v5165_v56  ;;  %v4992_v56 = vadd.f32 %v11094_v54, %v4903_v38 }
 0xb17   : > { %v5184_v3 = vpop.f32.mrf.mxu3 }
 0xb1a   : > { %v11345_v58 = vpop.f32.mrf.mxu0 }
 0xb1b   : > { %v11347_v27 = vpop.f32.mrf.mxu1 }
 0xb1d   : > { %5293 = vmatmul.f32.gmra.mxu0 %v12528_v11  ;;  %v5089_v11 = vadd.f32 %v5088_v31, %v10860_v1 }
 0xb1e   : > { %5412 = vmatmul.f32.gmra.mxu1 %v5168_v42  ;;  %v5098_v42 = vpop.f32.mrf.mxu2 }
 0xb1f   : > { %v5187_v4 = vpop.f32.mrf.mxu3  ;;  %v5178_v15 = vadd.f32 %v5177_v22, %v5089_v11  ;;  %v4911_v22 = vadd.f32 %v11141_v62, %v10855_v43  ;;  %v5099_v11 = vadd.f32 %v5098_v42, %v10860_v1 }
 0xb21   : > { %v5000_v36 = vadd.f32 %v11151_v63, %v4911_v22  ;;  %v5188_v46 = vadd.f32 %v5187_v4, %v5099_v11  ;;  %v4921_v22 = vadd.f32 %v11288_v5, %v10855_v43 }
 0xb22   : > { %v11354_v19 = vpop.f32.mrf.mxu0 }
 0xb23   : > { %v11357_v35 = vpop.f32.mrf.mxu1 }
 0xb25   : > { %5296 = vmatmul.f32.gmra.mxu0 %v4987_v14 }
 0xb26   : > { %5415 = vmatmul.f32.gmra.mxu1 %v5170_v28  ;;  %v5100_v54 = vpop.f32.mrf.mxu2  ;;  %v5180_v28 = vadd.f32 %v5179_v7, %v5091_v37  ;;  %v4913_v7 = vadd.f32 %v11194_v16, %v10855_v43 }
 0xb27   : > { %v5189_v39 = vpop.f32.mrf.mxu3  ;;  %v5101_v37 = vadd.f32 %v5100_v54, %v10860_v1 }
 0xb28   : > { %v5002_v62 = vadd.f32 %v11196_v2, %v4913_v7  ;;  %v4918_v2 = vadd.f32 %v11271_v32, %v10855_v43  ;;  %v5010_v32 = vadd.f32 %v11291_v45, %v4921_v22  ;;  %v4923_v7 = vadd.f32 %v11303_v17, %v10855_v43 }
 0xb2a   : > { %v11361_v55 = vpop.f32.mrf.mxu0  ;;  %v5012_v5 = vadd.f32 %v11305_v26, %v4923_v7  ;;  %v4928_v26 = vadd.f32 %v11320_v23, %v10855_v43 }
 0xb2b   : > { %v11363_v41 = vpop.f32.mrf.mxu1 }
 0xb2d   : > { %5299 = vmatmul.f32.gmra.mxu0 %v12531_v52 }
 0xb2e   : > { %5418 = vmatmul.f32.gmra.mxu1 %v5173_v44  ;;  %v5103_v61 = vpop.f32.mrf.mxu2  ;;  %v5094_v44 = vadd.f32 %v5093_v9, %v10860_v1 }
 0xb2f   : > { %v5192_v21 = vpop.f32.mrf.mxu3  ;;  %v5104_v4 = vadd.f32 %v5103_v61, %v10860_v1 }
 0xb30   : > { %v5183_v38 = vadd.f32 %v5182_v48, %v5094_v44  ;;  %v4916_v48 = vadd.f32 %v11237_v10, %v10855_v43  ;;  %v5007_v10 = vadd.f32 %v11281_v12, %v4918_v2 }
 0xb32   : > { %v11369_v51 = vpop.f32.mrf.mxu0  ;;  %v5005_v16 = vadd.f32 %v11245_v34, %v4916_v48 }
 0xb33   : > { %v11372_v33 = vpop.f32.mrf.mxu1 }
 0xb35   : > { %5302 = vmatmul.f32.gmra.mxu0 %v4992_v56  ;;  %v5096_v56 = vadd.f32 %v5095_v30, %v10860_v1 }
 0xb36   : > { %5421 = vmatmul.f32.gmra.mxu1 %v5175_v8  ;;  %v5105_v49 = vpop.f32.mrf.mxu2 }
 0xb37   : > { %v5185_v59 = vadd.f32 %v5184_v3, %v5096_v56  ;;  %v5194_v63 = vpop.f32.mrf.mxu3 }
 0xb3a   : > { %v11377_v24 = vpop.f32.mrf.mxu0 }
 0xb3b   : > { %v11380_v47 = vpop.f32.mrf.mxu1 }
 0xb3d   : > { %5305 = vmatmul.f32.gmra.mxu0 %v4995_v60 }
 0xb3e   : > { %5424 = vmatmul.f32.gmra.mxu1 %v5178_v15  ;;  %v5108_v30 = vpop.f32.mrf.mxu2 }
 0xb3f   : > { %v5197_v3 = vpop.f32.mrf.mxu3 }
 0xb42   : > { %v11385_v14 = vpop.f32.mrf.mxu0 }
 0xb43   : > { %v11388_v31 = vpop.f32.mrf.mxu1 }
 0xb45   : > { %5308 = vmatmul.f32.gmra.mxu0 %v4997_v18 }
 0xb46   : > { %5427 = vmatmul.f32.gmra.mxu1 %v5180_v28  ;;  %v5190_v28 = vadd.f32 %v5189_v39, %v5101_v37  ;;  %v5110_v34 = vpop.f32.mrf.mxu2  ;;  %v5106_v39 = vadd.f32 %v5105_v49, %v10860_v1 }
 0xb47   : > { %v5199_v54 = vpop.f32.mrf.mxu3 }
 0xb4a   : > { %v11393_v52 = vpop.f32.mrf.mxu0 }
 0xb4b   : > { %v11396_v0 = vpop.f32.mrf.mxu1 }
 0xb4d   : > { %5311 = vmatmul.f32.gmra.mxu0 %v5000_v36 }
 0xb4e   : > { %5430 = vmatmul.f32.gmra.mxu1 %v5183_v38  ;;  %v5193_v38 = vadd.f32 %v5192_v21, %v5104_v4  ;;  %v5113_v12 = vpop.f32.mrf.mxu2  ;;  %v4926_v21 = vadd.f32 %v11310_v57, %v10855_v43  ;;  %v5017_v57 = vadd.f32 %v11323_v53, %v4928_v26 }
 0xb4f   : > { %v5202_v45 = vpop.f32.mrf.mxu3 }
 0xb50   : > { %v5015_v17 = vadd.f32 %v11312_v50, %v4926_v21  ;;  %v4931_v50 = vadd.f32 %v11328_v25, %v10855_v43 }
 0xb52   : > { %v11401_v8 = vpop.f32.mrf.mxu0 }
 0xb53   : > { %v11404_v9 = vpop.f32.mrf.mxu1 }
 0xb55   : > { %5314 = vmatmul.f32.gmra.mxu0 %v5002_v62  ;;  %v5195_v62 = vadd.f32 %v5194_v63, %v5106_v39 }
 0xb56   : > { %5433 = vmatmul.f32.gmra.mxu1 %v5185_v59  ;;  %v5109_v59 = vadd.f32 %v5108_v30, %v10860_v1  ;;  %v5115_v48 = vpop.f32.mrf.mxu2 }
 0xb57   : > { %v5204_v63 = vpop.f32.mrf.mxu3 }
 0xb5a   : > { %v11409_v60 = vpop.f32.mrf.mxu0 }
 0xb5b   : > { %v11412_v15 = vpop.f32.mrf.mxu1 }
 0xb5d   : > { %5317 = vmatmul.f32.gmra.mxu0 %v5005_v16  ;;  %v5198_v16 = vadd.f32 %v5197_v3, %v5109_v59  ;;  %v5114_v3 = vadd.f32 %v5113_v12, %v10860_v1 }
 0xb5e   : > { %5436 = vmatmul.f32.gmra.mxu1 %v5188_v46  ;;  %v5111_v46 = vadd.f32 %v5110_v34, %v10860_v1  ;;  %v5118_v30 = vpop.f32.mrf.mxu2  ;;  %v5020_v34 = vadd.f32 %v11330_v40, %v4931_v50  ;;  %v4936_v40 = vadd.f32 %v11345_v58, %v10855_v43 }
 0xb5f   : > { %v5203_v22 = vadd.f32 %v5202_v45, %v5114_v3 }
 0xb62   : > { %v11417_v18 = vpop.f32.mrf.mxu0 }
 0xb63   : > { %v11420_v42 = vpop.f32.mrf.mxu1 }
 0xb65   : > { %5320 = vmatmul.f32.gmra.mxu0 %v5007_v10  ;;  %v5200_v10 = vadd.f32 %v5199_v54, %v5111_v46  ;;  %v5116_v54 = vadd.f32 %v5115_v48, %v10860_v1  ;;  %v4938_v48 = vadd.f32 %v11354_v19, %v10855_v43 }
 0xb66   : > { %5439 = vmatmul.f32.gmra.mxu1 %v5190_v28  ;;  %v5207_v28 = vpop.f32.mrf.mxu3  ;;  %v5120_v53 = vpop.f32.mrf.mxu2 }
 0xb67   : > { %v5205_v7 = vadd.f32 %v5204_v63, %v5116_v54  ;;  %v5027_v26 = vadd.f32 %v11357_v35, %v4938_v48  ;;  %v4943_v35 = vadd.f32 %v11369_v51, %v10855_v43 }
 0xb6a   : > { %v11425_v44 = vpop.f32.mrf.mxu0 }
 0xb6b   : > { %v11428_v36 = vpop.f32.mrf.mxu1 }
 0xb6d   : > { %5323 = vmatmul.f32.gmra.mxu0 %v5010_v32  ;;  %v4933_v32 = vadd.f32 %v11338_v20, %v10855_v43  ;;  %v5025_v20 = vadd.f32 %v11347_v27, %v4936_v40  ;;  %v4941_v27 = vadd.f32 %v11361_v55, %v10855_v43 }
 0xb6e   : > { %5442 = vmatmul.f32.gmra.mxu1 %v5193_v38  ;;  %v5209_v12 = vpop.f32.mrf.mxu3 }
 0xb6f   : > { %v5022_v25 = vadd.f32 %v11341_v29, %v4933_v32  ;;  %v5030_v19 = vadd.f32 %v11363_v41, %v4941_v27 }
 0xb72   : > { %v11433_v61 = vpop.f32.mrf.mxu0 }
 0xb73   : > { %v11436_v56 = vpop.f32.mrf.mxu1 }
 0xb75   : > { %5326 = vmatmul.f32.gmra.mxu0 %v5012_v5  ;;  %v5123_v5 = vpop.f32.mrf.mxu2 }
 0xb76   : > { %5445 = vmatmul.f32.gmra.mxu1 %v5195_v62  ;;  %v5119_v62 = vadd.f32 %v5118_v30, %v10860_v1  ;;  %v5212_v29 = vpop.f32.mrf.mxu3  ;;  %v5124_v30 = vadd.f32 %v5123_v5, %v10860_v1 }
 0xb78   : > { %v5208_v59 = vadd.f32 %v5207_v28, %v5119_v62  ;;  %v5213_v28 = vadd.f32 %v5212_v29, %v5124_v30 }
 0xb7a   : > { %v11441_v49 = vpop.f32.mrf.mxu0 }
 0xb7b   : > { %v11444_v11 = vpop.f32.mrf.mxu1 }
 0xb7d   : > { %5329 = vmatmul.f32.gmra.mxu0 %v5015_v17  ;;  %v5121_v17 = vadd.f32 %v5120_v53, %v10860_v1  ;;  %v5032_v53 = vadd.f32 %v11372_v33, %v4943_v35  ;;  %v4948_v33 = vadd.f32 %v11385_v14, %v10855_v43 }
 0xb7e   : > { %5448 = vmatmul.f32.gmra.mxu1 %v5198_v16  ;;  %v5125_v16 = vpop.f32.mrf.mxu2 }
 0xb7f   : > { %v5210_v46 = vadd.f32 %v5209_v12, %v5121_v17 }
 0xb82   : > { %v11449_v2 = vpop.f32.mrf.mxu0 }
 0xb83   : > { %v11452_v37 = vpop.f32.mrf.mxu1 }
 0xb85   : > { %5332 = vmatmul.f32.gmra.mxu0 %v5017_v57  ;;  %v5214_v57 = vpop.f32.mrf.mxu3 }
 0xb86   : > { %5451 = vmatmul.f32.gmra.mxu1 %v5200_v10  ;;  %v5128_v50 = vpop.f32.mrf.mxu2 }
 0xb87   : > { %v5129_v12 = vadd.f32 %v5128_v50, %v10860_v1 }
 0xb8a   : > { %v11457_v23 = vpop.f32.mrf.mxu0 }
 0xb8b   : > { %v11460_v4 = vpop.f32.mrf.mxu1 }
 0xb8d   : > { %5335 = vmatmul.f32.gmra.mxu0 %v5020_v34  ;;  %v5126_v34 = vadd.f32 %v5125_v16, %v10860_v1 }
 0xb8e   : > { %5454 = vmatmul.f32.gmra.mxu1 %v5203_v22  ;;  %v5217_v22 = vpop.f32.mrf.mxu3  ;;  %v5130_v41 = vpop.f32.mrf.mxu2 }
 0xb8f   : > { %v5215_v54 = vadd.f32 %v5214_v57, %v5126_v34  ;;  %v5218_v62 = vadd.f32 %v5217_v22, %v5129_v12 }
 0xb92   : > { %v11465_v38 = vpop.f32.mrf.mxu0 }
 0xb93   : > { %v11468_v39 = vpop.f32.mrf.mxu1 }
 0xb95   : > { %5338 = vmatmul.f32.gmra.mxu0 %v5022_v25  ;;  %v4946_v25 = vadd.f32 %v11377_v24, %v10855_v43  ;;  %v5037_v24 = vadd.f32 %v11388_v31, %v4948_v33 }
 0xb96   : > { %5457 = vmatmul.f32.gmra.mxu1 %v5205_v7  ;;  %v5219_v40 = vpop.f32.mrf.mxu3 }
 0xb97   : > { %v5035_v51 = vadd.f32 %v11380_v47, %v4946_v25  ;;  %v4951_v47 = vadd.f32 %v11393_v52, %v10855_v43  ;;  %v4953_v52 = vadd.f32 %v11401_v8, %v10855_v43 }
 0xb99   : > { %v5040_v30 = vadd.f32 %v11396_v0, %v4951_v47 }
 0xb9a   : > { %v11473_v45 = vpop.f32.mrf.mxu0 }
 0xb9b   : > { %v11476_v21 = vpop.f32.mrf.mxu1 }
 0xb9d   : > { %5341 = vmatmul.f32.gmra.mxu0 %v5025_v20  ;;  %v5133_v20 = vpop.f32.mrf.mxu2 }
 0xb9e   : > { %5460 = vmatmul.f32.gmra.mxu1 %v5208_v59  ;;  %v5131_v59 = vadd.f32 %v5130_v41, %v10860_v1  ;;  %v5222_v16 = vpop.f32.mrf.mxu3 }
 0xba0   : > { %v5220_v17 = vadd.f32 %v5219_v40, %v5131_v59  ;;  %v4956_v40 = vadd.f32 %v11409_v60, %v10855_v43 }
 0xba2   : > { %v11481_v58 = vpop.f32.mrf.mxu0 }
 0xba3   : > { %v11484_v63 = vpop.f32.mrf.mxu1 }
 0xba5   : > { %5344 = vmatmul.f32.gmra.mxu0 %v5027_v26  ;;  %v11516_v26 = vld [vmem:[#allocation14] ss:$0 sm:$0xff]  ;;  %v5135_v14 = vpop.f32.mrf.mxu2 }
 0xba6   : > { %5463 = vmatmul.f32.gmra.mxu1 %v5210_v46  ;;  %v5134_v46 = vadd.f32 %v5133_v20, %v10860_v1  ;;  %v5289_v27 = vadd.f32 %v11516_v26, %v11457_v23  ;;  %v5224_v34 = vpop.f32.mrf.mxu3  ;;  %v5136_v0 = vadd.f32 %v5135_v14, %v10860_v1  ;;  %v5292_v22 = vadd.f32 %v11516_v26, %v11465_v38 }
 0xba7   : > { %v5298_v47 = vadd.f32 %v11516_v26, %v11481_v58 }
 0xba8   : > { %v5223_v50 = vadd.f32 %v5222_v16, %v5134_v46  ;;  %v5225_v12 = vadd.f32 %v5224_v34, %v5136_v0  ;;  %v4958_v16 = vadd.f32 %v11417_v18, %v10855_v43 }
 0xbaa   : > { %v11489_v10 = vpop.f32.mrf.mxu0  ;;  %v5047_v14 = vadd.f32 %v11420_v42, %v4958_v16 }
 0xbab   : > { %v11492_v3 = vpop.f32.mrf.mxu1  ;;  %v5301_v42 = vadd.f32 %v11516_v26, %v11489_v10 }
 0xbad   : > { %5347 = vmatmul.f32.gmra.mxu0 %v5030_v19  ;;  %v11579_v0 = vadd.f32 %v11476_v21, %v5301_v42 }
 0xbae   : > { %5466 = vmatmul.f32.gmra.mxu1 %v5213_v28  ;;  %v11524_v28 = vadd.f32 %v11444_v11, %v5289_v27  ;;  %v5042_v11 = vadd.f32 %v11404_v9, %v4953_v52 }
 0xbb2   : > { %v11497_v55 = vpop.f32.mrf.mxu0 }
 0xbb3   : > { %v11500_v32 = vpop.f32.mrf.mxu1  ;;  %v5304_v10 = vadd.f32 %v11516_v26, %v11497_v55 }
 0xbb5   : > { %5350 = vmatmul.f32.gmra.mxu0 %v5032_v53  ;;  %v11592_v21 = vadd.f32 %v11484_v63, %v5304_v10 }
 0xbb6   : > { %5469 = vmatmul.f32.gmra.mxu1 %v5215_v54  ;;  %v5138_v54 = vpop.f32.mrf.mxu2 }
 0xbb7   : > { %v5139_v9 = vadd.f32 %v5138_v54, %v10860_v1 }
 0xbba   : > { %v11505_v7 = vpop.f32.mrf.mxu0 }
 0xbbb   : > { %v5425_v5 = vpop.f32.mrf.mxu1 }
 0xbbd   : > { %5353 = vmatmul.f32.gmra.mxu0 %v5035_v51  ;;  %v11538_v51 = vadd.f32 %v11452_v37, %v5292_v22  ;;  %v5045_v37 = vadd.f32 %v11412_v15, %v4956_v40 }
 0xbbe   : > { %5472 = vmatmul.f32.gmra.mxu1 %v5218_v62  ;;  %v5295_v62 = vadd.f32 %v11516_v26, %v11473_v45 }
 0xbc2   : > { %v11511_v29 = vpop.f32.mrf.mxu0 }
 0xbc3   : > { %v5428_v48 = vpop.f32.mrf.mxu1 }
 0xbc5   : > { %5356 = vmatmul.f32.gmra.mxu0 %v5037_v24 }
 0xbc6   : > { %5475 = vmatmul.f32.gmra.mxu1 %v5220_v17  ;;  %v11552_v17 = vadd.f32 %v11460_v4, %v5295_v62 }
 0xbca   : > { %v5312_v57 = vpop.f32.mrf.mxu0 }
 0xbcb   : > { %v5313_v31 = vadd.f32 %v11516_v26, %v5312_v57  ;;  %v5431_v19 = vpop.f32.mrf.mxu1 }
 0xbcd   : > { %v11526_v35 = vadd.f32 %v5425_v5, %v5313_v31  ;;  %5359 = vmatmul.f32.gmra.mxu0 %v5040_v30  ;;  %v5227_v5 = vpop.f32.mrf.mxu3  ;;  %v11566_v31 = vadd.f32 %v11468_v39, %v5298_v47 }
 0xbce   : > { %5478 = vmatmul.f32.gmra.mxu1 %v5223_v50  ;;  %v5228_v24 = vadd.f32 %v5227_v5, %v5139_v9  ;;  %v12532_v9 = vld [vmem:[#allocation77_spill] sm:$0xff] }
 0xbcf   : > { %v5493_v23 = vmax.f32 %v11524_v28, %v11526_v35 }
 0xbd2   : > { %v5315_v53 = vpop.f32.mrf.mxu0 }
 0xbd3   : > { %v5316_v41 = vadd.f32 %v11516_v26, %v5315_v53  ;;  %v5434_v25 = vpop.f32.mrf.mxu1 }
 0xbd5   : > { %v11540_v8 = vadd.f32 %v5428_v48, %v5316_v41  ;;  %5362 = vmatmul.f32.gmra.mxu0 %v5042_v11  ;;  %v5140_v48 = vpop.f32.mrf.mxu2  ;;  %v5229_v4 = vpop.f32.mrf.mxu3 }
 0xbd6   : > { %5481 = vmatmul.f32.gmra.mxu1 %v5225_v12  ;;  %v5141_v15 = vadd.f32 %v5140_v48, %v10860_v1 }
 0xbd7   : > { %v5494_v38 = vmax.f32 %v11538_v51, %v11540_v8 }
 0xbd8   : > { %v5230_v30 = vadd.f32 %v5229_v4, %v5141_v15 }
 0xbda   : > { %v5318_v33 = vpop.f32.mrf.mxu0 }
 0xbdb   : > { %v5319_v20 = vadd.f32 %v11516_v26, %v5318_v33  ;;  %v5437_v59 = vpop.f32.mrf.mxu1 }
 0xbdd   : > { %v11554_v60 = vadd.f32 %v5431_v19, %v5319_v20  ;;  %5365 = vmatmul.f32.gmra.mxu0 %v5045_v37  ;;  %v4961_v19 = vadd.f32 %v11425_v44, %v10855_v43  ;;  %v4963_v44 = vadd.f32 %v11433_v61, %v10855_v43 }
 0xbde   : > { %5484 = vmatmul.f32.gmra.mxu1 %v5228_v24 }
 0xbdf   : > { %v5495_v45 = vmax.f32 %v11552_v17, %v11554_v60  ;;  %v5050_v52 = vadd.f32 %v11428_v36, %v4961_v19  ;;  %v5052_v36 = vadd.f32 %v11436_v56, %v4963_v44  ;;  %v5066_v56 = vadd.f32 %v11108_v13, %v10860_v1 }
 0xbe1   : > { %v5155_v63 = vadd.f32 %v11110_v6, %v5066_v56 }
 0xbe2   : > { %v5321_v46 = vpop.f32.mrf.mxu0 }
 0xbe3   : > { %v5322_v27 = vadd.f32 %v11516_v26, %v5321_v46  ;;  %v5440_v57 = vpop.f32.mrf.mxu1 }
 0xbe5   : > { %v11568_v18 = vadd.f32 %v5434_v25, %v5322_v27  ;;  %5368 = vmatmul.f32.gmra.mxu0 %v5047_v14 }
 0xbe6   : > { %5487 = vmatmul.f32.gmra.mxu1 %v5230_v30 }
 0xbe7   : > { %v5496_v58 = vmax.f32 %v11566_v31, %v11568_v18  ;;  %v5307_v31 = vadd.f32 %v11516_v26, %v11505_v7 }
 0xbea   : > { %v5324_v50 = vpop.f32.mrf.mxu0 }
 0xbeb   : > { %v5325_v34 = vadd.f32 %v11516_v26, %v5324_v50  ;;  %v5443_v39 = vpop.f32.mrf.mxu1 }
 0xbed   : > { %v11581_v22 = vadd.f32 %v5437_v59, %v5325_v34  ;;  %5371 = vmatmul.f32.gmra.mxu0 %v5050_v52 }
 0xbef   : > { %v5497_v53 = vmax.f32 %v11579_v0, %v11581_v22  ;;  %v5420_v22 = vadd.f32 %v11492_v3, %v5307_v31 }
 0xbf2   : > { %v5327_v11 = vpop.f32.mrf.mxu0 }
 0xbf3   : > { %v5328_v54 = vadd.f32 %v11516_v26, %v5327_v11  ;;  %v5446_v41 = vpop.f32.mrf.mxu1 }
 0xbf5   : > { %v11594_v25 = vadd.f32 %v5440_v57, %v5328_v54  ;;  %5374 = vmatmul.f32.gmra.mxu0 %v5052_v36 }
 0xbf7   : > { %v5498_v43 = vmax.f32 %v11592_v21, %v11594_v25  ;;  %v5286_v21 = vadd.f32 %v11516_v26, %v11449_v2 }
 0xbfa   : > { %v5330_v61 = vpop.f32.mrf.mxu0 }
 0xbfb   : > { %v5331_v12 = vadd.f32 %v11516_v26, %v5330_v61  ;;  %v5449_v40 = vpop.f32.mrf.mxu1 }
 0xbfd   : > { %v11599_v55 = vadd.f32 %v5443_v39, %v5331_v12  ;;  %5394 = vmatmul.f32.vlgmr.msra.gmra.mxu0 %v12532_v9 }
 0xc02   : > { %v5333_v5 = vpop.f32.mrf.mxu0 }
 0xc03   : > { %v5334_v62 = vadd.f32 %v11516_v26, %v5333_v5  ;;  %v5452_v33 = vpop.f32.mrf.mxu1 }
 0xc05   : > { %v11606_v37 = vadd.f32 %v5446_v41, %v5334_v62  ;;  %5397 = vmatmul.f32.gmra.mxu0 %v5155_v63 }
 0xc0a   : > { %v5336_v20 = vpop.f32.mrf.mxu0 }
 0xc0b   : > { %v5337_v59 = vadd.f32 %v11516_v26, %v5336_v20  ;;  %v5455_v24 = vpop.f32.mrf.mxu1 }
 0xc0d   : > { %v5450_v48 = vadd.f32 %v5449_v40, %v5337_v59 }
 0xc12   : > { %v5339_v16 = vpop.f32.mrf.mxu0 }
 0xc13   : > { %v5340_v15 = vadd.f32 %v11516_v26, %v5339_v16  ;;  %v5458_v47 = vpop.f32.mrf.mxu1 }
 0xc15   : > { %v5453_v46 = vadd.f32 %v5452_v33, %v5340_v15 }
 0xc1a   : > { %v5342_v1 = vpop.f32.mrf.mxu0 }
 0xc1b   : > { %v5343_v13 = vadd.f32 %v11516_v26, %v5342_v1  ;;  %v5461_v6 = vpop.f32.mrf.mxu1 }
 0xc1d   : > { %v5456_v14 = vadd.f32 %v5455_v24, %v5343_v13 }
 0xc22   : > { %v5345_v4 = vpop.f32.mrf.mxu0 }
 0xc23   : > { %v5346_v27 = vadd.f32 %v11516_v26, %v5345_v4  ;;  %v5464_v57 = vpop.f32.mrf.mxu1 }
 0xc25   : > { %v5459_v30 = vadd.f32 %v5458_v47, %v5346_v27 }
 0xc2a   : > { %v5348_v19 = vpop.f32.mrf.mxu0 }
 0xc2b   : > { %v5349_v42 = vadd.f32 %v11516_v26, %v5348_v19  ;;  %v5467_v52 = vpop.f32.mrf.mxu1 }
 0xc2d   : > { %v5462_v50 = vadd.f32 %v5461_v6, %v5349_v42 }
 0xc32   : > { %v5351_v34 = vpop.f32.mrf.mxu0 }
 0xc33   : > { %v5352_v39 = vadd.f32 %v11516_v26, %v5351_v34  ;;  %v5470_v10 = vpop.f32.mrf.mxu1 }
 0xc35   : > { %v5465_v44 = vadd.f32 %v5464_v57, %v5352_v39  ;;  %v5522_v39 = vld [vmem:[%s12317_s8 + $0x38] sm:$0xff] }
 0xc3a   : > { %v5354_v11 = vpop.f32.mrf.mxu0 }
 0xc3b   : > { %v5355_v36 = vadd.f32 %v11516_v26, %v5354_v11  ;;  %v5473_v61 = vpop.f32.mrf.mxu1  ;;  %v5519_v11 = vld [vmem:[%s12317_s8 + $0x20] sm:$0xff] }
 0xc3d   : > { %v5468_v54 = vadd.f32 %v5467_v52, %v5355_v36  ;;  %v5520_v36 = vld [vmem:[%s12317_s8 + $0x28] sm:$0xff] }
 0xc3f   : > { %v5499_v41 = vmax.f32 %v11599_v55, %v5468_v54 }
 0xc42   : > { %v5357_v12 = vpop.f32.mrf.mxu0 }
 0xc43   : > { %v5476_v56 = vpop.f32.mrf.mxu1  ;;  %v5358_v42 = vadd.f32 %v11516_v26, %v5357_v12 }
 0xc45   : > { %v5471_v25 = vadd.f32 %v5470_v10, %v5358_v42  ;;  %v5518_v10 = vld [vmem:[%s12317_s8 + $0x18] sm:$0xff] }
 0xc4a   : > { %v5360_v40 = vpop.f32.mrf.mxu0 }
 0xc4b   : > { %v5361_v9 = vadd.f32 %v11516_v26, %v5360_v40  ;;  %v5479_v24 = vpop.f32.mrf.mxu1 }
 0xc4d   : > { %v5474_v5 = vadd.f32 %v5473_v61, %v5361_v9 }
 0xc4f   : > { %v5501_v63 = vmax.f32 %v5450_v48, %v5474_v5 }
 0xc51   : > { %v11620_v62 = vmax.f32 %v5493_v23, %v5501_v63 }
 0xc52   : > { %v5363_v33 = vpop.f32.mrf.mxu0 }
 0xc53   : > { %v5364_v20 = vadd.f32 %v11516_v26, %v5363_v33  ;;  %v5482_v13 = vpop.f32.mrf.mxu1 }
 0xc55   : > { %v5477_v59 = vadd.f32 %v5476_v56, %v5364_v20 }
 0xc57   : > { %v5502_v16 = vmax.f32 %v5453_v46, %v5477_v59 }
 0xc59   : > { %v11626_v55 = vmax.f32 %v5494_v38, %v5502_v16 }
 0xc5a   : > { %v5366_v15 = vpop.f32.mrf.mxu0 }
 0xc5b   : > { %v5367_v47 = vadd.f32 %v11516_v26, %v5366_v15  ;;  %v5485_v8 = vpop.f32.mrf.mxu1 }
 0xc5d   : > { %v5480_v48 = vadd.f32 %v5479_v24, %v5367_v47 }
 0xc5f   : > { %v5503_v1 = vmax.f32 %v5456_v14, %v5480_v48 }
 0xc61   : > { %v11632_v28 = vmax.f32 %v5495_v45, %v5503_v1 }
 0xc62   : > { %v5369_v35 = vpop.f32.mrf.mxu0 }
 0xc63   : > { %v5370_v23 = vadd.f32 %v11516_v26, %v5369_v35  ;;  %v5488_v57 = vpop.f32.mrf.mxu1 }
 0xc65   : > { %v5483_v46 = vadd.f32 %v5482_v13, %v5370_v23 }
 0xc67   : > { %v5504_v6 = vmax.f32 %v5459_v30, %v5483_v46 }
 0xc69   : > { %v11638_v51 = vmax.f32 %v5496_v58, %v5504_v6  ;;  %v5283_v58 = vadd.f32 %v11516_v26, %v11441_v49  ;;  %v5310_v49 = vadd.f32 %v11516_v26, %v11511_v29  ;;  %v5500_v29 = vmax.f32 %v11606_v37, %v5471_v25  ;;  %v5516_v37 = vld [vmem:[%s12317_s8 + $0x8] sm:$0xff] }
 0xc6a   : > { %v5372_v38 = vpop.f32.mrf.mxu0 }
 0xc6b   : > { %v5373_v14 = vadd.f32 %v11516_v26, %v5372_v38 }
 0xc6d   : > { %v5486_v4 = vadd.f32 %v5485_v8, %v5373_v14 }
 0xc6f   : > { %v5505_v27 = vmax.f32 %v5462_v50, %v5486_v4  ;;  %v5423_v50 = vadd.f32 %v11500_v32, %v5310_v49  ;;  %v5521_v32 = vld [vmem:[%s12317_s8 + $0x30] sm:$0xff] }
 0xc71   : > { %v11644_v17 = vmax.f32 %v5497_v53, %v5505_v27 }
 0xc72   : > { %v5375_v60 = vpop.f32.mrf.mxu0 }
 0xc73   : > { %v5376_v45 = vadd.f32 %v11516_v26, %v5375_v60  ;;  %v5515_v26 = vld [vmem:[%s12317_s8] sm:$0xff] }
 0xc75   : > { %v5489_v30 = vadd.f32 %v5488_v57, %v5376_v45 }
 0xc77   : > { %v5506_v18 = vmax.f32 %v5465_v44, %v5489_v30  ;;  %v5517_v44 = vld [vmem:[%s12317_s8 + $0x10] sm:$0xff] }
 0xc79   : > { %v11654_v19 = vmax.f32 %v5498_v43, %v5506_v18 }
 0xc7a   : > { %v5395_v0 = vpop.f32.mrf.mxu0 }
 0xc7b   : > { %v5396_v53 = vadd.f32 %v5395_v0, %v5283_v58  ;;  %5555 = vmatpush.msrb.mxu2 %v11654_v19  ;;  %7916 = vmatpush.msra.mxu3 %v11654_v19 }
 0xc7d   : > { %v5491_v7 = vmax.f32 %v5396_v53, %v5420_v22  ;;  %5556 = vmatpush.msrb.mxu2 %v11644_v17  ;;  %7917 = vmatpush.msra.mxu3 %v11644_v17 }
 0xc7f   : > { %5557 = vmatpush.msrb.mxu2 %v11638_v51  ;;  %7918 = vmatpush.msra.mxu3 %v11638_v51  ;;  %v5507_v3 = vmax.f32 %v5491_v7, %v5499_v41 }
 0xc81   : > { %5558 = vmatpush.msrb.mxu2 %v11632_v28  ;;  %7919 = vmatpush.msra.mxu3 %v11632_v28 }
 0xc82   : > { %v5398_v43 = vpop.f32.mrf.mxu0 }
 0xc83   : > { %v5399_v52 = vadd.f32 %v5398_v43, %v5286_v21  ;;  %5559 = vmatpush.msrb.mxu2 %v11626_v55  ;;  %7920 = vmatpush.msra.mxu3 %v11626_v55 }
 0xc85   : > { %v5492_v34 = vmax.f32 %v5399_v52, %v5423_v50  ;;  %5560 = vmatpush.msrb.mxu2 %v11620_v62  ;;  %7921 = vmatpush.msra.mxu3 %v11620_v62 }
 0xc87   : > { %v5508_v2 = vmax.f32 %v5492_v34, %v5500_v29 }
 0xc89   : > { %5561 = vmatpush.msrb.mxu2 %v5508_v2  ;;  %7922 = vmatpush.msra.mxu3 %v5508_v2 }
 0xc8b   : > { %5562 = vmatpush.msrb.mxu2 %v5507_v3  ;;  %7923 = vmatpush.msra.mxu3 %v5507_v3 }
 0xc8c   : > { %7623 = vmatmul.msk.f32.vlgmr.msrb.gmra.mxu2 %vm3216_vm1, %v5515_v26  ;;  %7629 = vmatmul.msk.f32.vlgmr.msra.gmra.mxu3 %vm3216_vm1, %v5521_v32 }
 0xc94   : > { %7624 = vmatmul.msk.f32.gmra.mxu2 %vm3216_vm1, %v5516_v37  ;;  %7630 = vmatmul.msk.f32.gmra.mxu3 %vm3216_vm1, %v5522_v39 }
 0xc9c   : > { %7625 = vmatmul.msk.f32.gmra.mxu2 %vm3216_vm1, %v5517_v44 }
 0xca4   : > { %7626 = vmatmul.msk.f32.gmra.mxu2 %vm3216_vm1, %v5518_v10 }
 0xcac   : > { %7627 = vmatmul.msk.f32.gmra.mxu2 %vm3216_vm1, %v5519_v11 }
 0xcb4   : > { %7628 = vmatmul.msk.f32.gmra.mxu2 %vm3216_vm1, %v5520_v36 }
 0xd0f   : > { %v5564_v54 = vpop.f32.mrf.mxu2  ;;  %v5582_v47 = vpop.f32.mrf.mxu3 }
 0xd10   : > { %v5565_v41 = vadd.f32 %v5564_v54, %v5507_v3  ;;  %v5583_v48 = vadd.f32 %v5582_v47, %v11644_v17 }
 0xd12   : > { %v5589_v61 = vsel %vm5588_vm5, %v5565_v41, 0.0  ;;  %v5607_v35 = vsel %vm5588_vm5, %v5583_v48, 0.0 }
 0xd13   : > { %5590 = vadd.xlane.f32.xlu1 %v5589_v61  ;;  %v5796_v61 = vld [vmem:[#allocation11 + $0x30] sm:$0xff] }
 0xd14   : > { %5839 = vmatpush.msrb.mxu3 %v5796_v61 }
 0xd17   : > { %v5567_v12 = vpop.f32.mrf.mxu2  ;;  %v5585_v60 = vpop.f32.mrf.mxu3 }
 0xd18   : > { %v5568_v40 = vadd.f32 %v5567_v12, %v5508_v2  ;;  %v11730_v30 = vadd.f32 %v5585_v60, %v11654_v19  ;;  %v5797_v12 = vld [vmem:[#allocation11 + $0x38] sm:$0xff] }
 0xd19   : > { %5880 = vmatpush.msra.mxu2 %v5797_v12 }
 0xd1a   : > { %v5592_v9 = vsel %vm5588_vm5, %v5568_v40, 0.0  ;;  %v5610_v0 = vsel %vm5588_vm5, %v11730_v30, 0.0 }
 0xd1b   : > { %5593 = vadd.xlane.f32.xlu2 %v5592_v9  ;;  %v5795_v9 = vld [vmem:[#allocation11 + $0x28] sm:$0xff] }
 0xd1c   : > { %5881 = vmatpush.msra.mxu2 %v5795_v9 }
 0xd1f   : > { %v5570_v56 = vpop.f32.mrf.mxu2 }
 0xd20   : > { %v5571_v5 = vadd.f32 %v5570_v56, %v11620_v62  ;;  %v5792_v56 = vld [vmem:[#allocation11 + $0x10] sm:$0xff] }
 0xd22   : > { %v5595_v63 = vsel %vm5588_vm5, %v5571_v5, 0.0 }
 0xd23   : > { %5596 = vadd.xlane.f32.xlu0 %v5595_v63 }
 0xd27   : > { %v5573_v33 = vpop.f32.mrf.mxu2 }
 0xd28   : > { %v5574_v20 = vadd.f32 %v5573_v33, %v11626_v55  ;;  %v8506_v55 = vmov 32.0   ;;  %v5790_v33 = vld [vmem:[#allocation11] sm:$0xff] }
 0xd29   : > { %8165 = vrcp.f32 %v8506_v55 }
 0xd2a   : > { %v5598_v59 = vsel %vm5588_vm5, %v5574_v20, 0.0 }
 0xd2b   : > { %5599 = vadd.xlane.f32.xlu1 %v5598_v59 }
 0xd2f   : > { %v5576_v24 = vpop.f32.mrf.mxu2  ;;  %v8166_v23 = vpop.eup %8165 }
 0xd30   : > { %v5577_v16 = vadd.f32 %v5576_v24, %v11632_v28  ;;  %v5614_v46 = vmul.f32 32.0, %v8166_v23  ;;  %vm5618_vm1 = vweird.f32 %v8166_v23 }
 0xd32   : > { %v5601_v15 = vsel %vm5588_vm5, %v5577_v16, 0.0  ;;  %v5615_v28 = vsub.f32 1.0, %v5614_v46 }
 0xd33   : > { %5602 = vadd.xlane.f32.xlu2 %v5601_v15 }
 0xd34   : > { %v5616_v6 = vmul.f32 %v8166_v23, %v5615_v28 }
 0xd36   : > { %v5617_v8 = vadd.f32 %v8166_v23, %v5616_v6 }
 0xd37   : > { %v5579_v1 = vpop.f32.mrf.mxu2 }
 0xd38   : > { %v5580_v62 = vadd.f32 %v5579_v1, %v11638_v51  ;;  %v11720_v38 = vsel %vm5618_vm1, %v8166_v23, %v5617_v8 }
 0xd3a   : > { %v5604_v13 = vsel %vm5588_vm5, %v5580_v62, 0.0 }
 0xd3b   : > { %5605 = vadd.xlane.f32.xlu0 %v5604_v13  ;;  %5608 = vadd.xlane.f32.xlu2 %v5607_v35 }
 0xd86   : > { %v5591_v14 = vpop.xlane.xlu1 %5590 }
 0xd87   : > { %v5620_v4 = vmul.f32 %v11720_v38, %v5591_v14 }
 0xd89   : > { %v11723_v51 = vsub.f32 %v5565_v41, %v5620_v4 }
 0xd8b   : > { %v5636_v27 = vmul.f32 %v11723_v51, %v11723_v51 }
 0xd8d   : > { %v5644_v17 = vsel %vm5588_vm5, %v5636_v27, 0.0 }
 0xd8e   : > { %v5594_v45 = vpop.xlane.xlu2 %5593  ;;  %5645 = vadd.xlane.f32.xlu1 %v5644_v17 }
 0xd8f   : > { %v5621_v57 = vmul.f32 %v11720_v38, %v5594_v45  ;;  %v11779_v45 = vld [vmem:[#allocation14 + $0x1] ss:$0 sm:$0xff] }
 0xd91   : > { %v11732_v31 = vsub.f32 %v5568_v40, %v5621_v57  ;;  %v5794_v40 = vld [vmem:[#allocation11 + $0x20] sm:$0xff] }
 0xd92   : > { %5840 = vmatpush.msrb.mxu3 %v5794_v40 }
 0xd93   : > { %v5637_v18 = vmul.f32 %v11732_v31, %v11732_v31 }
 0xd94   : > { %5841 = vmatpush.msrb.mxu3 %v5792_v56 }
 0xd95   : > { %v5647_v58 = vsel %vm5588_vm5, %v5637_v18, 0.0  ;;  %v11781_v18 = vld [vmem:[#allocation14 + $0x2] ss:$0 sm:$0xff] }
 0xd96   : > { %v5597_v22 = vpop.xlane.xlu0 %5596  ;;  %5648 = vadd.xlane.f32.xlu0 %v5647_v58  ;;  %5611 = vadd.xlane.f32.xlu1 %v5610_v0 }
 0xd97   : > { %v5622_v53 = vmul.f32 %v11720_v38, %v5597_v22  ;;  %5842 = vmatpush.msrb.mxu3 %v5790_v33 }
 0xd99   : > { %v11740_v42 = vsub.f32 %v5571_v5, %v5622_v53  ;;  %v5793_v5 = vld [vmem:[#allocation11 + $0x18] sm:$0xff] }
 0xd9a   : > { %5882 = vmatpush.msra.mxu2 %v5793_v5 }
 0xd9b   : > { %v5638_v19 = vmul.f32 %v11740_v42, %v11740_v42 }
 0xd9d   : > { %v5650_v7 = vsel %vm5588_vm5, %v5638_v19, 0.0 }
 0xd9e   : > { %5651 = vadd.xlane.f32.xlu2 %v5650_v7  ;;  %v5600_v49 = vpop.xlane.xlu1 %5599 }
 0xd9f   : > { %v5623_v3 = vmul.f32 %v11720_v38, %v5600_v49 }
 0xda1   : > { %v11746_v21 = vsub.f32 %v5574_v20, %v5623_v3  ;;  %v5791_v20 = vld [vmem:[#allocation11 + $0x8] sm:$0xff] }
 0xda2   : > { %5883 = vmatpush.msra.mxu2 %v5791_v20 }
 0xda3   : > { %v5639_v25 = vmul.f32 %v11746_v21, %v11746_v21 }
 0xda5   : > { %v5653_v43 = vsel %vm5588_vm5, %v5639_v25, 0.0 }
 0xda6   : > { %v5603_v50 = vpop.xlane.xlu2 %5602  ;;  %5654 = vadd.xlane.f32.xlu0 %v5653_v43 }
 0xda7   : > { %v5624_v52 = vmul.f32 %v11720_v38, %v5603_v50 }
 0xda9   : > { %v11752_v29 = vsub.f32 %v5577_v16, %v5624_v52 }
 0xdab   : > { %v5640_v34 = vmul.f32 %v11752_v29, %v11752_v29 }
 0xdad   : > { %v5656_v2 = vsel %vm5588_vm5, %v5640_v34, 0.0 }
 0xdae   : > { %v5606_v26 = vpop.xlane.xlu0 %5605  ;;  %v5609_v32 = vpop.xlane.xlu2 %5608  ;;  %5657 = vadd.xlane.f32.xlu1 %v5656_v2 }
 0xdaf   : > { %v5625_v37 = vmul.f32 %v11720_v38, %v5606_v26  ;;  %v5626_v39 = vmul.f32 %v11720_v38, %v5609_v32 }
 0xdb1   : > { %v11759_v44 = vsub.f32 %v5580_v62, %v5625_v37  ;;  %v11761_v10 = vsub.f32 %v5583_v48, %v5626_v39 }
 0xdb3   : > { %v5641_v11 = vmul.f32 %v11759_v44, %v11759_v44  ;;  %v5642_v36 = vmul.f32 %v11761_v10, %v11761_v10 }
 0xdb5   : > { %v5659_v54 = vsel %vm5588_vm5, %v5641_v11, 0.0  ;;  %v5662_v41 = vsel %vm5588_vm5, %v5642_v36, 0.0 }
 0xdb6   : > { %5660 = vadd.xlane.f32.xlu2 %v5659_v54  ;;  %5663 = vadd.xlane.f32.xlu0 %v5662_v41 }
 0xe01   : > { %v5646_v63 = vpop.xlane.xlu1 %5645 }
 0xe02   : > { %v5668_v59 = vmul.f32 %v5646_v63, %v11720_v38 }
 0xe04   : > { %v5676_v24 = vadd.f32 1e-05, %v5668_v59 }
 0xe06   : > { %8167 = vrsqrt.f32 %v5676_v24  ;;  %vm5690_vm7 = vweird.f32 %v5676_v24 }
 0xe09   : > { %v5649_v16 = vpop.xlane.xlu0 %5648  ;;  %v5612_v15 = vpop.xlane.xlu1 %5611 }
 0xe0a   : > { %v5669_v47 = vmul.f32 %v5649_v16, %v11720_v38  ;;  %v5627_v48 = vmul.f32 %v11720_v38, %v5612_v15 }
 0xe0c   : > { %v8168_v1 = vpop.eup %8167  ;;  %v5677_v62 = vadd.f32 1e-05, %v5669_v47  ;;  %v11773_v13 = vsub.f32 %v11730_v30, %v5627_v48 }
 0xe0d   : > { %v5685_v35 = vmul.f32 %v8168_v1, %v5676_v24  ;;  %vm5691_vm6 = vweird.f32 %v8168_v1 }
 0xe0e   : > { %8169 = vrsqrt.f32 %v5677_v62  ;;  %v5643_v55 = vmul.f32 %v11773_v13, %v11773_v13  ;;  %vm5692_vm8 = vmor %vm5690_vm7, %vm5691_vm6  ;;  %vm5700_vm10 = vweird.f32 %v5677_v62 }
 0xe0f   : > { %v5686_v23 = vmul.f32 %v8168_v1, %v5685_v35 }
 0xe10   : > { %v5665_v46 = vsel %vm5588_vm5, %v5643_v55, 0.0 }
 0xe11   : > { %v5687_v28 = vmul.f32 0.5, %v5686_v23  ;;  %v5652_v6 = vpop.xlane.xlu2 %5651  ;;  %5666 = vadd.xlane.f32.xlu1 %v5665_v46 }
 0xe12   : > { %v5670_v8 = vmul.f32 %v5652_v6, %v11720_v38 }
 0xe13   : > { %v5688_v14 = vsub.f32 1.5, %v5687_v28 }
 0xe14   : > { %v8170_v4 = vpop.eup %8169  ;;  %v5678_v27 = vadd.f32 1e-05, %v5670_v8 }
 0xe15   : > { %v5689_v17 = vmul.f32 %v8168_v1, %v5688_v14  ;;  %v5695_v60 = vmul.f32 %v8170_v4, %v5677_v62  ;;  %vm5701_vm9 = vweird.f32 %v8170_v4 }
 0xe16   : > { %8171 = vrsqrt.f32 %v5678_v27  ;;  %vm5702_vm11 = vmor %vm5700_vm10, %vm5701_vm9  ;;  %vm5710_vm13 = vweird.f32 %v5678_v27 }
 0xe17   : > { %v5693_v57 = vsel %vm5692_vm8, %v8168_v1, %v5689_v17  ;;  %v5696_v30 = vmul.f32 %v8170_v4, %v5695_v60 }
 0xe18   : > { %v5764_v58 = vmul.f32 %v5693_v57, %v11723_v51 }
 0xe19   : > { %v5697_v0 = vmul.f32 0.5, %v5696_v30  ;;  %v5655_v22 = vpop.xlane.xlu0 %5654 }
 0xe1a   : > { %v5773_v53 = vmul.f32 %v11779_v45, %v5764_v58  ;;  %v5671_v19 = vmul.f32 %v5655_v22, %v11720_v38 }
 0xe1b   : > { %v5698_v7 = vsub.f32 1.5, %v5697_v0 }
 0xe1c   : > { %v8172_v49 = vpop.eup %8171  ;;  %v5782_v3 = vadd.f32 %v11781_v18, %v5773_v53  ;;  %v5679_v25 = vadd.f32 1e-05, %v5671_v19 }
 0xe1d   : > { %v5699_v43 = vmul.f32 %v8170_v4, %v5698_v7  ;;  %v5705_v50 = vmul.f32 %v8172_v49, %v5678_v27  ;;  %vm5711_vm12 = vweird.f32 %v8172_v49 }
 0xe1e   : > { %8173 = vrsqrt.f32 %v5679_v25  ;;  %7631 = vmatmul.msk.f32.vlgmr.msrb.gmra.mxu3 %vm5588_vm5, %v5782_v3  ;;  %7639 = vmatmul.msk.f32.vlgmr.msra.gmra.mxu2 %vm5588_vm5, %v5782_v3  ;;  %vm5712_vm14 = vmor %vm5710_vm13, %vm5711_vm12  ;;  %vm5720_vm0 = vweird.f32 %v5679_v25 }
 0xe1f   : > { %v5703_v51 = vsel %vm5702_vm11, %v8170_v4, %v5699_v43  ;;  %v5706_v52 = vmul.f32 %v8172_v49, %v5705_v50 }
 0xe20   : > { %v5765_v34 = vmul.f32 %v5703_v51, %v11732_v31 }
 0xe21   : > { %v5707_v2 = vmul.f32 0.5, %v5706_v52  ;;  %v5658_v26 = vpop.xlane.xlu1 %5657 }
 0xe22   : > { %v5672_v32 = vmul.f32 %v5658_v26, %v11720_v38  ;;  %v5774_v37 = vmul.f32 %v11779_v45, %v5765_v34  ;;  %v5939_v26 = vld [vmem:[%s12319_s10 + $0xf0] sm:$0xff] }
 0xe23   : > { %v5708_v39 = vsub.f32 1.5, %v5707_v2  ;;  %v5923_v2 = vld [vmem:[%s12319_s10 + $0x70] sm:$0xff] }
 0xe24   : > { %v8174_v11 = vpop.eup %8173  ;;  %v5680_v36 = vadd.f32 1e-05, %v5672_v32  ;;  %v5783_v54 = vadd.f32 %v11781_v18, %v5774_v37  ;;  %v5922_v32 = vld [vmem:[%s12319_s10 + $0x68] sm:$0xff] }
 0xe25   : > { %v5709_v41 = vmul.f32 %v8172_v49, %v5708_v39  ;;  %v5715_v61 = vmul.f32 %v8174_v11, %v5679_v25  ;;  %vm5721_vm15 = vweird.f32 %v8174_v11  ;;  %v5938_v37 = vld [vmem:[%s12319_s10 + $0xe8] sm:$0xff]  ;;  %v5921_v39 = vld [vmem:[%s12319_s10 + $0x60] sm:$0xff] }
 0xe26   : > { %8175 = vrsqrt.f32 %v5680_v36  ;;  %7632 = vmatmul.msk.f32.gmra.mxu3 %vm5588_vm5, %v5783_v54  ;;  %7640 = vmatmul.msk.f32.gmra.mxu2 %vm5588_vm5, %v5783_v54  ;;  %vm5722_vm2 = vmor %vm5720_vm0, %vm5721_vm15  ;;  %vm5730_vm4 = vweird.f32 %v5680_v36  ;;  %v5936_v54 = vld [vmem:[%s12319_s10 + $0xd8] sm:$0xff] }
 0xe27   : > { %v5713_v31 = vsel %vm5712_vm14, %v8172_v49, %v5709_v41  ;;  %v5716_v12 = vmul.f32 %v8174_v11, %v5715_v61  ;;  %v5919_v41 = vld [vmem:[%s12319_s10 + $0x50] sm:$0xff] }
 0xe28   : > { %v5766_v40 = vmul.f32 %v5713_v31, %v11740_v42  ;;  %v5935_v61 = vld [vmem:[%s12319_s10 + $0xd0] sm:$0xff]  ;;  %v5918_v31 = vld [vmem:[%s12319_s10 + $0x48] sm:$0xff] }
 0xe29   : > { %v5717_v9 = vmul.f32 0.5, %v5716_v12  ;;  %v5661_v56 = vpop.xlane.xlu2 %5660  ;;  %v5664_v5 = vpop.xlane.xlu0 %5663  ;;  %v5934_v12 = vld [vmem:[%s12319_s10 + $0xc8] sm:$0xff] }
 0xe2a   : > { %v5673_v63 = vmul.f32 %v5661_v56, %v11720_v38  ;;  %v5674_v33 = vmul.f32 %v5664_v5, %v11720_v38  ;;  %v5775_v20 = vmul.f32 %v11779_v45, %v5766_v40  ;;  %v5917_v40 = vld [vmem:[%s12319_s10 + $0x40] sm:$0xff]  ;;  %v5916_v56 = vld [vmem:[%s12319_s10 + $0x38] sm:$0xff] }
 0xe2b   : > { %v5718_v59 = vsub.f32 1.5, %v5717_v9  ;;  %v5933_v9 = vld [vmem:[%s12319_s10 + $0xc0] sm:$0xff]  ;;  %v5932_v5 = vld [vmem:[%s12319_s10 + $0xb8] sm:$0xff] }
 0xe2c   : > { %v8176_v24 = vpop.eup %8175  ;;  %v5681_v16 = vadd.f32 1e-05, %v5673_v63  ;;  %v5682_v15 = vadd.f32 1e-05, %v5674_v33  ;;  %v5784_v47 = vadd.f32 %v11781_v18, %v5775_v20  ;;  %v5915_v63 = vld [vmem:[%s12319_s10 + $0x30] sm:$0xff]  ;;  %v5914_v20 = vld [vmem:[%s12319_s10 + $0x28] sm:$0xff] }
 0xe2d   : > { %v5719_v48 = vmul.f32 %v8174_v11, %v5718_v59  ;;  %v5725_v1 = vmul.f32 %v8176_v24, %v5680_v36  ;;  %vm5731_vm3 = vweird.f32 %v8176_v24  ;;  %v5920_v36 = vld [vmem:[%s12319_s10 + $0x58] sm:$0xff]  ;;  %v5931_v33 = vld [vmem:[%s12319_s10 + $0xb0] sm:$0xff]  ;;  %v5930_v59 = vld [vmem:[%s12319_s10 + $0xa8] sm:$0xff] }
 0xe2e   : > { %8177 = vrsqrt.f32 %v5681_v16  ;;  %7633 = vmatmul.msk.f32.gmra.mxu3 %vm5588_vm5, %v5784_v47  ;;  %7641 = vmatmul.msk.f32.gmra.mxu2 %vm5588_vm5, %v5784_v47  ;;  %vm5732_vm1 = vmor %vm5730_vm4, %vm5731_vm3  ;;  %vm5740_vm7 = vweird.f32 %v5681_v16  ;;  %vm5750_vm10 = vweird.f32 %v5682_v15  ;;  %v5912_v47 = vld [vmem:[%s12319_s10 + $0x18] sm:$0xff] }
 0xe2f   : > { %v5723_v42 = vsel %vm5722_vm2, %v8174_v11, %v5719_v48  ;;  %v5726_v62 = vmul.f32 %v8176_v24, %v5725_v1  ;;  %8179 = vrsqrt.f32 %v5682_v15  ;;  %v5937_v11 = vld [vmem:[%s12319_s10 + $0xe0] sm:$0xff]  ;;  %v5928_v48 = vld [vmem:[%s12319_s10 + $0x98] sm:$0xff] }
 0xe30   : > { %v5767_v35 = vmul.f32 %v5723_v42, %v11746_v21  ;;  %v5911_v42 = vld [vmem:[%s12319_s10 + $0x10] sm:$0xff] }
 0xe31   : > { %v5727_v55 = vmul.f32 0.5, %v5726_v62  ;;  %v5927_v62 = vld [vmem:[%s12319_s10 + $0x90] sm:$0xff] }
 0xe32   : > { %v5776_v23 = vmul.f32 %v11779_v45, %v5767_v35 }
 0xe33   : > { %v5728_v46 = vsub.f32 1.5, %v5727_v55  ;;  %v5910_v55 = vld [vmem:[%s12319_s10 + $0x8] sm:$0xff] }
 0xe34   : > { %v8178_v28 = vpop.eup %8177  ;;  %v5785_v6 = vadd.f32 %v11781_v18, %v5776_v23  ;;  %v5926_v23 = vld [vmem:[%s12319_s10 + $0x88] sm:$0xff] }
 0xe35   : > { %v8180_v8 = vpop.eup %8179  ;;  %v5729_v14 = vmul.f32 %v8176_v24, %v5728_v46  ;;  %v5735_v4 = vmul.f32 %v8178_v28, %v5681_v16  ;;  %vm5741_vm6 = vweird.f32 %v8178_v28  ;;  %v5929_v16 = vld [vmem:[%s12319_s10 + $0xa0] sm:$0xff] }
 0xe36   : > { %v5745_v27 = vmul.f32 %v8180_v8, %v5682_v15  ;;  %7634 = vmatmul.msk.f32.gmra.mxu3 %vm5588_vm5, %v5785_v6  ;;  %7642 = vmatmul.msk.f32.gmra.mxu2 %vm5588_vm5, %v5785_v6  ;;  %vm5751_vm8 = vweird.f32 %v8180_v8  ;;  %vm5742_vm9 = vmor %vm5740_vm7, %vm5741_vm6  ;;  %v5909_v46 = vld [vmem:[%s12319_s10] sm:$0xff] }
 0xe37   : > { %v5733_v17 = vsel %vm5732_vm1, %v8176_v24, %v5729_v14  ;;  %v5736_v21 = vmul.f32 %v8178_v28, %v5735_v4  ;;  %vm5752_vm11 = vmor %vm5750_vm10, %vm5751_vm8  ;;  %v5913_v24 = vld [vmem:[%s12319_s10 + $0x20] sm:$0xff] }
 0xe38   : > { %v5768_v60 = vmul.f32 %v5733_v17, %v11752_v29  ;;  %v5746_v57 = vmul.f32 %v8180_v8, %v5745_v27 }
 0xe39   : > { %v5737_v30 = vmul.f32 0.5, %v5736_v21 }
 0xe3a   : > { %v5747_v58 = vmul.f32 0.5, %v5746_v57  ;;  %v5777_v0 = vmul.f32 %v11779_v45, %v5768_v60 }
 0xe3b   : > { %v5738_v22 = vsub.f32 1.5, %v5737_v30 }
 0xe3c   : > { %v5748_v53 = vsub.f32 1.5, %v5747_v58  ;;  %v5786_v19 = vadd.f32 %v11781_v18, %v5777_v0  ;;  %v3739_v58 = vld [vmem:[#allocation12 + $0x5] ss:$8 sm:$0x3] }
 0xe3d   : > { %v5739_v7 = vmul.f32 %v8178_v28, %v5738_v22 }
 0xe3e   : > { %v5749_v49 = vmul.f32 %v8180_v8, %v5748_v53  ;;  %7635 = vmatmul.msk.f32.gmra.mxu3 %vm5588_vm5, %v5786_v19  ;;  %7643 = vmatmul.msk.f32.gmra.mxu2 %vm5588_vm5, %v5786_v19  ;;  %v11924_v53 = vperm.slane %v3739_v58, 0  ;;  %v11926_v19 = vperm.slane %v3739_v58, 1 }
 0xe3f   : > { %v5743_v29 = vsel %vm5742_vm9, %v8178_v28, %v5739_v7  ;;  %v5925_v28 = vld [vmem:[%s12319_s10 + $0x80] sm:$0xff] }
 0xe40   : > { %v5769_v3 = vmul.f32 %v5743_v29, %v11759_v44  ;;  %v5753_v25 = vsel %vm5752_vm11, %v8180_v8, %v5749_v49  ;;  %v5924_v44 = vld [vmem:[%s12319_s10 + $0x78] sm:$0xff] }
 0xe41   : > { %v5770_v50 = vmul.f32 %v5753_v25, %v11761_v10  ;;  %v5940_v10 = vld [vmem:[%s12319_s10 + $0xf8] sm:$0xff]  ;;  %5942 = vmatpush.msra.mxu3 %v5924_v44  ;;  %v6054_v44 = vld [vmem:[%s12533_s19 + $0x70] sm:$0xff] }
 0xe42   : > { %v5778_v43 = vmul.f32 %v11779_v45, %v5769_v3  ;;  %5983 = vmatpush.msrb.mxu2 %v5940_v10  ;;  %v6071_v10 = vld [vmem:[%s12533_s19 + $0xf8] sm:$0xff] }
 0xe43   : > { %v5779_v52 = vmul.f32 %v11779_v45, %v5770_v50  ;;  %5943 = vmatpush.msra.mxu3 %v5923_v2  ;;  %v6070_v2 = vld [vmem:[%s12533_s19 + $0xf0] sm:$0xff] }
 0xe44   : > { %v5787_v51 = vadd.f32 %v11781_v18, %v5778_v43  ;;  %5984 = vmatpush.msrb.mxu2 %v5939_v26  ;;  %v6053_v26 = vld [vmem:[%s12533_s19 + $0x68] sm:$0xff] }
 0xe45   : > { %v5788_v34 = vadd.f32 %v11781_v18, %v5779_v52  ;;  %5944 = vmatpush.msra.mxu3 %v5922_v32  ;;  %v6069_v32 = vld [vmem:[%s12533_s19 + $0xe8] sm:$0xff] }
 0xe46   : > { %7636 = vmatmul.msk.f32.gmra.mxu3 %vm5588_vm5, %v5787_v51  ;;  %7644 = vmatmul.msk.f32.gmra.mxu2 %vm5588_vm5, %v5787_v51 }
 0xe47   : > { %5985 = vmatpush.msrb.mxu2 %v5938_v37  ;;  %5945 = vmatpush.msra.mxu3 %v5921_v39  ;;  %v6052_v37 = vld [vmem:[%s12533_s19 + $0x60] sm:$0xff] }
 0xe48   : > { %v6068_v39 = vld [vmem:[%s12533_s19 + $0xe0] sm:$0xff] }
 0xe49   : > { %5986 = vmatpush.msrb.mxu2 %v5937_v11  ;;  %5946 = vmatpush.msra.mxu3 %v5920_v36 }
 0xe4b   : > { %5987 = vmatpush.msrb.mxu2 %v5936_v54  ;;  %5947 = vmatpush.msra.mxu3 %v5919_v41  ;;  %v6051_v54 = vld [vmem:[%s12533_s19 + $0x58] sm:$0xff] }
 0xe4c   : > { %v6067_v41 = vld [vmem:[%s12533_s19 + $0xd8] sm:$0xff] }
 0xe4d   : > { %5988 = vmatpush.msrb.mxu2 %v5935_v61  ;;  %5948 = vmatpush.msra.mxu3 %v5918_v31 }
 0xe4e   : > { %7637 = vmatmul.msk.f32.gmra.mxu3 %vm5588_vm5, %v5788_v34  ;;  %7645 = vmatmul.msk.f32.gmra.mxu2 %vm5588_vm5, %v5788_v34  ;;  %v6055_v34 = vld [vmem:[%s12533_s19 + $0x78] sm:$0xff] }
 0xe4f   : > { %5989 = vmatpush.msrb.mxu2 %v5934_v12  ;;  %5949 = vmatpush.msra.mxu3 %v5917_v40  ;;  %v6050_v12 = vld [vmem:[%s12533_s19 + $0x50] sm:$0xff] }
 0xe50   : > { %v6066_v40 = vld [vmem:[%s12533_s19 + $0xd0] sm:$0xff] }
 0xe51   : > { %5990 = vmatpush.msrb.mxu2 %v5933_v9  ;;  %5950 = vmatpush.msra.mxu3 %v5916_v56  ;;  %v6049_v9 = vld [vmem:[%s12533_s19 + $0x48] sm:$0xff] }
 0xe52   : > { %v6065_v56 = vld [vmem:[%s12533_s19 + $0xc8] sm:$0xff] }
 0xe53   : > { %5991 = vmatpush.msrb.mxu2 %v5932_v5  ;;  %5951 = vmatpush.msra.mxu3 %v5915_v63  ;;  %v6048_v5 = vld [vmem:[%s12533_s19 + $0x40] sm:$0xff] }
 0xe54   : > { %v6064_v63 = vld [vmem:[%s12533_s19 + $0xc0] sm:$0xff] }
 0xe55   : > { %5992 = vmatpush.msrb.mxu2 %v5931_v33  ;;  %5952 = vmatpush.msra.mxu3 %v5914_v20 }
 0xe57   : > { %5993 = vmatpush.msrb.mxu2 %v5930_v59  ;;  %5953 = vmatpush.msra.mxu3 %v5913_v24  ;;  %v6047_v59 = vld [vmem:[%s12533_s19 + $0x38] sm:$0xff] }
 0xe58   : > { %v6063_v24 = vld [vmem:[%s12533_s19 + $0xb8] sm:$0xff] }
 0xe59   : > { %5994 = vmatpush.msrb.mxu2 %v5929_v16  ;;  %5954 = vmatpush.msra.mxu3 %v5912_v47  ;;  %v6046_v16 = vld [vmem:[%s12533_s19 + $0x30] sm:$0xff] }
 0xe5b   : > { %5995 = vmatpush.msrb.mxu2 %v5928_v48  ;;  %5955 = vmatpush.msra.mxu3 %v5911_v42 }
 0xe5d   : > { %5996 = vmatpush.msrb.mxu2 %v5927_v62  ;;  %5956 = vmatpush.msra.mxu3 %v5910_v55 }
 0xe5f   : > { %5997 = vmatpush.msrb.mxu2 %v5926_v23  ;;  %5957 = vmatpush.msra.mxu3 %v5909_v46  ;;  %v6045_v23 = vld [vmem:[%s12533_s19 + $0x28] sm:$0xff]  ;;  %v6062_v46 = vld [vmem:[%s12533_s19 + $0xb0] sm:$0xff] }
 0xe61   : > { %5998 = vmatpush.msrb.mxu2 %v5925_v28  ;;  %6073 = vmatpush.msrb.mxu3 %v6055_v34  ;;  %v6044_v28 = vld [vmem:[%s12533_s19 + $0x20] sm:$0xff] }
 0xe63   : > { %6114 = vmatpush.msra.mxu2 %v6071_v10  ;;  %6074 = vmatpush.msrb.mxu3 %v6054_v44  ;;  %v6028_v10 = vld [vmem:[%s12534_s21 + $0x20] sm:$0xff] }
 0xe65   : > { %6115 = vmatpush.msra.mxu2 %v6070_v2  ;;  %6075 = vmatpush.msrb.mxu3 %v6053_v26  ;;  %v6029_v2 = vld [vmem:[%s12534_s21 + $0x28] sm:$0xff] }
 0xe67   : > { %6116 = vmatpush.msra.mxu2 %v6069_v32  ;;  %6076 = vmatpush.msrb.mxu3 %v6052_v37 }
 0xe69   : > { %6117 = vmatpush.msra.mxu2 %v6068_v39  ;;  %6077 = vmatpush.msrb.mxu3 %v6051_v54 }
 0xe6b   : > { %6118 = vmatpush.msra.mxu2 %v6067_v41  ;;  %6078 = vmatpush.msrb.mxu3 %v6050_v12  ;;  %v6032_v12 = vld [vmem:[%s12534_s21 + $0x40] sm:$0xff] }
 0xe6d   : > { %6119 = vmatpush.msra.mxu2 %v6066_v40  ;;  %6079 = vmatpush.msrb.mxu3 %v6049_v9  ;;  %v6033_v40 = vld [vmem:[%s12534_s21 + $0x48] sm:$0xff] }
 0xe6f   : > { %6120 = vmatpush.msra.mxu2 %v6065_v56  ;;  %6080 = vmatpush.msrb.mxu3 %v6048_v5 }
 0xe71   : > { %6121 = vmatpush.msra.mxu2 %v6064_v63  ;;  %6081 = vmatpush.msrb.mxu3 %v6047_v59 }
 0xe73   : > { %6122 = vmatpush.msra.mxu2 %v6063_v24  ;;  %6082 = vmatpush.msrb.mxu3 %v6046_v16 }
 0xe75   : > { %6083 = vmatpush.msrb.mxu3 %v6045_v23  ;;  %6123 = vmatpush.msra.mxu2 %v6062_v46 }
 0xe77   : > { %6084 = vmatpush.msrb.mxu3 %v6044_v28 }
 0xe84   : > { %v5667_v15 = vpop.xlane.xlu1 %5666 }
 0xe85   : > { %v5675_v1 = vmul.f32 %v5667_v15, %v11720_v38 }
 0xe87   : > { %v5683_v35 = vadd.f32 1e-05, %v5675_v1 }
 0xe89   : > { %8181 = vrsqrt.f32 %v5683_v35  ;;  %vm5760_vm13 = vweird.f32 %v5683_v35 }
 0xe8f   : > { %v8182_v6 = vpop.eup %8181 }
 0xe90   : > { %v5755_v8 = vmul.f32 %v8182_v6, %v5683_v35  ;;  %vm5761_vm12 = vweird.f32 %v8182_v6 }
 0xe91   : > { %vm5762_vm14 = vmor %vm5760_vm13, %vm5761_vm12 }
 0xe92   : > { %v5756_v14 = vmul.f32 %v8182_v6, %v5755_v8  ;;  %v6043_v8 = vld [vmem:[%s12533_s19 + $0x18] sm:$0xff] }
 0xe93   : > { %6085 = vmatpush.msrb.mxu3 %v6043_v8 }
 0xe94   : > { %v5757_v4 = vmul.f32 0.5, %v5756_v14  ;;  %v6060_v14 = vld [vmem:[%s12533_s19 + $0xa0] sm:$0xff] }
 0xe96   : > { %v5758_v27 = vsub.f32 1.5, %v5757_v4  ;;  %v6042_v4 = vld [vmem:[%s12533_s19 + $0x10] sm:$0xff] }
 0xe97   : > { %6086 = vmatpush.msrb.mxu3 %v6042_v4 }
 0xe98   : > { %v5759_v17 = vmul.f32 %v8182_v6, %v5758_v27  ;;  %v6059_v27 = vld [vmem:[%s12533_s19 + $0x98] sm:$0xff] }
 0xe9a   : > { %v5763_v21 = vsel %vm5762_vm14, %v8182_v6, %v5759_v17  ;;  %v6061_v6 = vld [vmem:[%s12533_s19 + $0xa8] sm:$0xff] }
 0xe9b   : > { %v5771_v60 = vmul.f32 %v5763_v21, %v11773_v13  ;;  %6124 = vmatpush.msra.mxu2 %v6061_v6  ;;  %v6041_v17 = vld [vmem:[%s12533_s19 + $0x8] sm:$0xff]  ;;  %v6058_v21 = vld [vmem:[%s12533_s19 + $0x90] sm:$0xff]  ;;  %v8114_v6 = vld [vmem:[#allocation14 + $0x4] ss:$0 sm:$0xff] }
 0xe9c   : > { %6087 = vmatpush.msrb.mxu3 %v6041_v17 }
 0xe9d   : > { %v5780_v57 = vmul.f32 %v11779_v45, %v5771_v60  ;;  %6125 = vmatpush.msra.mxu2 %v6060_v14  ;;  %v6040_v60 = vld [vmem:[%s12533_s19] sm:$0xff] }
 0xe9e   : > { %6088 = vmatpush.msrb.mxu3 %v6040_v60 }
 0xe9f   : > { %v5789_v30 = vadd.f32 %v11781_v18, %v5780_v57  ;;  %6126 = vmatpush.msra.mxu2 %v6059_v27  ;;  %v6057_v57 = vld [vmem:[%s12533_s19 + $0x88] sm:$0xff] }
 0xea1   : > { %v5844_v0 = vpop.f32.mrf.mxu3  ;;  %7638 = vmatmul.msk.f32.gmra.mxu3 %vm5588_vm5, %v5789_v30  ;;  %v5885_v22 = vpop.f32.mrf.mxu2  ;;  %7646 = vmatmul.msk.f32.gmra.mxu2 %vm5588_vm5, %v5789_v30  ;;  %v6056_v30 = vld [vmem:[%s12533_s19 + $0x80] sm:$0xff] }
 0xea2   : > { %v5845_v7 = vadd.f32 %v5844_v0, %v11924_v53  ;;  %v5886_v49 = vadd.f32 %v5885_v22, %v11926_v19  ;;  %6127 = vmatpush.msra.mxu2 %v6058_v21 }
 0xea4   : > { %6128 = vmatpush.msra.mxu2 %v6057_v57 }
 0xea6   : > { %6129 = vmatpush.msra.mxu2 %v6056_v30 }
 0xea9   : > { %v5847_v13 = vpop.f32.mrf.mxu3  ;;  %v5888_v29 = vpop.f32.mrf.mxu2  ;;  %5958 = vmatmul.f32.vlgmr.msra.gmra.mxu3 %v5845_v7  ;;  %5999 = vmatmul.f32.vlgmr.msrb.gmra.mxu2 %v5886_v49  ;;  %v12040_v49 = vld [vmem:[#allocation14 + $0x3] ss:$0 sm:$0xff] }
 0xeaa   : > { %v5848_v45 = vadd.f32 %v5847_v13, %v11924_v53  ;;  %v5889_v18 = vadd.f32 %v5888_v29, %v11926_v19 }
 0xeb1   : > { %v5850_v3 = vpop.f32.mrf.mxu3  ;;  %v5891_v25 = vpop.f32.mrf.mxu2  ;;  %5961 = vmatmul.f32.gmra.mxu3 %v5848_v45  ;;  %6002 = vmatmul.f32.gmra.mxu2 %v5889_v18  ;;  %v6024_v45 = vld [vmem:[%s12534_s21] sm:$0xff]  ;;  %v6025_v18 = vld [vmem:[%s12534_s21 + $0x8] sm:$0xff] }
 0xeb2   : > { %v5851_v43 = vadd.f32 %v5850_v3, %v11924_v53  ;;  %v5892_v50 = vadd.f32 %v5891_v25, %v11926_v19 }
 0xeb9   : > { %v5853_v51 = vpop.f32.mrf.mxu3  ;;  %v5894_v52 = vpop.f32.mrf.mxu2  ;;  %5964 = vmatmul.f32.gmra.mxu3 %v5851_v43  ;;  %6005 = vmatmul.f32.gmra.mxu2 %v5892_v50  ;;  %v6026_v43 = vld [vmem:[%s12534_s21 + $0x10] sm:$0xff]  ;;  %v6027_v50 = vld [vmem:[%s12534_s21 + $0x18] sm:$0xff] }
 0xeba   : > { %v5854_v11 = vadd.f32 %v5853_v51, %v11924_v53  ;;  %v5895_v36 = vadd.f32 %v5894_v52, %v11926_v19 }
 0xec1   : > { %v5856_v61 = vpop.f32.mrf.mxu3  ;;  %v5897_v31 = vpop.f32.mrf.mxu2  ;;  %5967 = vmatmul.f32.gmra.mxu3 %v5854_v11  ;;  %6008 = vmatmul.f32.gmra.mxu2 %v5895_v36  ;;  %v6030_v11 = vld [vmem:[%s12534_s21 + $0x30] sm:$0xff]  ;;  %v6031_v36 = vld [vmem:[%s12534_s21 + $0x38] sm:$0xff] }
 0xec2   : > { %v5857_v33 = vadd.f32 %v5856_v61, %v11924_v53  ;;  %v5898_v20 = vadd.f32 %v5897_v31, %v11926_v19 }
 0xec9   : > { %5970 = vmatmul.f32.gmra.mxu3 %v5857_v33  ;;  %6011 = vmatmul.f32.gmra.mxu2 %v5898_v20  ;;  %v5859_v15 = vpop.f32.mrf.mxu3  ;;  %v5900_v47 = vpop.f32.mrf.mxu2  ;;  %v6034_v33 = vld [vmem:[%s12534_s21 + $0x50] sm:$0xff]  ;;  %v6035_v20 = vld [vmem:[%s12534_s21 + $0x58] sm:$0xff] }
 0xeca   : > { %v5860_v48 = vadd.f32 %v5859_v15, %v11924_v53  ;;  %v5901_v1 = vadd.f32 %v5900_v47, %v11926_v19  ;;  %v6036_v15 = vld [vmem:[%s12534_s21 + $0x60] sm:$0xff]  ;;  %v6037_v47 = vld [vmem:[%s12534_s21 + $0x68] sm:$0xff] }
 0xed1   : > { %5973 = vmatmul.f32.gmra.mxu3 %v5860_v48  ;;  %6014 = vmatmul.f32.gmra.mxu2 %v5901_v1  ;;  %v5862_v42 = vpop.f32.mrf.mxu3  ;;  %v5903_v62 = vpop.f32.mrf.mxu2 }
 0xed2   : > { %v5863_v35 = vadd.f32 %v5862_v42, %v11924_v53  ;;  %v5904_v55 = vadd.f32 %v5903_v62, %v11926_v19  ;;  %v6038_v62 = vld [vmem:[%s12534_s21 + $0x70] sm:$0xff] }
 0xed9   : > { %5976 = vmatmul.f32.gmra.mxu3 %v5863_v35  ;;  %6017 = vmatmul.f32.gmra.mxu2 %v5904_v55  ;;  %v6039_v35 = vld [vmem:[%s12534_s21 + $0x78] sm:$0xff] }
 0xf24   : > { %v5865_v58 = vpop.f32.mrf.mxu3  ;;  %v5906_v0 = vpop.f32.mrf.mxu2 }
 0xf25   : > { %v5866_v22 = vadd.f32 %v5865_v58, %v11924_v53  ;;  %v5907_v7 = vadd.f32 %v5906_v0, %v11926_v19 }
 0xf27   : > { %5979 = vmatmul.f32.gmra.mxu3 %v5866_v22  ;;  %6020 = vmatmul.f32.gmra.mxu2 %v5907_v7 }
 0xf2c   : > { %v5959_v13 = vpop.f32.mrf.mxu3  ;;  %v6000_v29 = vpop.f32.mrf.mxu2 }
 0xf2d   : > { %v5960_v3 = vadd.f32 %v12040_v49, %v5959_v13 }
 0xf2f   : > { %v12049_v25 = vadd.f32 %v6000_v29, %v5960_v3  ;;  %6089 = vmatmul.f32.vlgmr.msrb.gmra.mxu3 %v6024_v45  ;;  %6130 = vmatmul.f32.vlgmr.msra.gmra.mxu2 %v6025_v18 }
 0xf34   : > { %v5962_v53 = vpop.f32.mrf.mxu3  ;;  %v6003_v19 = vpop.f32.mrf.mxu2 }
 0xf35   : > { %v5963_v51 = vadd.f32 %v12040_v49, %v5962_v53 }
 0xf37   : > { %v12058_v52 = vadd.f32 %v6003_v19, %v5963_v51  ;;  %6092 = vmatmul.f32.gmra.mxu3 %v6026_v43  ;;  %6133 = vmatmul.f32.gmra.mxu2 %v6027_v50 }
 0xf3c   : > { %v5965_v34 = vpop.f32.mrf.mxu3  ;;  %v6006_v44 = vpop.f32.mrf.mxu2 }
 0xf3d   : > { %v5966_v26 = vadd.f32 %v12040_v49, %v5965_v34 }
 0xf3f   : > { %v6007_v32 = vadd.f32 %v6006_v44, %v5966_v26  ;;  %6095 = vmatmul.f32.gmra.mxu3 %v6028_v10  ;;  %6136 = vmatmul.f32.gmra.mxu2 %v6029_v2 }
 0xf44   : > { %v5968_v37 = vpop.f32.mrf.mxu3  ;;  %v6009_v39 = vpop.f32.mrf.mxu2 }
 0xf45   : > { %v5969_v54 = vadd.f32 %v12040_v49, %v5968_v37 }
 0xf47   : > { %v6010_v41 = vadd.f32 %v6009_v39, %v5969_v54  ;;  %6098 = vmatmul.f32.gmra.mxu3 %v6030_v11  ;;  %6139 = vmatmul.f32.gmra.mxu2 %v6031_v36 }
 0xf4c   : > { %v5971_v61 = vpop.f32.mrf.mxu3  ;;  %v6012_v31 = vpop.f32.mrf.mxu2 }
 0xf4d   : > { %v5972_v9 = vadd.f32 %v12040_v49, %v5971_v61 }
 0xf4f   : > { %v6013_v56 = vadd.f32 %v6012_v31, %v5972_v9  ;;  %6101 = vmatmul.f32.gmra.mxu3 %v6032_v12  ;;  %6142 = vmatmul.f32.gmra.mxu2 %v6033_v40 }
 0xf54   : > { %v5974_v5 = vpop.f32.mrf.mxu3  ;;  %v6015_v63 = vpop.f32.mrf.mxu2 }
 0xf55   : > { %v5975_v59 = vadd.f32 %v12040_v49, %v5974_v5 }
 0xf57   : > { %v6016_v24 = vadd.f32 %v6015_v63, %v5975_v59  ;;  %6104 = vmatmul.f32.gmra.mxu3 %v6034_v33  ;;  %6145 = vmatmul.f32.gmra.mxu2 %v6035_v20 }
 0xf5c   : > { %v5977_v16 = vpop.f32.mrf.mxu3  ;;  %v6018_v1 = vpop.f32.mrf.mxu2 }
 0xf5d   : > { %v5978_v48 = vadd.f32 %v12040_v49, %v5977_v16 }
 0xf5f   : > { %v6019_v42 = vadd.f32 %v6018_v1, %v5978_v48  ;;  %6107 = vmatmul.f32.gmra.mxu3 %v6036_v15  ;;  %6148 = vmatmul.f32.gmra.mxu2 %v6037_v47 }
 0xf67   : > { %6110 = vmatmul.f32.gmra.mxu3 %v6038_v62  ;;  %6151 = vmatmul.f32.gmra.mxu2 %v6039_v35 }
 0xfaa   : > { %v5980_v55 = vpop.f32.mrf.mxu3  ;;  %v6021_v23 = vpop.f32.mrf.mxu2 }
 0xfab   : > { %v5981_v46 = vadd.f32 %v12040_v49, %v5980_v55 }
 0xfad   : > { %v6022_v28 = vadd.f32 %v6021_v23, %v5981_v46 }
 0xfb2   : > { %v6090_v8 = vpop.f32.mrf.mxu3  ;;  %v6131_v14 = vpop.f32.mrf.mxu2 }
 0xfb3   : > { %v6091_v4 = vadd.f32 %v8114_v6, %v6090_v8 }
 0xfb5   : > { %v6132_v27 = vadd.f32 %v6131_v14, %v6091_v4 }
 0xfb7   : > { %v6155_v17 = vadd.f32 %v6132_v27, %v12049_v25 }
 0xfb9   : > { %v6163_v21 = vsel %vm5588_vm5, %v6155_v17, 0.0 }
 0xfba   : > { %v6093_v60 = vpop.f32.mrf.mxu3  ;;  %6164 = vadd.xlane.f32.xlu2 %v6163_v21  ;;  %v6134_v57 = vpop.f32.mrf.mxu2 }
 0xfbb   : > { %v6094_v30 = vadd.f32 %v8114_v6, %v6093_v60 }
 0xfbd   : > { %v6135_v58 = vadd.f32 %v6134_v57, %v6094_v30 }
 0xfbf   : > { %v6156_v0 = vadd.f32 %v6135_v58, %v12058_v52 }
 0xfc1   : > { %v6166_v22 = vsel %vm5588_vm5, %v6156_v0, 0.0 }
 0xfc2   : > { %v6096_v7 = vpop.f32.mrf.mxu3  ;;  %6167 = vadd.xlane.f32.xlu0 %v6166_v22  ;;  %v6137_v49 = vpop.f32.mrf.mxu2 }
 0xfc3   : > { %v6097_v13 = vadd.f32 %v8114_v6, %v6096_v7 }
 0xfc5   : > { %v6138_v29 = vadd.f32 %v6137_v49, %v6097_v13 }
 0xfc7   : > { %v6157_v45 = vadd.f32 %v6138_v29, %v6007_v32 }
 0xfc9   : > { %v6169_v18 = vsel %vm5588_vm5, %v6157_v45, 0.0 }
 0xfca   : > { %v6099_v3 = vpop.f32.mrf.mxu3  ;;  %6170 = vadd.xlane.f32.xlu1 %v6169_v18  ;;  %v6140_v25 = vpop.f32.mrf.mxu2 }
 0xfcb   : > { %v6100_v53 = vadd.f32 %v8114_v6, %v6099_v3 }
 0xfcd   : > { %v6141_v19 = vadd.f32 %v6140_v25, %v6100_v53 }
 0xfcf   : > { %v6158_v43 = vadd.f32 %v6141_v19, %v6010_v41 }
 0xfd1   : > { %v6172_v50 = vsel %vm5588_vm5, %v6158_v43, 0.0 }
 0xfd2   : > { %v6102_v51 = vpop.f32.mrf.mxu3  ;;  %6173 = vadd.xlane.f32.xlu2 %v6172_v50  ;;  %v6143_v52 = vpop.f32.mrf.mxu2 }
 0xfd3   : > { %v6103_v34 = vadd.f32 %v8114_v6, %v6102_v51 }
 0xfd5   : > { %v6144_v44 = vadd.f32 %v6143_v52, %v6103_v34 }
 0xfd7   : > { %v6159_v10 = vadd.f32 %v6144_v44, %v6013_v56 }
 0xfd9   : > { %v6175_v2 = vsel %vm5588_vm5, %v6159_v10, 0.0 }
 0xfda   : > { %v6105_v26 = vpop.f32.mrf.mxu3  ;;  %6176 = vadd.xlane.f32.xlu0 %v6175_v2  ;;  %v6146_v32 = vpop.f32.mrf.mxu2 }
 0xfdb   : > { %v6106_v37 = vadd.f32 %v8114_v6, %v6105_v26 }
 0xfdd   : > { %v6147_v39 = vadd.f32 %v6146_v32, %v6106_v37 }
 0xfdf   : > { %v6160_v11 = vadd.f32 %v6147_v39, %v6016_v24 }
 0xfe1   : > { %v6178_v36 = vsel %vm5588_vm5, %v6160_v11, 0.0 }
 0xfe2   : > { %v6108_v54 = vpop.f32.mrf.mxu3  ;;  %6179 = vadd.xlane.f32.xlu1 %v6178_v36  ;;  %v6149_v41 = vpop.f32.mrf.mxu2 }
 0xfe3   : > { %v6109_v61 = vadd.f32 %v8114_v6, %v6108_v54 }
 0xfe5   : > { %v6150_v31 = vadd.f32 %v6149_v41, %v6109_v61 }
 0xfe7   : > { %v6161_v12 = vadd.f32 %v6150_v31, %v6019_v42 }
 0xfe9   : > { %v6181_v40 = vsel %vm5588_vm5, %v6161_v12, 0.0 }
 0xfea   : > { %v6111_v9 = vpop.f32.mrf.mxu3  ;;  %6182 = vadd.xlane.f32.xlu2 %v6181_v40  ;;  %v6152_v56 = vpop.f32.mrf.mxu2 }
 0xfeb   : > { %v6112_v5 = vadd.f32 %v8114_v6, %v6111_v9  ;;  %v12163_v9 = vld [vmem:[#allocation14 + $0x5] ss:$0 sm:$0xff] }
 0xfed   : > { %v6153_v63 = vadd.f32 %v6152_v56, %v6112_v5 }
 0xfef   : > { %v6162_v33 = vadd.f32 %v6153_v63, %v6022_v28 }
 0xff1   : > { %v6184_v20 = vsel %vm5588_vm5, %v6162_v33, 0.0 }
 0xff2   : > { %6185 = vadd.xlane.f32.xlu0 %v6184_v20 }
0x102d   : > { %v6165_v59 = vpop.xlane.xlu2 %6164 }
0x102e   : > { %v6187_v24 = vmul.f32 %v6165_v59, %v11720_v38 }
0x1030   : > { %v12113_v16 = vsub.f32 %v6155_v17, %v6187_v24 }
0x1032   : > { %v6203_v15 = vmul.f32 %v12113_v16, %v12113_v16 }
0x1034   : > { %v6211_v47 = vsel %vm5588_vm5, %v6203_v15, 0.0 }
0x1035   : > { %v6168_v48 = vpop.xlane.xlu0 %6167  ;;  %6212 = vadd.xlane.f32.xlu1 %v6211_v47 }
0x1036   : > { %v6188_v1 = vmul.f32 %v6168_v48, %v11720_v38 }
0x1038   : > { %v12119_v42 = vsub.f32 %v6156_v0, %v6188_v1 }
0x103a   : > { %v6204_v62 = vmul.f32 %v12119_v42, %v12119_v42 }
0x103c   : > { %v6214_v35 = vsel %vm5588_vm5, %v6204_v62, 0.0 }
0x103d   : > { %v6171_v55 = vpop.xlane.xlu1 %6170  ;;  %6215 = vadd.xlane.f32.xlu2 %v6214_v35 }
0x103e   : > { %v6189_v23 = vmul.f32 %v6171_v55, %v11720_v38 }
0x1040   : > { %v12125_v46 = vsub.f32 %v6157_v45, %v6189_v23 }
0x1042   : > { %v6205_v28 = vmul.f32 %v12125_v46, %v12125_v46 }
0x1044   : > { %v6217_v6 = vsel %vm5588_vm5, %v6205_v28, 0.0 }
0x1045   : > { %v6174_v8 = vpop.xlane.xlu2 %6173  ;;  %6218 = vadd.xlane.f32.xlu0 %v6217_v6 }
0x1046   : > { %v6190_v14 = vmul.f32 %v6174_v8, %v11720_v38 }
0x1048   : > { %v12131_v4 = vsub.f32 %v6158_v43, %v6190_v14 }
0x104a   : > { %v6206_v27 = vmul.f32 %v12131_v4, %v12131_v4 }
0x104c   : > { %v6220_v17 = vsel %vm5588_vm5, %v6206_v27, 0.0 }
0x104d   : > { %v6177_v21 = vpop.xlane.xlu0 %6176  ;;  %6221 = vadd.xlane.f32.xlu1 %v6220_v17 }
0x104e   : > { %v6191_v60 = vmul.f32 %v6177_v21, %v11720_v38 }
0x1050   : > { %v12137_v57 = vsub.f32 %v6159_v10, %v6191_v60 }
0x1052   : > { %v6207_v30 = vmul.f32 %v12137_v57, %v12137_v57 }
0x1054   : > { %v6223_v58 = vsel %vm5588_vm5, %v6207_v30, 0.0 }
0x1055   : > { %v6180_v0 = vpop.xlane.xlu1 %6179  ;;  %6224 = vadd.xlane.f32.xlu2 %v6223_v58 }
0x1056   : > { %v6192_v22 = vmul.f32 %v6180_v0, %v11720_v38 }
0x1058   : > { %v12143_v7 = vsub.f32 %v6160_v11, %v6192_v22 }
0x105a   : > { %v6208_v49 = vmul.f32 %v12143_v7, %v12143_v7 }
0x105c   : > { %v6226_v13 = vsel %vm5588_vm5, %v6208_v49, 0.0 }
0x105d   : > { %v6183_v29 = vpop.xlane.xlu2 %6182  ;;  %6227 = vadd.xlane.f32.xlu0 %v6226_v13 }
0x105e   : > { %v6193_v45 = vmul.f32 %v6183_v29, %v11720_v38 }
0x1060   : > { %v12149_v18 = vsub.f32 %v6161_v12, %v6193_v45 }
0x1062   : > { %v6209_v3 = vmul.f32 %v12149_v18, %v12149_v18 }
0x1064   : > { %v6229_v25 = vsel %vm5588_vm5, %v6209_v3, 0.0 }
0x1065   : > { %6230 = vadd.xlane.f32.xlu1 %v6229_v25  ;;  %v6186_v53 = vpop.xlane.xlu0 %6185 }
0x1066   : > { %v6194_v19 = vmul.f32 %v6186_v53, %v11720_v38 }
0x1068   : > { %v12155_v43 = vsub.f32 %v6162_v33, %v6194_v19  ;;  %v12166_v33 = vld [vmem:[#allocation14 + $0x6] ss:$0 sm:$0xff] }
0x106a   : > { %v6210_v50 = vmul.f32 %v12155_v43, %v12155_v43 }
0x106c   : > { %v6232_v51 = vsel %vm5588_vm5, %v6210_v50, 0.0 }
0x106d   : > { %6233 = vadd.xlane.f32.xlu2 %v6232_v51 }
0x10a8   : > { %v6213_v52 = vpop.xlane.xlu1 %6212 }
0x10a9   : > { %v6235_v34 = vmul.f32 %v6213_v52, %v11720_v38 }
0x10ab   : > { %v6243_v44 = vadd.f32 1e-05, %v6235_v34 }
0x10ad   : > { %8183 = vrsqrt.f32 %v6243_v44  ;;  %vm6257_vm0 = vweird.f32 %v6243_v44 }
0x10b0   : > { %v6216_v10 = vpop.xlane.xlu2 %6215 }
0x10b1   : > { %v6236_v2 = vmul.f32 %v6216_v10, %v11720_v38 }
0x10b3   : > { %v8184_v26 = vpop.eup %8183  ;;  %v6244_v32 = vadd.f32 1e-05, %v6236_v2 }
0x10b4   : > { %v6252_v37 = vmul.f32 %v8184_v26, %v6243_v44  ;;  %vm6258_vm15 = vweird.f32 %v8184_v26 }
0x10b5   : > { %8185 = vrsqrt.f32 %v6244_v32  ;;  %vm6259_vm2 = vmor %vm6257_vm0, %vm6258_vm15  ;;  %vm6267_vm4 = vweird.f32 %v6244_v32 }
0x10b6   : > { %v6253_v39 = vmul.f32 %v8184_v26, %v6252_v37 }
0x10b8   : > { %v6254_v11 = vmul.f32 0.5, %v6253_v39  ;;  %v6219_v36 = vpop.xlane.xlu0 %6218 }
0x10b9   : > { %v6237_v54 = vmul.f32 %v6219_v36, %v11720_v38 }
0x10ba   : > { %v6255_v41 = vsub.f32 1.5, %v6254_v11 }
0x10bb   : > { %v8186_v61 = vpop.eup %8185  ;;  %v6245_v31 = vadd.f32 1e-05, %v6237_v54 }
0x10bc   : > { %v6256_v12 = vmul.f32 %v8184_v26, %v6255_v41  ;;  %v6262_v40 = vmul.f32 %v8186_v61, %v6244_v32  ;;  %vm6268_vm3 = vweird.f32 %v8186_v61 }
0x10bd   : > { %8187 = vrsqrt.f32 %v6245_v31  ;;  %vm6269_vm1 = vmor %vm6267_vm4, %vm6268_vm3  ;;  %vm6277_vm7 = vweird.f32 %v6245_v31 }
0x10be   : > { %v6263_v56 = vmul.f32 %v8186_v61, %v6262_v40  ;;  %v6260_v5 = vsel %vm6259_vm2, %v8184_v26, %v6256_v12 }
0x10bf   : > { %v6331_v63 = vmul.f32 %v6260_v5, %v12113_v16 }
0x10c0   : > { %v6264_v20 = vmul.f32 0.5, %v6263_v56  ;;  %v6222_v59 = vpop.xlane.xlu1 %6221 }
0x10c1   : > { %v6238_v24 = vmul.f32 %v6222_v59, %v11720_v38  ;;  %v6340_v15 = vmul.f32 %v12163_v9, %v6331_v63 }
0x10c2   : > { %v6265_v47 = vsub.f32 1.5, %v6264_v20 }
0x10c3   : > { %v8188_v48 = vpop.eup %8187  ;;  %v6246_v1 = vadd.f32 1e-05, %v6238_v24  ;;  %v12171_v62 = vadd.f32 %v12166_v33, %v6340_v15 }
0x10c4   : > { %v6266_v35 = vmul.f32 %v8186_v61, %v6265_v47  ;;  %v6272_v55 = vmul.f32 %v8188_v48, %v6245_v31  ;;  %vm6278_vm6 = vweird.f32 %v8188_v48 }
0x10c5   : > { %8189 = vrsqrt.f32 %v6246_v1  ;;  %v6357_v16 = vsel %vm5588_vm5, %v12171_v62, -inf  ;;  %vm6279_vm8 = vmor %vm6277_vm7, %vm6278_vm6  ;;  %vm6287_vm10 = vweird.f32 %v6246_v1 }
0x10c6   : > { %v6273_v23 = vmul.f32 %v8188_v48, %v6272_v55  ;;  %6358 = vmax.xlane.f32.xlu0 %v6357_v16  ;;  %v6270_v28 = vsel %vm6269_vm1, %v8186_v61, %v6266_v35 }
0x10c7   : > { %v6332_v6 = vmul.f32 %v6270_v28, %v12119_v42 }
0x10c8   : > { %v6274_v8 = vmul.f32 0.5, %v6273_v23  ;;  %v6225_v14 = vpop.xlane.xlu2 %6224 }
0x10c9   : > { %v6239_v27 = vmul.f32 %v6225_v14, %v11720_v38  ;;  %v6341_v17 = vmul.f32 %v12163_v9, %v6332_v6 }
0x10ca   : > { %v6275_v21 = vsub.f32 1.5, %v6274_v8 }
0x10cb   : > { %v8190_v60 = vpop.eup %8189  ;;  %v6247_v30 = vadd.f32 1e-05, %v6239_v27  ;;  %v12179_v58 = vadd.f32 %v12166_v33, %v6341_v17 }
0x10cc   : > { %v6276_v0 = vmul.f32 %v8188_v48, %v6275_v21  ;;  %v6282_v22 = vmul.f32 %v8190_v60, %v6246_v1  ;;  %vm6288_vm9 = vweird.f32 %v8190_v60 }
0x10cd   : > { %8191 = vrsqrt.f32 %v6247_v30  ;;  %v6360_v42 = vsel %vm5588_vm5, %v12179_v58, -inf  ;;  %vm6289_vm11 = vmor %vm6287_vm10, %vm6288_vm9  ;;  %vm6297_vm13 = vweird.f32 %v6247_v30 }
0x10ce   : > { %v6283_v49 = vmul.f32 %v8190_v60, %v6282_v22  ;;  %6361 = vmax.xlane.f32.xlu1 %v6360_v42  ;;  %v6280_v13 = vsel %vm6279_vm8, %v8188_v48, %v6276_v0 }
0x10cf   : > { %v6333_v29 = vmul.f32 %v6280_v13, %v12125_v46 }
0x10d0   : > { %v6284_v45 = vmul.f32 0.5, %v6283_v49  ;;  %v6228_v3 = vpop.xlane.xlu0 %6227 }
0x10d1   : > { %v6240_v25 = vmul.f32 %v6228_v3, %v11720_v38  ;;  %v6342_v53 = vmul.f32 %v12163_v9, %v6333_v29 }
0x10d2   : > { %v6285_v19 = vsub.f32 1.5, %v6284_v45 }
0x10d3   : > { %v8192_v50 = vpop.eup %8191  ;;  %v6248_v51 = vadd.f32 1e-05, %v6240_v25  ;;  %v12187_v52 = vadd.f32 %v12166_v33, %v6342_v53 }
0x10d4   : > { %v6286_v34 = vmul.f32 %v8190_v60, %v6285_v19  ;;  %v6292_v44 = vmul.f32 %v8192_v50, %v6247_v30  ;;  %vm6298_vm12 = vweird.f32 %v8192_v50 }
0x10d5   : > { %8193 = vrsqrt.f32 %v6248_v51  ;;  %v6363_v46 = vsel %vm5588_vm5, %v12187_v52, -inf  ;;  %vm6299_vm14 = vmor %vm6297_vm13, %vm6298_vm12  ;;  %vm6307_vm0 = vweird.f32 %v6248_v51 }
0x10d6   : > { %v6293_v10 = vmul.f32 %v8192_v50, %v6292_v44  ;;  %6364 = vmax.xlane.f32.xlu2 %v6363_v46  ;;  %v6290_v2 = vsel %vm6289_vm11, %v8190_v60, %v6286_v34 }
0x10d7   : > { %v6334_v26 = vmul.f32 %v6290_v2, %v12131_v4 }
0x10d8   : > { %v6294_v32 = vmul.f32 0.5, %v6293_v10  ;;  %v6231_v37 = vpop.xlane.xlu1 %6230 }
0x10d9   : > { %v6241_v39 = vmul.f32 %v6231_v37, %v11720_v38  ;;  %v6343_v11 = vmul.f32 %v12163_v9, %v6334_v26 }
0x10da   : > { %v6295_v36 = vsub.f32 1.5, %v6294_v32 }
0x10db   : > { %v8194_v54 = vpop.eup %8193  ;;  %v6249_v41 = vadd.f32 1e-05, %v6241_v39  ;;  %v12195_v61 = vadd.f32 %v12166_v33, %v6343_v11 }
0x10dc   : > { %v6296_v31 = vmul.f32 %v8192_v50, %v6295_v36  ;;  %v6302_v12 = vmul.f32 %v8194_v54, %v6248_v51  ;;  %vm6308_vm15 = vweird.f32 %v8194_v54 }
0x10dd   : > { %8195 = vrsqrt.f32 %v6249_v41  ;;  %v6366_v4 = vsel %vm5588_vm5, %v12195_v61, -inf  ;;  %vm6309_vm2 = vmor %vm6307_vm0, %vm6308_vm15  ;;  %vm6317_vm4 = vweird.f32 %v6249_v41 }
0x10de   : > { %v6303_v40 = vmul.f32 %v8194_v54, %v6302_v12  ;;  %6367 = vmax.xlane.f32.xlu0 %v6366_v4  ;;  %v6300_v56 = vsel %vm6299_vm14, %v8192_v50, %v6296_v31 }
0x10df   : > { %v6335_v5 = vmul.f32 %v6300_v56, %v12137_v57 }
0x10e0   : > { %v6304_v63 = vmul.f32 0.5, %v6303_v40  ;;  %v6234_v20 = vpop.xlane.xlu2 %6233 }
0x10e1   : > { %v6242_v59 = vmul.f32 %v6234_v20, %v11720_v38  ;;  %v6344_v24 = vmul.f32 %v12163_v9, %v6335_v5 }
0x10e2   : > { %v6305_v15 = vsub.f32 1.5, %v6304_v63 }
0x10e3   : > { %v8196_v47 = vpop.eup %8195  ;;  %v6250_v48 = vadd.f32 1e-05, %v6242_v59  ;;  %v12203_v1 = vadd.f32 %v12166_v33, %v6344_v24 }
0x10e4   : > { %v6306_v35 = vmul.f32 %v8194_v54, %v6305_v15  ;;  %v6312_v55 = vmul.f32 %v8196_v47, %v6249_v41  ;;  %vm6318_vm3 = vweird.f32 %v8196_v47 }
0x10e5   : > { %8197 = vrsqrt.f32 %v6250_v48  ;;  %v6369_v57 = vsel %vm5588_vm5, %v12203_v1, -inf  ;;  %vm6319_vm1 = vmor %vm6317_vm4, %vm6318_vm3  ;;  %vm6327_vm7 = vweird.f32 %v6250_v48 }
0x10e6   : > { %v6313_v16 = vmul.f32 %v8196_v47, %v6312_v55  ;;  %6370 = vmax.xlane.f32.xlu1 %v6369_v57  ;;  %v6310_v38 = vsel %vm6309_vm2, %v8194_v54, %v6306_v35 }
0x10e7   : > { %v6336_v23 = vmul.f32 %v6310_v38, %v12143_v7 }
0x10e8   : > { %v6314_v28 = vmul.f32 0.5, %v6313_v16 }
0x10e9   : > { %v6345_v6 = vmul.f32 %v12163_v9, %v6336_v23 }
0x10ea   : > { %v6315_v8 = vsub.f32 1.5, %v6314_v28 }
0x10eb   : > { %v8198_v14 = vpop.eup %8197  ;;  %v6354_v27 = vadd.f32 %v12166_v33, %v6345_v6 }
0x10ec   : > { %v6316_v17 = vmul.f32 %v8196_v47, %v6315_v8  ;;  %v6322_v21 = vmul.f32 %v8198_v14, %v6250_v48  ;;  %vm6328_vm6 = vweird.f32 %v8198_v14 }
0x10ed   : > { %v6372_v60 = vsel %vm5588_vm5, %v6354_v27, -inf  ;;  %vm6329_vm8 = vmor %vm6327_vm7, %vm6328_vm6 }
0x10ee   : > { %v6323_v30 = vmul.f32 %v8198_v14, %v6322_v21  ;;  %6373 = vmax.xlane.f32.xlu2 %v6372_v60  ;;  %v6320_v0 = vsel %vm6319_vm1, %v8196_v47, %v6316_v17 }
0x10ef   : > { %v6337_v22 = vmul.f32 %v6320_v0, %v12149_v18 }
0x10f0   : > { %v6324_v7 = vmul.f32 0.5, %v6323_v30 }
0x10f1   : > { %v6346_v42 = vmul.f32 %v12163_v9, %v6337_v22 }
0x10f2   : > { %v6325_v49 = vsub.f32 1.5, %v6324_v7 }
0x10f3   : > { %v6355_v13 = vadd.f32 %v12166_v33, %v6346_v42 }
0x10f4   : > { %v6326_v29 = vmul.f32 %v8198_v14, %v6325_v49 }
0x10f5   : > { %v6375_v45 = vsel %vm5588_vm5, %v6355_v13, -inf }
0x10f6   : > { %6376 = vmax.xlane.f32.xlu0 %v6375_v45  ;;  %v6330_v3 = vsel %vm6329_vm8, %v8198_v14, %v6326_v29 }
0x10f7   : > { %v6338_v25 = vmul.f32 %v6330_v3, %v12155_v43 }
0x10f9   : > { %v6347_v53 = vmul.f32 %v12163_v9, %v6338_v25 }
0x10fb   : > { %v6356_v18 = vadd.f32 %v12166_v33, %v6347_v53 }
0x10fd   : > { %v6378_v19 = vsel %vm5588_vm5, %v6356_v18, -inf }
0x10fe   : > { %6379 = vmax.xlane.f32.xlu1 %v6378_v19 }
0x1139   : > { %v6359_v50 = vpop.xlane.xlu0 %6358 }
0x113a   : > { %v6381_v51 = vsub.f32 %v12171_v62, %v6359_v50 }
0x113c   : > { %v6389_v34 = vmul.f32 1.442695, %v6381_v51 }
0x113e   : > { %8199 = vpow2.f32 %v6389_v34 }
0x1141   : > { %v6362_v44 = vpop.xlane.xlu1 %6361 }
0x1142   : > { %v6382_v46 = vsub.f32 %v12179_v58, %v6362_v44 }
0x1144   : > { %v12221_v10 = vpop.eup %8199  ;;  %v6391_v2 = vmul.f32 1.442695, %v6382_v46 }
0x1145   : > { %v6405_v43 = vsel %vm5588_vm5, %v12221_v10, 0.0 }
0x1146   : > { %8201 = vpow2.f32 %v6391_v2  ;;  %6406 = vadd.xlane.f32.xlu2 %v6405_v43 }
0x1149   : > { %v6365_v9 = vpop.xlane.xlu2 %6364 }
0x114a   : > { %v6383_v33 = vsub.f32 %v12187_v52, %v6365_v9 }
0x114c   : > { %v12226_v26 = vpop.eup %8201  ;;  %v6393_v32 = vmul.f32 1.442695, %v6383_v33 }
0x114d   : > { %v6408_v62 = vsel %vm5588_vm5, %v12226_v26, 0.0 }
0x114e   : > { %8203 = vpow2.f32 %v6393_v32  ;;  %6409 = vadd.xlane.f32.xlu0 %v6408_v62 }
0x1151   : > { %v6368_v58 = vpop.xlane.xlu0 %6367 }
0x1152   : > { %v6384_v37 = vsub.f32 %v12195_v61, %v6368_v58 }
0x1154   : > { %v12231_v39 = vpop.eup %8203  ;;  %v6395_v11 = vmul.f32 1.442695, %v6384_v37 }
0x1155   : > { %v6411_v36 = vsel %vm5588_vm5, %v12231_v39, 0.0 }
0x1156   : > { %8205 = vpow2.f32 %v6395_v11  ;;  %6412 = vadd.xlane.f32.xlu1 %v6411_v36 }
0x1159   : > { %v6371_v52 = vpop.xlane.xlu1 %6370 }
0x115a   : > { %v6385_v54 = vsub.f32 %v12203_v1, %v6371_v52 }
0x115c   : > { %v12236_v41 = vpop.eup %8205  ;;  %v6397_v31 = vmul.f32 1.442695, %v6385_v54 }
0x115d   : > { %v6414_v12 = vsel %vm5588_vm5, %v12236_v41, 0.0 }
0x115e   : > { %8207 = vpow2.f32 %v6397_v31  ;;  %6415 = vadd.xlane.f32.xlu2 %v6414_v12 }
0x1161   : > { %v6374_v61 = vpop.xlane.xlu2 %6373 }
0x1162   : > { %v6386_v4 = vsub.f32 %v6354_v27, %v6374_v61 }
0x1164   : > { %v12240_v40 = vpop.eup %8207  ;;  %v6399_v56 = vmul.f32 1.442695, %v6386_v4 }
0x1165   : > { %v6417_v5 = vsel %vm5588_vm5, %v12240_v40, 0.0 }
0x1166   : > { %8209 = vpow2.f32 %v6399_v56  ;;  %6418 = vadd.xlane.f32.xlu0 %v6417_v5 }
0x1169   : > { %v6377_v63 = vpop.xlane.xlu0 %6376 }
0x116a   : > { %v6387_v20 = vsub.f32 %v6355_v13, %v6377_v63 }
0x116c   : > { %v12244_v59 = vpop.eup %8209  ;;  %v6401_v24 = vmul.f32 1.442695, %v6387_v20 }
0x116d   : > { %v6420_v15 = vsel %vm5588_vm5, %v12244_v59, 0.0 }
0x116e   : > { %8211 = vpow2.f32 %v6401_v24  ;;  %6421 = vadd.xlane.f32.xlu1 %v6420_v15 }
0x1171   : > { %v6380_v47 = vpop.xlane.xlu1 %6379 }
0x1172   : > { %v6388_v48 = vsub.f32 %v6356_v18, %v6380_v47 }
0x1174   : > { %v12248_v1 = vpop.eup %8211  ;;  %v6403_v35 = vmul.f32 1.442695, %v6388_v48 }
0x1175   : > { %v6423_v55 = vsel %vm5588_vm5, %v12248_v1, 0.0 }
0x1176   : > { %8213 = vpow2.f32 %v6403_v35  ;;  %6424 = vadd.xlane.f32.xlu2 %v6423_v55 }
0x117c   : > { %v12252_v57 = vpop.eup %8213 }
0x117d   : > { %v6426_v16 = vsel %vm5588_vm5, %v12252_v57, 0.0 }
0x117e   : > { %6427 = vadd.xlane.f32.xlu0 %v6426_v16 }
0x11b9   : > { %v6407_v38 = vpop.xlane.xlu2 %6406 }
0x11ba   : > { %8215 = vrcp.f32 %v6407_v38  ;;  %v6440_v14 = vand.u32 2147483648, %v6407_v38  ;;  %v6438_v17 = vand.u32 2147483647, %v6407_v38  ;;  %vm6434_vm10 = vweird.f32 %v6407_v38 }
0x11bc   : > { %v6441_v30 = vor.u32 1.1754944e-38, %v6440_v14  ;;  %vm6439_vm12 = vcmp.eq.f32.partialorder %v6438_v17, 8.507059e+37 }
0x11c0   : > { %v8216_v23 = vpop.eup %8215 }
0x11c1   : > { %v6430_v28 = vmul.f32 %v8216_v23, %v6407_v38  ;;  %v6410_v6 = vpop.xlane.xlu0 %6409  ;;  %vm6435_vm9 = vweird.f32 %v8216_v23 }
0x11c2   : > { %8217 = vrcp.f32 %v6410_v6  ;;  %vm6436_vm11 = vmor %vm6434_vm10, %vm6435_vm9  ;;  %v6455_v29 = vand.u32 2147483648, %v6410_v6  ;;  %v6453_v3 = vand.u32 2147483647, %v6410_v6  ;;  %vm6449_vm14 = vweird.f32 %v6410_v6 }
0x11c3   : > { %v6431_v8 = vsub.f32 1.0, %v6430_v28 }
0x11c4   : > { %v6456_v18 = vor.u32 1.1754944e-38, %v6455_v29  ;;  %vm6454_vm0 = vcmp.eq.f32.partialorder %v6453_v3, 8.507059e+37 }
0x11c5   : > { %v6432_v27 = vmul.f32 %v8216_v23, %v6431_v8 }
0x11c7   : > { %v6433_v21 = vadd.f32 %v8216_v23, %v6432_v27 }
0x11c8   : > { %v8218_v60 = vpop.eup %8217 }
0x11c9   : > { %v6437_v0 = vsel %vm6436_vm11, %v8216_v23, %v6433_v21  ;;  %v6445_v22 = vmul.f32 %v8218_v60, %v6410_v6  ;;  %v6413_v7 = vpop.xlane.xlu1 %6412  ;;  %vm6450_vm13 = vweird.f32 %v8218_v60 }
0x11ca   : > { %v6442_v42 = vsel %vm6439_vm12, %v6441_v30, %v6437_v0  ;;  %8219 = vrcp.f32 %v6413_v7  ;;  %vm6451_vm15 = vmor %vm6449_vm14, %vm6450_vm13  ;;  %v6468_v43 = vand.u32 2147483647, %v6413_v7  ;;  %vm6464_vm3 = vweird.f32 %v6413_v7 }
0x11cb   : > { %v6443_v49 = vmul.f32 %v12221_v10, %v6442_v42  ;;  %v6446_v13 = vsub.f32 1.0, %v6445_v22  ;;  %v6470_v10 = vand.u32 2147483648, %v6413_v7 }
0x11cc   : > { %vm6469_vm1 = vcmp.eq.f32.partialorder %v6468_v43, 8.507059e+37 }
0x11cd   : > { %6549 = vst.msk [vmem:[%s12535_s13] sm:$0xff] %vm5588_vm5, %v6443_v49  ;;  %v6447_v45 = vmul.f32 %v8218_v60, %v6446_v13  ;;  %v6471_v32 = vor.u32 1.1754944e-38, %v6470_v10 }
0x11cf   : > { %v6448_v25 = vadd.f32 %v8218_v60, %v6447_v45 }
0x11d0   : > { %v8220_v53 = vpop.eup %8219 }
0x11d1   : > { %v6452_v19 = vsel %vm6451_vm15, %v8218_v60, %v6448_v25  ;;  %v6460_v50 = vmul.f32 %v8220_v53, %v6413_v7  ;;  %v6416_v51 = vpop.xlane.xlu2 %6415  ;;  %vm6465_vm2 = vweird.f32 %v8220_v53 }
0x11d2   : > { %v6457_v34 = vsel %vm6454_vm0, %v6456_v18, %v6452_v19  ;;  %8221 = vrcp.f32 %v6416_v51  ;;  %vm6466_vm4 = vmor %vm6464_vm3, %vm6465_vm2  ;;  %v6485_v52 = vand.u32 2147483648, %v6416_v51  ;;  %v6483_v31 = vand.u32 2147483647, %v6416_v51 }
0x11d3   : > { %v6458_v44 = vmul.f32 %v12226_v26, %v6457_v34  ;;  %v6461_v46 = vsub.f32 1.0, %v6460_v50  ;;  %vm6479_vm7 = vweird.f32 %v6416_v51 }
0x11d4   : > { %v6486_v4 = vor.u32 1.1754944e-38, %v6485_v52  ;;  %vm6484_vm9 = vcmp.eq.f32.partialorder %v6483_v31, 8.507059e+37 }
0x11d5   : > { %6550 = vst.msk [vmem:[%s12535_s13 + $0x8] sm:$0xff] %vm5588_vm5, %v6458_v44  ;;  %v6462_v2 = vmul.f32 %v8220_v53, %v6461_v46 }
0x11d7   : > { %v6463_v9 = vadd.f32 %v8220_v53, %v6462_v2 }
0x11d8   : > { %v8222_v33 = vpop.eup %8221 }
0x11d9   : > { %v6467_v62 = vsel %vm6466_vm4, %v8220_v53, %v6463_v9  ;;  %v6475_v58 = vmul.f32 %v8222_v33, %v6416_v51  ;;  %v6419_v37 = vpop.xlane.xlu0 %6418  ;;  %vm6480_vm6 = vweird.f32 %v8222_v33 }
0x11da   : > { %v6472_v26 = vsel %vm6469_vm1, %v6471_v32, %v6467_v62  ;;  %8223 = vrcp.f32 %v6419_v37  ;;  %vm6481_vm8 = vmor %vm6479_vm7, %vm6480_vm6  ;;  %v6500_v15 = vand.u32 2147483648, %v6419_v37  ;;  %v6498_v48 = vand.u32 2147483647, %v6419_v37 }
0x11db   : > { %v6473_v11 = vmul.f32 %v12231_v39, %v6472_v26  ;;  %v6476_v36 = vsub.f32 1.0, %v6475_v58  ;;  %vm6494_vm11 = vweird.f32 %v6419_v37 }
0x11dc   : > { %v6501_v16 = vor.u32 1.1754944e-38, %v6500_v15  ;;  %vm6499_vm13 = vcmp.eq.f32.partialorder %v6498_v48, 8.507059e+37 }
0x11dd   : > { %6551 = vst.msk [vmem:[%s12535_s13 + $0x10] sm:$0xff] %vm5588_vm5, %v6473_v11  ;;  %v6477_v54 = vmul.f32 %v8222_v33, %v6476_v36 }
0x11df   : > { %v6478_v12 = vadd.f32 %v8222_v33, %v6477_v54 }
0x11e0   : > { %v8224_v61 = vpop.eup %8223 }
0x11e1   : > { %v6482_v56 = vsel %vm6481_vm8, %v8222_v33, %v6478_v12  ;;  %v6490_v5 = vmul.f32 %v8224_v61, %v6419_v37  ;;  %v6422_v63 = vpop.xlane.xlu1 %6421  ;;  %vm6495_vm10 = vweird.f32 %v8224_v61 }
0x11e2   : > { %v6487_v39 = vsel %vm6484_vm9, %v6486_v4, %v6482_v56  ;;  %8225 = vrcp.f32 %v6422_v63  ;;  %vm6496_vm12 = vmor %vm6494_vm11, %vm6495_vm10  ;;  %v6515_v14 = vand.u32 2147483648, %v6422_v63  ;;  %v6513_v17 = vand.u32 2147483647, %v6422_v63 }
0x11e3   : > { %v6488_v20 = vmul.f32 %v12236_v41, %v6487_v39  ;;  %v6491_v24 = vsub.f32 1.0, %v6490_v5  ;;  %vm6509_vm15 = vweird.f32 %v6422_v63 }
0x11e4   : > { %v6516_v30 = vor.u32 1.1754944e-38, %v6515_v14  ;;  %vm6514_vm2 = vcmp.eq.f32.partialorder %v6513_v17, 8.507059e+37 }
0x11e5   : > { %6552 = vst.msk [vmem:[%s12535_s13 + $0x18] sm:$0xff] %vm5588_vm5, %v6488_v20  ;;  %v6492_v47 = vmul.f32 %v8224_v61, %v6491_v24 }
0x11e7   : > { %v6493_v35 = vadd.f32 %v8224_v61, %v6492_v47 }
0x11e8   : > { %v8226_v55 = vpop.eup %8225 }
0x11e9   : > { %v6497_v38 = vsel %vm6496_vm12, %v8224_v61, %v6493_v35  ;;  %v6505_v23 = vmul.f32 %v8226_v55, %v6422_v63  ;;  %v6425_v28 = vpop.xlane.xlu2 %6424  ;;  %vm6510_vm14 = vweird.f32 %v8226_v55 }
0x11ea   : > { %v6502_v41 = vsel %vm6499_vm13, %v6501_v16, %v6497_v38  ;;  %8227 = vrcp.f32 %v6425_v28  ;;  %vm6511_vm0 = vmor %vm6509_vm15, %vm6510_vm14  ;;  %v6530_v13 = vand.u32 2147483648, %v6425_v28  ;;  %v6528_v45 = vand.u32 2147483647, %v6425_v28 }
0x11eb   : > { %v6503_v6 = vmul.f32 %v12240_v40, %v6502_v41  ;;  %v6506_v8 = vsub.f32 1.0, %v6505_v23  ;;  %vm6524_vm4 = vweird.f32 %v6425_v28 }
0x11ec   : > { %v6531_v53 = vor.u32 1.1754944e-38, %v6530_v13  ;;  %vm6529_vm6 = vcmp.eq.f32.partialorder %v6528_v45, 8.507059e+37 }
0x11ed   : > { %6553 = vst.msk [vmem:[%s12535_s13 + $0x20] sm:$0xff] %vm5588_vm5, %v6503_v6  ;;  %v6507_v27 = vmul.f32 %v8226_v55, %v6506_v8 }
0x11ef   : > { %v6508_v21 = vadd.f32 %v8226_v55, %v6507_v27 }
0x11f0   : > { %v8228_v60 = vpop.eup %8227 }
0x11f1   : > { %v6512_v0 = vsel %vm6511_vm0, %v8226_v55, %v6508_v21  ;;  %v6520_v22 = vmul.f32 %v8228_v60, %v6425_v28  ;;  %v6428_v7 = vpop.xlane.xlu0 %6427  ;;  %vm6525_vm3 = vweird.f32 %v8228_v60 }
0x11f2   : > { %v6517_v40 = vsel %vm6514_vm2, %v6516_v30, %v6512_v0  ;;  %8229 = vrcp.f32 %v6428_v7  ;;  %vm6526_vm1 = vmor %vm6524_vm4, %vm6525_vm3  ;;  %v6545_v34 = vand.u32 2147483648, %v6428_v7  ;;  %v6543_v46 = vand.u32 2147483647, %v6428_v7 }
0x11f3   : > { %v6518_v42 = vmul.f32 %v12244_v59, %v6517_v40  ;;  %v6521_v49 = vsub.f32 1.0, %v6520_v22  ;;  %vm6539_vm8 = vweird.f32 %v6428_v7 }
0x11f4   : > { %v6546_v2 = vor.u32 1.1754944e-38, %v6545_v34  ;;  %vm6544_vm10 = vcmp.eq.f32.partialorder %v6543_v46, 8.507059e+37 }
0x11f5   : > { %6554 = vst.msk [vmem:[%s12535_s13 + $0x28] sm:$0xff] %vm5588_vm5, %v6518_v42  ;;  %v6522_v29 = vmul.f32 %v8228_v60, %v6521_v49 }
0x11f7   : > { %v6523_v3 = vadd.f32 %v8228_v60, %v6522_v29 }
0x11f8   : > { %v8230_v25 = vpop.eup %8229 }
0x11f9   : > { %v6527_v18 = vsel %vm6526_vm1, %v8228_v60, %v6523_v3  ;;  %v6535_v19 = vmul.f32 %v8230_v25, %v6428_v7  ;;  %vm6540_vm7 = vweird.f32 %v8230_v25 }
0x11fa   : > { %v6532_v50 = vsel %vm6529_vm6, %v6531_v53, %v6527_v18  ;;  %vm6541_vm9 = vmor %vm6539_vm8, %vm6540_vm7 }
0x11fb   : > { %v6533_v59 = vmul.f32 %v12248_v1, %v6532_v50  ;;  %v6536_v51 = vsub.f32 1.0, %v6535_v19 }
0x11fd   : > { %6555 = vst.msk [vmem:[%s12535_s13 + $0x30] sm:$0xff] %vm5588_vm5, %v6533_v59  ;;  %v6537_v44 = vmul.f32 %v8230_v25, %v6536_v51 }
0x11ff   : > { %v6538_v10 = vadd.f32 %v8230_v25, %v6537_v44 }
0x1201   : > { %v6542_v43 = vsel %vm6541_vm9, %v8230_v25, %v6538_v10 }
0x1202   : > { %v6547_v9 = vsel %vm6544_vm10, %v6546_v2, %v6542_v43 }
0x1203   : > { %v6548_v33 = vmul.f32 %v12252_v57, %v6547_v9 }
0x1205   : > { %6556 = vst.msk [vmem:[%s12535_s13 + $0x38] sm:$0xff] %vm5588_vm5, %v6548_v33 }
0x1206 PF: > { %s12536_s1 = sld [smem:[#allocation20_spill]]  ;;  %p29_p3 = scmp.ge.s32.totalorder %s8647_s18, 13  }
0x1207   : > { %s12537_s15 = sld [smem:[#allocation21_spill]]  ;;  %s12538_s29 = smov %s8483_s30 }
0x1208   : > { %s12540_s16 = smov %s8647_s18  ;;  %31 = sbr.rel (!%p29_p3) target bundleno = 17 (0x11), region = 169 }
0x120c   : > { %s12539_s30 = smov %s12536_s1 }
0x120d   :  { %6568 = vsyncpa [#allocation5], 1 }
0x120e   :  { %6570 = vsyncpa [#allocation5 + $0x1], 1 }
0x120f   :  { %6571 = vsyncpa [#allocation7], 1 }
0x1210   :  { %6573 = vsyncpa [#allocation7 + $0x1], 1 }
0x1211   :  { %6574 = vsyncpa [#allocation10], 1 }
0x1212   :  { %6575 = vsyncpa [#allocation13], 1 }

</bundles_post_ra>
